<compile_context>
chip_gen: v6e
topology: v6e:2x2x1
jax: 0.10.0
libtpu: 0.0.40
codegen_flags: <defaults>
</compile_context>

<pallas_src>
import functools

import jax
import jax.numpy as jnp
from jax.experimental import pallas as pl
from jax.experimental.pallas import tpu as pltpu


LEAKY_SLOPE = 0.2


def _leaky(x, slope):
    return jnp.where(x >= 0, x, slope * x)


def _round_up(x, m):
    return pl.cdiv(x, m) * m


# ----------------------------------------------------------------------------
# Kernel 1: fused knn = pairwise -||xi - xj||^2 + iterative top-k selection.
# The (TI, N) distance tile lives only in VMEM; output is (TI, k) int32 indices.
# ----------------------------------------------------------------------------
def _knn_topk_kernel(xi_ref, xa_ref, o_ref, *, k, n_valid):
    xi = xi_ref[0]                                             # (TI, C)
    xa = xa_ref[0]                                             # (Rp, C)  full rows
    inner = jax.lax.dot_general(                               # (TI, Rp), no transpose
        xi, xa, (((1,), (1,)), ((), ())), preferred_element_type=jnp.float32)
    xif = xi.astype(jnp.float32)
    xaf = xa.astype(jnp.float32)
    si = jnp.sum(xif * xif, axis=-1, keepdims=True)            # (TI, 1)
    # column norms produced directly in (1, Rp) layout via a tiny M=1 matmul
    sa = jax.lax.dot_general(jnp.ones((1, xaf.shape[-1]), jnp.float32), xaf * xaf,
                             (((1,), (1,)), ((), ())),
                             preferred_element_type=jnp.float32)   # (1, Rp)
    d = 2.0 * inner - si - sa                                  # -||xi - xj||^2

    col = jax.lax.broadcasted_iota(jnp.int32, d.shape, 1)
    big = d.shape[1]
    d = jnp.where(col < n_valid, d, -jnp.inf)                  # mask padded columns

    out = jnp.zeros(o_ref.shape[1:], jnp.int32)                # (TI, k)
    tcol = jax.lax.broadcasted_iota(jnp.int32, out.shape, 1)
    for t in range(k):                                         # k is small & static
        m = jnp.max(d, axis=-1, keepdims=True)
        sel = jnp.min(jnp.where(d == m, col, big), axis=-1, keepdims=True)
        out = jnp.where(tcol == t, sel, out)
        d = jnp.where(col == sel, -jnp.inf, d)
    o_ref[0] = out


def knn_indices(feat, k, *, use_bf16, tile_rows=256):
    """feat:(B,N,C) -> (B,N,k) int32 neighbour indices (self included, as in ref)."""
    B, N, C = feat.shape
    x = feat.astype(jnp.bfloat16 if use_bf16 else jnp.float32)
    TI = N if N <= tile_rows else tile_rows
    Rp = _round_up(N, TI)
    if Rp != N:
        x = jnp.pad(x, ((0, 0), (0, Rp - N), (0, 0)))
    out = pl.pallas_call(
        functools.partial(_knn_topk_kernel, k=k, n_valid=N),
        out_shape=jax.ShapeDtypeStruct((B, Rp, k), jnp.int32),
        grid=(B, Rp // TI),
        in_specs=[pl.BlockSpec((1, TI, C), lambda b, i: (b, i, 0)),
                  pl.BlockSpec((1, Rp, C), lambda b, i: (b, 0, 0))],
        out_specs=pl.BlockSpec((1, TI, k), lambda b, i: (b, i, 0)),
        compiler_params=pltpu.CompilerParams(
            dimension_semantics=("parallel", "parallel")),
    )(x, x)
    return out[:, :N, :]


# ----------------------------------------------------------------------------
# Kernel 2: fused EdgeConv block
#   neigh:(k,TR,C), center:(TR,C) -> conv1(+bias+LReLU) [-> conv2(+bias+LReLU)] -> max_k
# Edge feature is implicit:  edge @ W1 = neigh @ W1_top + center @ W1_delta.
# Single batched matmul over all k neighbours (M = k*TR).
# ----------------------------------------------------------------------------
def _edgeconv_kernel(neigh_ref, center_ref, w1t_ref, w1d_ref, b1_ref, *rest,
                     slope, two_convs):
    if two_convs:
        w2_ref, b2_ref, o_ref = rest
    else:
        (o_ref,) = rest
    _, kk, tr, cc = neigh_ref.shape
    g = neigh_ref[0].reshape(kk * tr, cc)                       # (k*TR, C) bf16
    hc = jnp.dot(center_ref[0], w1d_ref[...],
                 preferred_element_type=jnp.float32) + b1_ref[...]   # (TR, 64)
    h = jnp.dot(g, w1t_ref[...], preferred_element_type=jnp.float32)  # (k*TR, 64)
    h = _leaky(h.reshape(kk, tr, -1) + hc[None], slope)
    if two_convs:
        h = jnp.dot(h.reshape(kk * tr, -1).astype(jnp.bfloat16), w2_ref[...],
                    preferred_element_type=jnp.float32) + b2_ref[...]
        h = _leaky(h, slope).reshape(kk, tr, -1)
    o_ref[0] = jnp.max(h, axis=0).astype(o_ref.dtype)           # max over k (VPU)


def edgeconv_block(feat, idx, p, *, two_convs, slope=LEAKY_SLOPE, row_cap=1024):
    """feat:(B,N,C), idx:(B,N,k) -> (B,N,64) bf16. Fused conv(+conv)+k-max."""
    B, N, C = feat.shape
    k = idx.shape[-1]
    featb = feat.astype(jnp.bfloat16)
    # TODO(synk): neighbour gather is a data-dependent row gather; done as an XLA
    #             gather (bf16, (B,k,N,C) layout) — an in-kernel DMA gather would
    #             need scalar-prefetched indices + manual per-row copies.
    idx_t = jnp.swapaxes(idx, 1, 2)                             # (B, k, N)
    neigh = jax.vmap(lambda fb, ib: fb[ib])(featb, idx_t)       # (B, k, N, C) bf16

    TR = row_cap if N > row_cap else _round_up(N, 8)
    Np = _round_up(N, TR)
    if Np != N:
        featb = jnp.pad(featb, ((0, 0), (0, Np - N), (0, 0)))
        neigh = jnp.pad(neigh, ((0, 0), (0, 0), (0, Np - N), (0, 0)))

    cout = p["b1"].shape[-1]
    ins = [neigh, featb, p["w1t"], p["w1d"], p["b1"]]
    in_specs = [
        pl.BlockSpec((1, k, TR, C), lambda b, n: (b, 0, n, 0)),
        pl.BlockSpec((1, TR, C), lambda b, n: (b, n, 0)),
        pl.BlockSpec(p["w1t"].shape, lambda b, n: (0, 0)),
        pl.BlockSpec(p["w1d"].shape, lambda b, n: (0, 0)),
        pl.BlockSpec(p["b1"].shape, lambda b, n: (0, 0)),
    ]
    if two_convs:
        ins += [p["w2"], p["b2"]]
        in_specs += [pl.BlockSpec(p["w2"].shape, lambda b, n: (0, 0)),
                     pl.BlockSpec(p["b2"].shape, lambda b, n: (0, 0))]

    out = pl.pallas_call(
        functools.partial(_edgeconv_kernel, slope=slope, two_convs=two_convs),
        out_shape=jax.ShapeDtypeStruct((B, Np, cout), jnp.bfloat16),
        grid=(B, Np // TR),
        in_specs=in_specs,
        out_specs=pl.BlockSpec((1, TR, cout), lambda b, n: (b, n, 0)),
        compiler_params=pltpu.CompilerParams(
            dimension_semantics=("parallel", "parallel")),
    )(*ins)
    return out[:, :N, :]


# ----------------------------------------------------------------------------
# Kernel 3: conv6 (x1|x2|x3 -> emb_dims via split weights) + global max over N,
# accumulated in VMEM; N reduction split 2-way so both v7x TCs get work.
# ----------------------------------------------------------------------------
def _conv6_gmax_kernel(x1_ref, x2_ref, x3_ref, wa_ref, wb_ref, wc_ref, b_ref,
                       o_ref, acc_ref, *, slope):
    @pl.when(pl.program_id(2) == 0)
    def _():
        acc_ref[...] = jnp.full_like(acc_ref, -jnp.inf)

    h = (jnp.dot(x1_ref[0], wa_ref[...], preferred_element_type=jnp.float32)
         + jnp.dot(x2_ref[0], wb_ref[...], preferred_element_type=jnp.float32)
         + jnp.dot(x3_ref[0], wc_ref[...], preferred_element_type=jnp.float32)
         + b_ref[...])
    h = _leaky(h, slope)                                        # (TN, E)
    acc_ref[...] = jnp.maximum(acc_ref[...], jnp.max(h, axis=0, keepdims=True))

    @pl.when(pl.program_id(2) == pl.num_programs(2) - 1)
    def _():
        o_ref[0] = acc_ref[...].astype(o_ref.dtype)


def conv6_global_max(x1, x2, x3, p, *, slope=LEAKY_SLOPE, n_cap=2048):
    """x1,x2,x3:(B,N,64) -> (B,E) global max of LeakyReLU(BN(conv6(cat)))."""
    B, N, C = x1.shape
    E = p["b"].shape[-1]
    TN = N if N <= n_cap else n_cap
    Np = _round_up(N, TN)
    if Np != N:  # edge-replicate so padded rows cannot change the max
        pad = ((0, 0), (0, Np - N), (0, 0))
        x1 = jnp.pad(x1, pad, mode="edge")
        x2 = jnp.pad(x2, pad, mode="edge")
        x3 = jnp.pad(x3, pad, mode="edge")
    chunks = Np // TN
    S = 2 if (chunks >= 2 and chunks % 2 == 0) else 1           # 2-way split for v7x
    CH = chunks // S
    xmap = lambda b, s, c: (b, s * CH + c, 0)
    wmap = lambda b, s, c: (0, 0)
    out = pl.pallas_call(
        functools.partial(_conv6_gmax_kernel, slope=slope),
        out_shape=jax.ShapeDtypeStruct((B, S, E), jnp.float32),
        grid=(B, S, CH),
        in_specs=[pl.BlockSpec((1, TN, C), xmap)] * 3 + [
            pl.BlockSpec(p["wa"].shape, wmap),
            pl.BlockSpec(p["wb"].shape, wmap),
            pl.BlockSpec(p["wc"].shape, wmap),
            pl.BlockSpec(p["b"].shape, wmap)],
        out_specs=pl.BlockSpec((1, 1, E), lambda b, s, c: (b, s, 0)),
        scratch_shapes=[pltpu.VMEM((1, E), jnp.float32)],
        compiler_params=pltpu.CompilerParams(
            dimension_semantics=("parallel", "parallel", "arbitrary")),
    )(x1, x2, x3, p["wa"], p["wb"], p["wc"], p["b"])
    return jnp.max(out, axis=1)                                 # (B, E) f32


# ----------------------------------------------------------------------------
# Kernel 4: fused classifier head (1216 -> 512 -> 256 -> 13, padded to 128 lanes).
# Global-feature contribution enters as a precomputed per-batch bias (hoisted);
# x1/x2/x3 enter via split weight slices (no 192/1216-wide concat in HBM).
# ----------------------------------------------------------------------------
def _classifier_kernel(x1_ref, x2_ref, x3_ref, hb_ref, w1a_ref, w1b_ref, w1c_ref,
                       w2_ref, b2_ref, w3_ref, o_ref, *, slope):
    h = (jnp.dot(x1_ref[0], w1a_ref[...], preferred_element_type=jnp.float32)
         + jnp.dot(x2_ref[0], w1b_ref[...], preferred_element_type=jnp.float32)
         + jnp.dot(x3_ref[0], w1c_ref[...], preferred_element_type=jnp.float32)
         + hb_ref[0])                                           # (TN, 512)
    h = _leaky(h, slope)
    h = jnp.dot(h.astype(jnp.bfloat16), w2_ref[...],
                preferred_element_type=jnp.float32) + b2_ref[...]
    h = _leaky(h, slope)                                        # (TN, 256)
    # TODO(synk): Dropout is identity (eval semantics).
    o_ref[0] = jnp.dot(h.astype(jnp.bfloat16), w3_ref[...],
                       preferred_element_type=jnp.float32).astype(o_ref.dtype)


def classifier_head(x1, x2, x3, hb, p, num_class, *, slope=LEAKY_SLOPE, n_cap=2048):
    """x1,x2,x3:(B,N,64), hb:(B,1,512) -> (B,N,num_class) f32 logits."""
    B, N, C = x1.shape
    cpad = p["w3"].shape[-1]                                    # 128: lane-dense output
    TN = N if N <= n_cap else n_cap
    Np = _round_up(N, TN)
    if Np != N:
        pad = ((0, 0), (0, Np - N), (0, 0))
        x1 = jnp.pad(x1, pad)
        x2 = jnp.pad(x2, pad)
        x3 = jnp.pad(x3, pad)
    wmap = lambda b, n: (0, 0)
    out = pl.pallas_call(
        functools.partial(_classifier_kernel, slope=slope),
        out_shape=jax.ShapeDtypeStruct((B, Np, cpad), jnp.bfloat16),
        grid=(B, Np // TN),
        in_specs=[pl.BlockSpec((1, TN, C), lambda b, n: (b, n, 0))] * 3 + [
            pl.BlockSpec((1, 1, hb.shape[-1]), lambda b, n: (b, 0, 0)),
            pl.BlockSpec(p["w1a"].shape, wmap),
            pl.BlockSpec(p["w1b"].shape, wmap),
            pl.BlockSpec(p["w1c"].shape, wmap),
            pl.BlockSpec(p["w2"].shape, wmap),
            pl.BlockSpec(p["b2"].shape, wmap),
            pl.BlockSpec(p["w3"].shape, wmap)],
        out_specs=pl.BlockSpec((1, TN, cpad), lambda b, n: (b, n, 0)),
        compiler_params=pltpu.CompilerParams(
            dimension_semantics=("parallel", "parallel")),
    )(x1, x2, x3, hb, p["w1a"], p["w1b"], p["w1c"], p["w2"], p["b2"], p["w3"])
    return out[:, :N, :num_class].astype(jnp.float32)


# ----------------------------------------------------------------------------
# Parameter initialization (deterministic, synthetic; BN folded, weights split)
# ----------------------------------------------------------------------------
def _folded_conv_bn(key, cin, cout):
    kw, kg, kb, km, kv = jax.random.split(key, 5)
    w = 0.05 * jax.random.normal(kw, (cin, cout), jnp.float32)
    gamma = 1.0 + 0.1 * jax.random.normal(kg, (cout,), jnp.float32)
    beta = 0.1 * jax.random.normal(kb, (cout,), jnp.float32)
    mean = 0.1 * jax.random.normal(km, (cout,), jnp.float32)
    var = 1.0 + 0.1 * jnp.abs(jax.random.normal(kv, (cout,), jnp.float32))
    scale = gamma / jnp.sqrt(var + 1e-5)
    return w * scale[None, :], beta - mean * scale              # scale folded into weight


def init_params(key, num_channel=9, emb_dims=1024, num_class=13):
    keys = jax.random.split(key, 9)
    bf = jnp.bfloat16

    def edge_block(k_a, k_b, cin, two_convs):
        wf, b = _folded_conv_bn(k_a, 2 * cin, 64)
        # edge @ W = neigh @ W[:cin] + center @ (W[cin:] - W[:cin])
        blk = {"w1t": wf[:cin].astype(bf),
               "w1d": (wf[cin:] - wf[:cin]).astype(bf),
               "b1": b.reshape(1, -1)}
        if two_convs:
            w2, b2 = _folded_conv_bn(k_b, 64, 64)
            blk["w2"] = w2.astype(bf)
            blk["b2"] = b2.reshape(1, -1)
        return blk

    p = {"ec1": edge_block(keys[0], keys[1], num_channel, True),
         "ec2": edge_block(keys[2], keys[3], 64, True),
         "ec3": edge_block(keys[4], keys[4], 64, False)}

    w6, b6 = _folded_conv_bn(keys[5], 192, emb_dims)
    p["conv6"] = {"wa": w6[0:64].astype(bf), "wb": w6[64:128].astype(bf),
                  "wc": w6[128:192].astype(bf), "b": b6.reshape(1, -1)}

    w1, b1 = _folded_conv_bn(keys[6], emb_dims + 192, 512)      # 1216 -> 512
    w2, b2 = _folded_conv_bn(keys[7], 512, 256)
    w3 = 0.05 * jax.random.normal(keys[8], (256, num_class), jnp.float32)
    cpad = max(128, _round_up(num_class, 128))                  # lane-dense padded logits
    w3p = jnp.zeros((256, cpad), jnp.float32).at[:, :num_class].set(w3)
    p["cls"] = {"w1g": w1[:emb_dims],                           # f32: used once per batch
                "b1": b1.reshape(1, -1),
                "w1a": w1[emb_dims:emb_dims + 64].astype(bf),   # x1 slice
                "w1b": w1[emb_dims + 64:emb_dims + 128].astype(bf),   # x2 slice
                "w1c": w1[emb_dims + 128:emb_dims + 192].astype(bf),  # x3 slice
                "w2": w2.astype(bf), "b2": b2.reshape(1, -1),
                "w3": w3p.astype(bf)}
    return p


# ----------------------------------------------------------------------------
# Forward pass (mirrors get_model.forward, eval semantics)
# ----------------------------------------------------------------------------
def dgcnn_semseg_forward(x, params, k, num_class=13):
    """x: (B, 9, N) channel-first (as in PyTorch) -> (B, N, num_class)."""
    B, C0, N = x.shape
    xc = jnp.transpose(x, (0, 2, 1)).astype(jnp.float32)        # (B, N, 9)

    # EdgeConv block 1 (knn on xyz channels 6:9, dim9=True; f32 distances)
    idx = knn_indices(xc[..., 6:9], k, use_bf16=False)
    x1 = edgeconv_block(xc, idx, params["ec1"], two_convs=True)       # (B,N,64)

    # EdgeConv block 2 (feature-space knn in bf16)
    idx = knn_indices(x1, k, use_bf16=True)
    x2 = edgeconv_block(x1, idx, params["ec2"], two_convs=True)       # (B,N,64)

    # EdgeConv block 3 (single conv)
    idx = knn_indices(x2, k, use_bf16=True)
    x3 = edgeconv_block(x2, idx, params["ec3"], two_convs=False)      # (B,N,64)

    # conv6 + global max (no (B,N,192) concat; weights are split per input)
    gfeat = conv6_global_max(x1, x2, x3, params["conv6"])             # (B, emb) f32
    # hoisted global-feature bias for the classifier: (B,1,512), once per batch
    hb = jnp.dot(gfeat, params["cls"]["w1g"].astype(jnp.float32)) + params["cls"]["b1"]
    return classifier_head(x1, x2, x3, hb[:, None, :], params["cls"], num_class)


# ----------------------------------------------------------------------------
# Main
# ----------------------------------------------------------------------------
if __name__ == "__main__":
    B, C, N = 2, 9, 32          # num_channel=9 (module default)
    k = 4                       # args.k
    emb_dims = 1024             # fixed by the hard-coded 1216 = emb_dims + 192
    num_class = 13

    key = jax.random.PRNGKey(0)
    kx, kp = jax.random.split(key)
    x = jax.random.normal(kx, (B, C, N), jnp.float32)
    params = init_params(kp, num_channel=C, emb_dims=emb_dims, num_class=num_class)

    fwd = jax.jit(functools.partial(dgcnn_semseg_forward, k=k, num_class=num_class))
    out = jax.block_until_ready(fwd(x, params))
    assert out.shape == (B, N, num_class), out.shape
    assert bool(jnp.all(jnp.isfinite(out)))
    print("KERNEL_OK")
</pallas_src>

<mosaic_0001>
module attributes {stable_mosaic.version = 11 : i64} {
  func.func @_knn_topk_kernel(%arg0: i32, %arg1: i32, %arg2: memref<1x32x3xf32, #tpu.memory_space<vmem>>, %arg3: memref<1x32x3xf32, #tpu.memory_space<vmem>>, %arg4: memref<1x32x4xi32, #tpu.memory_space<vmem>>) attributes {dimension_semantics = [#tpu.dimension_semantics<parallel>, #tpu.dimension_semantics<parallel>], iteration_bounds = array<i64: 2, 1>, scalar_prefetch = 0 : i64, scratch_operands = 0 : i64, tpu.core_type = #tpu.core_type<tc>, window_params = [{transform_indices = @transform_0, window_bounds = array<i64: 1, 32, 3>}, {transform_indices = @transform_1, window_bounds = array<i64: 1, 32, 3>}, {transform_indices = @transform_2, window_bounds = array<i64: 1, 32, 4>}]} {
    %c0 = arith.constant 0 : index
    %c0_0 = arith.constant 0 : index
    %c0_1 = arith.constant 0 : index
    %0 = vector.load %arg2[%c0, %c0_0, %c0_1] : memref<1x32x3xf32, #tpu.memory_space<vmem>>, vector<1x32x3xf32>
    %1 = vector.shape_cast %0 : vector<1x32x3xf32> to vector<32x3xf32>
    %c0_2 = arith.constant 0 : index
    %c0_3 = arith.constant 0 : index
    %c0_4 = arith.constant 0 : index
    %2 = vector.load %arg3[%c0_2, %c0_3, %c0_4] : memref<1x32x3xf32, #tpu.memory_space<vmem>>, vector<1x32x3xf32>
    %3 = vector.shape_cast %2 : vector<1x32x3xf32> to vector<32x3xf32>
    %cst = arith.constant dense<0.000000e+00> : vector<32x32xf32>
    %4 = tpu.matmul %1, %3, %cst {dimension_numbers = #tpu.dot_dimension_numbers<[1], [1], [0], [0], [0, 0, 1, 0], [], []>} : vector<32x3xf32>, vector<32x3xf32>, vector<32x32xf32> -> vector<32x32xf32>
    %5 = arith.mulf %1, %1 : vector<32x3xf32>
    %cst_5 = arith.constant dense<0.000000e+00> : vector<32xf32>
    %6 = vector.multi_reduction <add>, %5, %cst_5 [1] : vector<32x3xf32> to vector<32xf32>
    %7 = vector.shape_cast %6 : vector<32xf32> to vector<32x1xf32>
    %cst_6 = arith.constant 1.000000e+00 : f32
    %8 = vector.broadcast %cst_6 : f32 to vector<1x3xf32>
    %9 = arith.mulf %3, %3 : vector<32x3xf32>
    %cst_7 = arith.constant dense<0.000000e+00> : vector<1x32xf32>
    %10 = tpu.matmul %8, %9, %cst_7 {dimension_numbers = #tpu.dot_dimension_numbers<[1], [1], [0], [0], [0, 0, 1, 0], [], []>} : vector<1x3xf32>, vector<32x3xf32>, vector<1x32xf32> -> vector<1x32xf32>
    %cst_8 = arith.constant 2.000000e+00 : f32
    %11 = vector.broadcast %cst_8 : f32 to vector<32x32xf32>
    %12 = arith.mulf %11, %4 : vector<32x32xf32>
    %13 = vector.broadcast %7 : vector<32x1xf32> to vector<32x32xf32>
    %14 = arith.subf %12, %13 : vector<32x32xf32>
    %15 = vector.broadcast %10 : vector<1x32xf32> to vector<32x32xf32>
    %16 = arith.subf %14, %15 : vector<32x32xf32>
    %17 = tpu.iota {dimensions = array<i32: 1>} : vector<32x32xi32>
    %c32_i32 = arith.constant 32 : i32
    %18 = vector.broadcast %c32_i32 : i32 to vector<32x32xi32>
    %19 = arith.cmpi slt, %17, %18 : vector<32x32xi32>
    %cst_9 = arith.constant 0xFF800000 : f32
    %20 = vector.broadcast %cst_9 : f32 to vector<32x32xf32>
    %21 = arith.select %19, %16, %20 : vector<32x32xi1>, vector<32x32xf32>
    %c0_i32 = arith.constant 0 : i32
    %22 = vector.broadcast %c0_i32 : i32 to vector<32x4xi32>
    %23 = tpu.iota {dimensions = array<i32: 1>} : vector<32x4xi32>
    %cst_10 = arith.constant dense<0xFF800000> : vector<32xf32>
    %24 = vector.multi_reduction <maximumf>, %21, %cst_10 [1] : vector<32x32xf32> to vector<32xf32>
    %25 = vector.shape_cast %24 : vector<32xf32> to vector<32x1xf32>
    %26 = vector.broadcast %25 : vector<32x1xf32> to vector<32x32xf32>
    %27 = arith.cmpf oeq, %21, %26 : vector<32x32xf32>
    %c32_i32_11 = arith.constant 32 : i32
    %28 = vector.broadcast %c32_i32_11 : i32 to vector<32x32xi32>
    %29 = arith.select %27, %17, %28 : vector<32x32xi1>, vector<32x32xi32>
    %cst_12 = arith.constant dense<2147483647> : vector<32xi32>
    %30 = vector.multi_reduction <minsi>, %29, %cst_12 [1] : vector<32x32xi32> to vector<32xi32>
    %31 = vector.shape_cast %30 : vector<32xi32> to vector<32x1xi32>
    %c0_i32_13 = arith.constant 0 : i32
    %32 = vector.broadcast %c0_i32_13 : i32 to vector<32x4xi32>
    %33 = arith.cmpi eq, %23, %32 : vector<32x4xi32>
    %34 = vector.shape_cast %31 : vector<32x1xi32> to vector<32x1xi32>
    %35 = vector.broadcast %34 : vector<32x1xi32> to vector<32x4xi32>
    %36 = arith.select %33, %35, %22 : vector<32x4xi1>, vector<32x4xi32>
    %37 = vector.broadcast %31 : vector<32x1xi32> to vector<32x32xi32>
    %38 = arith.cmpi eq, %17, %37 : vector<32x32xi32>
    %cst_14 = arith.constant 0xFF800000 : f32
    %39 = vector.broadcast %cst_14 : f32 to vector<32x32xf32>
    %40 = arith.select %38, %39, %21 : vector<32x32xi1>, vector<32x32xf32>
    %cst_15 = arith.constant dense<0xFF800000> : vector<32xf32>
    %41 = vector.multi_reduction <maximumf>, %40, %cst_15 [1] : vector<32x32xf32> to vector<32xf32>
    %42 = vector.shape_cast %41 : vector<32xf32> to vector<32x1xf32>
    %43 = vector.broadcast %42 : vector<32x1xf32> to vector<32x32xf32>
    %44 = arith.cmpf oeq, %40, %43 : vector<32x32xf32>
    %c32_i32_16 = arith.constant 32 : i32
    %45 = vector.broadcast %c32_i32_16 : i32 to vector<32x32xi32>
    %46 = arith.select %44, %17, %45 : vector<32x32xi1>, vector<32x32xi32>
    %cst_17 = arith.constant dense<2147483647> : vector<32xi32>
    %47 = vector.multi_reduction <minsi>, %46, %cst_17 [1] : vector<32x32xi32> to vector<32xi32>
    %48 = vector.shape_cast %47 : vector<32xi32> to vector<32x1xi32>
    %c1_i32 = arith.constant 1 : i32
    %49 = vector.broadcast %c1_i32 : i32 to vector<32x4xi32>
    %50 = arith.cmpi eq, %23, %49 : vector<32x4xi32>
    %51 = vector.shape_cast %48 : vector<32x1xi32> to vector<32x1xi32>
    %52 = vector.broadcast %51 : vector<32x1xi32> to vector<32x4xi32>
    %53 = arith.select %50, %52, %36 : vector<32x4xi1>, vector<32x4xi32>
    %54 = vector.broadcast %48 : vector<32x1xi32> to vector<32x32xi32>
    %55 = arith.cmpi eq, %17, %54 : vector<32x32xi32>
    %cst_18 = arith.constant 0xFF800000 : f32
    %56 = vector.broadcast %cst_18 : f32 to vector<32x32xf32>
    %57 = arith.select %55, %56, %40 : vector<32x32xi1>, vector<32x32xf32>
    %cst_19 = arith.constant dense<0xFF800000> : vector<32xf32>
    %58 = vector.multi_reduction <maximumf>, %57, %cst_19 [1] : vector<32x32xf32> to vector<32xf32>
    %59 = vector.shape_cast %58 : vector<32xf32> to vector<32x1xf32>
    %60 = vector.broadcast %59 : vector<32x1xf32> to vector<32x32xf32>
    %61 = arith.cmpf oeq, %57, %60 : vector<32x32xf32>
    %c32_i32_20 = arith.constant 32 : i32
    %62 = vector.broadcast %c32_i32_20 : i32 to vector<32x32xi32>
    %63 = arith.select %61, %17, %62 : vector<32x32xi1>, vector<32x32xi32>
    %cst_21 = arith.constant dense<2147483647> : vector<32xi32>
    %64 = vector.multi_reduction <minsi>, %63, %cst_21 [1] : vector<32x32xi32> to vector<32xi32>
    %65 = vector.shape_cast %64 : vector<32xi32> to vector<32x1xi32>
    %c2_i32 = arith.constant 2 : i32
    %66 = vector.broadcast %c2_i32 : i32 to vector<32x4xi32>
    %67 = arith.cmpi eq, %23, %66 : vector<32x4xi32>
    %68 = vector.shape_cast %65 : vector<32x1xi32> to vector<32x1xi32>
    %69 = vector.broadcast %68 : vector<32x1xi32> to vector<32x4xi32>
    %70 = arith.select %67, %69, %53 : vector<32x4xi1>, vector<32x4xi32>
    %71 = vector.broadcast %65 : vector<32x1xi32> to vector<32x32xi32>
    %72 = arith.cmpi eq, %17, %71 : vector<32x32xi32>
    %cst_22 = arith.constant 0xFF800000 : f32
    %73 = vector.broadcast %cst_22 : f32 to vector<32x32xf32>
    %74 = arith.select %72, %73, %57 : vector<32x32xi1>, vector<32x32xf32>
    %cst_23 = arith.constant dense<0xFF800000> : vector<32xf32>
    %75 = vector.multi_reduction <maximumf>, %74, %cst_23 [1] : vector<32x32xf32> to vector<32xf32>
    %76 = vector.shape_cast %75 : vector<32xf32> to vector<32x1xf32>
    %77 = vector.broadcast %76 : vector<32x1xf32> to vector<32x32xf32>
    %78 = arith.cmpf oeq, %74, %77 : vector<32x32xf32>
    %c32_i32_24 = arith.constant 32 : i32
    %79 = vector.broadcast %c32_i32_24 : i32 to vector<32x32xi32>
    %80 = arith.select %78, %17, %79 : vector<32x32xi1>, vector<32x32xi32>
    %cst_25 = arith.constant dense<2147483647> : vector<32xi32>
    %81 = vector.multi_reduction <minsi>, %80, %cst_25 [1] : vector<32x32xi32> to vector<32xi32>
    %82 = vector.shape_cast %81 : vector<32xi32> to vector<32x1xi32>
    %c3_i32 = arith.constant 3 : i32
    %83 = vector.broadcast %c3_i32 : i32 to vector<32x4xi32>
    %84 = arith.cmpi eq, %23, %83 : vector<32x4xi32>
    %85 = vector.shape_cast %82 : vector<32x1xi32> to vector<32x1xi32>
    %86 = vector.broadcast %85 : vector<32x1xi32> to vector<32x4xi32>
    %87 = arith.select %84, %86, %70 : vector<32x4xi1>, vector<32x4xi32>
    %c0_26 = arith.constant 0 : index
    %c0_27 = arith.constant 0 : index
    %c0_28 = arith.constant 0 : index
    %88 = vector.load %arg4[%c0_26, %c0_27, %c0_28] : memref<1x32x4xi32, #tpu.memory_space<vmem>>, vector<1x32x4xi32>
    %89 = vector.shape_cast %88 : vector<1x32x4xi32> to vector<32x4xi32>
    %90 = vector.shape_cast %87 : vector<32x4xi32> to vector<1x32x4xi32>
    tpu.vector_store %arg4[%c0_26, %c0_27, %c0_28], %90 {strides = array<i32>} : memref<1x32x4xi32, #tpu.memory_space<vmem>>, vector<1x32x4xi32>,
    return
  }
  func.func @transform_0(%arg0: i32, %arg1: i32) -> (i32, i32, i32) {
    %c0_i32 = arith.constant 0 : i32
    %c0_i32_0 = arith.constant 0 : i32
    return %arg0, %arg1, %c0_i32 : i32, i32, i32
  }
  func.func @transform_1(%arg0: i32, %arg1: i32) -> (i32, i32, i32) {
    %c0_i32 = arith.constant 0 : i32
    %c0_i32_0 = arith.constant 0 : i32
    %c0_i32_1 = arith.constant 0 : i32
    return %arg0, %c0_i32, %c0_i32_0 : i32, i32, i32
  }
  func.func @transform_2(%arg0: i32, %arg1: i32) -> (i32, i32, i32) {
    %c0_i32 = arith.constant 0 : i32
    %c0_i32_0 = arith.constant 0 : i32
    return %arg0, %arg1, %c0_i32 : i32, i32, i32
  }
}

module attributes {stable_mosaic.version = 11 : i64} {
  func.func @_edgeconv_kernel(%arg0: i32, %arg1: i32, %arg2: memref<1x4x32x9xbf16, #tpu.memory_space<vmem>>, %arg3: memref<1x32x9xbf16, #tpu.memory_space<vmem>>, %arg4: memref<9x64xbf16, #tpu.memory_space<vmem>>, %arg5: memref<9x64xbf16, #tpu.memory_space<vmem>>, %arg6: memref<1x64xf32, #tpu.memory_space<vmem>>, %arg7: memref<64x64xbf16, #tpu.memory_space<vmem>>, %arg8: memref<1x64xf32, #tpu.memory_space<vmem>>, %arg9: memref<1x32x64xbf16, #tpu.memory_space<vmem>>) attributes {dimension_semantics = [#tpu.dimension_semantics<parallel>, #tpu.dimension_semantics<parallel>], iteration_bounds = array<i64: 2, 1>, scalar_prefetch = 0 : i64, scratch_operands = 0 : i64, tpu.core_type = #tpu.core_type<tc>, window_params = [{transform_indices = @transform_0, window_bounds = array<i64: 1, 4, 32, 9>}, {transform_indices = @transform_1, window_bounds = array<i64: 1, 32, 9>}, {pipeline_mode = #tpu.pipeline_mode<synchronous>, transform_indices = @transform_2, window_bounds = array<i64: 9, 64>}, {pipeline_mode = #tpu.pipeline_mode<synchronous>, transform_indices = @transform_3, window_bounds = array<i64: 9, 64>}, {pipeline_mode = #tpu.pipeline_mode<synchronous>, transform_indices = @transform_4, window_bounds = array<i64: 1, 64>}, {pipeline_mode = #tpu.pipeline_mode<synchronous>, transform_indices = @transform_5, window_bounds = array<i64: 64, 64>}, {pipeline_mode = #tpu.pipeline_mode<synchronous>, transform_indices = @transform_6, window_bounds = array<i64: 1, 64>}, {transform_indices = @transform_7, window_bounds = array<i64: 1, 32, 64>}]} {
    %c0 = arith.constant 0 : index
    %c0_0 = arith.constant 0 : index
    %c0_1 = arith.constant 0 : index
    %c0_2 = arith.constant 0 : index
    %0 = vector.load %arg2[%c0, %c0_0, %c0_1, %c0_2] : memref<1x4x32x9xbf16, #tpu.memory_space<vmem>>, vector<1x4x32x9xbf16>
    %1 = vector.shape_cast %0 : vector<1x4x32x9xbf16> to vector<4x32x9xbf16>
    %2 = vector.shape_cast %1 : vector<4x32x9xbf16> to vector<128x9xbf16>
    %c0_3 = arith.constant 0 : index
    %c0_4 = arith.constant 0 : index
    %c0_5 = arith.constant 0 : index
    %3 = vector.load %arg3[%c0_3, %c0_4, %c0_5] : memref<1x32x9xbf16, #tpu.memory_space<vmem>>, vector<1x32x9xbf16>
    %4 = vector.shape_cast %3 : vector<1x32x9xbf16> to vector<32x9xbf16>
    %c0_6 = arith.constant 0 : index
    %c0_7 = arith.constant 0 : index
    %5 = vector.load %arg5[%c0_6, %c0_7] : memref<9x64xbf16, #tpu.memory_space<vmem>>, vector<9x64xbf16>
    %cst = arith.constant dense<0.000000e+00> : vector<32x64xf32>
    %6 = tpu.matmul %4, %5, %cst {dimension_numbers = #tpu.dot_dimension_numbers<[1], [0], [0], [1], [0, 0, 1, 1], [], []>} : vector<32x9xbf16>, vector<9x64xbf16>, vector<32x64xf32> -> vector<32x64xf32>
    %c0_8 = arith.constant 0 : index
    %c0_9 = arith.constant 0 : index
    %7 = vector.load %arg6[%c0_8, %c0_9] : memref<1x64xf32, #tpu.memory_space<vmem>>, vector<1x64xf32>
    %8 = vector.broadcast %7 : vector<1x64xf32> to vector<32x64xf32>
    %9 = arith.addf %6, %8 : vector<32x64xf32>
    %c0_10 = arith.constant 0 : index
    %c0_11 = arith.constant 0 : index
    %10 = vector.load %arg4[%c0_10, %c0_11] : memref<9x64xbf16, #tpu.memory_space<vmem>>, vector<9x64xbf16>
    %cst_12 = arith.constant dense<0.000000e+00> : vector<128x64xf32>
    %11 = tpu.matmul %2, %10, %cst_12 {dimension_numbers = #tpu.dot_dimension_numbers<[1], [0], [0], [1], [0, 0, 1, 1], [], []>} : vector<128x9xbf16>, vector<9x64xbf16>, vector<128x64xf32> -> vector<128x64xf32>
    %12 = vector.shape_cast %11 : vector<128x64xf32> to vector<4x32x64xf32>
    %13 = vector.shape_cast %9 : vector<32x64xf32> to vector<1x32x64xf32>
    %14 = vector.broadcast %13 : vector<1x32x64xf32> to vector<4x32x64xf32>
    %15 = arith.addf %12, %14 : vector<4x32x64xf32>
    %cst_13 = arith.constant 0.000000e+00 : f32
    %16 = vector.broadcast %cst_13 : f32 to vector<4x32x64xf32>
    %17 = arith.cmpf oge, %15, %16 : vector<4x32x64xf32>
    %cst_14 = arith.constant 2.000000e-01 : f32
    %18 = vector.broadcast %cst_14 : f32 to vector<4x32x64xf32>
    %19 = arith.mulf %18, %15 : vector<4x32x64xf32>
    %20 = arith.select %17, %15, %19 : vector<4x32x64xi1>, vector<4x32x64xf32>
    %21 = vector.shape_cast %20 : vector<4x32x64xf32> to vector<128x64xf32>
    %22 = arith.truncf %21 : vector<128x64xf32> to vector<128x64xbf16>
    %c0_15 = arith.constant 0 : index
    %c0_16 = arith.constant 0 : index
    %23 = vector.load %arg7[%c0_15, %c0_16] : memref<64x64xbf16, #tpu.memory_space<vmem>>, vector<64x64xbf16>
    %cst_17 = arith.constant dense<0.000000e+00> : vector<128x64xf32>
    %24 = tpu.matmul %22, %23, %cst_17 {dimension_numbers = #tpu.dot_dimension_numbers<[1], [0], [0], [1], [0, 0, 1, 1], [], []>} : vector<128x64xbf16>, vector<64x64xbf16>, vector<128x64xf32> -> vector<128x64xf32>
    %c0_18 = arith.constant 0 : index
    %c0_19 = arith.constant 0 : index
    %25 = vector.load %arg8[%c0_18, %c0_19] : memref<1x64xf32, #tpu.memory_space<vmem>>, vector<1x64xf32>
    %26 = vector.broadcast %25 : vector<1x64xf32> to vector<128x64xf32>
    %27 = arith.addf %24, %26 : vector<128x64xf32>
    %cst_20 = arith.constant 0.000000e+00 : f32
    %28 = vector.broadcast %cst_20 : f32 to vector<128x64xf32>
    %29 = arith.cmpf oge, %27, %28 : vector<128x64xf32>
    %cst_21 = arith.constant 2.000000e-01 : f32
    %30 = vector.broadcast %cst_21 : f32 to vector<128x64xf32>
    %31 = arith.mulf %30, %27 : vector<128x64xf32>
    %32 = arith.select %29, %27, %31 : vector<128x64xi1>, vector<128x64xf32>
    %33 = vector.shape_cast %32 : vector<128x64xf32> to vector<4x32x64xf32>
    %cst_22 = arith.constant dense<0xFF800000> : vector<32x64xf32>
    %34 = vector.multi_reduction <maximumf>, %33, %cst_22 [0] : vector<4x32x64xf32> to vector<32x64xf32>
    %35 = arith.truncf %34 : vector<32x64xf32> to vector<32x64xbf16>
    %c0_23 = arith.constant 0 : index
    %c0_24 = arith.constant 0 : index
    %c0_25 = arith.constant 0 : index
    %36 = vector.load %arg9[%c0_23, %c0_24, %c0_25] : memref<1x32x64xbf16, #tpu.memory_space<vmem>>, vector<1x32x64xbf16>
    %37 = vector.shape_cast %36 : vector<1x32x64xbf16> to vector<32x64xbf16>
    %38 = vector.shape_cast %35 : vector<32x64xbf16> to vector<1x32x64xbf16>
    tpu.vector_store %arg9[%c0_23, %c0_24, %c0_25], %38 {strides = array<i32>} : memref<1x32x64xbf16, #tpu.memory_space<vmem>>, vector<1x32x64xbf16>,
    return
  }
  func.func @transform_0(%arg0: i32, %arg1: i32) -> (i32, i32, i32, i32) {
    %c0_i32 = arith.constant 0 : i32
    %c0_i32_0 = arith.constant 0 : i32
    %c0_i32_1 = arith.constant 0 : i32
    return %arg0, %c0_i32, %arg1, %c0_i32_0 : i32, i32, i32, i32
  }
  func.func @transform_1(%arg0: i32, %arg1: i32) -> (i32, i32, i32) {
    %c0_i32 = arith.constant 0 : i32
    %c0_i32_0 = arith.constant 0 : i32
    return %arg0, %arg1, %c0_i32 : i32, i32, i32
  }
  func.func @transform_2(%arg0: i32, %arg1: i32) -> (i32, i32) {
    %c0_i32 = arith.constant 0 : i32
    %c0_i32_0 = arith.constant 0 : i32
    %c0_i32_1 = arith.constant 0 : i32
    return %c0_i32, %c0_i32_0 : i32, i32
  }
  func.func @transform_3(%arg0: i32, %arg1: i32) -> (i32, i32) {
    %c0_i32 = arith.constant 0 : i32
    %c0_i32_0 = arith.constant 0 : i32
    %c0_i32_1 = arith.constant 0 : i32
    return %c0_i32, %c0_i32_0 : i32, i32
  }
  func.func @transform_4(%arg0: i32, %arg1: i32) -> (i32, i32) {
    %c0_i32 = arith.constant 0 : i32
    %c0_i32_0 = arith.constant 0 : i32
    %c0_i32_1 = arith.constant 0 : i32
    return %c0_i32, %c0_i32_0 : i32, i32
  }
  func.func @transform_5(%arg0: i32, %arg1: i32) -> (i32, i32) {
    %c0_i32 = arith.constant 0 : i32
    %c0_i32_0 = arith.constant 0 : i32
    %c0_i32_1 = arith.constant 0 : i32
    return %c0_i32, %c0_i32_0 : i32, i32
  }
  func.func @transform_6(%arg0: i32, %arg1: i32) -> (i32, i32) {
    %c0_i32 = arith.constant 0 : i32
    %c0_i32_0 = arith.constant 0 : i32
    %c0_i32_1 = arith.constant 0 : i32
    return %c0_i32, %c0_i32_0 : i32, i32
  }
  func.func @transform_7(%arg0: i32, %arg1: i32) -> (i32, i32, i32) {
    %c0_i32 = arith.constant 0 : i32
    %c0_i32_0 = arith.constant 0 : i32
    return %arg0, %arg1, %c0_i32 : i32, i32, i32
  }
}

module attributes {stable_mosaic.version = 11 : i64} {
  func.func @_knn_topk_kernel(%arg0: i32, %arg1: i32, %arg2: memref<1x32x64xbf16, #tpu.memory_space<vmem>>, %arg3: memref<1x32x64xbf16, #tpu.memory_space<vmem>>, %arg4: memref<1x32x4xi32, #tpu.memory_space<vmem>>) attributes {dimension_semantics = [#tpu.dimension_semantics<parallel>, #tpu.dimension_semantics<parallel>], iteration_bounds = array<i64: 2, 1>, scalar_prefetch = 0 : i64, scratch_operands = 0 : i64, tpu.core_type = #tpu.core_type<tc>, window_params = [{transform_indices = @transform_0, window_bounds = array<i64: 1, 32, 64>}, {transform_indices = @transform_1, window_bounds = array<i64: 1, 32, 64>}, {transform_indices = @transform_2, window_bounds = array<i64: 1, 32, 4>}]} {
    %c0 = arith.constant 0 : index
    %c0_0 = arith.constant 0 : index
    %c0_1 = arith.constant 0 : index
    %0 = vector.load %arg2[%c0, %c0_0, %c0_1] : memref<1x32x64xbf16, #tpu.memory_space<vmem>>, vector<1x32x64xbf16>
    %1 = vector.shape_cast %0 : vector<1x32x64xbf16> to vector<32x64xbf16>
    %c0_2 = arith.constant 0 : index
    %c0_3 = arith.constant 0 : index
    %c0_4 = arith.constant 0 : index
    %2 = vector.load %arg3[%c0_2, %c0_3, %c0_4] : memref<1x32x64xbf16, #tpu.memory_space<vmem>>, vector<1x32x64xbf16>
    %3 = vector.shape_cast %2 : vector<1x32x64xbf16> to vector<32x64xbf16>
    %cst = arith.constant dense<0.000000e+00> : vector<32x32xf32>
    %4 = tpu.matmul %1, %3, %cst {dimension_numbers = #tpu.dot_dimension_numbers<[1], [1], [0], [0], [0, 0, 1, 0], [], []>} : vector<32x64xbf16>, vector<32x64xbf16>, vector<32x32xf32> -> vector<32x32xf32>
    %5 = arith.extf %1 : vector<32x64xbf16> to vector<32x64xf32>
    %6 = arith.extf %3 : vector<32x64xbf16> to vector<32x64xf32>
    %7 = arith.mulf %5, %5 : vector<32x64xf32>
    %cst_5 = arith.constant dense<0.000000e+00> : vector<32xf32>
    %8 = vector.multi_reduction <add>, %7, %cst_5 [1] : vector<32x64xf32> to vector<32xf32>
    %9 = vector.shape_cast %8 : vector<32xf32> to vector<32x1xf32>
    %cst_6 = arith.constant 1.000000e+00 : f32
    %10 = vector.broadcast %cst_6 : f32 to vector<1x64xf32>
    %11 = arith.mulf %6, %6 : vector<32x64xf32>
    %cst_7 = arith.constant dense<0.000000e+00> : vector<1x32xf32>
    %12 = tpu.matmul %10, %11, %cst_7 {dimension_numbers = #tpu.dot_dimension_numbers<[1], [1], [0], [0], [0, 0, 1, 0], [], []>} : vector<1x64xf32>, vector<32x64xf32>, vector<1x32xf32> -> vector<1x32xf32>
    %cst_8 = arith.constant 2.000000e+00 : f32
    %13 = vector.broadcast %cst_8 : f32 to vector<32x32xf32>
    %14 = arith.mulf %13, %4 : vector<32x32xf32>
    %15 = vector.broadcast %9 : vector<32x1xf32> to vector<32x32xf32>
    %16 = arith.subf %14, %15 : vector<32x32xf32>
    %17 = vector.broadcast %12 : vector<1x32xf32> to vector<32x32xf32>
    %18 = arith.subf %16, %17 : vector<32x32xf32>
    %19 = tpu.iota {dimensions = array<i32: 1>} : vector<32x32xi32>
    %c32_i32 = arith.constant 32 : i32
    %20 = vector.broadcast %c32_i32 : i32 to vector<32x32xi32>
    %21 = arith.cmpi slt, %19, %20 : vector<32x32xi32>
    %cst_9 = arith.constant 0xFF800000 : f32
    %22 = vector.broadcast %cst_9 : f32 to vector<32x32xf32>
    %23 = arith.select %21, %18, %22 : vector<32x32xi1>, vector<32x32xf32>
    %c0_i32 = arith.constant 0 : i32
    %24 = vector.broadcast %c0_i32 : i32 to vector<32x4xi32>
    %25 = tpu.iota {dimensions = array<i32: 1>} : vector<32x4xi32>
    %cst_10 = arith.constant dense<0xFF800000> : vector<32xf32>
    %26 = vector.multi_reduction <maximumf>, %23, %cst_10 [1] : vector<32x32xf32> to vector<32xf32>
    %27 = vector.shape_cast %26 : vector<32xf32> to vector<32x1xf32>
    %28 = vector.broadcast %27 : vector<32x1xf32> to vector<32x32xf32>
    %29 = arith.cmpf oeq, %23, %28 : vector<32x32xf32>
    %c32_i32_11 = arith.constant 32 : i32
    %30 = vector.broadcast %c32_i32_11 : i32 to vector<32x32xi32>
    %31 = arith.select %29, %19, %30 : vector<32x32xi1>, vector<32x32xi32>
    %cst_12 = arith.constant dense<2147483647> : vector<32xi32>
    %32 = vector.multi_reduction <minsi>, %31, %cst_12 [1] : vector<32x32xi32> to vector<32xi32>
    %33 = vector.shape_cast %32 : vector<32xi32> to vector<32x1xi32>
    %c0_i32_13 = arith.constant 0 : i32
    %34 = vector.broadcast %c0_i32_13 : i32 to vector<32x4xi32>
    %35 = arith.cmpi eq, %25, %34 : vector<32x4xi32>
    %36 = vector.shape_cast %33 : vector<32x1xi32> to vector<32x1xi32>
    %37 = vector.broadcast %36 : vector<32x1xi32> to vector<32x4xi32>
    %38 = arith.select %35, %37, %24 : vector<32x4xi1>, vector<32x4xi32>
    %39 = vector.broadcast %33 : vector<32x1xi32> to vector<32x32xi32>
    %40 = arith.cmpi eq, %19, %39 : vector<32x32xi32>
    %cst_14 = arith.constant 0xFF800000 : f32
    %41 = vector.broadcast %cst_14 : f32 to vector<32x32xf32>
    %42 = arith.select %40, %41, %23 : vector<32x32xi1>, vector<32x32xf32>
    %cst_15 = arith.constant dense<0xFF800000> : vector<32xf32>
    %43 = vector.multi_reduction <maximumf>, %42, %cst_15 [1] : vector<32x32xf32> to vector<32xf32>
    %44 = vector.shape_cast %43 : vector<32xf32> to vector<32x1xf32>
    %45 = vector.broadcast %44 : vector<32x1xf32> to vector<32x32xf32>
    %46 = arith.cmpf oeq, %42, %45 : vector<32x32xf32>
    %c32_i32_16 = arith.constant 32 : i32
    %47 = vector.broadcast %c32_i32_16 : i32 to vector<32x32xi32>
    %48 = arith.select %46, %19, %47 : vector<32x32xi1>, vector<32x32xi32>
    %cst_17 = arith.constant dense<2147483647> : vector<32xi32>
    %49 = vector.multi_reduction <minsi>, %48, %cst_17 [1] : vector<32x32xi32> to vector<32xi32>
    %50 = vector.shape_cast %49 : vector<32xi32> to vector<32x1xi32>
    %c1_i32 = arith.constant 1 : i32
    %51 = vector.broadcast %c1_i32 : i32 to vector<32x4xi32>
    %52 = arith.cmpi eq, %25, %51 : vector<32x4xi32>
    %53 = vector.shape_cast %50 : vector<32x1xi32> to vector<32x1xi32>
    %54 = vector.broadcast %53 : vector<32x1xi32> to vector<32x4xi32>
    %55 = arith.select %52, %54, %38 : vector<32x4xi1>, vector<32x4xi32>
    %56 = vector.broadcast %50 : vector<32x1xi32> to vector<32x32xi32>
    %57 = arith.cmpi eq, %19, %56 : vector<32x32xi32>
    %cst_18 = arith.constant 0xFF800000 : f32
    %58 = vector.broadcast %cst_18 : f32 to vector<32x32xf32>
    %59 = arith.select %57, %58, %42 : vector<32x32xi1>, vector<32x32xf32>
    %cst_19 = arith.constant dense<0xFF800000> : vector<32xf32>
    %60 = vector.multi_reduction <maximumf>, %59, %cst_19 [1] : vector<32x32xf32> to vector<32xf32>
    %61 = vector.shape_cast %60 : vector<32xf32> to vector<32x1xf32>
    %62 = vector.broadcast %61 : vector<32x1xf32> to vector<32x32xf32>
    %63 = arith.cmpf oeq, %59, %62 : vector<32x32xf32>
    %c32_i32_20 = arith.constant 32 : i32
    %64 = vector.broadcast %c32_i32_20 : i32 to vector<32x32xi32>
    %65 = arith.select %63, %19, %64 : vector<32x32xi1>, vector<32x32xi32>
    %cst_21 = arith.constant dense<2147483647> : vector<32xi32>
    %66 = vector.multi_reduction <minsi>, %65, %cst_21 [1] : vector<32x32xi32> to vector<32xi32>
    %67 = vector.shape_cast %66 : vector<32xi32> to vector<32x1xi32>
    %c2_i32 = arith.constant 2 : i32
    %68 = vector.broadcast %c2_i32 : i32 to vector<32x4xi32>
    %69 = arith.cmpi eq, %25, %68 : vector<32x4xi32>
    %70 = vector.shape_cast %67 : vector<32x1xi32> to vector<32x1xi32>
    %71 = vector.broadcast %70 : vector<32x1xi32> to vector<32x4xi32>
    %72 = arith.select %69, %71, %55 : vector<32x4xi1>, vector<32x4xi32>
    %73 = vector.broadcast %67 : vector<32x1xi32> to vector<32x32xi32>
    %74 = arith.cmpi eq, %19, %73 : vector<32x32xi32>
    %cst_22 = arith.constant 0xFF800000 : f32
    %75 = vector.broadcast %cst_22 : f32 to vector<32x32xf32>
    %76 = arith.select %74, %75, %59 : vector<32x32xi1>, vector<32x32xf32>
    %cst_23 = arith.constant dense<0xFF800000> : vector<32xf32>
    %77 = vector.multi_reduction <maximumf>, %76, %cst_23 [1] : vector<32x32xf32> to vector<32xf32>
    %78 = vector.shape_cast %77 : vector<32xf32> to vector<32x1xf32>
    %79 = vector.broadcast %78 : vector<32x1xf32> to vector<32x32xf32>
    %80 = arith.cmpf oeq, %76, %79 : vector<32x32xf32>
    %c32_i32_24 = arith.constant 32 : i32
    %81 = vector.broadcast %c32_i32_24 : i32 to vector<32x32xi32>
    %82 = arith.select %80, %19, %81 : vector<32x32xi1>, vector<32x32xi32>
    %cst_25 = arith.constant dense<2147483647> : vector<32xi32>
    %83 = vector.multi_reduction <minsi>, %82, %cst_25 [1] : vector<32x32xi32> to vector<32xi32>
    %84 = vector.shape_cast %83 : vector<32xi32> to vector<32x1xi32>
    %c3_i32 = arith.constant 3 : i32
    %85 = vector.broadcast %c3_i32 : i32 to vector<32x4xi32>
    %86 = arith.cmpi eq, %25, %85 : vector<32x4xi32>
    %87 = vector.shape_cast %84 : vector<32x1xi32> to vector<32x1xi32>
    %88 = vector.broadcast %87 : vector<32x1xi32> to vector<32x4xi32>
    %89 = arith.select %86, %88, %72 : vector<32x4xi1>, vector<32x4xi32>
    %c0_26 = arith.constant 0 : index
    %c0_27 = arith.constant 0 : index
    %c0_28 = arith.constant 0 : index
    %90 = vector.load %arg4[%c0_26, %c0_27, %c0_28] : memref<1x32x4xi32, #tpu.memory_space<vmem>>, vector<1x32x4xi32>
    %91 = vector.shape_cast %90 : vector<1x32x4xi32> to vector<32x4xi32>
    %92 = vector.shape_cast %89 : vector<32x4xi32> to vector<1x32x4xi32>
    tpu.vector_store %arg4[%c0_26, %c0_27, %c0_28], %92 {strides = array<i32>} : memref<1x32x4xi32, #tpu.memory_space<vmem>>, vector<1x32x4xi32>,
    return
  }
  func.func @transform_0(%arg0: i32, %arg1: i32) -> (i32, i32, i32) {
    %c0_i32 = arith.constant 0 : i32
    %c0_i32_0 = arith.constant 0 : i32
    return %arg0, %arg1, %c0_i32 : i32, i32, i32
  }
  func.func @transform_1(%arg0: i32, %arg1: i32) -> (i32, i32, i32) {
    %c0_i32 = arith.constant 0 : i32
    %c0_i32_0 = arith.constant 0 : i32
    %c0_i32_1 = arith.constant 0 : i32
    return %arg0, %c0_i32, %c0_i32_0 : i32, i32, i32
  }
  func.func @transform_2(%arg0: i32, %arg1: i32) -> (i32, i32, i32) {
    %c0_i32 = arith.constant 0 : i32
    %c0_i32_0 = arith.constant 0 : i32
    return %arg0, %arg1, %c0_i32 : i32, i32, i32
  }
}

module attributes {stable_mosaic.version = 11 : i64} {
  func.func @_edgeconv_kernel(%arg0: i32, %arg1: i32, %arg2: memref<1x4x32x64xbf16, #tpu.memory_space<vmem>>, %arg3: memref<1x32x64xbf16, #tpu.memory_space<vmem>>, %arg4: memref<64x64xbf16, #tpu.memory_space<vmem>>, %arg5: memref<64x64xbf16, #tpu.memory_space<vmem>>, %arg6: memref<1x64xf32, #tpu.memory_space<vmem>>, %arg7: memref<1x32x64xbf16, #tpu.memory_space<vmem>>) attributes {dimension_semantics = [#tpu.dimension_semantics<parallel>, #tpu.dimension_semantics<parallel>], iteration_bounds = array<i64: 2, 1>, scalar_prefetch = 0 : i64, scratch_operands = 0 : i64, tpu.core_type = #tpu.core_type<tc>, window_params = [{transform_indices = @transform_0, window_bounds = array<i64: 1, 4, 32, 64>}, {transform_indices = @transform_1, window_bounds = array<i64: 1, 32, 64>}, {pipeline_mode = #tpu.pipeline_mode<synchronous>, transform_indices = @transform_2, window_bounds = array<i64: 64, 64>}, {pipeline_mode = #tpu.pipeline_mode<synchronous>, transform_indices = @transform_3, window_bounds = array<i64: 64, 64>}, {pipeline_mode = #tpu.pipeline_mode<synchronous>, transform_indices = @transform_4, window_bounds = array<i64: 1, 64>}, {transform_indices = @transform_5, window_bounds = array<i64: 1, 32, 64>}]} {
    %c0 = arith.constant 0 : index
    %c0_0 = arith.constant 0 : index
    %c0_1 = arith.constant 0 : index
    %c0_2 = arith.constant 0 : index
    %0 = vector.load %arg2[%c0, %c0_0, %c0_1, %c0_2] : memref<1x4x32x64xbf16, #tpu.memory_space<vmem>>, vector<1x4x32x64xbf16>
    %1 = vector.shape_cast %0 : vector<1x4x32x64xbf16> to vector<4x32x64xbf16>
    %2 = vector.shape_cast %1 : vector<4x32x64xbf16> to vector<128x64xbf16>
    %c0_3 = arith.constant 0 : index
    %c0_4 = arith.constant 0 : index
    %c0_5 = arith.constant 0 : index
    %3 = vector.load %arg3[%c0_3, %c0_4, %c0_5] : memref<1x32x64xbf16, #tpu.memory_space<vmem>>, vector<1x32x64xbf16>
    %4 = vector.shape_cast %3 : vector<1x32x64xbf16> to vector<32x64xbf16>
    %c0_6 = arith.constant 0 : index
    %c0_7 = arith.constant 0 : index
    %5 = vector.load %arg5[%c0_6, %c0_7] : memref<64x64xbf16, #tpu.memory_space<vmem>>, vector<64x64xbf16>
    %cst = arith.constant dense<0.000000e+00> : vector<32x64xf32>
    %6 = tpu.matmul %4, %5, %cst {dimension_numbers = #tpu.dot_dimension_numbers<[1], [0], [0], [1], [0, 0, 1, 1], [], []>} : vector<32x64xbf16>, vector<64x64xbf16>, vector<32x64xf32> -> vector<32x64xf32>
    %c0_8 = arith.constant 0 : index
    %c0_9 = arith.constant 0 : index
    %7 = vector.load %arg6[%c0_8, %c0_9] : memref<1x64xf32, #tpu.memory_space<vmem>>, vector<1x64xf32>
    %8 = vector.broadcast %7 : vector<1x64xf32> to vector<32x64xf32>
    %9 = arith.addf %6, %8 : vector<32x64xf32>
    %c0_10 = arith.constant 0 : index
    %c0_11 = arith.constant 0 : index
    %10 = vector.load %arg4[%c0_10, %c0_11] : memref<64x64xbf16, #tpu.memory_space<vmem>>, vector<64x64xbf16>
    %cst_12 = arith.constant dense<0.000000e+00> : vector<128x64xf32>
    %11 = tpu.matmul %2, %10, %cst_12 {dimension_numbers = #tpu.dot_dimension_numbers<[1], [0], [0], [1], [0, 0, 1, 1], [], []>} : vector<128x64xbf16>, vector<64x64xbf16>, vector<128x64xf32> -> vector<128x64xf32>
    %12 = vector.shape_cast %11 : vector<128x64xf32> to vector<4x32x64xf32>
    %13 = vector.shape_cast %9 : vector<32x64xf32> to vector<1x32x64xf32>
    %14 = vector.broadcast %13 : vector<1x32x64xf32> to vector<4x32x64xf32>
    %15 = arith.addf %12, %14 : vector<4x32x64xf32>
    %cst_13 = arith.constant 0.000000e+00 : f32
    %16 = vector.broadcast %cst_13 : f32 to vector<4x32x64xf32>
    %17 = arith.cmpf oge, %15, %16 : vector<4x32x64xf32>
    %cst_14 = arith.constant 2.000000e-01 : f32
    %18 = vector.broadcast %cst_14 : f32 to vector<4x32x64xf32>
    %19 = arith.mulf %18, %15 : vector<4x32x64xf32>
    %20 = arith.select %17, %15, %19 : vector<4x32x64xi1>, vector<4x32x64xf32>
    %cst_15 = arith.constant dense<0xFF800000> : vector<32x64xf32>
    %21 = vector.multi_reduction <maximumf>, %20, %cst_15 [0] : vector<4x32x64xf32> to vector<32x64xf32>
    %22 = arith.truncf %21 : vector<32x64xf32> to vector<32x64xbf16>
    %c0_16 = arith.constant 0 : index
    %c0_17 = arith.constant 0 : index
    %c0_18 = arith.constant 0 : index
    %23 = vector.load %arg7[%c0_16, %c0_17, %c0_18] : memref<1x32x64xbf16, #tpu.memory_space<vmem>>, vector<1x32x64xbf16>
    %24 = vector.shape_cast %23 : vector<1x32x64xbf16> to vector<32x64xbf16>
    %25 = vector.shape_cast %22 : vector<32x64xbf16> to vector<1x32x64xbf16>
    tpu.vector_store %arg7[%c0_16, %c0_17, %c0_18], %25 {strides = array<i32>} : memref<1x32x64xbf16, #tpu.memory_space<vmem>>, vector<1x32x64xbf16>,
    return
  }
  func.func @transform_0(%arg0: i32, %arg1: i32) -> (i32, i32, i32, i32) {
    %c0_i32 = arith.constant 0 : i32
    %c0_i32_0 = arith.constant 0 : i32
    %c0_i32_1 = arith.constant 0 : i32
    return %arg0, %c0_i32, %arg1, %c0_i32_0 : i32, i32, i32, i32
  }
  func.func @transform_1(%arg0: i32, %arg1: i32) -> (i32, i32, i32) {
    %c0_i32 = arith.constant 0 : i32
    %c0_i32_0 = arith.constant 0 : i32
    return %arg0, %arg1, %c0_i32 : i32, i32, i32
  }
  func.func @transform_2(%arg0: i32, %arg1: i32) -> (i32, i32) {
    %c0_i32 = arith.constant 0 : i32
    %c0_i32_0 = arith.constant 0 : i32
    %c0_i32_1 = arith.constant 0 : i32
    return %c0_i32, %c0_i32_0 : i32, i32
  }
  func.func @transform_3(%arg0: i32, %arg1: i32) -> (i32, i32) {
    %c0_i32 = arith.constant 0 : i32
    %c0_i32_0 = arith.constant 0 : i32
    %c0_i32_1 = arith.constant 0 : i32
    return %c0_i32, %c0_i32_0 : i32, i32
  }
  func.func @transform_4(%arg0: i32, %arg1: i32) -> (i32, i32) {
    %c0_i32 = arith.constant 0 : i32
    %c0_i32_0 = arith.constant 0 : i32
    %c0_i32_1 = arith.constant 0 : i32
    return %c0_i32, %c0_i32_0 : i32, i32
  }
  func.func @transform_5(%arg0: i32, %arg1: i32) -> (i32, i32, i32) {
    %c0_i32 = arith.constant 0 : i32
    %c0_i32_0 = arith.constant 0 : i32
    return %arg0, %arg1, %c0_i32 : i32, i32, i32
  }
}

module attributes {stable_mosaic.version = 11 : i64} {
  func.func @_edgeconv_kernel(%arg0: i32, %arg1: i32, %arg2: memref<1x4x32x64xbf16, #tpu.memory_space<vmem>>, %arg3: memref<1x32x64xbf16, #tpu.memory_space<vmem>>, %arg4: memref<64x64xbf16, #tpu.memory_space<vmem>>, %arg5: memref<64x64xbf16, #tpu.memory_space<vmem>>, %arg6: memref<1x64xf32, #tpu.memory_space<vmem>>, %arg7: memref<64x64xbf16, #tpu.memory_space<vmem>>, %arg8: memref<1x64xf32, #tpu.memory_space<vmem>>, %arg9: memref<1x32x64xbf16, #tpu.memory_space<vmem>>) attributes {dimension_semantics = [#tpu.dimension_semantics<parallel>, #tpu.dimension_semantics<parallel>], iteration_bounds = array<i64: 2, 1>, scalar_prefetch = 0 : i64, scratch_operands = 0 : i64, tpu.core_type = #tpu.core_type<tc>, window_params = [{transform_indices = @transform_0, window_bounds = array<i64: 1, 4, 32, 64>}, {transform_indices = @transform_1, window_bounds = array<i64: 1, 32, 64>}, {pipeline_mode = #tpu.pipeline_mode<synchronous>, transform_indices = @transform_2, window_bounds = array<i64: 64, 64>}, {pipeline_mode = #tpu.pipeline_mode<synchronous>, transform_indices = @transform_3, window_bounds = array<i64: 64, 64>}, {pipeline_mode = #tpu.pipeline_mode<synchronous>, transform_indices = @transform_4, window_bounds = array<i64: 1, 64>}, {pipeline_mode = #tpu.pipeline_mode<synchronous>, transform_indices = @transform_5, window_bounds = array<i64: 64, 64>}, {pipeline_mode = #tpu.pipeline_mode<synchronous>, transform_indices = @transform_6, window_bounds = array<i64: 1, 64>}, {transform_indices = @transform_7, window_bounds = array<i64: 1, 32, 64>}]} {
    %c0 = arith.constant 0 : index
    %c0_0 = arith.constant 0 : index
    %c0_1 = arith.constant 0 : index
    %c0_2 = arith.constant 0 : index
    %0 = vector.load %arg2[%c0, %c0_0, %c0_1, %c0_2] : memref<1x4x32x64xbf16, #tpu.memory_space<vmem>>, vector<1x4x32x64xbf16>
    %1 = vector.shape_cast %0 : vector<1x4x32x64xbf16> to vector<4x32x64xbf16>
    %2 = vector.shape_cast %1 : vector<4x32x64xbf16> to vector<128x64xbf16>
    %c0_3 = arith.constant 0 : index
    %c0_4 = arith.constant 0 : index
    %c0_5 = arith.constant 0 : index
    %3 = vector.load %arg3[%c0_3, %c0_4, %c0_5] : memref<1x32x64xbf16, #tpu.memory_space<vmem>>, vector<1x32x64xbf16>
    %4 = vector.shape_cast %3 : vector<1x32x64xbf16> to vector<32x64xbf16>
    %c0_6 = arith.constant 0 : index
    %c0_7 = arith.constant 0 : index
    %5 = vector.load %arg5[%c0_6, %c0_7] : memref<64x64xbf16, #tpu.memory_space<vmem>>, vector<64x64xbf16>
    %cst = arith.constant dense<0.000000e+00> : vector<32x64xf32>
    %6 = tpu.matmul %4, %5, %cst {dimension_numbers = #tpu.dot_dimension_numbers<[1], [0], [0], [1], [0, 0, 1, 1], [], []>} : vector<32x64xbf16>, vector<64x64xbf16>, vector<32x64xf32> -> vector<32x64xf32>
    %c0_8 = arith.constant 0 : index
    %c0_9 = arith.constant 0 : index
    %7 = vector.load %arg6[%c0_8, %c0_9] : memref<1x64xf32, #tpu.memory_space<vmem>>, vector<1x64xf32>
    %8 = vector.broadcast %7 : vector<1x64xf32> to vector<32x64xf32>
    %9 = arith.addf %6, %8 : vector<32x64xf32>
    %c0_10 = arith.constant 0 : index
    %c0_11 = arith.constant 0 : index
    %10 = vector.load %arg4[%c0_10, %c0_11] : memref<64x64xbf16, #tpu.memory_space<vmem>>, vector<64x64xbf16>
    %cst_12 = arith.constant dense<0.000000e+00> : vector<128x64xf32>
    %11 = tpu.matmul %2, %10, %cst_12 {dimension_numbers = #tpu.dot_dimension_numbers<[1], [0], [0], [1], [0, 0, 1, 1], [], []>} : vector<128x64xbf16>, vector<64x64xbf16>, vector<128x64xf32> -> vector<128x64xf32>
    %12 = vector.shape_cast %11 : vector<128x64xf32> to vector<4x32x64xf32>
    %13 = vector.shape_cast %9 : vector<32x64xf32> to vector<1x32x64xf32>
    %14 = vector.broadcast %13 : vector<1x32x64xf32> to vector<4x32x64xf32>
    %15 = arith.addf %12, %14 : vector<4x32x64xf32>
    %cst_13 = arith.constant 0.000000e+00 : f32
    %16 = vector.broadcast %cst_13 : f32 to vector<4x32x64xf32>
    %17 = arith.cmpf oge, %15, %16 : vector<4x32x64xf32>
    %cst_14 = arith.constant 2.000000e-01 : f32
    %18 = vector.broadcast %cst_14 : f32 to vector<4x32x64xf32>
    %19 = arith.mulf %18, %15 : vector<4x32x64xf32>
    %20 = arith.select %17, %15, %19 : vector<4x32x64xi1>, vector<4x32x64xf32>
    %21 = vector.shape_cast %20 : vector<4x32x64xf32> to vector<128x64xf32>
    %22 = arith.truncf %21 : vector<128x64xf32> to vector<128x64xbf16>
    %c0_15 = arith.constant 0 : index
    %c0_16 = arith.constant 0 : index
    %23 = vector.load %arg7[%c0_15, %c0_16] : memref<64x64xbf16, #tpu.memory_space<vmem>>, vector<64x64xbf16>
    %cst_17 = arith.constant dense<0.000000e+00> : vector<128x64xf32>
    %24 = tpu.matmul %22, %23, %cst_17 {dimension_numbers = #tpu.dot_dimension_numbers<[1], [0], [0], [1], [0, 0, 1, 1], [], []>} : vector<128x64xbf16>, vector<64x64xbf16>, vector<128x64xf32> -> vector<128x64xf32>
    %c0_18 = arith.constant 0 : index
    %c0_19 = arith.constant 0 : index
    %25 = vector.load %arg8[%c0_18, %c0_19] : memref<1x64xf32, #tpu.memory_space<vmem>>, vector<1x64xf32>
    %26 = vector.broadcast %25 : vector<1x64xf32> to vector<128x64xf32>
    %27 = arith.addf %24, %26 : vector<128x64xf32>
    %cst_20 = arith.constant 0.000000e+00 : f32
    %28 = vector.broadcast %cst_20 : f32 to vector<128x64xf32>
    %29 = arith.cmpf oge, %27, %28 : vector<128x64xf32>
    %cst_21 = arith.constant 2.000000e-01 : f32
    %30 = vector.broadcast %cst_21 : f32 to vector<128x64xf32>
    %31 = arith.mulf %30, %27 : vector<128x64xf32>
    %32 = arith.select %29, %27, %31 : vector<128x64xi1>, vector<128x64xf32>
    %33 = vector.shape_cast %32 : vector<128x64xf32> to vector<4x32x64xf32>
    %cst_22 = arith.constant dense<0xFF800000> : vector<32x64xf32>
    %34 = vector.multi_reduction <maximumf>, %33, %cst_22 [0] : vector<4x32x64xf32> to vector<32x64xf32>
    %35 = arith.truncf %34 : vector<32x64xf32> to vector<32x64xbf16>
    %c0_23 = arith.constant 0 : index
    %c0_24 = arith.constant 0 : index
    %c0_25 = arith.constant 0 : index
    %36 = vector.load %arg9[%c0_23, %c0_24, %c0_25] : memref<1x32x64xbf16, #tpu.memory_space<vmem>>, vector<1x32x64xbf16>
    %37 = vector.shape_cast %36 : vector<1x32x64xbf16> to vector<32x64xbf16>
    %38 = vector.shape_cast %35 : vector<32x64xbf16> to vector<1x32x64xbf16>
    tpu.vector_store %arg9[%c0_23, %c0_24, %c0_25], %38 {strides = array<i32>} : memref<1x32x64xbf16, #tpu.memory_space<vmem>>, vector<1x32x64xbf16>,
    return
  }
  func.func @transform_0(%arg0: i32, %arg1: i32) -> (i32, i32, i32, i32) {
    %c0_i32 = arith.constant 0 : i32
    %c0_i32_0 = arith.constant 0 : i32
    %c0_i32_1 = arith.constant 0 : i32
    return %arg0, %c0_i32, %arg1, %c0_i32_0 : i32, i32, i32, i32
  }
  func.func @transform_1(%arg0: i32, %arg1: i32) -> (i32, i32, i32) {
    %c0_i32 = arith.constant 0 : i32
    %c0_i32_0 = arith.constant 0 : i32
    return %arg0, %arg1, %c0_i32 : i32, i32, i32
  }
  func.func @transform_2(%arg0: i32, %arg1: i32) -> (i32, i32) {
    %c0_i32 = arith.constant 0 : i32
    %c0_i32_0 = arith.constant 0 : i32
    %c0_i32_1 = arith.constant 0 : i32
    return %c0_i32, %c0_i32_0 : i32, i32
  }
  func.func @transform_3(%arg0: i32, %arg1: i32) -> (i32, i32) {
    %c0_i32 = arith.constant 0 : i32
    %c0_i32_0 = arith.constant 0 : i32
    %c0_i32_1 = arith.constant 0 : i32
    return %c0_i32, %c0_i32_0 : i32, i32
  }
  func.func @transform_4(%arg0: i32, %arg1: i32) -> (i32, i32) {
    %c0_i32 = arith.constant 0 : i32
    %c0_i32_0 = arith.constant 0 : i32
    %c0_i32_1 = arith.constant 0 : i32
    return %c0_i32, %c0_i32_0 : i32, i32
  }
  func.func @transform_5(%arg0: i32, %arg1: i32) -> (i32, i32) {
    %c0_i32 = arith.constant 0 : i32
    %c0_i32_0 = arith.constant 0 : i32
    %c0_i32_1 = arith.constant 0 : i32
    return %c0_i32, %c0_i32_0 : i32, i32
  }
  func.func @transform_6(%arg0: i32, %arg1: i32) -> (i32, i32) {
    %c0_i32 = arith.constant 0 : i32
    %c0_i32_0 = arith.constant 0 : i32
    %c0_i32_1 = arith.constant 0 : i32
    return %c0_i32, %c0_i32_0 : i32, i32
  }
  func.func @transform_7(%arg0: i32, %arg1: i32) -> (i32, i32, i32) {
    %c0_i32 = arith.constant 0 : i32
    %c0_i32_0 = arith.constant 0 : i32
    return %arg0, %arg1, %c0_i32 : i32, i32, i32
  }
}

module attributes {stable_mosaic.version = 11 : i64} {
  func.func @_conv6_gmax_kernel(%arg0: i32, %arg1: i32, %arg2: i32, %arg3: memref<1x32x64xbf16, #tpu.memory_space<vmem>>, %arg4: memref<1x32x64xbf16, #tpu.memory_space<vmem>>, %arg5: memref<1x32x64xbf16, #tpu.memory_space<vmem>>, %arg6: memref<64x1024xbf16, #tpu.memory_space<vmem>>, %arg7: memref<64x1024xbf16, #tpu.memory_space<vmem>>, %arg8: memref<64x1024xbf16, #tpu.memory_space<vmem>>, %arg9: memref<1x1024xf32, #tpu.memory_space<vmem>>, %arg10: memref<1x1x1024xf32, #tpu.memory_space<vmem>>, %arg11: memref<1x1024xf32, #tpu.memory_space<vmem>>) attributes {dimension_semantics = [#tpu.dimension_semantics<parallel>, #tpu.dimension_semantics<parallel>, #tpu.dimension_semantics<arbitrary>], iteration_bounds = array<i64: 2, 1, 1>, scalar_prefetch = 0 : i64, scratch_operands = 1 : i64, tpu.core_type = #tpu.core_type<tc>, window_params = [{transform_indices = @transform_0, window_bounds = array<i64: 1, 32, 64>}, {transform_indices = @transform_1, window_bounds = array<i64: 1, 32, 64>}, {transform_indices = @transform_2, window_bounds = array<i64: 1, 32, 64>}, {pipeline_mode = #tpu.pipeline_mode<synchronous>, transform_indices = @transform_3, window_bounds = array<i64: 64, 1024>}, {pipeline_mode = #tpu.pipeline_mode<synchronous>, transform_indices = @transform_4, window_bounds = array<i64: 64, 1024>}, {pipeline_mode = #tpu.pipeline_mode<synchronous>, transform_indices = @transform_5, window_bounds = array<i64: 64, 1024>}, {pipeline_mode = #tpu.pipeline_mode<synchronous>, transform_indices = @transform_6, window_bounds = array<i64: 1, 1024>}, {transform_indices = @transform_7, window_bounds = array<i64: 1, 1, 1024>}]} {
    %c0_i32 = arith.constant 0 : i32
    %0 = arith.cmpi eq, %arg2, %c0_i32 : i32
    %1 = arith.extui %0 : i1 to i32
    %c0_i32_0 = arith.constant 0 : i32
    %2 = arith.cmpi ne, %1, %c0_i32_0 : i32
    scf.if %2 {
      %cst_28 = arith.constant 0xFF800000 : f32
      %33 = vector.broadcast %cst_28 : f32 to vector<1x1024xf32>
      %c0_29 = arith.constant 0 : index
      %c0_30 = arith.constant 0 : index
      %34 = vector.load %arg11[%c0_29, %c0_30] : memref<1x1024xf32, #tpu.memory_space<vmem>>, vector<1x1024xf32>
      tpu.vector_store %arg11[%c0_29, %c0_30], %33 {strides = array<i32>} : memref<1x1024xf32, #tpu.memory_space<vmem>>, vector<1x1024xf32>,
    } else {
    }
    %c0 = arith.constant 0 : index
    %c0_1 = arith.constant 0 : index
    %c0_2 = arith.constant 0 : index
    %3 = vector.load %arg3[%c0, %c0_1, %c0_2] : memref<1x32x64xbf16, #tpu.memory_space<vmem>>, vector<1x32x64xbf16>
    %4 = vector.shape_cast %3 : vector<1x32x64xbf16> to vector<32x64xbf16>
    %c0_3 = arith.constant 0 : index
    %c0_4 = arith.constant 0 : index
    %5 = vector.load %arg6[%c0_3, %c0_4] : memref<64x1024xbf16, #tpu.memory_space<vmem>>, vector<64x1024xbf16>
    %cst = arith.constant dense<0.000000e+00> : vector<32x1024xf32>
    %6 = tpu.matmul %4, %5, %cst {dimension_numbers = #tpu.dot_dimension_numbers<[1], [0], [0], [1], [0, 0, 1, 1], [], []>} : vector<32x64xbf16>, vector<64x1024xbf16>, vector<32x1024xf32> -> vector<32x1024xf32>
    %c0_5 = arith.constant 0 : index
    %c0_6 = arith.constant 0 : index
    %c0_7 = arith.constant 0 : index
    %7 = vector.load %arg4[%c0_5, %c0_6, %c0_7] : memref<1x32x64xbf16, #tpu.memory_space<vmem>>, vector<1x32x64xbf16>
    %8 = vector.shape_cast %7 : vector<1x32x64xbf16> to vector<32x64xbf16>
    %c0_8 = arith.constant 0 : index
    %c0_9 = arith.constant 0 : index
    %9 = vector.load %arg7[%c0_8, %c0_9] : memref<64x1024xbf16, #tpu.memory_space<vmem>>, vector<64x1024xbf16>
    %cst_10 = arith.constant dense<0.000000e+00> : vector<32x1024xf32>
    %10 = tpu.matmul %8, %9, %cst_10 {dimension_numbers = #tpu.dot_dimension_numbers<[1], [0], [0], [1], [0, 0, 1, 1], [], []>} : vector<32x64xbf16>, vector<64x1024xbf16>, vector<32x1024xf32> -> vector<32x1024xf32>
    %11 = arith.addf %6, %10 : vector<32x1024xf32>
    %c0_11 = arith.constant 0 : index
    %c0_12 = arith.constant 0 : index
    %c0_13 = arith.constant 0 : index
    %12 = vector.load %arg5[%c0_11, %c0_12, %c0_13] : memref<1x32x64xbf16, #tpu.memory_space<vmem>>, vector<1x32x64xbf16>
    %13 = vector.shape_cast %12 : vector<1x32x64xbf16> to vector<32x64xbf16>
    %c0_14 = arith.constant 0 : index
    %c0_15 = arith.constant 0 : index
    %14 = vector.load %arg8[%c0_14, %c0_15] : memref<64x1024xbf16, #tpu.memory_space<vmem>>, vector<64x1024xbf16>
    %cst_16 = arith.constant dense<0.000000e+00> : vector<32x1024xf32>
    %15 = tpu.matmul %13, %14, %cst_16 {dimension_numbers = #tpu.dot_dimension_numbers<[1], [0], [0], [1], [0, 0, 1, 1], [], []>} : vector<32x64xbf16>, vector<64x1024xbf16>, vector<32x1024xf32> -> vector<32x1024xf32>
    %16 = arith.addf %11, %15 : vector<32x1024xf32>
    %c0_17 = arith.constant 0 : index
    %c0_18 = arith.constant 0 : index
    %17 = vector.load %arg9[%c0_17, %c0_18] : memref<1x1024xf32, #tpu.memory_space<vmem>>, vector<1x1024xf32>
    %18 = vector.broadcast %17 : vector<1x1024xf32> to vector<32x1024xf32>
    %19 = arith.addf %16, %18 : vector<32x1024xf32>
    %cst_19 = arith.constant 0.000000e+00 : f32
    %20 = vector.broadcast %cst_19 : f32 to vector<32x1024xf32>
    %21 = arith.cmpf oge, %19, %20 : vector<32x1024xf32>
    %cst_20 = arith.constant 2.000000e-01 : f32
    %22 = vector.broadcast %cst_20 : f32 to vector<32x1024xf32>
    %23 = arith.mulf %22, %19 : vector<32x1024xf32>
    %24 = arith.select %21, %19, %23 : vector<32x1024xi1>, vector<32x1024xf32>
    %c0_21 = arith.constant 0 : index
    %c0_22 = arith.constant 0 : index
    %25 = vector.load %arg11[%c0_21, %c0_22] : memref<1x1024xf32, #tpu.memory_space<vmem>>, vector<1x1024xf32>
    %cst_23 = arith.constant dense<0xFF800000> : vector<1024xf32>
    %26 = vector.multi_reduction <maximumf>, %24, %cst_23 [0] : vector<32x1024xf32> to vector<1024xf32>
    %27 = vector.shape_cast %26 : vector<1024xf32> to vector<1x1024xf32>
    %28 = arith.maximumf %25, %27 : vector<1x1024xf32>
    %c0_24 = arith.constant 0 : index
    %c0_25 = arith.constant 0 : index
    %29 = vector.load %arg11[%c0_24, %c0_25] : memref<1x1024xf32, #tpu.memory_space<vmem>>, vector<1x1024xf32>
    tpu.vector_store %arg11[%c0_24, %c0_25], %28 {strides = array<i32>} : memref<1x1024xf32, #tpu.memory_space<vmem>>, vector<1x1024xf32>,
    %c0_i32_26 = arith.constant 0 : i32
    %30 = arith.cmpi eq, %arg2, %c0_i32_26 : i32
    %31 = arith.extui %30 : i1 to i32
    %c0_i32_27 = arith.constant 0 : i32
    %32 = arith.cmpi ne, %31, %c0_i32_27 : i32
    scf.if %32 {
      %c0_28 = arith.constant 0 : index
      %c0_29 = arith.constant 0 : index
      %33 = vector.load %arg11[%c0_28, %c0_29] : memref<1x1024xf32, #tpu.memory_space<vmem>>, vector<1x1024xf32>
      %c0_30 = arith.constant 0 : index
      %c0_31 = arith.constant 0 : index
      %c0_32 = arith.constant 0 : index
      %34 = vector.load %arg10[%c0_30, %c0_31, %c0_32] : memref<1x1x1024xf32, #tpu.memory_space<vmem>>, vector<1x1x1024xf32>
      %35 = vector.shape_cast %34 : vector<1x1x1024xf32> to vector<1x1024xf32>
      %36 = vector.shape_cast %33 : vector<1x1024xf32> to vector<1x1x1024xf32>
      tpu.vector_store %arg10[%c0_30, %c0_31, %c0_32], %36 {strides = array<i32>} : memref<1x1x1024xf32, #tpu.memory_space<vmem>>, vector<1x1x1024xf32>,
    } else {
    }
    return
  }
  func.func @transform_0(%arg0: i32, %arg1: i32, %arg2: i32) -> (i32, i32, i32) {
    %c1_i32 = arith.constant 1 : i32
    %0 = arith.muli %arg1, %c1_i32 : i32
    %1 = arith.addi %0, %arg2 : i32
    %c0_i32 = arith.constant 0 : i32
    %c0_i32_0 = arith.constant 0 : i32
    return %arg0, %1, %c0_i32 : i32, i32, i32
  }
  func.func @transform_1(%arg0: i32, %arg1: i32, %arg2: i32) -> (i32, i32, i32) {
    %c1_i32 = arith.constant 1 : i32
    %0 = arith.muli %arg1, %c1_i32 : i32
    %1 = arith.addi %0, %arg2 : i32
    %c0_i32 = arith.constant 0 : i32
    %c0_i32_0 = arith.constant 0 : i32
    return %arg0, %1, %c0_i32 : i32, i32, i32
  }
  func.func @transform_2(%arg0: i32, %arg1: i32, %arg2: i32) -> (i32, i32, i32) {
    %c1_i32 = arith.constant 1 : i32
    %0 = arith.muli %arg1, %c1_i32 : i32
    %1 = arith.addi %0, %arg2 : i32
    %c0_i32 = arith.constant 0 : i32
    %c0_i32_0 = arith.constant 0 : i32
    return %arg0, %1, %c0_i32 : i32, i32, i32
  }
  func.func @transform_3(%arg0: i32, %arg1: i32, %arg2: i32) -> (i32, i32) {
    %c0_i32 = arith.constant 0 : i32
    %c0_i32_0 = arith.constant 0 : i32
    %c0_i32_1 = arith.constant 0 : i32
    return %c0_i32, %c0_i32_0 : i32, i32
  }
  func.func @transform_4(%arg0: i32, %arg1: i32, %arg2: i32) -> (i32, i32) {
    %c0_i32 = arith.constant 0 : i32
    %c0_i32_0 = arith.constant 0 : i32
    %c0_i32_1 = arith.constant 0 : i32
    return %c0_i32, %c0_i32_0 : i32, i32
  }
  func.func @transform_5(%arg0: i32, %arg1: i32, %arg2: i32) -> (i32, i32) {
    %c0_i32 = arith.constant 0 : i32
    %c0_i32_0 = arith.constant 0 : i32
    %c0_i32_1 = arith.constant 0 : i32
    return %c0_i32, %c0_i32_0 : i32, i32
  }
  func.func @transform_6(%arg0: i32, %arg1: i32, %arg2: i32) -> (i32, i32) {
    %c0_i32 = arith.constant 0 : i32
    %c0_i32_0 = arith.constant 0 : i32
    %c0_i32_1 = arith.constant 0 : i32
    return %c0_i32, %c0_i32_0 : i32, i32
  }
  func.func @transform_7(%arg0: i32, %arg1: i32, %arg2: i32) -> (i32, i32, i32) {
    %c0_i32 = arith.constant 0 : i32
    %c0_i32_0 = arith.constant 0 : i32
    return %arg0, %arg1, %c0_i32 : i32, i32, i32
  }
}

module attributes {stable_mosaic.version = 11 : i64} {
  func.func @_classifier_kernel(%arg0: i32, %arg1: i32, %arg2: memref<1x32x64xbf16, #tpu.memory_space<vmem>>, %arg3: memref<1x32x64xbf16, #tpu.memory_space<vmem>>, %arg4: memref<1x32x64xbf16, #tpu.memory_space<vmem>>, %arg5: memref<1x1x512xf32, #tpu.memory_space<vmem>>, %arg6: memref<64x512xbf16, #tpu.memory_space<vmem>>, %arg7: memref<64x512xbf16, #tpu.memory_space<vmem>>, %arg8: memref<64x512xbf16, #tpu.memory_space<vmem>>, %arg9: memref<512x256xbf16, #tpu.memory_space<vmem>>, %arg10: memref<1x256xf32, #tpu.memory_space<vmem>>, %arg11: memref<256x128xbf16, #tpu.memory_space<vmem>>, %arg12: memref<1x32x128xbf16, #tpu.memory_space<vmem>>) attributes {dimension_semantics = [#tpu.dimension_semantics<parallel>, #tpu.dimension_semantics<parallel>], iteration_bounds = array<i64: 2, 1>, scalar_prefetch = 0 : i64, scratch_operands = 0 : i64, tpu.core_type = #tpu.core_type<tc>, window_params = [{transform_indices = @transform_0, window_bounds = array<i64: 1, 32, 64>}, {transform_indices = @transform_1, window_bounds = array<i64: 1, 32, 64>}, {transform_indices = @transform_2, window_bounds = array<i64: 1, 32, 64>}, {transform_indices = @transform_3, window_bounds = array<i64: 1, 1, 512>}, {pipeline_mode = #tpu.pipeline_mode<synchronous>, transform_indices = @transform_4, window_bounds = array<i64: 64, 512>}, {pipeline_mode = #tpu.pipeline_mode<synchronous>, transform_indices = @transform_5, window_bounds = array<i64: 64, 512>}, {pipeline_mode = #tpu.pipeline_mode<synchronous>, transform_indices = @transform_6, window_bounds = array<i64: 64, 512>}, {pipeline_mode = #tpu.pipeline_mode<synchronous>, transform_indices = @transform_7, window_bounds = array<i64: 512, 256>}, {pipeline_mode = #tpu.pipeline_mode<synchronous>, transform_indices = @transform_8, window_bounds = array<i64: 1, 256>}, {pipeline_mode = #tpu.pipeline_mode<synchronous>, transform_indices = @transform_9, window_bounds = array<i64: 256, 128>}, {transform_indices = @transform_10, window_bounds = array<i64: 1, 32, 128>}]} {
    %c0 = arith.constant 0 : index
    %c0_0 = arith.constant 0 : index
    %c0_1 = arith.constant 0 : index
    %0 = vector.load %arg2[%c0, %c0_0, %c0_1] : memref<1x32x64xbf16, #tpu.memory_space<vmem>>, vector<1x32x64xbf16>
    %1 = vector.shape_cast %0 : vector<1x32x64xbf16> to vector<32x64xbf16>
    %c0_2 = arith.constant 0 : index
    %c0_3 = arith.constant 0 : index
    %2 = vector.load %arg6[%c0_2, %c0_3] : memref<64x512xbf16, #tpu.memory_space<vmem>>, vector<64x512xbf16>
    %cst = arith.constant dense<0.000000e+00> : vector<32x512xf32>
    %3 = tpu.matmul %1, %2, %cst {dimension_numbers = #tpu.dot_dimension_numbers<[1], [0], [0], [1], [0, 0, 1, 1], [], []>} : vector<32x64xbf16>, vector<64x512xbf16>, vector<32x512xf32> -> vector<32x512xf32>
    %c0_4 = arith.constant 0 : index
    %c0_5 = arith.constant 0 : index
    %c0_6 = arith.constant 0 : index
    %4 = vector.load %arg3[%c0_4, %c0_5, %c0_6] : memref<1x32x64xbf16, #tpu.memory_space<vmem>>, vector<1x32x64xbf16>
    %5 = vector.shape_cast %4 : vector<1x32x64xbf16> to vector<32x64xbf16>
    %c0_7 = arith.constant 0 : index
    %c0_8 = arith.constant 0 : index
    %6 = vector.load %arg7[%c0_7, %c0_8] : memref<64x512xbf16, #tpu.memory_space<vmem>>, vector<64x512xbf16>
    %cst_9 = arith.constant dense<0.000000e+00> : vector<32x512xf32>
    %7 = tpu.matmul %5, %6, %cst_9 {dimension_numbers = #tpu.dot_dimension_numbers<[1], [0], [0], [1], [0, 0, 1, 1], [], []>} : vector<32x64xbf16>, vector<64x512xbf16>, vector<32x512xf32> -> vector<32x512xf32>
    %8 = arith.addf %3, %7 : vector<32x512xf32>
    %c0_10 = arith.constant 0 : index
    %c0_11 = arith.constant 0 : index
    %c0_12 = arith.constant 0 : index
    %9 = vector.load %arg4[%c0_10, %c0_11, %c0_12] : memref<1x32x64xbf16, #tpu.memory_space<vmem>>, vector<1x32x64xbf16>
    %10 = vector.shape_cast %9 : vector<1x32x64xbf16> to vector<32x64xbf16>
    %c0_13 = arith.constant 0 : index
    %c0_14 = arith.constant 0 : index
    %11 = vector.load %arg8[%c0_13, %c0_14] : memref<64x512xbf16, #tpu.memory_space<vmem>>, vector<64x512xbf16>
    %cst_15 = arith.constant dense<0.000000e+00> : vector<32x512xf32>
    %12 = tpu.matmul %10, %11, %cst_15 {dimension_numbers = #tpu.dot_dimension_numbers<[1], [0], [0], [1], [0, 0, 1, 1], [], []>} : vector<32x64xbf16>, vector<64x512xbf16>, vector<32x512xf32> -> vector<32x512xf32>
    %13 = arith.addf %8, %12 : vector<32x512xf32>
    %c0_16 = arith.constant 0 : index
    %c0_17 = arith.constant 0 : index
    %c0_18 = arith.constant 0 : index
    %14 = vector.load %arg5[%c0_16, %c0_17, %c0_18] : memref<1x1x512xf32, #tpu.memory_space<vmem>>, vector<1x1x512xf32>
    %15 = vector.shape_cast %14 : vector<1x1x512xf32> to vector<1x512xf32>
    %16 = vector.broadcast %15 : vector<1x512xf32> to vector<32x512xf32>
    %17 = arith.addf %13, %16 : vector<32x512xf32>
    %cst_19 = arith.constant 0.000000e+00 : f32
    %18 = vector.broadcast %cst_19 : f32 to vector<32x512xf32>
    %19 = arith.cmpf oge, %17, %18 : vector<32x512xf32>
    %cst_20 = arith.constant 2.000000e-01 : f32
    %20 = vector.broadcast %cst_20 : f32 to vector<32x512xf32>
    %21 = arith.mulf %20, %17 : vector<32x512xf32>
    %22 = arith.select %19, %17, %21 : vector<32x512xi1>, vector<32x512xf32>
    %23 = arith.truncf %22 : vector<32x512xf32> to vector<32x512xbf16>
    %c0_21 = arith.constant 0 : index
    %c0_22 = arith.constant 0 : index
    %24 = vector.load %arg9[%c0_21, %c0_22] : memref<512x256xbf16, #tpu.memory_space<vmem>>, vector<512x256xbf16>
    %cst_23 = arith.constant dense<0.000000e+00> : vector<32x256xf32>
    %25 = tpu.matmul %23, %24, %cst_23 {dimension_numbers = #tpu.dot_dimension_numbers<[1], [0], [0], [1], [0, 0, 1, 1], [], []>} : vector<32x512xbf16>, vector<512x256xbf16>, vector<32x256xf32> -> vector<32x256xf32>
    %c0_24 = arith.constant 0 : index
    %c0_25 = arith.constant 0 : index
    %26 = vector.load %arg10[%c0_24, %c0_25] : memref<1x256xf32, #tpu.memory_space<vmem>>, vector<1x256xf32>
    %27 = vector.broadcast %26 : vector<1x256xf32> to vector<32x256xf32>
    %28 = arith.addf %25, %27 : vector<32x256xf32>
    %cst_26 = arith.constant 0.000000e+00 : f32
    %29 = vector.broadcast %cst_26 : f32 to vector<32x256xf32>
    %30 = arith.cmpf oge, %28, %29 : vector<32x256xf32>
    %cst_27 = arith.constant 2.000000e-01 : f32
    %31 = vector.broadcast %cst_27 : f32 to vector<32x256xf32>
    %32 = arith.mulf %31, %28 : vector<32x256xf32>
    %33 = arith.select %30, %28, %32 : vector<32x256xi1>, vector<32x256xf32>
    %34 = arith.truncf %33 : vector<32x256xf32> to vector<32x256xbf16>
    %c0_28 = arith.constant 0 : index
    %c0_29 = arith.constant 0 : index
    %35 = vector.load %arg11[%c0_28, %c0_29] : memref<256x128xbf16, #tpu.memory_space<vmem>>, vector<256x128xbf16>
    %cst_30 = arith.constant dense<0.000000e+00> : vector<32x128xf32>
    %36 = tpu.matmul %34, %35, %cst_30 {dimension_numbers = #tpu.dot_dimension_numbers<[1], [0], [0], [1], [0, 0, 1, 1], [], []>} : vector<32x256xbf16>, vector<256x128xbf16>, vector<32x128xf32> -> vector<32x128xf32>
    %37 = arith.truncf %36 : vector<32x128xf32> to vector<32x128xbf16>
    %c0_31 = arith.constant 0 : index
    %c0_32 = arith.constant 0 : index
    %c0_33 = arith.constant 0 : index
    %38 = vector.load %arg12[%c0_31, %c0_32, %c0_33] : memref<1x32x128xbf16, #tpu.memory_space<vmem>>, vector<1x32x128xbf16>
    %39 = vector.shape_cast %38 : vector<1x32x128xbf16> to vector<32x128xbf16>
    %40 = vector.shape_cast %37 : vector<32x128xbf16> to vector<1x32x128xbf16>
    tpu.vector_store %arg12[%c0_31, %c0_32, %c0_33], %40 {strides = array<i32>} : memref<1x32x128xbf16, #tpu.memory_space<vmem>>, vector<1x32x128xbf16>,
    return
  }
  func.func @transform_0(%arg0: i32, %arg1: i32) -> (i32, i32, i32) {
    %c0_i32 = arith.constant 0 : i32
    %c0_i32_0 = arith.constant 0 : i32
    return %arg0, %arg1, %c0_i32 : i32, i32, i32
  }
  func.func @transform_1(%arg0: i32, %arg1: i32) -> (i32, i32, i32) {
    %c0_i32 = arith.constant 0 : i32
    %c0_i32_0 = arith.constant 0 : i32
    return %arg0, %arg1, %c0_i32 : i32, i32, i32
  }
  func.func @transform_2(%arg0: i32, %arg1: i32) -> (i32, i32, i32) {
    %c0_i32 = arith.constant 0 : i32
    %c0_i32_0 = arith.constant 0 : i32
    return %arg0, %arg1, %c0_i32 : i32, i32, i32
  }
  func.func @transform_3(%arg0: i32, %arg1: i32) -> (i32, i32, i32) {
    %c0_i32 = arith.constant 0 : i32
    %c0_i32_0 = arith.constant 0 : i32
    %c0_i32_1 = arith.constant 0 : i32
    return %arg0, %c0_i32, %c0_i32_0 : i32, i32, i32
  }
  func.func @transform_4(%arg0: i32, %arg1: i32) -> (i32, i32) {
    %c0_i32 = arith.constant 0 : i32
    %c0_i32_0 = arith.constant 0 : i32
    %c0_i32_1 = arith.constant 0 : i32
    return %c0_i32, %c0_i32_0 : i32, i32
  }
  func.func @transform_5(%arg0: i32, %arg1: i32) -> (i32, i32) {
    %c0_i32 = arith.constant 0 : i32
    %c0_i32_0 = arith.constant 0 : i32
    %c0_i32_1 = arith.constant 0 : i32
    return %c0_i32, %c0_i32_0 : i32, i32
  }
  func.func @transform_6(%arg0: i32, %arg1: i32) -> (i32, i32) {
    %c0_i32 = arith.constant 0 : i32
    %c0_i32_0 = arith.constant 0 : i32
    %c0_i32_1 = arith.constant 0 : i32
    return %c0_i32, %c0_i32_0 : i32, i32
  }
  func.func @transform_7(%arg0: i32, %arg1: i32) -> (i32, i32) {
    %c0_i32 = arith.constant 0 : i32
    %c0_i32_0 = arith.constant 0 : i32
    %c0_i32_1 = arith.constant 0 : i32
    return %c0_i32, %c0_i32_0 : i32, i32
  }
  func.func @transform_8(%arg0: i32, %arg1: i32) -> (i32, i32) {
    %c0_i32 = arith.constant 0 : i32
    %c0_i32_0 = arith.constant 0 : i32
    %c0_i32_1 = arith.constant 0 : i32
    return %c0_i32, %c0_i32_0 : i32, i32
  }
  func.func @transform_9(%arg0: i32, %arg1: i32) -> (i32, i32) {
    %c0_i32 = arith.constant 0 : i32
    %c0_i32_0 = arith.constant 0 : i32
    %c0_i32_1 = arith.constant 0 : i32
    return %c0_i32, %c0_i32_0 : i32, i32
  }
  func.func @transform_10(%arg0: i32, %arg1: i32) -> (i32, i32, i32) {
    %c0_i32 = arith.constant 0 : i32
    %c0_i32_0 = arith.constant 0 : i32
    return %arg0, %arg1, %c0_i32 : i32, i32, i32
  }
}

</mosaic_0001>

<bundles_post_ra>
// kernel: dgcnn_semseg_forward.8
= control target key start
LH: loop header
LB: loop body
LE: loop exit
PB: predicated region body
PF: predicated region fallthrough
CT: control target
= control target key end

     0   :  { %s1054_s9 = smov 0   ;;  %s1056_s10 = smov 0   ;;  %s1333_s0 = inlined_call_operand.vmem [shape: f32[2,32,3], index: 0, kind: input, shape index: {}, may-alias: {0,1}]   ;;  %s1334_s1 = inlined_call_operand.vmem [shape: f32[2,32,3], index: 1, kind: input, shape index: {}, may-alias: {0,1}]   ;;  %s1335_s2 = inlined_call_operand.vmem [shape: s32[2,32,4], index: 2, kind: output, shape index: {}]  }
   0x1   :  { %s1058_s11 = smov 0  }
   0x2 LB: > { %s24_s12 = sadd.s32 1, %s1030_s10  ;;  %p922_p0 = scmp.ge.s32.totalorder %s1034_s11, 1  ;;  %s1034_s11 = sphi %s1058_s11, %s12_s11   ;;  %s1030_s10 = sphi %s1056_s10, %s1337_s10   ;;  %s1026_s9 = sphi %s1054_s9, %s1336_s9  }
   0x3   : > { %p26_p1 = scmp.ge.s32.totalorder %s24_s12, 2  ;;  %p143_p2 = scmp.lt.s32.totalorder %s1034_s11, 3 }
   0x5   : > { %s1339_s12 = smov (%p26_p1, %s24_s12), 0  ;;  %p144_p3 = pnand %p922_p0, %p143_p2 }
   0x6   : > { %p179_p4 = scmp.lt.s32.totalorder (!%p144_p3), %s1026_s9, 1 }
   0x7   : > { %147 = sbr.rel (%p144_p3) target bundleno = 1959 (0x7a7), region = 28 }
   0xc   : > { %v1036_v0 = vmov 0.0   ;;  %vm1037_vm0 = vmmov 0   ;;  %s1341_s9 = smov (!%p179_p4, %s1026_s9), 1  ;;  %vm211_vm1 = vcmask 23552   ;;  %v1038_v21 = vmov 1.0  }
   0xd   : > { %974 = vmatprep.subr.mxu1 %v1036_v0  ;;  %982 = vmatprep.mubr.msk.f32.mxu1 %vm1037_vm0, %v1036_v0  ;;  %s1072_s13 = sshll.u32 %s1341_s9, 5  ;;  %v434_v22 = vlaneseq  ;;  %vm449_vm3 = vcmask 261120  }
   0xe   : > { %s1078_s16 = scalar_lea.vmem %s1334_s1, %s1072_s13  ;;  %s186_s19 = scalar_lea.vmem %s1333_s0, %s1072_s13 }
   0xf   : > { %v210_v1 = vld [vmem:[%s1078_s16 + $0x18] sm:$0xff]  ;;  %v209_v2 = vld [vmem:[%s1078_s16 + $0x10] sm:$0xff]  ;;  %v203_v4 = vld [vmem:[%s186_s19] sm:$0xff]  ;;  %v435_v24 = vshrl.u32 %v434_v22, 7  ;;  %v1109_v28 = vand.u32 127, %v434_v22  ;;  %s201_s22 = scalar_lea.vmem %s1335_s2, %s1072_s13 }
  0x10   : > { %960 = vmatprep.subr.msk.mxu0 %vm211_vm1, %v210_v1  ;;  %v340_v3 = vmul.f32 %v210_v1, %v210_v1  ;;  %v204_v5 = vld [vmem:[%s186_s19 + $0x8] sm:$0xff]  ;;  %968 = vmatprep.mubr.msk.f32.mxu0 %vm211_vm1, %v203_v4  ;;  %v321_v6 = vmul.f32 %v203_v4, %v203_v4  ;;  %v205_v7 = vld [vmem:[%s186_s19 + $0x10] sm:$0xff]  ;;  %v206_v8 = vld [vmem:[%s186_s19 + $0x18] sm:$0xff]  ;;  %v339_v10 = vmul.f32 %v209_v2, %v209_v2 }
  0x11   : > { %961 = vmatpush3.xpose.msk.msra.mxu0 %vm211_vm1, %v210_v1  ;;  %v322_v9 = vmul.f32 %v204_v5, %v204_v5  ;;  %v323_v11 = vmul.f32 %v205_v7, %v205_v7  ;;  %v324_v12 = vmul.f32 %v206_v8, %v206_v8  ;;  %v208_v13 = vld [vmem:[%s1078_s16 + $0x8] sm:$0xff]  ;;  %v207_v19 = vld [vmem:[%s1078_s16] sm:$0xff]  ;;  %v436_v25 = vsub.s32 0, %v435_v24 }
  0x12   : > { %975 = vmatpush3.xpose.msk.msra.mxu1 %vm211_vm1, %v340_v3  ;;  %962 = vmatprep.subr.msk.mxu0 %vm211_vm1, %v209_v2  ;;  %v325_v14 = vsel %vm211_vm1, %v321_v6, 0.0  ;;  %v338_v17 = vmul.f32 %v208_v13, %v208_v13  ;;  %v337_v20 = vmul.f32 %v207_v19, %v207_v19  ;;  %vm444_vm2 = vcmp.lt.s32.totalorder %v1109_v28, 32 }
  0x13   : > { %976 = vmatprep.subr.mxu1 %v1036_v0  ;;  %326 = vadd.xlane.f32.xlu0 %v325_v14  ;;  %v331_v15 = vsel %vm211_vm1, %v323_v11, 0.0  ;;  %v328_v16 = vsel %vm211_vm1, %v322_v9, 0.0  ;;  %v334_v18 = vsel %vm211_vm1, %v324_v12, 0.0 }
  0x14   : > { %332 = vadd.xlane.f32.xlu1 %v331_v15 }
  0x15   : > { %963 = vmatpush3.xpose.msk.msra.mxu0 %vm211_vm1, %v209_v2 }
  0x16   : > { %977 = vmatpush3.xpose.msk.msra.mxu1 %vm211_vm1, %v339_v10  ;;  %964 = vmatprep.subr.msk.mxu0 %vm211_vm1, %v208_v13 }
  0x17   : > { %978 = vmatprep.subr.mxu1 %v1036_v0  ;;  %329 = vadd.xlane.f32.xlu0 %v328_v16 }
  0x18   : > { %335 = vadd.xlane.f32.xlu1 %v334_v18 }
  0x19   : > { %965 = vmatpush3.xpose.msk.msra.mxu0 %vm211_vm1, %v208_v13 }
  0x1a   : > { %979 = vmatpush3.xpose.msk.msra.mxu1 %vm211_vm1, %v338_v17  ;;  %966 = vmatprep.subr.msk.mxu0 %vm211_vm1, %v207_v19 }
  0x1b   : > { %980 = vmatprep.subr.mxu1 %v1036_v0 }
  0x1d   : > { %967 = vmatpush3.xpose.msk.msra.mxu0 %vm211_vm1, %v207_v19 }
  0x1e   : > { %981 = vmatpush3.xpose.msk.msra.mxu1 %vm211_vm1, %v337_v20 }
  0x20   : > { %969 = vmatmul.mubr.msk.f32.vlgmr.msra.gmra.mxu0 %vm211_vm1, %v204_v5 }
  0x21   : > { %983 = vmatmul.mubr.msk.f32.vlgmr.msra.gmra.mxu1 %vm211_vm1, %v1038_v21  ;;  %971 = vmatprep.mubr.msk.f32.mxu0 %vm211_vm1, %v205_v7 }
  0x24   : > { %972 = vmatmul.mubr.msk.f32.gmra.mxu0 %vm211_vm1, %v206_v8 }
  0x9c   : > { %v327_v23 = vpop.xlane.xlu0 %326 }
  0x9d   : > { %v333_v26 = vpop.xlane.xlu1 %332 }
  0xa0   : > { %v330_v29 = vpop.xlane.xlu0 %329 }
  0xa1   : > { %v336_v38 = vpop.xlane.xlu1 %335 }
  0xe0   : > { %v970_v27 = vpop.f32.mrf.mxu0 }
  0xe1   : > { %v427_v30 = vmul.f32 2.0, %v970_v27  ;;  %v422_v31 = vpop.f32.mrf.mxu1 }
  0xe2   : > { %v437_v32 = vrot.slane %v422_v31, %v436_v25  ;;  %v302_v33 = vpop.f32.mrf.mxu0 }
  0xe3   : > { %v431_v34 = vsub.f32 %v427_v30, %v330_v29  ;;  %v426_v35 = vmul.f32 2.0, %v302_v33  ;;  %v984_v36 = vpop.f32.mrf.mxu1 }
  0xe4   : > { %v973_v37 = vpop.f32.mrf.mxu0 }
  0xe5   : > { %v439_v39 = vsub.f32 %v431_v34, %v437_v32  ;;  %v430_v40 = vsub.f32 %v426_v35, %v327_v23  ;;  %v429_v41 = vmul.f32 2.0, %v973_v37 }
  0xe6   : > { %v312_v42 = vpop.f32.mrf.mxu0 }
  0xe7   : > { %v438_v43 = vsub.f32 %v430_v40, %v437_v32  ;;  %v433_v44 = vsub.f32 %v429_v41, %v336_v38  ;;  %v428_v45 = vmul.f32 2.0, %v312_v42  ;;  %v1114_v46 = vsel %vm444_vm2, %v439_v39, -inf }
  0xe8   : > { %v453_v47 = vsel %vm449_vm3, %v1114_v46, -inf }
  0xe9   : > { %v441_v48 = vsub.f32 %v433_v44, %v437_v32  ;;  %v432_v49 = vsub.f32 %v428_v45, %v333_v26  ;;  %454 = vmax.xlane.f32.xlu1 %v453_v47  ;;  %v1120_v50 = vsel %vm444_vm2, %v438_v43, -inf }
  0xea   : > { %v450_v51 = vsel %vm449_vm3, %v1120_v50, -inf }
  0xeb   : > { %v440_v52 = vsub.f32 %v432_v49, %v437_v32  ;;  %451 = vmax.xlane.f32.xlu0 %v450_v51  ;;  %v1126_v53 = vsel %vm444_vm2, %v441_v48, -inf }
  0xec   : > { %v459_v54 = vsel %vm449_vm3, %v1126_v53, -inf }
  0xed   : > { %460 = vmax.xlane.f32.xlu1 %v459_v54  ;;  %v1132_v55 = vsel %vm444_vm2, %v440_v52, -inf }
  0xee   : > { %v456_v56 = vsel %vm449_vm3, %v1132_v55, -inf }
  0xef   : > { %457 = vmax.xlane.f32.xlu0 %v456_v56 }
 0x172   : > { %v455_v57 = vpop.xlane.xlu1 %454 }
 0x173   : > { %vm463_vm4 = vcmp.eq.f32.partialorder %v1114_v46, %v455_v57 }
 0x174   : > { %v467_v58 = vsel %vm463_vm4, %v1109_v28, 32  ;;  %v452_v59 = vpop.xlane.xlu0 %451 }
 0x175   : > { %v485_v60 = vsel %vm449_vm3, %v467_v58, 2147483647  ;;  %vm462_vm5 = vcmp.eq.f32.partialorder %v1120_v50, %v452_v59 }
 0x176   : > { %v466_v61 = vsel %vm462_vm5, %v1109_v28, 32  ;;  %v461_v62 = vpop.xlane.xlu1 %460  ;;  %v487_v63 = vshra.s32 %v485_v60, 16  ;;  %v486_v13 = vand.u32 65535, %v485_v60 }
 0x177   : > { %v470_v0 = vsel %vm449_vm3, %v466_v61, 2147483647  ;;  %vm465_vm6 = vcmp.eq.f32.partialorder %v1126_v53, %v461_v62 }
 0x178   : > { %v469_v1 = vsel %vm465_vm6, %v1109_v28, 32  ;;  %v458_v2 = vpop.xlane.xlu0 %457  ;;  %v489_v3 = vcvt.s32.f32 %v487_v63  ;;  %v472_v4 = vshra.s32 %v470_v0, 16  ;;  %v471_v14 = vand.u32 65535, %v470_v0 }
 0x179   : > { %v515_v5 = vsel %vm449_vm3, %v469_v1, 2147483647  ;;  %vm464_vm7 = vcmp.eq.f32.partialorder %v1132_v55, %v458_v2  ;;  %v488_v16 = vcvt.s32.f32 %v486_v13 }
 0x17a   : > { %v468_v6 = vsel %vm464_vm7, %v1109_v28, 32  ;;  %490 = vmin.xlane.f32.xlu1 %v489_v3  ;;  %v474_v7 = vcvt.s32.f32 %v472_v4  ;;  %v517_v8 = vshra.s32 %v515_v5, 16  ;;  %v516_v17 = vand.u32 65535, %v515_v5 }
 0x17b   : > { %v500_v9 = vsel %vm449_vm3, %v468_v6, 2147483647  ;;  %v473_v20 = vcvt.s32.f32 %v471_v14 }
 0x17c   : > { %475 = vmin.xlane.f32.xlu0 %v474_v7  ;;  %v519_v10 = vcvt.s32.f32 %v517_v8  ;;  %v502_v11 = vshra.s32 %v500_v9, 16  ;;  %v501_v21 = vand.u32 65535, %v500_v9  ;;  %v518_v24 = vcvt.s32.f32 %v516_v17 }
 0x17e   : > { %520 = vmin.xlane.f32.xlu1 %v519_v10  ;;  %v504_v12 = vcvt.s32.f32 %v502_v11  ;;  %v503_v27 = vcvt.s32.f32 %v501_v21 }
 0x180   : > { %505 = vmin.xlane.f32.xlu0 %v504_v12 }
 0x203   : > { %v491_v15 = vpop.xlane.xlu1 %490 }
 0x204   : > { %vm492_vm8 = vcmp.eq.f32.partialorder %v489_v3, %v491_v15  ;;  %v497_v30 = vcvt.f32.s32 %v491_v15 }
 0x205   : > { %v476_v18 = vpop.xlane.xlu0 %475  ;;  %v493_v19 = vsel %vm492_vm8, %v488_v16, inf }
 0x206   : > { %494 = vmin.xlane.f32.xlu1 %v493_v19  ;;  %vm477_vm9 = vcmp.eq.f32.partialorder %v474_v7, %v476_v18  ;;  %v482_v31 = vcvt.f32.s32 %v476_v18  ;;  %v498_v33 = vshll.u32 %v497_v30, 16 }
 0x207   : > { %v521_v22 = vpop.xlane.xlu1 %520  ;;  %v478_v23 = vsel %vm477_vm9, %v473_v20, inf  ;;  %vm530_vm9 = vcmp.eq.s32.totalorder %v1109_v28, 0 }
 0x208   : > { %479 = vmin.xlane.f32.xlu0 %v478_v23  ;;  %vm522_vm10 = vcmp.eq.f32.partialorder %v519_v10, %v521_v22  ;;  %v527_v34 = vcvt.f32.s32 %v521_v22  ;;  %v483_v37 = vshll.u32 %v482_v31, 16 }
 0x209   : > { %v506_v25 = vpop.xlane.xlu0 %505  ;;  %v523_v26 = vsel %vm522_vm10, %v518_v24, inf  ;;  %vm623_vm10 = vcmp.eq.s32.totalorder %v1109_v28, 1 }
 0x20a   : > { %524 = vmin.xlane.f32.xlu1 %v523_v26  ;;  %vm507_vm11 = vcmp.eq.f32.partialorder %v504_v12, %v506_v25  ;;  %v512_v38 = vcvt.f32.s32 %v506_v25  ;;  %v528_v42 = vshll.u32 %v527_v34, 16 }
 0x20b   : > { %v508_v29 = vsel %vm507_vm11, %v503_v27, inf }
 0x20c   : > { %509 = vmin.xlane.f32.xlu0 %v508_v29  ;;  %v513_v48 = vshll.u32 %v512_v38, 16 }
 0x28f   : > { %v495_v32 = vpop.xlane.xlu1 %494 }
 0x290   : > { %v496_v35 = vcvt.f32.s32 %v495_v32 }
 0x291   : > { %v480_v36 = vpop.xlane.xlu0 %479 }
 0x292   : > { %v1148_v39 = vadd.s32 %v498_v33, %v496_v35  ;;  %v481_v40 = vcvt.f32.s32 %v480_v36 }
 0x293   : > { %v525_v41 = vpop.xlane.xlu1 %524 }
 0x294   : > { %v1150_v43 = vadd.s32 %v483_v37, %v481_v40  ;;  %v526_v44 = vcvt.f32.s32 %v525_v41  ;;  %vm536_vm12 = vcmp.eq.s32.totalorder %v1109_v28, %v1148_v39  ;;  %v532_v40 = vsel %vm530_vm9, %v1148_v39, 0 }
 0x295   : > { %v510_v45 = vpop.xlane.xlu0 %509  ;;  %v1155_v47 = vsel %vm536_vm12, -inf, %v1114_v46 }
 0x296   : > { %v1157_v49 = vadd.s32 %v528_v42, %v526_v44  ;;  %v511_v51 = vcvt.f32.s32 %v510_v45  ;;  %v546_v52 = vsel %vm449_vm3, %v1155_v47, -inf  ;;  %vm535_vm13 = vcmp.eq.s32.totalorder %v1109_v28, %v1150_v43 }
 0x297   : > { %547 = vmax.xlane.f32.xlu1 %v546_v52  ;;  %v1166_v56 = vsel %vm535_vm13, -inf, %v1120_v50  ;;  %v531_v39 = vsel %vm530_vm9, %v1150_v43, 0 }
 0x298   : > { %v1163_v54 = vadd.s32 %v513_v48, %v511_v51  ;;  %vm538_vm14 = vcmp.eq.s32.totalorder %v1109_v28, %v1157_v49  ;;  %v543_v46 = vsel %vm449_vm3, %v1166_v56, -inf }
 0x299   : > { %v1173_v57 = vsel %vm538_vm14, -inf, %v1126_v53  ;;  %544 = vmax.xlane.f32.xlu0 %v543_v46 }
 0x29a   : > { %v552_v58 = vsel %vm449_vm3, %v1173_v57, -inf  ;;  %vm537_vm15 = vcmp.eq.s32.totalorder %v1109_v28, %v1163_v54 }
 0x29b   : > { %553 = vmax.xlane.f32.xlu1 %v552_v58  ;;  %v1180_v50 = vsel %vm537_vm15, -inf, %v1132_v55 }
 0x29c   : > { %v549_v59 = vsel %vm449_vm3, %v1180_v50, -inf }
 0x29d   : > { %550 = vmax.xlane.f32.xlu0 %v549_v59  ;;  %v534_v59 = vsel %vm530_vm9, %v1157_v49, 0 }
 0x320   : > { %v548_v60 = vpop.xlane.xlu1 %547 }
 0x321   : > { %vm556_vm0 = vcmp.eq.f32.partialorder %v1155_v47, %v548_v60 }
 0x322   : > { %v560_v53 = vsel %vm556_vm0, %v1109_v28, 32  ;;  %v545_v62 = vpop.xlane.xlu0 %544 }
 0x323   : > { %v578_v61 = vsel %vm449_vm3, %v560_v53, 2147483647  ;;  %vm555_vm1 = vcmp.eq.f32.partialorder %v1166_v56, %v545_v62 }
 0x324   : > { %v554_v63 = vpop.xlane.xlu1 %553  ;;  %v580_v0 = vshra.s32 %v578_v61, 16  ;;  %v559_v1 = vsel %vm555_vm1, %v1109_v28, 32  ;;  %v579_v14 = vand.u32 65535, %v578_v61 }
 0x325   : > { %vm558_vm2 = vcmp.eq.f32.partialorder %v1173_v57, %v554_v63  ;;  %v563_v55 = vsel %vm449_vm3, %v559_v1, 2147483647 }
 0x326   : > { %v562_v2 = vsel %vm558_vm2, %v1109_v28, 32  ;;  %v582_v3 = vcvt.s32.f32 %v580_v0  ;;  %v551_v5 = vpop.xlane.xlu0 %550  ;;  %v565_v6 = vshra.s32 %v563_v55, 16  ;;  %v564_v15 = vand.u32 65535, %v563_v55 }
 0x327   : > { %v608_v4 = vsel %vm449_vm3, %v562_v2, 2147483647  ;;  %vm557_vm4 = vcmp.eq.f32.partialorder %v1180_v50, %v551_v5  ;;  %v581_v17 = vcvt.s32.f32 %v579_v14  ;;  %v533_v2 = vsel %vm530_vm9, %v1163_v54, 0 }
 0x328   : > { %583 = vmin.xlane.f32.xlu1 %v582_v3  ;;  %v610_v7 = vshra.s32 %v608_v4, 16  ;;  %v561_v8 = vsel %vm557_vm4, %v1109_v28, 32  ;;  %v567_v9 = vcvt.s32.f32 %v565_v6  ;;  %v609_v18 = vand.u32 65535, %v608_v4 }
 0x329   : > { %v593_v10 = vsel %vm449_vm3, %v561_v8, 2147483647  ;;  %v566_v21 = vcvt.s32.f32 %v564_v15 }
 0x32a   : > { %v612_v11 = vcvt.s32.f32 %v610_v7  ;;  %568 = vmin.xlane.f32.xlu0 %v567_v9  ;;  %v595_v12 = vshra.s32 %v593_v10, 16  ;;  %v594_v22 = vand.u32 65535, %v593_v10  ;;  %v611_v24 = vcvt.s32.f32 %v609_v18 }
 0x32c   : > { %613 = vmin.xlane.f32.xlu1 %v612_v11  ;;  %v597_v13 = vcvt.s32.f32 %v595_v12  ;;  %v596_v29 = vcvt.s32.f32 %v594_v22 }
 0x32e   : > { %598 = vmin.xlane.f32.xlu0 %v597_v13 }
 0x3b1   : > { %v584_v16 = vpop.xlane.xlu1 %583 }
 0x3b2   : > { %vm585_vm5 = vcmp.eq.f32.partialorder %v582_v3, %v584_v16  ;;  %v590_v31 = vcvt.f32.s32 %v584_v16 }
 0x3b3   : > { %v586_v19 = vsel %vm585_vm5, %v581_v17, inf  ;;  %v569_v20 = vpop.xlane.xlu0 %568 }
 0x3b4   : > { %587 = vmin.xlane.f32.xlu1 %v586_v19  ;;  %vm570_vm6 = vcmp.eq.f32.partialorder %v567_v9, %v569_v20  ;;  %v575_v32 = vcvt.f32.s32 %v569_v20  ;;  %v591_v34 = vshll.u32 %v590_v31, 16 }
 0x3b5   : > { %v614_v23 = vpop.xlane.xlu1 %613  ;;  %v571_v25 = vsel %vm570_vm6, %v566_v21, inf }
 0x3b6   : > { %vm615_vm7 = vcmp.eq.f32.partialorder %v612_v11, %v614_v23  ;;  %572 = vmin.xlane.f32.xlu0 %v571_v25  ;;  %v620_v35 = vcvt.f32.s32 %v614_v23  ;;  %v576_v41 = vshll.u32 %v575_v32, 16 }
 0x3b7   : > { %v616_v26 = vsel %vm615_vm7, %v611_v24, inf  ;;  %v599_v27 = vpop.xlane.xlu0 %598 }
 0x3b8   : > { %617 = vmin.xlane.f32.xlu1 %v616_v26  ;;  %vm600_vm8 = vcmp.eq.f32.partialorder %v597_v13, %v599_v27  ;;  %v605_v42 = vcvt.f32.s32 %v599_v27  ;;  %v621_v48 = vshll.u32 %v620_v35, 16 }
 0x3b9   : > { %v601_v30 = vsel %vm600_vm8, %v596_v29, inf  ;;  %vm716_vm8 = vcmp.eq.s32.totalorder %v1109_v28, 2 }
 0x3ba   : > { %602 = vmin.xlane.f32.xlu0 %v601_v30  ;;  %v606_v62 = vshll.u32 %v605_v42, 16 }
 0x43d   : > { %v588_v33 = vpop.xlane.xlu1 %587 }
 0x43e   : > { %v589_v36 = vcvt.f32.s32 %v588_v33 }
 0x43f   : > { %v573_v38 = vpop.xlane.xlu0 %572 }
 0x440   : > { %v592_v37 = vadd.s32 %v591_v34, %v589_v36  ;;  %v574_v44 = vcvt.f32.s32 %v573_v38 }
 0x441   : > { %v618_v45 = vpop.xlane.xlu1 %617 }
 0x442   : > { %v1203_v51 = vsel %vm623_vm10, %v592_v37, %v532_v40  ;;  %v619_v52 = vcvt.f32.s32 %v618_v45  ;;  %vm629_vm11 = vcmp.eq.s32.totalorder %v1109_v28, %v592_v37  ;;  %v577_v46 = vadd.s32 %v576_v41, %v574_v44 }
 0x443   : > { %v1207_v58 = vsel %vm629_vm11, -inf, %v1155_v47  ;;  %v603_v53 = vpop.xlane.xlu0 %602 }
 0x444   : > { %v622_v60 = vadd.s32 %v621_v48, %v619_v52  ;;  %v639_v61 = vsel %vm449_vm3, %v1207_v58, -inf  ;;  %v1219_v63 = vsel %vm623_vm10, %v577_v46, %v531_v39  ;;  %v604_v47 = vcvt.f32.s32 %v603_v53 }
 0x445   : > { %640 = vmax.xlane.f32.xlu1 %v639_v61  ;;  %vm628_vm12 = vcmp.eq.s32.totalorder %v1109_v28, %v577_v46 }
 0x446   : > { %v1224_v43 = vsel %vm623_vm10, %v622_v60, %v534_v59  ;;  %v1227_v49 = vsel %vm628_vm12, -inf, %v1166_v56  ;;  %vm631_vm13 = vcmp.eq.s32.totalorder %v1109_v28, %v622_v60  ;;  %v607_v0 = vadd.s32 %v606_v62, %v604_v47 }
 0x447   : > { %v636_v1 = vsel %vm449_vm3, %v1227_v49, -inf  ;;  %v1233_v55 = vsel %vm631_vm13, -inf, %v1173_v57 }
 0x448   : > { %637 = vmax.xlane.f32.xlu0 %v636_v1  ;;  %v645_v3 = vsel %vm449_vm3, %v1233_v55, -inf  ;;  %v1242_v56 = vsel %vm623_vm10, %v607_v0, %v533_v2  ;;  %vm630_vm14 = vcmp.eq.s32.totalorder %v1109_v28, %v607_v0 }
 0x449   : > { %646 = vmax.xlane.f32.xlu1 %v645_v3  ;;  %v1246_v4 = vsel %vm630_vm14, -inf, %v1180_v50 }
 0x44a   : > { %v642_v57 = vsel %vm449_vm3, %v1246_v4, -inf }
 0x44c   : > { %643 = vmax.xlane.f32.xlu0 %v642_v57 }
 0x4ce   : > { %v641_v5 = vpop.xlane.xlu1 %640 }
 0x4cf   : > { %vm649_vm15 = vcmp.eq.f32.partialorder %v1207_v58, %v641_v5 }
 0x4d0   : > { %v653_v54 = vsel %vm649_vm15, %v1109_v28, 32 }
 0x4d1   : > { %v671_v6 = vsel %vm449_vm3, %v653_v54, 2147483647  ;;  %v638_v7 = vpop.xlane.xlu0 %637 }
 0x4d2   : > { %vm648_vm0 = vcmp.eq.f32.partialorder %v1227_v49, %v638_v7  ;;  %v647_v8 = vpop.xlane.xlu1 %646  ;;  %v673_v9 = vshra.s32 %v671_v6, 16  ;;  %v672_v23 = vand.u32 65535, %v671_v6 }
 0x4d3   : > { %v652_v10 = vsel %vm648_vm0, %v1109_v28, 32  ;;  %vm651_vm1 = vcmp.eq.f32.partialorder %v1233_v55, %v647_v8 }
 0x4d4   : > { %v656_v50 = vsel %vm449_vm3, %v652_v10, 2147483647  ;;  %v655_v11 = vsel %vm651_vm1, %v1109_v28, 32  ;;  %v675_v12 = vcvt.s32.f32 %v673_v9  ;;  %v674_v26 = vcvt.s32.f32 %v672_v23 }
 0x4d5   : > { %v701_v13 = vsel %vm449_vm3, %v655_v11, 2147483647  ;;  %v644_v14 = vpop.xlane.xlu0 %643  ;;  %v658_v15 = vshra.s32 %v656_v50, 16  ;;  %v657_v24 = vand.u32 65535, %v656_v50 }
 0x4d6   : > { %vm650_vm2 = vcmp.eq.f32.partialorder %v1246_v4, %v644_v14  ;;  %676 = vmin.xlane.f32.xlu1 %v675_v12  ;;  %v703_v16 = vshra.s32 %v701_v13, 16  ;;  %v702_v27 = vand.u32 65535, %v701_v13 }
 0x4d7   : > { %v654_v17 = vsel %vm650_vm2, %v1109_v28, 32  ;;  %v660_v18 = vcvt.s32.f32 %v658_v15  ;;  %v659_v31 = vcvt.s32.f32 %v657_v24 }
 0x4d8   : > { %v686_v19 = vsel %vm449_vm3, %v654_v17, 2147483647  ;;  %v705_v20 = vcvt.s32.f32 %v703_v16  ;;  %v704_v34 = vcvt.s32.f32 %v702_v27 }
 0x4d9   : > { %661 = vmin.xlane.f32.xlu0 %v660_v18  ;;  %v688_v21 = vshra.s32 %v686_v19, 16  ;;  %v687_v32 = vand.u32 65535, %v686_v19 }
 0x4da   : > { %706 = vmin.xlane.f32.xlu1 %v705_v20 }
 0x4db   : > { %v690_v22 = vcvt.s32.f32 %v688_v21  ;;  %v689_v38 = vcvt.s32.f32 %v687_v32 }
 0x4dd   : > { %691 = vmin.xlane.f32.xlu0 %v690_v22 }
 0x55f   : > { %v677_v25 = vpop.xlane.xlu1 %676 }
 0x560   : > { %vm678_vm4 = vcmp.eq.f32.partialorder %v675_v12, %v677_v25  ;;  %v683_v41 = vcvt.f32.s32 %v677_v25 }
 0x561   : > { %v679_v29 = vsel %vm678_vm4, %v674_v26, inf }
 0x562   : > { %v662_v30 = vpop.xlane.xlu0 %661  ;;  %680 = vmin.xlane.f32.xlu1 %v679_v29  ;;  %v684_v45 = vshll.u32 %v683_v41, 16 }
 0x563   : > { %v707_v33 = vpop.xlane.xlu1 %706  ;;  %vm663_vm5 = vcmp.eq.f32.partialorder %v660_v18, %v662_v30  ;;  %v668_v42 = vcvt.f32.s32 %v662_v30 }
 0x564   : > { %v664_v35 = vsel %vm663_vm5, %v659_v31, inf  ;;  %vm708_vm6 = vcmp.eq.f32.partialorder %v705_v20, %v707_v33  ;;  %v713_v48 = vcvt.f32.s32 %v707_v33  ;;  %vm809_vm5 = vcmp.eq.s32.totalorder %v1109_v28, 3 }
 0x565   : > { %665 = vmin.xlane.f32.xlu0 %v664_v35  ;;  %v709_v36 = vsel %vm708_vm6, %v704_v34, inf  ;;  %v669_v59 = vshll.u32 %v668_v42, 16  ;;  %vm814_vm6 = vcmask 31744  }
 0x566   : > { %v692_v37 = vpop.xlane.xlu0 %691  ;;  %710 = vmin.xlane.f32.xlu1 %v709_v36  ;;  %v714_v62 = vshll.u32 %v713_v48, 16 }
 0x567   : > { %vm693_vm7 = vcmp.eq.f32.partialorder %v690_v22, %v692_v37  ;;  %v698_v60 = vcvt.f32.s32 %v692_v37 }
 0x568   : > { %v694_v40 = vsel %vm693_vm7, %v689_v38, inf }
 0x569   : > { %695 = vmin.xlane.f32.xlu0 %v694_v40  ;;  %v699_v54 = vshll.u32 %v698_v60, 16 }
 0x5eb   : > { %v681_v44 = vpop.xlane.xlu1 %680 }
 0x5ec   : > { %v682_v52 = vcvt.f32.s32 %v681_v44 }
 0x5ee   : > { %v685_v46 = vadd.s32 %v684_v45, %v682_v52  ;;  %v666_v39 = vpop.xlane.xlu0 %665 }
 0x5ef   : > { %v667_v53 = vcvt.f32.s32 %v666_v39  ;;  %v711_v61 = vpop.xlane.xlu1 %710 }
 0x5f0   : > { %v1266_v47 = vsel %vm716_vm8, %v685_v46, %v1203_v51  ;;  %v712_v0 = vcvt.f32.s32 %v711_v61  ;;  %vm722_vm9 = vcmp.eq.s32.totalorder %v1109_v28, %v685_v46 }
 0x5f1   : > { %v670_v1 = vadd.s32 %v669_v59, %v667_v53  ;;  %v726_v2 = vsel %vm722_vm9, -inf, %v1207_v58 }
 0x5f2   : > { %v715_v3 = vadd.s32 %v714_v62, %v712_v0  ;;  %v696_v57 = vpop.xlane.xlu0 %695  ;;  %v732_v5 = vsel %vm449_vm3, %v726_v2, -inf }
 0x5f3   : > { %v1274_v6 = vsel %vm716_vm8, %v670_v1, %v1219_v63  ;;  %v697_v7 = vcvt.f32.s32 %v696_v57  ;;  %733 = vmax.xlane.f32.xlu1 %v732_v5  ;;  %vm721_vm10 = vcmp.eq.s32.totalorder %v1109_v28, %v670_v1 }
 0x5f4   : > { %v1280_v51 = vsel %vm716_vm8, %v715_v3, %v1224_v43  ;;  %v725_v58 = vsel %vm721_vm10, -inf, %v1227_v49  ;;  %vm724_vm11 = vcmp.eq.s32.totalorder %v1109_v28, %v715_v3 }
 0x5f5   : > { %v700_v8 = vadd.s32 %v699_v54, %v697_v7  ;;  %v729_v9 = vsel %vm449_vm3, %v725_v58, -inf  ;;  %v728_v10 = vsel %vm724_vm11, -inf, %v1233_v55 }
 0x5f6   : > { %730 = vmax.xlane.f32.xlu0 %v729_v9  ;;  %v738_v63 = vsel %vm449_vm3, %v728_v10, -inf }
 0x5f7   : > { %v1290_v50 = vsel %vm716_vm8, %v700_v8, %v1242_v56  ;;  %739 = vmax.xlane.f32.xlu1 %v738_v63  ;;  %vm723_vm12 = vcmp.eq.s32.totalorder %v1109_v28, %v700_v8 }
 0x5f8   : > { %v727_v43 = vsel %vm723_vm12, -inf, %v1246_v4 }
 0x5f9   : > { %v735_v49 = vsel %vm449_vm3, %v727_v43, -inf }
 0x5fa   : > { %736 = vmax.xlane.f32.xlu0 %v735_v49 }
 0x67c   : > { %v734_v11 = vpop.xlane.xlu1 %733 }
 0x67d   : > { %vm742_vm13 = vcmp.eq.f32.partialorder %v726_v2, %v734_v11 }
 0x67e   : > { %v746_v55 = vsel %vm742_vm13, %v1109_v28, 32 }
 0x67f   : > { %v764_v12 = vsel %vm449_vm3, %v746_v55, 2147483647  ;;  %v731_v13 = vpop.xlane.xlu0 %730 }
 0x680   : > { %vm741_vm14 = vcmp.eq.f32.partialorder %v725_v58, %v731_v13  ;;  %v740_v14 = vpop.xlane.xlu1 %739  ;;  %v766_v15 = vshra.s32 %v764_v12, 16  ;;  %v765_v29 = vand.u32 65535, %v764_v12 }
 0x681   : > { %v745_v56 = vsel %vm741_vm14, %v1109_v28, 32  ;;  %vm744_vm15 = vcmp.eq.f32.partialorder %v728_v10, %v740_v14 }
 0x682   : > { %v749_v16 = vsel %vm449_vm3, %v745_v56, 2147483647  ;;  %v748_v4 = vsel %vm744_vm15, %v1109_v28, 32  ;;  %v768_v17 = vcvt.s32.f32 %v766_v15  ;;  %v767_v32 = vcvt.s32.f32 %v765_v29 }
 0x683   : > { %v794_v18 = vsel %vm449_vm3, %v748_v4, 2147483647  ;;  %v737_v19 = vpop.xlane.xlu0 %736  ;;  %v751_v20 = vshra.s32 %v749_v16, 16  ;;  %v750_v30 = vand.u32 65535, %v749_v16 }
 0x684   : > { %vm743_vm0 = vcmp.eq.f32.partialorder %v727_v43, %v737_v19  ;;  %769 = vmin.xlane.f32.xlu1 %v768_v17  ;;  %v796_v21 = vshra.s32 %v794_v18, 16  ;;  %v795_v33 = vand.u32 65535, %v794_v18 }
 0x685   : > { %v747_v22 = vsel %vm743_vm0, %v1109_v28, 32  ;;  %v753_v23 = vcvt.s32.f32 %v751_v20  ;;  %v752_v36 = vcvt.s32.f32 %v750_v30 }
 0x686   : > { %v779_v24 = vsel %vm449_vm3, %v747_v22, 2147483647  ;;  %v798_v25 = vcvt.s32.f32 %v796_v21  ;;  %v797_v40 = vcvt.s32.f32 %v795_v33 }
 0x687   : > { %754 = vmin.xlane.f32.xlu0 %v753_v23  ;;  %v781_v26 = vshra.s32 %v779_v24, 16  ;;  %v780_v37 = vand.u32 65535, %v779_v24 }
 0x688   : > { %799 = vmin.xlane.f32.xlu1 %v798_v25 }
 0x689   : > { %v783_v27 = vcvt.s32.f32 %v781_v26  ;;  %v782_v45 = vcvt.s32.f32 %v780_v37 }
 0x68b   : > { %784 = vmin.xlane.f32.xlu0 %v783_v27 }
 0x70d   : > { %v770_v31 = vpop.xlane.xlu1 %769 }
 0x70e   : > { %vm771_vm1 = vcmp.eq.f32.partialorder %v768_v17, %v770_v31  ;;  %v776_v52 = vcvt.f32.s32 %v770_v31 }
 0x70f   : > { %v772_v34 = vsel %vm771_vm1, %v767_v32, inf }
 0x710   : > { %v755_v35 = vpop.xlane.xlu0 %754  ;;  %773 = vmin.xlane.f32.xlu1 %v772_v34  ;;  %v777_v59 = vshll.u32 %v776_v52, 16 }
 0x711   : > { %v800_v38 = vpop.xlane.xlu1 %799  ;;  %vm756_vm2 = vcmp.eq.f32.partialorder %v753_v23, %v755_v35  ;;  %v761_v46 = vcvt.f32.s32 %v755_v35 }
 0x712   : > { %v757_v41 = vsel %vm756_vm2, %v752_v36, inf  ;;  %vm801_vm3 = vcmp.eq.f32.partialorder %v798_v25, %v800_v38  ;;  %v806_v60 = vcvt.f32.s32 %v800_v38 }
 0x713   : > { %758 = vmin.xlane.f32.xlu0 %v757_v41  ;;  %v802_v42 = vsel %vm801_vm3, %v797_v40, inf  ;;  %v762_v0 = vshll.u32 %v761_v46, 16 }
 0x714   : > { %v785_v44 = vpop.xlane.xlu0 %784  ;;  %803 = vmin.xlane.f32.xlu1 %v802_v42  ;;  %v807_v57 = vshll.u32 %v806_v60, 16 }
 0x715   : > { %vm786_vm4 = vcmp.eq.f32.partialorder %v783_v27, %v785_v44  ;;  %v791_v1 = vcvt.f32.s32 %v785_v44 }
 0x716   : > { %v787_v48 = vsel %vm786_vm4, %v782_v45, inf }
 0x717   : > { %788 = vmin.xlane.f32.xlu0 %v787_v48  ;;  %v792_v9 = vshll.u32 %v791_v1, 16 }
 0x799   : > { %v774_v39 = vpop.xlane.xlu1 %773 }
 0x79a   : > { %v775_v53 = vcvt.f32.s32 %v774_v39 }
 0x79c   : > { %v778_v61 = vadd.s32 %v777_v59, %v775_v53  ;;  %v759_v62 = vpop.xlane.xlu0 %758 }
 0x79d   : > { %v760_v2 = vcvt.f32.s32 %v759_v62  ;;  %v804_v3 = vpop.xlane.xlu1 %803 }
 0x79e   : > { %v811_v5 = vsel %vm809_vm5, %v778_v61, %v1266_v47  ;;  %v805_v54 = vcvt.f32.s32 %v804_v3 }
 0x79f   : > { %816 = vst.msk [vmem:[%s201_s22 + $0x8] sm:$0xff] %vm814_vm6, %v811_v5  ;;  %v763_v7 = vadd.s32 %v762_v0, %v760_v2 }
 0x7a0   : > { %v808_v58 = vadd.s32 %v807_v57, %v805_v54  ;;  %v789_v8 = vpop.xlane.xlu0 %788 }
 0x7a1   : > { %v810_v10 = vsel %vm809_vm5, %v763_v7, %v1274_v6  ;;  %v790_v63 = vcvt.f32.s32 %v789_v8 }
 0x7a2   : > { %815 = vst.msk [vmem:[%s201_s22] sm:$0xff] %vm814_vm6, %v810_v10  ;;  %v813_v43 = vsel %vm809_vm5, %v808_v58, %v1280_v51 }
 0x7a3   : > { %818 = vst.msk [vmem:[%s201_s22 + $0x18] sm:$0xff] %vm814_vm6, %v813_v43  ;;  %v793_v47 = vadd.s32 %v792_v9, %v790_v63 }
 0x7a5   : > { %v812_v49 = vsel %vm809_vm5, %v793_v47, %v1290_v50 }
 0x7a6   : > { %817 = vst.msk [vmem:[%s201_s22 + $0x10] sm:$0xff] %vm814_vm6, %v812_v49 }
 0x7a7 PF: > { %s12_s11 = sadd.s32 1, %s1034_s11   ;;  %s1336_s9 = smov %s1030_s10 }
 0x7a8   : > { %p9_p5 = scmp.ge.s32.totalorder %s12_s11, 4   ;;  %s1337_s10 = smov %s1339_s12 }
 0x7aa   :  { %11 = sbr.rel (!%p9_p5) target bundleno = 2 (0x2), region = 61 }

// kernel: dgcnn_semseg_forward.10
= control target key start
LH: loop header
LB: loop body
LE: loop exit
PB: predicated region body
PF: predicated region fallthrough
CT: control target
= control target key end

     0   :  { %s1033_s9 = smov 0   ;;  %s1035_s10 = smov 0   ;;  %s1291_s0 = inlined_call_operand.vmem [shape: bf16[2,32,64], index: 0, kind: input, shape index: {}, may-alias: {0,1}]   ;;  %s1292_s1 = inlined_call_operand.vmem [shape: bf16[2,32,64], index: 1, kind: input, shape index: {}, may-alias: {0,1}]   ;;  %s1293_s2 = inlined_call_operand.vmem [shape: s32[2,32,4], index: 2, kind: output, shape index: {}]  }
   0x1   :  { %s1037_s11 = smov 0  }
   0x2 LB: > { %s24_s12 = sadd.s32 1, %s1009_s10  ;;  %p903_p0 = scmp.ge.s32.totalorder %s1013_s11, 1  ;;  %s1013_s11 = sphi %s1037_s11, %s12_s11   ;;  %s1009_s10 = sphi %s1035_s10, %s1295_s10   ;;  %s1005_s9 = sphi %s1033_s9, %s1294_s9  }
   0x3   : > { %p26_p1 = scmp.ge.s32.totalorder %s24_s12, 2  ;;  %p143_p2 = scmp.lt.s32.totalorder %s1013_s11, 3 }
   0x5   : > { %s1297_s12 = smov (%p26_p1, %s24_s12), 0  ;;  %p144_p3 = pnand %p903_p0, %p143_p2 }
   0x6   : > { %p179_p4 = scmp.lt.s32.totalorder (!%p144_p3), %s1005_s9, 1 }
   0x7   : > { %147 = sbr.rel (%p144_p3) target bundleno = 1963 (0x7ab), region = 28 }
   0xc   : > { %v1015_v0 = vmov 0.0   ;;  %vm1016_vm0 = vmmov 0   ;;  %s1299_s9 = smov (!%p179_p4, %s1005_s9), 1  ;;  %vm232_vm1 = vcmask 523264   ;;  %v1017_v27 = vmov 1.0  }
   0xd   : > { %943 = vmatprep.subr.mxu1 %v1015_v0  ;;  %951 = vmatprep.mubr.msk.f32.mxu1 %vm1016_vm0, %v1015_v0  ;;  %s923_s13 = sshll.u32 %s1299_s9, 4  ;;  %v415_v28 = vlaneseq  ;;  %vm430_vm3 = vcmask 261120   ;;  %s925_s20 = sshll.u32 %s1299_s9, 5 }
   0xe   : > { %s192_s16 = scalar_lea.vmem %s1292_s1, %s923_s13  ;;  %s186_s19 = scalar_lea.vmem %s1291_s0, %s923_s13 }
   0xf   : > { %v210_v1 = vld [vmem:[%s192_s16 + $0x8] sm:$0xff]   ;;  %v208_v2 = vld [vmem:[%s192_s16] sm:$0xff]   ;;  %v416_v29 = vshrl.u32 %v415_v28, 7  ;;  %v1075_v41 = vand.u32 127, %v415_v28  ;;  %s201_s23 = scalar_lea.vmem %s1293_s2, %s925_s20 }
  0x10   : > { %v300_v3 = vunpack.c.l.bf16 %v210_v1  ;;  %v301_v4 = vunpack.c.h.bf16 %v210_v1  ;;  %v204_v5 = vld [vmem:[%s186_s19] sm:$0xff]   ;;  %954 = vmatprep.subr.msk.bf16.mxu0 %vm232_vm1, %v210_v1  ;;  %v243_v6 = vsel %vm232_vm1, %v210_v1, 0  ;;  %v206_v8 = vld [vmem:[%s186_s19 + $0x8] sm:$0xff]   ;;  %v299_v12 = vunpack.c.h.bf16 %v208_v2 }
  0x11   : > { %936 = vmatpush3.bf16.xpose.msra.mxu0 %v243_v6  ;;  %939 = vmatprep.mubr.msk.bf16.mxu0 %vm232_vm1, %v204_v5  ;;  %v296_v9 = vunpack.c.l.bf16 %v206_v8  ;;  %v294_v10 = vunpack.c.l.bf16 %v204_v5  ;;  %v297_v13 = vunpack.c.h.bf16 %v206_v8  ;;  %v295_v14 = vunpack.c.h.bf16 %v204_v5 }
  0x12   : > { %v321_v7 = vmul.f32 %v301_v4, %v301_v4  ;;  %v320_v11 = vmul.f32 %v300_v3, %v300_v3  ;;  %955 = vmatprep.subr.msk.bf16.mxu0 %vm232_vm1, %v208_v2  ;;  %v240_v21 = vsel %vm232_vm1, %v208_v2, 0  ;;  %v319_v22 = vmul.f32 %v299_v12, %v299_v12 }
  0x13   : > { %v304_v15 = vmul.f32 %v296_v9, %v296_v9  ;;  %v302_v16 = vmul.f32 %v294_v10, %v294_v10  ;;  %v305_v17 = vmul.f32 %v297_v13, %v297_v13  ;;  %v303_v18 = vmul.f32 %v295_v14, %v295_v14 }
  0x14   : > { %944 = vmatpush3.xpose.msk.msra.mxu1 %vm232_vm1, %v321_v7  ;;  %v298_v23 = vunpack.c.l.bf16 %v208_v2  ;;  %v417_v31 = vsub.s32 0, %v416_v29  ;;  %vm425_vm2 = vcmp.lt.s32.totalorder %v1075_v41, 32 }
  0x15   : > { %945 = vmatprep.subr.mxu1 %v1015_v0  ;;  %v312_v19 = vsel %vm232_vm1, %v304_v15, 0.0  ;;  %v306_v20 = vsel %vm232_vm1, %v302_v16, 0.0  ;;  %v315_v24 = vsel %vm232_vm1, %v305_v17, 0.0  ;;  %v309_v25 = vsel %vm232_vm1, %v303_v18, 0.0 }
  0x16   : > { %313 = vadd.xlane.f32.xlu1 %v312_v19  ;;  %307 = vadd.xlane.f32.xlu0 %v306_v20  ;;  %v318_v26 = vmul.f32 %v298_v23, %v298_v23 }
  0x18   : > { %946 = vmatpush3.xpose.msk.msra.mxu1 %vm232_vm1, %v320_v11 }
  0x19   : > { %947 = vmatprep.subr.mxu1 %v1015_v0  ;;  %938 = vmatpush3.bf16.xpose.msra.mxu0 %v240_v21 }
  0x1a   : > { %316 = vadd.xlane.f32.xlu1 %v315_v24  ;;  %310 = vadd.xlane.f32.xlu0 %v309_v25 }
  0x1c   : > { %948 = vmatpush3.xpose.msk.msra.mxu1 %vm232_vm1, %v319_v22 }
  0x1d   : > { %949 = vmatprep.subr.mxu1 %v1015_v0 }
  0x20   : > { %950 = vmatpush3.xpose.msk.msra.mxu1 %vm232_vm1, %v318_v26  ;;  %940 = vmatmul.mubr.msk.bf16.vlgmr.msra.gmra.mxu0 %vm232_vm1, %v206_v8 }
  0x23   : > { %952 = vmatmul.mubr.msk.f32.vlgmr.msra.gmra.mxu1 %vm232_vm1, %v1017_v27 }
  0x9f   : > { %v314_v30 = vpop.xlane.xlu1 %313  ;;  %v308_v33 = vpop.xlane.xlu0 %307 }
  0xa3   : > { %v317_v43 = vpop.xlane.xlu1 %316  ;;  %v311_v47 = vpop.xlane.xlu0 %310 }
  0xe0   : > { %v941_v32 = vpop.f32.mrf.mxu0 }
  0xe1   : > { %v409_v34 = vmul.f32 2.0, %v941_v32 }
  0xe2   : > { %v279_v36 = vpop.f32.mrf.mxu0 }
  0xe3   : > { %v403_v35 = vpop.f32.mrf.mxu1  ;;  %v413_v38 = vsub.f32 %v409_v34, %v314_v30  ;;  %v407_v39 = vmul.f32 2.0, %v279_v36 }
  0xe4   : > { %v418_v37 = vrot.slane %v403_v35, %v417_v31  ;;  %v942_v42 = vpop.f32.mrf.mxu0 }
  0xe5   : > { %v953_v40 = vpop.f32.mrf.mxu1  ;;  %v411_v44 = vsub.f32 %v407_v39, %v308_v33  ;;  %v410_v45 = vmul.f32 2.0, %v942_v42 }
  0xe6   : > { %v282_v46 = vpop.f32.mrf.mxu0  ;;  %v421_v48 = vsub.f32 %v413_v38, %v418_v37 }
  0xe7   : > { %v419_v49 = vsub.f32 %v411_v44, %v418_v37  ;;  %v414_v50 = vsub.f32 %v410_v45, %v317_v43  ;;  %v408_v51 = vmul.f32 2.0, %v282_v46 }
  0xe8   : > { %v1082_v57 = vsel %vm425_vm2, %v421_v48, -inf }
  0xe9   : > { %v412_v52 = vsub.f32 %v408_v51, %v311_v47  ;;  %v1078_v53 = vsel %vm425_vm2, %v419_v49, -inf  ;;  %v422_v55 = vsub.f32 %v414_v50, %v418_v37  ;;  %v437_v59 = vsel %vm430_vm3, %v1082_v57, -inf }
  0xea   : > { %v431_v54 = vsel %vm430_vm3, %v1078_v53, -inf }
  0xeb   : > { %v420_v56 = vsub.f32 %v412_v52, %v418_v37  ;;  %432 = vmax.xlane.f32.xlu0 %v431_v54  ;;  %v1090_v61 = vsel %vm425_vm2, %v422_v55, -inf }
  0xec   : > { %v440_v62 = vsel %vm430_vm3, %v1090_v61, -inf }
  0xed   : > { %v1084_v58 = vsel %vm425_vm2, %v420_v56, -inf }
  0xee   : > { %v434_v60 = vsel %vm430_vm3, %v1084_v58, -inf }
  0xef   : > { %438 = vmax.xlane.f32.xlu0 %v437_v59  ;;  %435 = vmax.xlane.f32.xlu1 %v434_v60 }
  0xf3   : > { %441 = vmax.xlane.f32.xlu1 %v440_v62 }
 0x174   : > { %v433_v63 = vpop.xlane.xlu0 %432 }
 0x175   : > { %vm443_vm4 = vcmp.eq.f32.partialorder %v1078_v53, %v433_v63 }
 0x176   : > { %v447_v0 = vsel %vm443_vm4, %v1075_v41, 32 }
 0x177   : > { %v451_v1 = vsel %vm430_vm3, %v447_v0, 2147483647 }
 0x178   : > { %v439_v2 = vpop.xlane.xlu0 %438  ;;  %v436_v3 = vpop.xlane.xlu1 %435  ;;  %v453_v4 = vshra.s32 %v451_v1, 16  ;;  %v452_v19 = vand.u32 65535, %v451_v1 }
 0x179   : > { %vm445_vm5 = vcmp.eq.f32.partialorder %v1082_v57, %v439_v2  ;;  %vm444_vm6 = vcmp.eq.f32.partialorder %v1084_v58, %v436_v3 }
 0x17a   : > { %v449_v5 = vsel %vm445_vm5, %v1075_v41, 32  ;;  %v448_v6 = vsel %vm444_vm6, %v1075_v41, 32  ;;  %v455_v7 = vcvt.s32.f32 %v453_v4  ;;  %v454_v21 = vcvt.s32.f32 %v452_v19 }
 0x17b   : > { %v481_v8 = vsel %vm430_vm3, %v449_v5, 2147483647  ;;  %v466_v9 = vsel %vm430_vm3, %v448_v6, 2147483647 }
 0x17c   : > { %456 = vmin.xlane.f32.xlu0 %v455_v7  ;;  %v442_v10 = vpop.xlane.xlu1 %441  ;;  %v483_v11 = vshra.s32 %v481_v8, 16  ;;  %v468_v12 = vshra.s32 %v466_v9, 16  ;;  %v482_v22 = vand.u32 65535, %v481_v8  ;;  %v467_v23 = vand.u32 65535, %v466_v9 }
 0x17d   : > { %vm446_vm7 = vcmp.eq.f32.partialorder %v1090_v61, %v442_v10 }
 0x17e   : > { %v450_v13 = vsel %vm446_vm7, %v1075_v41, 32  ;;  %v485_v14 = vcvt.s32.f32 %v483_v11  ;;  %v470_v15 = vcvt.s32.f32 %v468_v12  ;;  %v484_v27 = vcvt.s32.f32 %v482_v22 }
 0x17f   : > { %v496_v16 = vsel %vm430_vm3, %v450_v13, 2147483647  ;;  %v469_v28 = vcvt.s32.f32 %v467_v23 }
 0x180   : > { %486 = vmin.xlane.f32.xlu0 %v485_v14  ;;  %471 = vmin.xlane.f32.xlu1 %v470_v15  ;;  %v498_v17 = vshra.s32 %v496_v16, 16  ;;  %v497_v29 = vand.u32 65535, %v496_v16 }
 0x182   : > { %v500_v18 = vcvt.s32.f32 %v498_v17  ;;  %v499_v33 = vcvt.s32.f32 %v497_v29 }
 0x184   : > { %501 = vmin.xlane.f32.xlu1 %v500_v18 }
 0x205   : > { %v457_v20 = vpop.xlane.xlu0 %456 }
 0x206   : > { %vm458_vm8 = vcmp.eq.f32.partialorder %v455_v7, %v457_v20  ;;  %v463_v35 = vcvt.f32.s32 %v457_v20 }
 0x207   : > { %v459_v24 = vsel %vm458_vm8, %v454_v21, inf }
 0x208   : > { %460 = vmin.xlane.f32.xlu0 %v459_v24  ;;  %v464_v39 = vshll.u32 %v463_v35, 16 }
 0x209   : > { %v487_v25 = vpop.xlane.xlu0 %486  ;;  %v472_v26 = vpop.xlane.xlu1 %471 }
 0x20a   : > { %vm488_vm9 = vcmp.eq.f32.partialorder %v485_v14, %v487_v25  ;;  %vm473_vm10 = vcmp.eq.f32.partialorder %v470_v15, %v472_v26  ;;  %v493_v36 = vcvt.f32.s32 %v487_v25  ;;  %v478_v37 = vcvt.f32.s32 %v472_v26 }
 0x20b   : > { %v489_v30 = vsel %vm488_vm9, %v484_v27, inf  ;;  %v474_v31 = vsel %vm473_vm10, %v469_v28, inf  ;;  %vm511_vm9 = vcmp.eq.s32.totalorder %v1075_v41, 0  ;;  %vm604_vm10 = vcmp.eq.s32.totalorder %v1075_v41, 1 }
 0x20c   : > { %490 = vmin.xlane.f32.xlu0 %v489_v30  ;;  %475 = vmin.xlane.f32.xlu1 %v474_v31  ;;  %v494_v43 = vshll.u32 %v493_v36, 16  ;;  %v479_v44 = vshll.u32 %v478_v37, 16 }
 0x20d   : > { %v502_v32 = vpop.xlane.xlu1 %501 }
 0x20e   : > { %vm503_vm11 = vcmp.eq.f32.partialorder %v500_v18, %v502_v32  ;;  %v508_v47 = vcvt.f32.s32 %v502_v32 }
 0x20f   : > { %v504_v34 = vsel %vm503_vm11, %v499_v33, inf }
 0x210   : > { %505 = vmin.xlane.f32.xlu1 %v504_v34  ;;  %v509_v56 = vshll.u32 %v508_v47, 16 }
 0x291   : > { %v461_v38 = vpop.xlane.xlu0 %460 }
 0x292   : > { %v462_v40 = vcvt.f32.s32 %v461_v38 }
 0x294   : > { %v1106_v42 = vadd.s32 %v464_v39, %v462_v40 }
 0x295   : > { %v491_v45 = vpop.xlane.xlu0 %490  ;;  %v476_v46 = vpop.xlane.xlu1 %475 }
 0x296   : > { %v492_v48 = vcvt.f32.s32 %v491_v45  ;;  %v477_v49 = vcvt.f32.s32 %v476_v46  ;;  %vm516_vm12 = vcmp.eq.s32.totalorder %v1075_v41, %v1106_v42  ;;  %v512_v45 = vsel %vm511_vm9, %v1106_v42, 0 }
 0x297   : > { %v1111_v50 = vsel %vm516_vm12, -inf, %v1078_v53 }
 0x298   : > { %v1113_v51 = vadd.s32 %v494_v43, %v492_v48  ;;  %v1115_v52 = vadd.s32 %v479_v44, %v477_v49  ;;  %v524_v54 = vsel %vm430_vm3, %v1111_v50, -inf }
 0x299   : > { %525 = vmax.xlane.f32.xlu0 %v524_v54  ;;  %v506_v55 = vpop.xlane.xlu1 %505 }
 0x29a   : > { %v507_v59 = vcvt.f32.s32 %v506_v55  ;;  %vm518_vm13 = vcmp.eq.s32.totalorder %v1075_v41, %v1113_v51  ;;  %vm517_vm14 = vcmp.eq.s32.totalorder %v1075_v41, %v1115_v52 }
 0x29b   : > { %v1122_v60 = vsel %vm518_vm13, -inf, %v1082_v57  ;;  %v1131_v63 = vsel %vm517_vm14, -inf, %v1084_v58 }
 0x29c   : > { %v1126_v53 = vadd.s32 %v509_v56, %v507_v59  ;;  %v530_v62 = vsel %vm430_vm3, %v1122_v60, -inf  ;;  %v527_v0 = vsel %vm430_vm3, %v1131_v63, -inf }
 0x29d   : > { %531 = vmax.xlane.f32.xlu0 %v530_v62  ;;  %528 = vmax.xlane.f32.xlu1 %v527_v0 }
 0x29e   : > { %vm519_vm15 = vcmp.eq.s32.totalorder %v1075_v41, %v1126_v53 }
 0x29f   : > { %v1138_v57 = vsel %vm519_vm15, -inf, %v1090_v61 }
 0x2a0   : > { %v533_v1 = vsel %vm430_vm3, %v1138_v57, -inf }
 0x2a1   : > { %534 = vmax.xlane.f32.xlu1 %v533_v1  ;;  %v514_v1 = vsel %vm511_vm9, %v1113_v51, 0 }
 0x322   : > { %v526_v2 = vpop.xlane.xlu0 %525 }
 0x323   : > { %vm536_vm0 = vcmp.eq.f32.partialorder %v1111_v50, %v526_v2 }
 0x324   : > { %v540_v58 = vsel %vm536_vm0, %v1075_v41, 32 }
 0x325   : > { %v544_v3 = vsel %vm430_vm3, %v540_v58, 2147483647  ;;  %v513_v58 = vsel %vm511_vm9, %v1115_v52, 0 }
 0x326   : > { %v532_v4 = vpop.xlane.xlu0 %531  ;;  %v546_v5 = vshra.s32 %v544_v3, 16  ;;  %v529_v6 = vpop.xlane.xlu1 %528  ;;  %v545_v20 = vand.u32 65535, %v544_v3 }
 0x327   : > { %vm538_vm1 = vcmp.eq.f32.partialorder %v1122_v60, %v532_v4  ;;  %vm537_vm2 = vcmp.eq.f32.partialorder %v1131_v63, %v529_v6 }
 0x328   : > { %v542_v7 = vsel %vm538_vm1, %v1075_v41, 32  ;;  %v548_v61 = vcvt.s32.f32 %v546_v5  ;;  %v541_v9 = vsel %vm537_vm2, %v1075_v41, 32  ;;  %v547_v22 = vcvt.s32.f32 %v545_v20 }
 0x329   : > { %v574_v8 = vsel %vm430_vm3, %v542_v7, 2147483647  ;;  %v559_v10 = vsel %vm430_vm3, %v541_v9, 2147483647  ;;  %v515_v9 = vsel %vm511_vm9, %v1126_v53, 0 }
 0x32a   : > { %549 = vmin.xlane.f32.xlu0 %v548_v61  ;;  %v576_v11 = vshra.s32 %v574_v8, 16  ;;  %v535_v12 = vpop.xlane.xlu1 %534  ;;  %v561_v13 = vshra.s32 %v559_v10, 16  ;;  %v575_v23 = vand.u32 65535, %v574_v8  ;;  %v560_v24 = vand.u32 65535, %v559_v10 }
 0x32b   : > { %vm539_vm4 = vcmp.eq.f32.partialorder %v1138_v57, %v535_v12 }
 0x32c   : > { %v578_v14 = vcvt.s32.f32 %v576_v11  ;;  %v543_v15 = vsel %vm539_vm4, %v1075_v41, 32  ;;  %v563_v16 = vcvt.s32.f32 %v561_v13  ;;  %v577_v27 = vcvt.s32.f32 %v575_v23 }
 0x32d   : > { %v589_v17 = vsel %vm430_vm3, %v543_v15, 2147483647  ;;  %v562_v29 = vcvt.s32.f32 %v560_v24 }
 0x32e   : > { %579 = vmin.xlane.f32.xlu0 %v578_v14  ;;  %564 = vmin.xlane.f32.xlu1 %v563_v16  ;;  %v591_v18 = vshra.s32 %v589_v17, 16  ;;  %v590_v30 = vand.u32 65535, %v589_v17 }
 0x330   : > { %v593_v19 = vcvt.s32.f32 %v591_v18  ;;  %v592_v34 = vcvt.s32.f32 %v590_v30 }
 0x332   : > { %594 = vmin.xlane.f32.xlu1 %v593_v19 }
 0x3b3   : > { %v550_v21 = vpop.xlane.xlu0 %549 }
 0x3b4   : > { %vm551_vm5 = vcmp.eq.f32.partialorder %v548_v61, %v550_v21  ;;  %v556_v36 = vcvt.f32.s32 %v550_v21 }
 0x3b5   : > { %v552_v25 = vsel %vm551_vm5, %v547_v22, inf }
 0x3b6   : > { %553 = vmin.xlane.f32.xlu0 %v552_v25  ;;  %v557_v39 = vshll.u32 %v556_v36, 16 }
 0x3b7   : > { %v580_v26 = vpop.xlane.xlu0 %579  ;;  %v565_v28 = vpop.xlane.xlu1 %564 }
 0x3b8   : > { %vm581_vm6 = vcmp.eq.f32.partialorder %v578_v14, %v580_v26  ;;  %vm566_vm7 = vcmp.eq.f32.partialorder %v563_v16, %v565_v28  ;;  %v586_v37 = vcvt.f32.s32 %v580_v26  ;;  %v571_v43 = vcvt.f32.s32 %v565_v28 }
 0x3b9   : > { %v582_v31 = vsel %vm581_vm6, %v577_v27, inf  ;;  %v567_v32 = vsel %vm566_vm7, %v562_v29, inf }
 0x3ba   : > { %583 = vmin.xlane.f32.xlu0 %v582_v31  ;;  %568 = vmin.xlane.f32.xlu1 %v567_v32  ;;  %v587_v46 = vshll.u32 %v586_v37, 16  ;;  %v572_v56 = vshll.u32 %v571_v43, 16 }
 0x3bb   : > { %v595_v33 = vpop.xlane.xlu1 %594 }
 0x3bc   : > { %vm596_vm8 = vcmp.eq.f32.partialorder %v593_v19, %v595_v33  ;;  %v601_v48 = vcvt.f32.s32 %v595_v33 }
 0x3bd   : > { %v597_v35 = vsel %vm596_vm8, %v592_v34, inf  ;;  %vm697_vm8 = vcmp.eq.s32.totalorder %v1075_v41, 2 }
 0x3be   : > { %598 = vmin.xlane.f32.xlu1 %v597_v35  ;;  %v602_v3 = vshll.u32 %v601_v48, 16 }
 0x43f   : > { %v554_v38 = vpop.xlane.xlu0 %553 }
 0x440   : > { %v555_v40 = vcvt.f32.s32 %v554_v38 }
 0x442   : > { %v558_v44 = vadd.s32 %v557_v39, %v555_v40 }
 0x443   : > { %v584_v47 = vpop.xlane.xlu0 %583  ;;  %v569_v55 = vpop.xlane.xlu1 %568 }
 0x444   : > { %v1161_v49 = vsel %vm604_vm10, %v558_v44, %v512_v45  ;;  %v585_v54 = vcvt.f32.s32 %v584_v47  ;;  %vm609_vm11 = vcmp.eq.s32.totalorder %v1075_v41, %v558_v44  ;;  %v570_v59 = vcvt.f32.s32 %v569_v55 }
 0x445   : > { %v1165_v62 = vsel %vm609_vm11, -inf, %v1111_v50 }
 0x446   : > { %v588_v0 = vadd.s32 %v587_v46, %v585_v54  ;;  %v617_v42 = vsel %vm430_vm3, %v1165_v62, -inf  ;;  %v573_v2 = vadd.s32 %v572_v56, %v570_v59 }
 0x447   : > { %618 = vmax.xlane.f32.xlu0 %v617_v42  ;;  %v599_v50 = vpop.xlane.xlu1 %598 }
 0x448   : > { %v1177_v4 = vsel %vm604_vm10, %v588_v0, %v514_v1  ;;  %vm611_vm12 = vcmp.eq.s32.totalorder %v1075_v41, %v588_v0  ;;  %v1182_v5 = vsel %vm604_vm10, %v573_v2, %v513_v58  ;;  %v600_v6 = vcvt.f32.s32 %v599_v50 }
 0x449   : > { %v1185_v51 = vsel %vm611_vm12, -inf, %v1122_v60  ;;  %vm610_vm13 = vcmp.eq.s32.totalorder %v1075_v41, %v573_v2 }
 0x44a   : > { %v623_v52 = vsel %vm430_vm3, %v1185_v51, -inf  ;;  %v1191_v7 = vsel %vm610_vm13, -inf, %v1131_v63  ;;  %v603_v61 = vadd.s32 %v602_v3, %v600_v6 }
 0x44b   : > { %624 = vmax.xlane.f32.xlu0 %v623_v52  ;;  %v620_v8 = vsel %vm430_vm3, %v1191_v7, -inf }
 0x44c   : > { %621 = vmax.xlane.f32.xlu1 %v620_v8  ;;  %v1200_v60 = vsel %vm604_vm10, %v603_v61, %v515_v9  ;;  %vm612_vm14 = vcmp.eq.s32.totalorder %v1075_v41, %v603_v61 }
 0x44d   : > { %v1204_v10 = vsel %vm612_vm14, -inf, %v1138_v57 }
 0x44e   : > { %v626_v63 = vsel %vm430_vm3, %v1204_v10, -inf }
 0x450   : > { %627 = vmax.xlane.f32.xlu1 %v626_v63 }
 0x4d0   : > { %v619_v11 = vpop.xlane.xlu0 %618 }
 0x4d1   : > { %vm629_vm15 = vcmp.eq.f32.partialorder %v1165_v62, %v619_v11 }
 0x4d2   : > { %v633_v12 = vsel %vm629_vm15, %v1075_v41, 32 }
 0x4d3   : > { %v637_v53 = vsel %vm430_vm3, %v633_v12, 2147483647 }
 0x4d4   : > { %v625_v13 = vpop.xlane.xlu0 %624  ;;  %v639_v14 = vshra.s32 %v637_v53, 16  ;;  %v638_v29 = vand.u32 65535, %v637_v53 }
 0x4d5   : > { %vm631_vm0 = vcmp.eq.f32.partialorder %v1185_v51, %v625_v13  ;;  %v622_v15 = vpop.xlane.xlu1 %621 }
 0x4d6   : > { %v635_v16 = vsel %vm631_vm0, %v1075_v41, 32  ;;  %vm630_vm1 = vcmp.eq.f32.partialorder %v1191_v7, %v622_v15  ;;  %v641_v57 = vcvt.s32.f32 %v639_v14  ;;  %v640_v31 = vcvt.s32.f32 %v638_v29 }
 0x4d7   : > { %v667_v17 = vsel %vm430_vm3, %v635_v16, 2147483647  ;;  %v634_v18 = vsel %vm630_vm1, %v1075_v41, 32 }
 0x4d8   : > { %v652_v19 = vsel %vm430_vm3, %v634_v18, 2147483647  ;;  %642 = vmin.xlane.f32.xlu0 %v641_v57  ;;  %v669_v20 = vshra.s32 %v667_v17, 16  ;;  %v668_v32 = vand.u32 65535, %v667_v17 }
 0x4d9   : > { %v628_v21 = vpop.xlane.xlu1 %627  ;;  %v654_v22 = vshra.s32 %v652_v19, 16  ;;  %v653_v33 = vand.u32 65535, %v652_v19 }
 0x4da   : > { %vm632_vm2 = vcmp.eq.f32.partialorder %v1204_v10, %v628_v21  ;;  %v671_v23 = vcvt.s32.f32 %v669_v20  ;;  %v670_v36 = vcvt.s32.f32 %v668_v32 }
 0x4db   : > { %v636_v24 = vsel %vm632_vm2, %v1075_v41, 32  ;;  %v656_v25 = vcvt.s32.f32 %v654_v22  ;;  %v655_v38 = vcvt.s32.f32 %v653_v33 }
 0x4dc   : > { %v682_v26 = vsel %vm430_vm3, %v636_v24, 2147483647  ;;  %672 = vmin.xlane.f32.xlu0 %v671_v23 }
 0x4dd   : > { %657 = vmin.xlane.f32.xlu1 %v656_v25  ;;  %v684_v27 = vshra.s32 %v682_v26, 16  ;;  %v683_v39 = vand.u32 65535, %v682_v26 }
 0x4df   : > { %v686_v28 = vcvt.s32.f32 %v684_v27  ;;  %v685_v45 = vcvt.s32.f32 %v683_v39 }
 0x4e1   : > { %687 = vmin.xlane.f32.xlu1 %v686_v28 }
 0x561   : > { %v643_v30 = vpop.xlane.xlu0 %642 }
 0x562   : > { %vm644_vm4 = vcmp.eq.f32.partialorder %v641_v57, %v643_v30  ;;  %v649_v47 = vcvt.f32.s32 %v643_v30 }
 0x563   : > { %v645_v34 = vsel %vm644_vm4, %v640_v31, inf }
 0x564   : > { %646 = vmin.xlane.f32.xlu0 %v645_v34  ;;  %v650_v55 = vshll.u32 %v649_v47, 16 }
 0x565   : > { %v673_v35 = vpop.xlane.xlu0 %672 }
 0x566   : > { %v658_v37 = vpop.xlane.xlu1 %657  ;;  %vm674_vm5 = vcmp.eq.f32.partialorder %v671_v23, %v673_v35  ;;  %v679_v48 = vcvt.f32.s32 %v673_v35 }
 0x567   : > { %v675_v40 = vsel %vm674_vm5, %v670_v36, inf  ;;  %vm659_vm6 = vcmp.eq.f32.partialorder %v656_v25, %v658_v37  ;;  %v664_v59 = vcvt.f32.s32 %v658_v37  ;;  %vm790_vm5 = vcmp.eq.s32.totalorder %v1075_v41, 3 }
 0x568   : > { %676 = vmin.xlane.f32.xlu0 %v675_v40  ;;  %v660_v43 = vsel %vm659_vm6, %v655_v38, inf  ;;  %v680_v42 = vshll.u32 %v679_v48, 16  ;;  %vm795_vm6 = vcmask 31744  }
 0x569   : > { %661 = vmin.xlane.f32.xlu1 %v660_v43  ;;  %v665_v6 = vshll.u32 %v664_v59, 16 }
 0x56a   : > { %v688_v44 = vpop.xlane.xlu1 %687 }
 0x56b   : > { %vm689_vm7 = vcmp.eq.f32.partialorder %v686_v28, %v688_v44  ;;  %v694_v2 = vcvt.f32.s32 %v688_v44 }
 0x56c   : > { %v690_v46 = vsel %vm689_vm7, %v685_v45, inf }
 0x56d   : > { %691 = vmin.xlane.f32.xlu1 %v690_v46  ;;  %v695_v11 = vshll.u32 %v694_v2, 16 }
 0x5ed   : > { %v647_v54 = vpop.xlane.xlu0 %646 }
 0x5ee   : > { %v648_v56 = vcvt.f32.s32 %v647_v54 }
 0x5f0   : > { %v651_v0 = vadd.s32 %v650_v55, %v648_v56 }
 0x5f1   : > { %v677_v1 = vpop.xlane.xlu0 %676 }
 0x5f2   : > { %v1224_v58 = vsel %vm697_vm8, %v651_v0, %v1161_v49  ;;  %v678_v3 = vcvt.f32.s32 %v677_v1  ;;  %v662_v50 = vpop.xlane.xlu1 %661  ;;  %vm702_vm9 = vcmp.eq.s32.totalorder %v1075_v41, %v651_v0 }
 0x5f3   : > { %v663_v52 = vcvt.f32.s32 %v662_v50  ;;  %v706_v61 = vsel %vm702_vm9, -inf, %v1165_v62 }
 0x5f4   : > { %v681_v8 = vadd.s32 %v680_v42, %v678_v3  ;;  %v710_v9 = vsel %vm430_vm3, %v706_v61, -inf }
 0x5f5   : > { %v666_v63 = vadd.s32 %v665_v6, %v663_v52  ;;  %711 = vmax.xlane.f32.xlu0 %v710_v9 }
 0x5f6   : > { %v1232_v12 = vsel %vm697_vm8, %v681_v8, %v1177_v4  ;;  %v692_v49 = vpop.xlane.xlu1 %691  ;;  %vm704_vm10 = vcmp.eq.s32.totalorder %v1075_v41, %v681_v8 }
 0x5f7   : > { %v1238_v53 = vsel %vm697_vm8, %v666_v63, %v1182_v5  ;;  %v693_v62 = vcvt.f32.s32 %v692_v49  ;;  %v708_v13 = vsel %vm704_vm10, -inf, %v1185_v51  ;;  %vm703_vm11 = vcmp.eq.s32.totalorder %v1075_v41, %v666_v63 }
 0x5f8   : > { %v716_v14 = vsel %vm430_vm3, %v708_v13, -inf  ;;  %v707_v15 = vsel %vm703_vm11, -inf, %v1191_v7 }
 0x5f9   : > { %v696_v16 = vadd.s32 %v695_v11, %v693_v62  ;;  %717 = vmax.xlane.f32.xlu0 %v716_v14  ;;  %v713_v4 = vsel %vm430_vm3, %v707_v15, -inf }
 0x5fa   : > { %714 = vmax.xlane.f32.xlu1 %v713_v4 }
 0x5fb   : > { %v1248_v57 = vsel %vm697_vm8, %v696_v16, %v1200_v60  ;;  %vm705_vm12 = vcmp.eq.s32.totalorder %v1075_v41, %v696_v16 }
 0x5fc   : > { %v709_v5 = vsel %vm705_vm12, -inf, %v1204_v10 }
 0x5fd   : > { %v719_v51 = vsel %vm430_vm3, %v709_v5, -inf }
 0x5fe   : > { %720 = vmax.xlane.f32.xlu1 %v719_v51 }
 0x67e   : > { %v712_v17 = vpop.xlane.xlu0 %711 }
 0x67f   : > { %vm722_vm13 = vcmp.eq.f32.partialorder %v706_v61, %v712_v17 }
 0x680   : > { %v726_v7 = vsel %vm722_vm13, %v1075_v41, 32 }
 0x681   : > { %v730_v18 = vsel %vm430_vm3, %v726_v7, 2147483647 }
 0x682   : > { %v718_v19 = vpop.xlane.xlu0 %717  ;;  %v732_v20 = vshra.s32 %v730_v18, 16  ;;  %v731_v34 = vand.u32 65535, %v730_v18 }
 0x683   : > { %vm724_vm14 = vcmp.eq.f32.partialorder %v708_v13, %v718_v19  ;;  %v715_v21 = vpop.xlane.xlu1 %714 }
 0x684   : > { %v728_v60 = vsel %vm724_vm14, %v1075_v41, 32  ;;  %vm723_vm15 = vcmp.eq.f32.partialorder %v707_v15, %v715_v21  ;;  %v734_v22 = vcvt.s32.f32 %v732_v20  ;;  %v733_v36 = vcvt.s32.f32 %v731_v34 }
 0x685   : > { %v760_v23 = vsel %vm430_vm3, %v728_v60, 2147483647  ;;  %v727_v10 = vsel %vm723_vm15, %v1075_v41, 32 }
 0x686   : > { %v745_v24 = vsel %vm430_vm3, %v727_v10, 2147483647  ;;  %735 = vmin.xlane.f32.xlu0 %v734_v22  ;;  %v762_v25 = vshra.s32 %v760_v23, 16  ;;  %v761_v37 = vand.u32 65535, %v760_v23 }
 0x687   : > { %v721_v26 = vpop.xlane.xlu1 %720  ;;  %v747_v27 = vshra.s32 %v745_v24, 16  ;;  %v746_v38 = vand.u32 65535, %v745_v24 }
 0x688   : > { %vm725_vm0 = vcmp.eq.f32.partialorder %v709_v5, %v721_v26  ;;  %v764_v28 = vcvt.s32.f32 %v762_v25  ;;  %v763_v43 = vcvt.s32.f32 %v761_v37 }
 0x689   : > { %v729_v29 = vsel %vm725_vm0, %v1075_v41, 32  ;;  %v749_v30 = vcvt.s32.f32 %v747_v27  ;;  %v748_v45 = vcvt.s32.f32 %v746_v38 }
 0x68a   : > { %v775_v31 = vsel %vm430_vm3, %v729_v29, 2147483647  ;;  %765 = vmin.xlane.f32.xlu0 %v764_v28 }
 0x68b   : > { %750 = vmin.xlane.f32.xlu1 %v749_v30  ;;  %v777_v32 = vshra.s32 %v775_v31, 16  ;;  %v776_v46 = vand.u32 65535, %v775_v31 }
 0x68d   : > { %v779_v33 = vcvt.s32.f32 %v777_v32  ;;  %v778_v55 = vcvt.s32.f32 %v776_v46 }
 0x68f   : > { %780 = vmin.xlane.f32.xlu1 %v779_v33 }
 0x70f   : > { %v736_v35 = vpop.xlane.xlu0 %735 }
 0x710   : > { %vm737_vm1 = vcmp.eq.f32.partialorder %v734_v22, %v736_v35  ;;  %v742_v59 = vcvt.f32.s32 %v736_v35 }
 0x711   : > { %v738_v39 = vsel %vm737_vm1, %v733_v36, inf }
 0x712   : > { %739 = vmin.xlane.f32.xlu0 %v738_v39  ;;  %v743_v42 = vshll.u32 %v742_v59, 16 }
 0x713   : > { %v766_v40 = vpop.xlane.xlu0 %765 }
 0x714   : > { %v751_v44 = vpop.xlane.xlu1 %750  ;;  %vm767_vm2 = vcmp.eq.f32.partialorder %v764_v28, %v766_v40  ;;  %v772_v1 = vcvt.f32.s32 %v766_v40 }
 0x715   : > { %v768_v47 = vsel %vm767_vm2, %v763_v43, inf  ;;  %vm752_vm3 = vcmp.eq.f32.partialorder %v749_v30, %v751_v44  ;;  %v757_v3 = vcvt.f32.s32 %v751_v44 }
 0x716   : > { %769 = vmin.xlane.f32.xlu0 %v768_v47  ;;  %v753_v48 = vsel %vm752_vm3, %v748_v45, inf  ;;  %v773_v52 = vshll.u32 %v772_v1, 16 }
 0x717   : > { %754 = vmin.xlane.f32.xlu1 %v753_v48  ;;  %v758_v63 = vshll.u32 %v757_v3, 16 }
 0x718   : > { %v781_v54 = vpop.xlane.xlu1 %780 }
 0x719   : > { %vm782_vm4 = vcmp.eq.f32.partialorder %v779_v33, %v781_v54  ;;  %v787_v11 = vcvt.f32.s32 %v781_v54 }
 0x71a   : > { %v783_v56 = vsel %vm782_vm4, %v778_v55, inf }
 0x71b   : > { %784 = vmin.xlane.f32.xlu1 %v783_v56  ;;  %v788_v16 = vshll.u32 %v787_v11, 16 }
 0x79b   : > { %v740_v0 = vpop.xlane.xlu0 %739 }
 0x79c   : > { %v741_v2 = vcvt.f32.s32 %v740_v0 }
 0x79e   : > { %v744_v50 = vadd.s32 %v743_v42, %v741_v2 }
 0x79f   : > { %v770_v6 = vpop.xlane.xlu0 %769 }
 0x7a0   : > { %v791_v61 = vsel %vm790_vm5, %v744_v50, %v1224_v58  ;;  %v771_v8 = vcvt.f32.s32 %v770_v6  ;;  %v755_v9 = vpop.xlane.xlu1 %754 }
 0x7a1   : > { %796 = vst.msk [vmem:[%s201_s23] sm:$0xff] %vm795_vm6, %v791_v61  ;;  %v756_v49 = vcvt.f32.s32 %v755_v9 }
 0x7a2   : > { %v774_v62 = vadd.s32 %v773_v52, %v771_v8 }
 0x7a3   : > { %v759_v13 = vadd.s32 %v758_v63, %v756_v49 }
 0x7a4   : > { %v793_v14 = vsel %vm790_vm5, %v774_v62, %v1232_v12  ;;  %v785_v15 = vpop.xlane.xlu1 %784 }
 0x7a5   : > { %798 = vst.msk [vmem:[%s201_s23 + $0x10] sm:$0xff] %vm795_vm6, %v793_v14  ;;  %v792_v58 = vsel %vm790_vm5, %v759_v13, %v1238_v53  ;;  %v786_v4 = vcvt.f32.s32 %v785_v15 }
 0x7a6   : > { %797 = vst.msk [vmem:[%s201_s23 + $0x8] sm:$0xff] %vm795_vm6, %v792_v58 }
 0x7a7   : > { %v789_v5 = vadd.s32 %v788_v16, %v786_v4 }
 0x7a9   : > { %v794_v51 = vsel %vm790_vm5, %v789_v5, %v1248_v57 }
 0x7aa   : > { %799 = vst.msk [vmem:[%s201_s23 + $0x18] sm:$0xff] %vm795_vm6, %v794_v51 }
 0x7ab PF: > { %s12_s11 = sadd.s32 1, %s1013_s11   ;;  %s1294_s9 = smov %s1009_s10 }
 0x7ac   : > { %p9_p5 = scmp.ge.s32.totalorder %s12_s11, 4   ;;  %s1295_s10 = smov %s1297_s12 }
 0x7ae   :  { %11 = sbr.rel (!%p9_p5) target bundleno = 2 (0x2), region = 61 }

// kernel: dgcnn_semseg_forward.9
= control target key start
LH: loop header
LB: loop body
LE: loop exit
PB: predicated region body
PF: predicated region fallthrough
CT: control target
= control target key end

     0   :  { %12 = vsyncpa [#allocation3], 0  ;;  %s1856_s0 = inlined_call_operand.vmem [shape: bf16[2,4,32,9], index: 0, kind: input, shape index: {}]   ;;  %s1857_s1 = inlined_call_operand.vmem [shape: bf16[2,32,9], index: 1, kind: input, shape index: {}]   ;;  %s1858_s2 = inlined_call_operand.hbm [shape: bf16[9,64], index: 2, kind: input, shape index: {}]   ;;  %s1859_s3 = inlined_call_operand.hbm [shape: bf16[9,64], index: 3, kind: input, shape index: {}]   ;;  %s1860_s4 = inlined_call_operand.hbm [shape: f32[1,64], index: 4, kind: input, shape index: {}]   ;;  %s1861_s5 = inlined_call_operand.hbm [shape: bf16[64,64], index: 5, kind: input, shape index: {}]   ;;  %s1862_s6 = inlined_call_operand.hbm [shape: f32[1,64], index: 6, kind: input, shape index: {}]   ;;  %s1863_s7 = inlined_call_operand.vmem [shape: bf16[2,32,64], index: 7, kind: output, shape index: {}]  }
   0x1   :  { %13 = vsyncpa [#allocation5], 0 }
   0x2   :  { %14 = vsyncpa [#allocation8], 0  ;;  %s1645_s24 = smov 0   ;;  %s1647_s25 = smov 0  }
   0x3   :  { %s1649_s26 = smov 0  }
   0x4 LB: > { %s1187_s27 = sadd.s32 4294967295, %s1595_s26   ;;  %p1189_p0 = scmp.ge.s32.totalorder %s1595_s26, 1  ;;  %s1595_s26 = sphi %s1649_s26, %s20_s26   ;;  %s1591_s25 = sphi %s1647_s25, %s1869_s25   ;;  %s1587_s24 = sphi %s1645_s24, %s1868_s24  }
   0x5   : > { %p226_p1 = scmp.lt.s32.totalorder %s1595_s26, 3  ;;  %p1663_p2 = scmp.eq.s32.totalorder %s1187_s27, 0 }
   0x6   : > { %s1597_s30 = smov [#allocation4]   ;;  %s1598_s9 = smov [#allocation7]  }
   0x7   : > { %p1667_p3 = pnand %p1189_p0, %p226_p1  ;;  %s251_s8 = sshll.u32 %s1597_s30, 4  ;;  %s252_s8 = int_to_ptr.vmem [resolvable:$true] %s251_s8 }
   0x8   : > { %s275_s10 = sshll.u32 %s1598_s9, 4  ;;  %s32_s12 = sadd.s32 1, %s1591_s25  ;;  %s276_s10 = int_to_ptr.vmem [resolvable:$true] %s275_s10 }
   0x9   : > { %p1357_p4 = pneg %p1667_p3  ;;  %s1442_s14 = scalar_lea.vmem %s252_s8, 128 }
   0xa   : > { %p1443_p7 = scmp.ne.s32.totalorder %s252_s8, %s1442_s14  ;;  %p1450_p10 = scmp.lt.s32.totalorder %s252_s8, %s252_s8 }
   0xb   : > { %p1675_p5 = pnand %p1663_p2, %p1357_p4  ;;  %p1451_p11 = scmp.lt.s32.totalorder %s1442_s14, %s1442_s14 }
   0xd   : > { %p1682_p6 = pneg %p1675_p5  ;;  %p1452_p12 = por %p1451_p11, %p1450_p10 }
   0xf   : > { %p1445_p8 = pnand %p1443_p7, %p1682_p6 }
  0x11   : > { %p1446_p9 = pneg %p1445_p8 }
  0x13   : > { %p1453_p13 = pnand %p1452_p12, %p1446_p9 }
  0x15   : > { %1456 = shalt.err (!%p1453_p13)
}
  0x16   : > { %s1599_s15 = smov 64   ;;  %s1600_s16 = smov 4  }
  0x17   : > { %1363 = dma.hbm_to_vmem [thread:$0]  (!%p1675_p5), %s1859_s3, 128, %s252_s8, [#allocation5], %s1599_s15, %s1599_s15, %s1600_s16  }
  0x18   : > { %s1468_s19 = scalar_lea.vmem %s276_s10, 512  ;;  %p1476_p7 = scmp.lt.s32.totalorder %s276_s10, %s276_s10 }
  0x19   : > { %p1469_p0 = scmp.ne.s32.totalorder %s276_s10, %s1468_s19  ;;  %p1477_p8 = scmp.lt.s32.totalorder %s1468_s19, %s1468_s19 }
  0x1b   : > { %p1471_p1 = pnand %p1469_p0, %p1682_p6  ;;  %p1478_p9 = por %p1477_p8, %p1476_p7 }
  0x1d   : > { %p1472_p4 = pneg %p1471_p1 }
  0x1f   : > { %p1479_p10 = pnand %p1478_p9, %p1472_p4 }
  0x21   : > { %1482 = shalt.err (!%p1479_p10)
}
  0x22   : > { %1369 = dma.hbm_to_vmem [thread:$0]  (!%p1675_p5), %s1861_s5, 512, %s276_s10, [#allocation8], %s1599_s15, %s1599_s15, %s1600_s16  }
  0x23   : > { %p34_p11 = scmp.ge.s32.totalorder %s32_s12, 2  ;;  %s1601_s22 = smov [#allocation2]  }
  0x24   : > { %s238_s23 = sshll.u32 %s1601_s22, 4  ;;  %s1602_s27 = smov [#allocation6]   ;;  %s239_s23 = int_to_ptr.vmem [resolvable:$true] %s238_s23 }
  0x25   : > { %s1871_s12 = smov (%p34_p11, %s32_s12), 0  ;;  %s265_s30 = sshll.u32 %s1602_s27, 4  ;;  %s266_s30 = int_to_ptr.vmem [resolvable:$true] %s265_s30 }
  0x26   : > { %s1494_s8 = scalar_lea.vmem %s239_s23, 128  ;;  %p1502_p1 = scmp.lt.s32.totalorder %s239_s23, %s239_s23 }
  0x27   : > { %p1495_p12 = scmp.ne.s32.totalorder %s239_s23, %s1494_s8  ;;  %p1503_p4 = scmp.lt.s32.totalorder %s1494_s8, %s1494_s8 }
  0x29   : > { %p1497_p13 = pnand %p1495_p12, %p1682_p6  ;;  %p1504_p7 = por %p1503_p4, %p1502_p1 }
  0x2b   : > { %p1498_p0 = pneg %p1497_p13 }
  0x2d   : > { %p1505_p8 = pnand %p1504_p7, %p1498_p0 }
  0x2f   : > { %1508 = shalt.err (!%p1505_p8)
}
  0x30   : > { %1360 = dma.hbm_to_vmem [thread:$0]  (!%p1675_p5), %s1858_s2, 128, %s239_s23, [#allocation3], %s1599_s15, %s1599_s15, %s1600_s16  }
  0x31   : > { %s1520_s14 = scalar_lea.vmem %s266_s30, 16  ;;  %s1527_s17 = scalar_lea.vmem %s266_s30, 32 }
  0x32   : > { %p1521_p9 = scmp.ne.s32.totalorder %s266_s30, %s1520_s14  ;;  %p1528_p12 = scmp.lt.s32.totalorder %s266_s30, %s266_s30 }
  0x33   : > { %p1529_p13 = scmp.lt.s32.totalorder %s1527_s17, %s1520_s14 }
  0x34   : > { %p1523_p10 = pnand %p1521_p9, %p1682_p6 }
  0x35   : > { %p1530_p0 = por %p1529_p13, %p1528_p12 }
  0x36   : > { %p1524_p11 = pneg %p1523_p10 }
  0x38   : > { %p1531_p1 = pnand %p1530_p0, %p1524_p11 }
  0x3a   : > { %1534 = shalt.err (!%p1531_p1)
}
  0x3b   : > { %1366 = dma.hbm_to_vmem [thread:$0]  (!%p1675_p5), %s1860_s4, 16, %s266_s30, [#allocation5]  }
  0x3c   : > { %s1603_s15 = smov [#allocation9]  }
  0x3d   : > { %s289_s16 = sshll.u32 %s1603_s15, 4  ;;  %s290_s16 = int_to_ptr.vmem [resolvable:$true] %s289_s16 }
  0x3e   : > { %s1546_s20 = scalar_lea.vmem %s290_s16, 16  ;;  %s1553_s21 = scalar_lea.vmem %s290_s16, 32 }
  0x3f   : > { %p1547_p4 = scmp.ne.s32.totalorder %s290_s16, %s1546_s20  ;;  %p1554_p9 = scmp.lt.s32.totalorder %s290_s16, %s290_s16 }
  0x40   : > { %p1555_p10 = scmp.lt.s32.totalorder %s1553_s21, %s1546_s20 }
  0x41   : > { %p1549_p7 = pnand %p1547_p4, %p1682_p6 }
  0x42   : > { %p1556_p11 = por %p1555_p10, %p1554_p9 }
  0x43   : > { %p1550_p8 = pneg %p1549_p7 }
  0x45   : > { %p1557_p12 = pnand %p1556_p11, %p1550_p8 }
  0x47   : > { %1560 = shalt.err (!%p1557_p12)
}
  0x48   : > { %1372 = dma.hbm_to_vmem [thread:$0]  (!%p1675_p5), %s1862_s6, 16, %s290_s16, [#allocation8]  }
  0x49   : > { %328 = sbr.rel (%p1667_p3) target bundleno = 535 (0x217), region = 48 }
  0x4e   : > { %1574 = dma.done.wait (%p1663_p2), [#allocation3], 128  }
  0x4f   : > { %1576 = vsyncadd (%p1663_p2), [#allocation3], 4294967168 }
  0x50   : > { %1578 = dma.done.wait (%p1663_p2), [#allocation5], 144  }
  0x51   : > { %1580 = vsyncadd (%p1663_p2), [#allocation5], 4294967152 }
  0x52   : > { %1582 = dma.done.wait (%p1663_p2), [#allocation8], 528  }
  0x53   : > { %1584 = vsyncadd (%p1663_p2), [#allocation8], 4294966768  ;;  %vm475_vm0 = vcmask 1043456   ;;  %p394_p3 = scmp.lt.s32.totalorder %s1587_s24, 1  ;;  %vm476_vm1 = vcmask 1044480   ;;  %v1604_v0 = vmov 65535  }
  0x54   : > { %v477_v1 = vsel %vm475_vm0, 4294967295, %v1604_v0  ;;  %vm468_vm2 = vcmask 72704   ;;  %v1415_v3 = vld [vmem:[#allocation4] sm:$0x1f]   ;;  %v1416_v4 = vld [vmem:[#allocation2] sm:$0x1f]  }
  0x55   : > { %s1873_s24 = smov (!%p394_p3, %s1587_s24), 1  ;;  %v478_v2 = vsel %vm476_vm1, %v477_v1, 0  ;;  %v1427_v17 = vld [vmem:[#allocation7 + $0x18] sm:$0xff]   ;;  %v1428_v18 = vld [vmem:[#allocation7 + $0x10] sm:$0xff]   ;;  %v1429_v19 = vld [vmem:[#allocation7 + $0x8] sm:$0xff]   ;;  %vm813_vm7 = vcmask 523264  }
  0x56   : > { %s1250_s29 = sshll.u32 %s1873_s24, 6  ;;  %s1251_s11 = sshll.u32 %s1873_s24, 4  ;;  %v480_v5 = vand.u32 %v1415_v3, %v478_v2  ;;  %v603_v7 = vand.u32 %v1416_v4, %v478_v2  ;;  %v1430_v20 = vld [vmem:[#allocation7] sm:$0xff]   ;;  %v1208_v22 = vld [vmem:[#allocation6] ss:$0 sm:$0xff] }
  0x57   : > { %s411_s28 = scalar_lea.vmem %s1857_s1, %s1251_s11  ;;  %s401_s9 = scalar_lea.vmem %s1856_s0, %s1250_s29 }
  0x58   : > { %v1417_v6 = vld [vmem:[%s411_s28] sm:$0xff]   ;;  %1281 = vmatprep.subr.bf16.mxu0 %v480_v5  ;;  %v1419_v9 = vld [vmem:[%s411_s28 + $0x8] sm:$0xff]   ;;  %1287 = vmatprep.subr.bf16.mxu1 %v603_v7  ;;  %v1421_v11 = vld [vmem:[%s401_s9 + $0x10] sm:$0xff]   ;;  %s421_s17 = scalar_lea.vmem %s1863_s7, %s1251_s11 }
  0x59   : > { %v1418_v8 = vld [vmem:[%s401_s9] sm:$0xff]   ;;  %1283 = vmatprep.mubr.msk.bf16.mxu0 %vm468_vm2, %v1417_v6  ;;  %1282 = vmatpush3.bf16.msra.mxu0 %v480_v5  ;;  %v1420_v10 = vld [vmem:[%s401_s9 + $0x8] sm:$0xff]   ;;  %v1422_v12 = vld [vmem:[%s401_s9 + $0x18] sm:$0xff]  }
  0x5a   : > { %1288 = vmatpush3.bf16.msra.mxu1 %v603_v7  ;;  %1289 = vmatprep.mubr.msk.bf16.mxu1 %vm468_vm2, %v1418_v8  ;;  %v1423_v13 = vld [vmem:[%s401_s9 + $0x20] sm:$0xff]   ;;  %v1424_v14 = vld [vmem:[%s401_s9 + $0x28] sm:$0xff]   ;;  %v1425_v15 = vld [vmem:[%s401_s9 + $0x30] sm:$0xff]  }
  0x5b   : > { %v1426_v16 = vld [vmem:[%s401_s9 + $0x38] sm:$0xff]   ;;  %1305 = vmatprep.subr.bf16.mxu0 %v1427_v17  ;;  %1329 = vmatprep.subr.bf16.mxu1 %v1427_v17 }
  0x5c   : > { %1284 = vmatmul.mubr.msk.bf16.vlgmr.msra.gmra.mxu0 %vm468_vm2, %v1419_v9 }
  0x5d   : > { %1290 = vmatmul.mubr.msk.bf16.vlgmr.msra.gmra.mxu1 %vm468_vm2, %v1420_v10  ;;  %1306 = vmatpush3.bf16.msra.mxu0 %v1427_v17 }
  0x5e   : > { %1293 = vmatprep.mubr.msk.bf16.mxu1 %vm468_vm2, %v1421_v11  ;;  %1333 = vmatpush3.bf16.msra.mxu1 %v1427_v17 }
  0x5f   : > { %1307 = vmatprep.subr.bf16.mxu0 %v1428_v18  ;;  %1330 = vmatprep.subr.bf16.mxu1 %v1428_v18 }
  0x61   : > { %1308 = vmatpush3.bf16.msra.mxu0 %v1428_v18 }
  0x62   : > { %1334 = vmatpush3.bf16.msra.mxu1 %v1428_v18  ;;  %1309 = vmatprep.subr.bf16.mxu0 %v1429_v19 }
  0x63   : > { %1331 = vmatprep.subr.bf16.mxu1 %v1429_v19 }
  0x65   : > { %1294 = vmatmul.mubr.msk.bf16.gmra.mxu1 %vm468_vm2, %v1422_v12  ;;  %1310 = vmatpush3.bf16.msra.mxu0 %v1429_v19 }
  0x66   : > { %1297 = vmatprep.mubr.msk.bf16.mxu1 %vm468_vm2, %v1423_v13  ;;  %1335 = vmatpush3.bf16.msra.mxu1 %v1429_v19 }
  0x67   : > { %1311 = vmatprep.subr.bf16.mxu0 %v1430_v20  ;;  %1332 = vmatprep.subr.bf16.mxu1 %v1430_v20 }
  0x69   : > { %1312 = vmatpush3.bf16.msra.mxu0 %v1430_v20 }
  0x6a   : > { %1336 = vmatpush3.bf16.msra.mxu1 %v1430_v20 }
  0x6d   : > { %1298 = vmatmul.mubr.msk.bf16.gmra.mxu1 %vm468_vm2, %v1424_v14 }
  0x6e   : > { %1301 = vmatprep.mubr.msk.bf16.mxu1 %vm468_vm2, %v1425_v15 }
  0x75   : > { %1302 = vmatmul.mubr.msk.bf16.gmra.mxu1 %vm468_vm2, %v1426_v16 }
 0x11c   : > { %v1285_v21 = vpop.f32.mrf.mxu0 }
 0x11d   : > { %v1291_v23 = vpop.f32.mrf.mxu1  ;;  %v1770_v25 = vadd.f32 %v1285_v21, %v1208_v22 }
 0x11e   : > { %v516_v24 = vpop.f32.mrf.mxu0 }
 0x11f   : > { %v1772_v26 = vadd.f32 %v1208_v22, %v516_v24  ;;  %v639_v27 = vpop.f32.mrf.mxu1  ;;  %v704_v33 = vadd.f32 %v1291_v23, %v1770_v25 }
 0x120   : > { %v1286_v28 = vpop.f32.mrf.mxu0 }
 0x121   : > { %v1774_v29 = vadd.f32 %v1286_v28, %v1208_v22  ;;  %v1292_v30 = vpop.f32.mrf.mxu1  ;;  %v702_v31 = vadd.f32 %v639_v27, %v1772_v26  ;;  %v736_v41 = vmul.f32 0.2, %v704_v33  ;;  %vm720_vm5 = vcmp.ge.f32.partialorder %v704_v33, 0.0 }
 0x122   : > { %v519_v32 = vpop.f32.mrf.mxu0 }
 0x123   : > { %v705_v34 = vadd.f32 %v1292_v30, %v1774_v29  ;;  %v642_v35 = vpop.f32.mrf.mxu1  ;;  %v1779_v36 = vadd.f32 %v1208_v22, %v519_v32  ;;  %v734_v39 = vmul.f32 0.2, %v702_v31  ;;  %vm718_vm4 = vcmp.ge.f32.partialorder %v702_v31, 0.0 }
 0x124   : > { %v752_v50 = vsel %vm720_vm5, %v704_v33, %v736_v41  ;;  %v1802_v41 = vld [vmem:[#allocation9] ss:$0 sm:$0xff] }
 0x125   : > { %v737_v37 = vmul.f32 0.2, %v705_v34  ;;  %v1295_v38 = vpop.f32.mrf.mxu1  ;;  %vm721_vm3 = vcmp.ge.f32.partialorder %v705_v34, 0.0  ;;  %v703_v40 = vadd.f32 %v642_v35, %v1779_v36  ;;  %v750_v47 = vsel %vm718_vm4, %v702_v31, %v734_v39 }
 0x126   : > { %v708_v52 = vadd.f32 %v1295_v38, %v1770_v25 }
 0x127   : > { %v655_v42 = vpop.f32.mrf.mxu1  ;;  %vm719_vm6 = vcmp.ge.f32.partialorder %v703_v40, 0.0  ;;  %v735_v43 = vmul.f32 0.2, %v703_v40  ;;  %v753_v44 = vsel %vm721_vm3, %v705_v34, %v737_v37 }
 0x128   : > { %v706_v45 = vadd.f32 %v655_v42, %v1772_v26  ;;  %v767_v54 = vpack.c.bf16 %v753_v44, %v752_v50  ;;  %v740_v60 = vmul.f32 0.2, %v708_v52  ;;  %vm724_vm11 = vcmp.ge.f32.partialorder %v708_v52, 0.0 }
 0x129   : > { %v1296_v46 = vpop.f32.mrf.mxu1  ;;  %v751_v48 = vsel %vm719_vm6, %v703_v40, %v735_v43 }
 0x12a   : > { %v709_v49 = vadd.f32 %v1296_v46, %v1774_v29  ;;  %v766_v51 = vpack.c.bf16 %v751_v48, %v750_v47  ;;  %v738_v55 = vmul.f32 0.2, %v706_v45  ;;  %vm722_vm8 = vcmp.ge.f32.partialorder %v706_v45, 0.0 }
 0x12b   : > { %v658_v53 = vpop.f32.mrf.mxu1  ;;  %v756_v6 = vsel %vm724_vm11, %v708_v52, %v740_v60 }
 0x12c   : > { %v707_v56 = vadd.f32 %v658_v53, %v1779_v36  ;;  %v741_v57 = vmul.f32 0.2, %v709_v49  ;;  %1313 = vmatprep.mubr.msk.bf16.mxu0 %vm813_vm7, %v766_v51  ;;  %vm725_vm9 = vcmp.ge.f32.partialorder %v709_v49, 0.0  ;;  %v754_v62 = vsel %vm722_vm8, %v706_v45, %v738_v55 }
 0x12d   : > { %v1299_v58 = vpop.f32.mrf.mxu1  ;;  %1314 = vmatmul.mubr.msk.bf16.vlgmr.msra.gmra.mxu0 %vm813_vm7, %v767_v54 }
 0x12e   : > { %vm723_vm10 = vcmp.ge.f32.partialorder %v707_v56, 0.0  ;;  %v739_v59 = vmul.f32 0.2, %v707_v56  ;;  %v757_v1 = vsel %vm725_vm9, %v709_v49, %v741_v57  ;;  %v712_v4 = vadd.f32 %v1299_v58, %v1770_v25 }
 0x12f   : > { %v671_v61 = vpop.f32.mrf.mxu1  ;;  %v769_v8 = vpack.c.bf16 %v757_v1, %v756_v6 }
 0x130   : > { %v755_v63 = vsel %vm723_vm10, %v707_v56, %v739_v59  ;;  %v710_v0 = vadd.f32 %v671_v61, %v1772_v26  ;;  %v744_v13 = vmul.f32 0.2, %v712_v4  ;;  %vm728_vm15 = vcmp.ge.f32.partialorder %v712_v4, 0.0 }
 0x131   : > { %v768_v2 = vpack.c.bf16 %v755_v63, %v754_v62  ;;  %v1300_v3 = vpop.f32.mrf.mxu1 }
 0x132   : > { %v713_v5 = vadd.f32 %v1300_v3, %v1774_v29  ;;  %v742_v9 = vmul.f32 0.2, %v710_v0  ;;  %vm726_vm12 = vcmp.ge.f32.partialorder %v710_v0, 0.0  ;;  %v760_v23 = vsel %vm728_vm15, %v712_v4, %v744_v13 }
 0x133   : > { %v674_v7 = vpop.f32.mrf.mxu1  ;;  %1317 = vmatprep.mubr.msk.bf16.mxu0 %vm813_vm7, %v768_v2  ;;  %vm1027_vm15 = vcmask 519168  }
 0x134   : > { %v745_v10 = vmul.f32 0.2, %v713_v5  ;;  %v711_v11 = vadd.f32 %v674_v7, %v1779_v36  ;;  %vm729_vm13 = vcmp.ge.f32.partialorder %v713_v5, 0.0  ;;  %v758_v16 = vsel %vm726_vm12, %v710_v0, %v742_v9 }
 0x135   : > { %v1303_v12 = vpop.f32.mrf.mxu1  ;;  %1318 = vmatmul.mubr.msk.bf16.gmra.mxu0 %vm813_vm7, %v769_v8 }
 0x136   : > { %vm727_vm14 = vcmp.ge.f32.partialorder %v711_v11, 0.0  ;;  %v743_v14 = vmul.f32 0.2, %v711_v11  ;;  %v761_v17 = vsel %vm729_vm13, %v713_v5, %v745_v10  ;;  %v716_v21 = vadd.f32 %v1303_v12, %v1770_v25 }
 0x137   : > { %v687_v15 = vpop.f32.mrf.mxu1  ;;  %v771_v27 = vpack.c.bf16 %v761_v17, %v760_v23 }
 0x138   : > { %v759_v18 = vsel %vm727_vm14, %v711_v11, %v743_v14  ;;  %v714_v19 = vadd.f32 %v687_v15, %v1772_v26  ;;  %v748_v33 = vmul.f32 0.2, %v716_v21  ;;  %vm732_vm2 = vcmp.ge.f32.partialorder %v716_v21, 0.0 }
 0x139   : > { %v770_v20 = vpack.c.bf16 %v759_v18, %v758_v16  ;;  %v1304_v22 = vpop.f32.mrf.mxu1 }
 0x13a   : > { %v717_v24 = vadd.f32 %v1304_v22, %v1774_v29  ;;  %v746_v30 = vmul.f32 0.2, %v714_v19  ;;  %vm730_vm1 = vcmp.ge.f32.partialorder %v714_v19, 0.0  ;;  %v764_v29 = vsel %vm732_vm2, %v716_v21, %v748_v33 }
 0x13b   : > { %v690_v28 = vpop.f32.mrf.mxu1  ;;  %1321 = vmatprep.mubr.msk.bf16.mxu0 %vm813_vm7, %v770_v20 }
 0x13c   : > { %vm733_vm0 = vcmp.ge.f32.partialorder %v717_v24, 0.0  ;;  %v749_v31 = vmul.f32 0.2, %v717_v24  ;;  %v715_v32 = vadd.f32 %v690_v28, %v1779_v36  ;;  %v762_v34 = vsel %vm730_vm1, %v714_v19, %v746_v30 }
 0x13d   : > { %1322 = vmatmul.mubr.msk.bf16.gmra.mxu0 %vm813_vm7, %v771_v27 }
 0x13e   : > { %vm731_vm3 = vcmp.ge.f32.partialorder %v715_v32, 0.0  ;;  %v747_v26 = vmul.f32 0.2, %v715_v32  ;;  %v765_v25 = vsel %vm733_vm0, %v717_v24, %v749_v31 }
 0x13f   : > { %v773_v38 = vpack.c.bf16 %v765_v25, %v764_v29 }
 0x140   : > { %v763_v35 = vsel %vm731_vm3, %v715_v32, %v747_v26 }
 0x141   : > { %v772_v37 = vpack.c.bf16 %v763_v35, %v762_v34 }
 0x143   : > { %1325 = vmatprep.mubr.msk.bf16.mxu1 %vm813_vm7, %v772_v37 }
 0x144   : > { %1326 = vmatmul.mubr.msk.bf16.vlgmr.msra.gmra.mxu1 %vm813_vm7, %v773_v38 }
 0x1ed   : > { %v1315_v39 = vpop.f32.mrf.mxu0 }
 0x1ee   : > { %v881_v43 = vadd.f32 %v1315_v39, %v1802_v41 }
 0x1ef   : > { %v872_v40 = vpop.f32.mrf.mxu0 }
 0x1f0   : > { %v873_v44 = vadd.f32 %v1802_v41, %v872_v40  ;;  %vm937_vm4 = vcmp.ge.f32.partialorder %v881_v43, 0.0  ;;  %v953_v52 = vmul.f32 0.2, %v881_v43 }
 0x1f1   : > { %v1316_v36 = vpop.f32.mrf.mxu0 }
 0x1f2   : > { %v884_v46 = vadd.f32 %v1316_v36, %v1802_v41  ;;  %vm935_vm5 = vcmp.ge.f32.partialorder %v873_v44, 0.0  ;;  %v951_v54 = vmul.f32 0.2, %v873_v44  ;;  %v969_v61 = vsel %vm937_vm4, %v881_v43, %v953_v52 }
 0x1f3   : > { %v875_v42 = vpop.f32.mrf.mxu0  ;;  %v997_v10 = vsel %vm813_vm7, %v969_v61, -inf }
 0x1f4   : > { %v876_v47 = vadd.f32 %v1802_v41, %v875_v42  ;;  %v954_v55 = vmul.f32 0.2, %v884_v46  ;;  %vm938_vm8 = vcmp.ge.f32.partialorder %v884_v46, 0.0  ;;  %v967_v63 = vsel %vm935_vm5, %v873_v44, %v951_v54 }
 0x1f5   : > { %v1319_v45 = vpop.f32.mrf.mxu0  ;;  %v983_v11 = vsel %vm813_vm7, %v967_v63, -inf }
 0x1f6   : > { %v897_v48 = vadd.f32 %v1319_v45, %v1802_v41  ;;  %v952_v56 = vmul.f32 0.2, %v876_v47  ;;  %vm936_vm9 = vcmp.ge.f32.partialorder %v876_v47, 0.0  ;;  %v970_v0 = vsel %vm938_vm8, %v884_v46, %v954_v55 }
 0x1f7   : > { %v888_v49 = vpop.f32.mrf.mxu0  ;;  %v1004_v12 = vsel %vm813_vm7, %v970_v0, -inf }
 0x1f8   : > { %v957_v50 = vmul.f32 0.2, %v897_v48  ;;  %v889_v51 = vadd.f32 %v1802_v41, %v888_v49  ;;  %vm941_vm6 = vcmp.ge.f32.partialorder %v897_v48, 0.0  ;;  %v968_v1 = vsel %vm936_vm9, %v876_v47, %v952_v56 }
 0x1f9   : > { %v1320_v53 = vpop.f32.mrf.mxu0  ;;  %v990_v14 = vsel %vm813_vm7, %v968_v1, -inf }
 0x1fa   : > { %v955_v57 = vmul.f32 0.2, %v889_v51  ;;  %v900_v58 = vadd.f32 %v1320_v53, %v1802_v41  ;;  %v973_v60 = vsel %vm941_vm6, %v897_v48, %v957_v50  ;;  %vm939_vm10 = vcmp.ge.f32.partialorder %v889_v51, 0.0 }
 0x1fb   : > { %v891_v59 = vpop.f32.mrf.mxu0  ;;  %v998_v3 = vsel %vm813_vm7, %v973_v60, -inf }
 0x1fc   : > { %v971_v4 = vsel %vm939_vm10, %v889_v51, %v955_v57  ;;  %vm942_vm11 = vcmp.ge.f32.partialorder %v900_v58, 0.0  ;;  %v958_v5 = vmul.f32 0.2, %v900_v58  ;;  %v892_v7 = vadd.f32 %v1802_v41, %v891_v59 }
 0x1fd   : > { %v1323_v62 = vpop.f32.mrf.mxu0  ;;  %v999_v17 = vmax.f32 %v997_v10, %v998_v3  ;;  %v984_v18 = vsel %vm813_vm7, %v971_v4, -inf }
 0x1fe   : > { %v913_v2 = vadd.f32 %v1323_v62, %v1802_v41  ;;  %v974_v19 = vsel %vm942_vm11, %v900_v58, %v958_v5  ;;  %vm940_vm14 = vcmp.ge.f32.partialorder %v892_v7, 0.0  ;;  %v956_v23 = vmul.f32 0.2, %v892_v7 }
 0x1ff   : > { %v904_v6 = vpop.f32.mrf.mxu0  ;;  %v985_v33 = vmax.f32 %v983_v11, %v984_v18  ;;  %v1005_v25 = vsel %vm813_vm7, %v974_v19, -inf }
 0x200   : > { %vm945_vm12 = vcmp.ge.f32.partialorder %v913_v2, 0.0  ;;  %v961_v8 = vmul.f32 0.2, %v913_v2  ;;  %v905_v9 = vadd.f32 %v1802_v41, %v904_v6  ;;  %v972_v38 = vsel %vm940_vm14, %v892_v7, %v956_v23 }
 0x201   : > { %v1324_v13 = vpop.f32.mrf.mxu0  ;;  %v1006_v46 = vmax.f32 %v1004_v12, %v1005_v25  ;;  %v991_v49 = vsel %vm813_vm7, %v972_v38, -inf }
 0x202   : > { %v977_v15 = vsel %vm945_vm12, %v913_v2, %v961_v8  ;;  %vm943_vm13 = vcmp.ge.f32.partialorder %v905_v9, 0.0  ;;  %v959_v16 = vmul.f32 0.2, %v905_v9  ;;  %v916_v20 = vadd.f32 %v1324_v13, %v1802_v41 }
 0x203   : > { %v907_v21 = vpop.f32.mrf.mxu0  ;;  %v1000_v28 = vsel %vm813_vm7, %v977_v15, -inf  ;;  %v992_v60 = vmax.f32 %v990_v14, %v991_v49 }
 0x204   : > { %v1327_v22 = vpop.f32.mrf.mxu1  ;;  %v908_v24 = vadd.f32 %v1802_v41, %v907_v21  ;;  %v975_v30 = vsel %vm943_vm13, %v905_v9, %v959_v16  ;;  %vm946_vm0 = vcmp.ge.f32.partialorder %v916_v20, 0.0  ;;  %v962_v31 = vmul.f32 0.2, %v916_v20 }
 0x205   : > { %v929_v27 = vadd.f32 %v1327_v22, %v1802_v41  ;;  %v1001_v39 = vmax.f32 %v999_v17, %v1000_v28  ;;  %v986_v40 = vsel %vm813_vm7, %v975_v30, -inf }
 0x206   : > { %v920_v32 = vpop.f32.mrf.mxu1  ;;  %vm944_vm1 = vcmp.ge.f32.partialorder %v908_v24, 0.0  ;;  %v960_v26 = vmul.f32 0.2, %v908_v24  ;;  %v978_v34 = vsel %vm946_vm0, %v916_v20, %v962_v31  ;;  %v987_v53 = vmax.f32 %v985_v33, %v986_v40 }
 0x207   : > { %vm949_vm2 = vcmp.ge.f32.partialorder %v929_v27, 0.0  ;;  %v965_v35 = vmul.f32 0.2, %v929_v27  ;;  %v921_v29 = vadd.f32 %v1802_v41, %v920_v32  ;;  %v1007_v42 = vsel %vm813_vm7, %v978_v34, -inf }
 0x208   : > { %v1328_v37 = vpop.f32.mrf.mxu1  ;;  %v976_v43 = vsel %vm944_vm1, %v908_v24, %v960_v26  ;;  %v1008_v54 = vmax.f32 %v1006_v46, %v1007_v42 }
 0x209   : > { %v932_v36 = vadd.f32 %v1328_v37, %v1802_v41  ;;  %v981_v44 = vsel %vm949_vm2, %v929_v27, %v965_v35  ;;  %vm947_vm3 = vcmp.ge.f32.partialorder %v921_v29, 0.0  ;;  %v963_v48 = vmul.f32 0.2, %v921_v29 }
 0x20a   : > { %v923_v45 = vpop.f32.mrf.mxu1  ;;  %v1002_v47 = vsel %vm813_vm7, %v981_v44, -inf  ;;  %v993_v55 = vsel %vm813_vm7, %v976_v43, -inf }
 0x20b   : > { %vm950_vm4 = vcmp.ge.f32.partialorder %v932_v36, 0.0  ;;  %v1003_v50 = vmax.f32 %v1001_v39, %v1002_v47  ;;  %v966_v51 = vmul.f32 0.2, %v932_v36  ;;  %v924_v52 = vadd.f32 %v1802_v41, %v923_v45 }
 0x20c   : > { %v979_v56 = vsel %vm947_vm3, %v921_v29, %v963_v48  ;;  %v994_v0 = vmax.f32 %v992_v60, %v993_v55 }
 0x20d   : > { %v1255_v57 = vpack.c.bf16 %v1003_v50, %v1003_v50  ;;  %v988_v58 = vsel %vm813_vm7, %v979_v56, -inf  ;;  %v982_v59 = vsel %vm950_vm4, %v932_v36, %v966_v51  ;;  %vm948_vm5 = vcmp.ge.f32.partialorder %v924_v52, 0.0 }
 0x20e   : > { %v989_v61 = vmax.f32 %v987_v53, %v988_v58  ;;  %v1009_v62 = vsel %vm813_vm7, %v982_v59, -inf  ;;  %v964_v41 = vmul.f32 0.2, %v924_v52 }
 0x20f   : > { %1030 = vst.msk [vmem:[%s421_s17 + $0x8] sm:$0xf] %vm1027_vm15, %v1255_v57  ;;  %v1010_v63 = vmax.f32 %v1008_v54, %v1009_v62 }
 0x210   : > { %v1253_v1 = vpack.c.bf16 %v989_v61, %v989_v61  ;;  %v980_v2 = vsel %vm948_vm5, %v924_v52, %v964_v41 }
 0x211   : > { %v1256_v3 = vpack.c.bf16 %v1010_v63, %v1010_v63  ;;  %v995_v4 = vsel %vm813_vm7, %v980_v2, -inf }
 0x212   : > { %1028 = vst.msk [vmem:[%s421_s17] sm:$0xf] %vm1027_vm15, %v1253_v1  ;;  %v996_v5 = vmax.f32 %v994_v0, %v995_v4 }
 0x213   : > { %1031 = vst.msk [vmem:[%s421_s17 + $0xc] sm:$0xf] %vm1027_vm15, %v1256_v3 }
 0x214   : > { %v1254_v6 = vpack.c.bf16 %v996_v5, %v996_v5 }
 0x216   : > { %1029 = vst.msk [vmem:[%s421_s17 + $0x4] sm:$0xf] %vm1027_vm15, %v1254_v6 }
 0x217 PF: > { %s20_s26 = sadd.s32 1, %s1595_s26   ;;  %s1868_s24 = smov %s1591_s25 }
 0x218   : > { %p17_p2 = scmp.ge.s32.totalorder %s20_s26, 4   ;;  %s1869_s25 = smov %s1871_s12 }
 0x21a   :  { %19 = sbr.rel (!%p17_p2) target bundleno = 4 (0x4), region = 102 }
 0x21f   :  { %1062 = vsyncpa [#allocation3], 1 }
 0x220   :  { %1064 = vsyncpa [#allocation3 + $0x1], 1 }
 0x221   :  { %1065 = vsyncpa [#allocation5], 1 }
 0x222   :  { %1066 = vsyncpa [#allocation8], 1 }

// kernel: dgcnn_semseg_forward.13
= control target key start
LH: loop header
LB: loop body
LE: loop exit
PB: predicated region body
PF: predicated region fallthrough
CT: control target
= control target key end

     0   :  { %s1048_s18 = smov 0   ;;  %s1050_s19 = smov 0   ;;  %s1186_s0 = inlined_call_operand.vmem [shape: bf16[2,4,32,64], index: 0, kind: input, shape index: {}]   ;;  %s1187_s1 = inlined_call_operand.vmem [shape: bf16[2,32,64], index: 1, kind: input, shape index: {}]   ;;  %s1188_s2 = inlined_call_operand.vmem [shape: bf16[64,64], index: 2, kind: input, shape index: {}]   ;;  %s1189_s3 = inlined_call_operand.vmem [shape: bf16[64,64], index: 3, kind: input, shape index: {}]   ;;  %s1190_s4 = inlined_call_operand.vmem [shape: f32[1,64], index: 4, kind: input, shape index: {}]   ;;  %s1191_s5 = inlined_call_operand.vmem [shape: bf16[2,32,64], index: 5, kind: output, shape index: {}]  }
   0x1   :  { %s1052_s20 = smov 0  }
   0x2 LB: > { %s27_s21 = sadd.s32 1, %s1012_s19  ;;  %p841_p0 = scmp.ge.s32.totalorder %s1016_s20, 1  ;;  %s1016_s20 = sphi %s1052_s20, %s15_s20   ;;  %s1012_s19 = sphi %s1050_s19, %s1193_s19   ;;  %s1008_s18 = sphi %s1048_s18, %s1192_s18  }
   0x3   : > { %p29_p1 = scmp.ge.s32.totalorder %s27_s21, 2  ;;  %p225_p2 = scmp.lt.s32.totalorder %s1016_s20, 3 }
   0x5   : > { %s1195_s21 = smov (%p29_p1, %s27_s21), 0  ;;  %p226_p3 = pnand %p841_p0, %p225_p2 }
   0x6   : > { %p271_p4 = scmp.lt.s32.totalorder (!%p226_p3), %s1008_s18, 1 }
   0x7   : > { %229 = sbr.rel (%p226_p3) target bundleno = 260 (0x104), region = 40 }
   0xc   : > { %v976_v0 = vld [vmem:[%s1189_s3 + $0x18] sm:$0xff]   ;;  %v978_v2 = vld [vmem:[%s1189_s3 + $0x10] sm:$0xff]   ;;  %s1197_s18 = smov (!%p271_p4, %s1008_s18), 1  ;;  %v980_v4 = vld [vmem:[%s1189_s3 + $0x8] sm:$0xff]   ;;  %vm370_vm0 = vcmask 523264   ;;  %vm727_vm9 = vcmask 519168  }
   0xd   : > { %v977_v1 = vld [vmem:[%s1188_s2 + $0x18] sm:$0xff]   ;;  %908 = vmatprep.subr.bf16.mxu0 %v976_v0  ;;  %v979_v3 = vld [vmem:[%s1188_s2 + $0x10] sm:$0xff]   ;;  %s883_s7 = sshll.u32 %s1197_s18, 6  ;;  %v981_v5 = vld [vmem:[%s1188_s2 + $0x8] sm:$0xff]   ;;  %s884_s10 = sshll.u32 %s1197_s18, 4 }
   0xe   : > { %944 = vmatprep.subr.bf16.mxu1 %v977_v1  ;;  %909 = vmatpush3.bf16.msra.mxu0 %v976_v0  ;;  %v982_v6 = vld [vmem:[%s1189_s3] sm:$0xff]   ;;  %s1094_s15 = scalar_lea.vmem %s1186_s0, %s883_s7  ;;  %s288_s22 = scalar_lea.vmem %s1187_s1, %s884_s10 }
   0xf   : > { %948 = vmatpush3.bf16.msra.mxu1 %v977_v1  ;;  %910 = vmatprep.subr.bf16.mxu0 %v978_v2  ;;  %v983_v7 = vld [vmem:[%s1188_s2] sm:$0xff]   ;;  %v985_v9 = vld [vmem:[%s1094_s15 + $0x10] sm:$0xff]   ;;  %v986_v10 = vld [vmem:[%s288_s22 + $0x8] sm:$0xff]   ;;  %s1155_s29 = scalar_lea.vmem %s1191_s5, %s884_s10 }
  0x10   : > { %945 = vmatprep.subr.bf16.mxu1 %v979_v3  ;;  %v984_v8 = vld [vmem:[%s288_s22] sm:$0xff]   ;;  %932 = vmatprep.mubr.msk.bf16.mxu1 %vm370_vm0, %v985_v9  ;;  %v987_v11 = vld [vmem:[%s1094_s15 + $0x18] sm:$0xff]   ;;  %v989_v14 = vld [vmem:[%s1094_s15 + $0x28] sm:$0xff]  }
  0x11   : > { %916 = vmatprep.mubr.msk.bf16.mxu0 %vm370_vm0, %v984_v8  ;;  %v988_v12 = vld [vmem:[%s1094_s15 + $0x20] sm:$0xff]   ;;  %v991_v15 = vld [vmem:[%s1094_s15 + $0x30] sm:$0xff]   ;;  %v992_v16 = vld [vmem:[%s1094_s15 + $0x8] sm:$0xff]  }
  0x12   : > { %911 = vmatpush3.bf16.msra.mxu0 %v978_v2  ;;  %v990_v13 = vld [vmem:[%s1094_s15] sm:$0xff]   ;;  %v993_v17 = vld [vmem:[%s1094_s15 + $0x38] sm:$0xff]  }
  0x13   : > { %949 = vmatpush3.bf16.msra.mxu1 %v979_v3  ;;  %912 = vmatprep.subr.bf16.mxu0 %v980_v4  ;;  %v848_v18 = vld [vmem:[%s1190_s4] ss:$0 sm:$0xff] }
  0x14   : > { %946 = vmatprep.subr.bf16.mxu1 %v981_v5 }
  0x16   : > { %913 = vmatpush3.bf16.msra.mxu0 %v980_v4 }
  0x17   : > { %950 = vmatpush3.bf16.msra.mxu1 %v981_v5  ;;  %914 = vmatprep.subr.bf16.mxu0 %v982_v6 }
  0x18   : > { %947 = vmatprep.subr.bf16.mxu1 %v983_v7 }
  0x1a   : > { %915 = vmatpush3.bf16.msra.mxu0 %v982_v6 }
  0x1b   : > { %951 = vmatpush3.bf16.msra.mxu1 %v983_v7  ;;  %920 = vmatprep.subr.bf16.mxu0 %v977_v1 }
  0x1d   : > { %917 = vmatmul.mubr.msk.bf16.vlgmr.msra.gmra.mxu0 %vm370_vm0, %v986_v10 }
  0x1e   : > { %933 = vmatmul.mubr.msk.bf16.vlgmr.msra.gmra.mxu1 %vm370_vm0, %v987_v11  ;;  %921 = vmatpush3.bf16.msra.mxu0 %v977_v1 }
  0x1f   : > { %922 = vmatprep.subr.bf16.mxu0 %v979_v3  ;;  %936 = vmatprep.mubr.msk.bf16.mxu1 %vm370_vm0, %v988_v12 }
  0x20   : > { %928 = vmatprep.mubr.msk.bf16.mxu0 %vm370_vm0, %v990_v13 }
  0x22   : > { %923 = vmatpush3.bf16.msra.mxu0 %v979_v3 }
  0x23   : > { %924 = vmatprep.subr.bf16.mxu0 %v981_v5 }
  0x26   : > { %937 = vmatmul.mubr.msk.bf16.gmra.mxu1 %vm370_vm0, %v989_v14  ;;  %925 = vmatpush3.bf16.msra.mxu0 %v981_v5 }
  0x27   : > { %926 = vmatprep.subr.bf16.mxu0 %v983_v7  ;;  %940 = vmatprep.mubr.msk.bf16.mxu1 %vm370_vm0, %v991_v15 }
  0x2a   : > { %927 = vmatpush3.bf16.msra.mxu0 %v983_v7 }
  0x2d   : > { %929 = vmatmul.mubr.msk.bf16.vlgmr.msra.gmra.mxu0 %vm370_vm0, %v992_v16 }
  0x2e   : > { %941 = vmatmul.mubr.msk.bf16.gmra.mxu1 %vm370_vm0, %v993_v17 }
  0xdd   : > { %v918_v19 = vpop.f32.mrf.mxu0 }
  0xde   : > { %v934_v20 = vpop.f32.mrf.mxu1  ;;  %v420_v21 = vadd.f32 %v918_v19, %v848_v18 }
  0xdf   : > { %v411_v22 = vpop.f32.mrf.mxu0 }
  0xe0   : > { %v412_v23 = vadd.f32 %v848_v18, %v411_v22  ;;  %v572_v24 = vpop.f32.mrf.mxu1  ;;  %v625_v28 = vadd.f32 %v934_v20, %v420_v21 }
  0xe1   : > { %v919_v25 = vpop.f32.mrf.mxu0 }
  0xe2   : > { %v1125_v26 = vadd.f32 %v919_v25, %v848_v18  ;;  %v935_v27 = vpop.f32.mrf.mxu1  ;;  %v623_v29 = vadd.f32 %v572_v24, %v412_v23  ;;  %v657_v35 = vmul.f32 0.2, %v625_v28  ;;  %vm641_vm1 = vcmp.ge.f32.partialorder %v625_v28, 0.0 }
  0xe3   : > { %v414_v30 = vpop.f32.mrf.mxu0 }
  0xe4   : > { %v626_v31 = vadd.f32 %v935_v27, %v1125_v26  ;;  %v575_v32 = vpop.f32.mrf.mxu1  ;;  %v1128_v33 = vadd.f32 %v848_v18, %v414_v30  ;;  %v655_v36 = vmul.f32 0.2, %v623_v29  ;;  %vm639_vm2 = vcmp.ge.f32.partialorder %v623_v29, 0.0 }
  0xe5   : > { %v673_v45 = vsel %vm641_vm1, %v625_v28, %v657_v35 }
  0xe6   : > { %v938_v34 = vpop.f32.mrf.mxu1  ;;  %v624_v37 = vadd.f32 %v575_v32, %v1128_v33  ;;  %v658_v39 = vmul.f32 0.2, %v626_v31  ;;  %vm642_vm3 = vcmp.ge.f32.partialorder %v626_v31, 0.0  ;;  %v671_v46 = vsel %vm639_vm2, %v623_v29, %v655_v36 }
  0xe7   : > { %v629_v38 = vadd.f32 %v938_v34, %v420_v21  ;;  %v698_v59 = vsel %vm370_vm0, %v673_v45, -inf  ;;  %v684_v60 = vsel %vm370_vm0, %v671_v46, -inf }
  0xe8   : > { %v588_v40 = vpop.f32.mrf.mxu1  ;;  %vm640_vm4 = vcmp.ge.f32.partialorder %v624_v37, 0.0  ;;  %v656_v41 = vmul.f32 0.2, %v624_v37  ;;  %v674_v48 = vsel %vm642_vm3, %v626_v31, %v658_v39 }
  0xe9   : > { %vm645_vm5 = vcmp.ge.f32.partialorder %v629_v38, 0.0  ;;  %v661_v42 = vmul.f32 0.2, %v629_v38  ;;  %v627_v43 = vadd.f32 %v588_v40, %v412_v23  ;;  %v1136_v61 = vsel %vm370_vm0, %v674_v48, -inf }
  0xea   : > { %v939_v44 = vpop.f32.mrf.mxu1  ;;  %v672_v49 = vsel %vm640_vm4, %v624_v37, %v656_v41 }
  0xeb   : > { %v630_v47 = vadd.f32 %v939_v44, %v1125_v26  ;;  %vm643_vm6 = vcmp.ge.f32.partialorder %v627_v43, 0.0  ;;  %v659_v50 = vmul.f32 0.2, %v627_v43  ;;  %v677_v52 = vsel %vm645_vm5, %v629_v38, %v661_v42 }
  0xec   : > { %v591_v51 = vpop.f32.mrf.mxu1  ;;  %v1139_v62 = vsel %vm370_vm0, %v672_v49, -inf  ;;  %v700_v0 = vsel %vm370_vm0, %v677_v52, -inf }
  0xed   : > { %v662_v53 = vmul.f32 0.2, %v630_v47  ;;  %v930_v54 = vpop.f32.mrf.mxu0  ;;  %v675_v55 = vsel %vm643_vm6, %v627_v43, %v659_v50  ;;  %vm646_vm7 = vcmp.ge.f32.partialorder %v630_v47, 0.0  ;;  %v628_v56 = vadd.f32 %v591_v51, %v1128_v33 }
  0xee   : > { %v621_v57 = vadd.f32 %v930_v54, %v420_v21  ;;  %v942_v58 = vpop.f32.mrf.mxu1  ;;  %v686_v4 = vsel %vm370_vm0, %v675_v55, -inf }
  0xef   : > { %v556_v63 = vpop.f32.mrf.mxu0  ;;  %v633_v2 = vadd.f32 %v942_v58, %v420_v21  ;;  %v678_v5 = vsel %vm646_vm7, %v630_v47, %v662_v53  ;;  %vm644_vm10 = vcmp.ge.f32.partialorder %v628_v56, 0.0  ;;  %v660_v19 = vmul.f32 0.2, %v628_v56 }
  0xf0   : > { %vm637_vm8 = vcmp.ge.f32.partialorder %v621_v57, 0.0  ;;  %v653_v1 = vmul.f32 0.2, %v621_v57  ;;  %v604_v3 = vpop.f32.mrf.mxu1  ;;  %v619_v6 = vadd.f32 %v556_v63, %v412_v23  ;;  %v707_v46 = vsel %vm370_vm0, %v678_v5, -inf }
  0xf1   : > { %v631_v7 = vadd.f32 %v604_v3, %v412_v23  ;;  %v931_v8 = vpop.f32.mrf.mxu0  ;;  %vm649_vm11 = vcmp.ge.f32.partialorder %v633_v2, 0.0  ;;  %v665_v10 = vmul.f32 0.2, %v633_v2 }
  0xf2   : > { %v669_v9 = vsel %vm637_vm8, %v621_v57, %v653_v1  ;;  %v943_v11 = vpop.f32.mrf.mxu1  ;;  %vm635_vm12 = vcmp.ge.f32.partialorder %v619_v6, 0.0  ;;  %v651_v13 = vmul.f32 0.2, %v619_v6  ;;  %v622_v18 = vadd.f32 %v931_v8, %v1125_v26 }
  0xf3   : > { %v697_v12 = vsel %vm370_vm0, %v669_v9, -inf  ;;  %vm647_vm13 = vcmp.ge.f32.partialorder %v631_v7, 0.0  ;;  %v559_v14 = vpop.f32.mrf.mxu0  ;;  %v681_v16 = vsel %vm649_vm11, %v633_v2, %v665_v10  ;;  %v663_v17 = vmul.f32 0.2, %v631_v7 }
  0xf4   : > { %v699_v15 = vmax.f32 %v697_v12, %v698_v59  ;;  %v667_v20 = vsel %vm635_vm12, %v619_v6, %v651_v13  ;;  %v634_v21 = vadd.f32 %v943_v11, %v1125_v26  ;;  %v620_v22 = vadd.f32 %v559_v14, %v1128_v33  ;;  %v607_v27 = vpop.f32.mrf.mxu1 }
  0xf5   : > { %v702_v24 = vsel %vm370_vm0, %v681_v16, -inf  ;;  %v683_v25 = vsel %vm370_vm0, %v667_v20, -inf  ;;  %vm638_vm14 = vcmp.ge.f32.partialorder %v622_v18, 0.0  ;;  %v679_v29 = vsel %vm647_vm13, %v631_v7, %v663_v17 }
  0xf6   : > { %v701_v23 = vmax.f32 %v699_v15, %v700_v0  ;;  %v685_v28 = vmax.f32 %v683_v25, %v684_v60  ;;  %v654_v30 = vmul.f32 0.2, %v622_v18  ;;  %vm650_vm15 = vcmp.ge.f32.partialorder %v634_v21, 0.0 }
  0xf7   : > { %v666_v32 = vmul.f32 0.2, %v634_v21  ;;  %vm636_vm1 = vcmp.ge.f32.partialorder %v620_v22, 0.0  ;;  %v652_v34 = vmul.f32 0.2, %v620_v22  ;;  %v676_v26 = vsel %vm644_vm10, %v628_v56, %v660_v19 }
  0xf8   : > { %v703_v31 = vmax.f32 %v701_v23, %v702_v24  ;;  %v687_v35 = vmax.f32 %v685_v28, %v686_v4  ;;  %v670_v36 = vsel %vm638_vm14, %v622_v18, %v654_v30  ;;  %v632_v37 = vadd.f32 %v607_v27, %v1128_v33 }
  0xf9   : > { %v688_v39 = vsel %vm370_vm0, %v679_v29, -inf  ;;  %v704_v40 = vsel %vm370_vm0, %v670_v36, -inf  ;;  %v668_v41 = vsel %vm636_vm1, %v620_v22, %v652_v34  ;;  %v682_v44 = vsel %vm650_vm15, %v634_v21, %v666_v32 }
  0xfa   : > { %v888_v38 = vpack.c.bf16 %v703_v31, %v703_v31  ;;  %v689_v42 = vmax.f32 %v687_v35, %v688_v39  ;;  %v706_v43 = vmax.f32 %v704_v40, %v1136_v61  ;;  %v690_v45 = vsel %vm370_vm0, %v668_v41, -inf }
  0xfb   : > { %v692_v33 = vmax.f32 %v690_v45, %v1139_v62  ;;  %vm648_vm2 = vcmp.ge.f32.partialorder %v632_v37, 0.0  ;;  %v664_v47 = vmul.f32 0.2, %v632_v37  ;;  %v693_v48 = vsel %vm370_vm0, %v676_v26, -inf }
  0xfc   : > { %730 = vst.msk [vmem:[%s1155_s29 + $0x8] sm:$0xf] %vm727_vm9, %v888_v38  ;;  %v886_v49 = vpack.c.bf16 %v689_v42, %v689_v42  ;;  %v708_v50 = vmax.f32 %v706_v43, %v707_v46  ;;  %v709_v51 = vsel %vm370_vm0, %v682_v44, -inf }
  0xfd   : > { %v680_v52 = vsel %vm648_vm2, %v632_v37, %v664_v47  ;;  %v694_v53 = vmax.f32 %v692_v33, %v693_v48 }
  0xfe   : > { %728 = vst.msk [vmem:[%s1155_s29] sm:$0xf] %vm727_vm9, %v886_v49  ;;  %v710_v54 = vmax.f32 %v708_v50, %v709_v51  ;;  %v695_v55 = vsel %vm370_vm0, %v680_v52, -inf }
  0xff   : > { %v696_v56 = vmax.f32 %v694_v53, %v695_v55 }
 0x100   : > { %v889_v57 = vpack.c.bf16 %v710_v54, %v710_v54 }
 0x101   : > { %v887_v58 = vpack.c.bf16 %v696_v56, %v696_v56 }
 0x102   : > { %731 = vst.msk [vmem:[%s1155_s29 + $0xc] sm:$0xf] %vm727_vm9, %v889_v57 }
 0x103   : > { %729 = vst.msk [vmem:[%s1155_s29 + $0x4] sm:$0xf] %vm727_vm9, %v887_v58 }
 0x104 PF: > { %s15_s20 = sadd.s32 1, %s1016_s20   ;;  %s1192_s18 = smov %s1012_s19 }
 0x105   : > { %p12_p5 = scmp.ge.s32.totalorder %s15_s20, 4   ;;  %s1193_s19 = smov %s1195_s21 }
 0x107   :  { %14 = sbr.rel (!%p12_p5) target bundleno = 2 (0x2), region = 73 }

// kernel: dgcnn_semseg_forward.11
= control target key start
LH: loop header
LB: loop body
LE: loop exit
PB: predicated region body
PF: predicated region fallthrough
CT: control target
= control target key end

     0   :  { %s1381_s24 = smov 0   ;;  %s1383_s25 = smov 0   ;;  %s1559_s0 = inlined_call_operand.vmem [shape: bf16[2,4,32,64], index: 0, kind: input, shape index: {}]   ;;  %s1560_s1 = inlined_call_operand.vmem [shape: bf16[2,32,64], index: 1, kind: input, shape index: {}]   ;;  %s1561_s2 = inlined_call_operand.vmem [shape: bf16[64,64], index: 2, kind: input, shape index: {}]   ;;  %s1562_s3 = inlined_call_operand.vmem [shape: bf16[64,64], index: 3, kind: input, shape index: {}]   ;;  %s1563_s4 = inlined_call_operand.vmem [shape: f32[1,64], index: 4, kind: input, shape index: {}]   ;;  %s1564_s5 = inlined_call_operand.vmem [shape: bf16[64,64], index: 5, kind: input, shape index: {}]   ;;  %s1565_s6 = inlined_call_operand.vmem [shape: f32[1,64], index: 6, kind: input, shape index: {}]   ;;  %s1566_s7 = inlined_call_operand.vmem [shape: bf16[2,32,64], index: 7, kind: output, shape index: {}]  }
   0x1   :  { %s1385_s26 = smov 0  }
   0x2 LB: > { %s29_s27 = sadd.s32 1, %s1335_s25  ;;  %p1111_p0 = scmp.ge.s32.totalorder %s1339_s26, 1  ;;  %s1339_s26 = sphi %s1385_s26, %s17_s26   ;;  %s1335_s25 = sphi %s1383_s25, %s1568_s25   ;;  %s1331_s24 = sphi %s1381_s24, %s1567_s24  }
   0x3   : > { %p31_p1 = scmp.ge.s32.totalorder %s29_s27, 2  ;;  %p275_p2 = scmp.lt.s32.totalorder %s1339_s26, 3 }
   0x5   : > { %s1570_s27 = smov (%p31_p1, %s29_s27), 0  ;;  %p276_p3 = pnand %p1111_p0, %p275_p2 }
   0x6   : > { %p325_p4 = scmp.lt.s32.totalorder (!%p276_p3), %s1331_s24, 1 }
   0x7   : > { %279 = sbr.rel (%p276_p3) target bundleno = 472 (0x1d8), region = 48 }
   0xc   : > { %v1295_v0 = vld [vmem:[%s1562_s3 + $0x18] sm:$0xff]   ;;  %v1297_v2 = vld [vmem:[%s1562_s3 + $0x10] sm:$0xff]   ;;  %s1572_s24 = smov (!%p325_p4, %s1331_s24), 1  ;;  %v1299_v4 = vld [vmem:[%s1562_s3 + $0x8] sm:$0xff]   ;;  %vm424_vm0 = vcmask 523264  }
   0xd   : > { %v1296_v1 = vld [vmem:[%s1561_s2 + $0x18] sm:$0xff]   ;;  %1203 = vmatprep.subr.bf16.mxu0 %v1295_v0  ;;  %v1298_v3 = vld [vmem:[%s1561_s2 + $0x10] sm:$0xff]   ;;  %s1166_s15 = sshll.u32 %s1572_s24, 6  ;;  %v1300_v5 = vld [vmem:[%s1561_s2 + $0x8] sm:$0xff]   ;;  %s1167_s18 = sshll.u32 %s1572_s24, 4 }
   0xe   : > { %1215 = vmatprep.subr.bf16.mxu1 %v1296_v1  ;;  %1204 = vmatpush3.bf16.msra.mxu0 %v1295_v0  ;;  %v1301_v6 = vld [vmem:[%s1562_s3] sm:$0xff]   ;;  %s1427_s23 = scalar_lea.vmem %s1559_s0, %s1166_s15  ;;  %s342_s30 = scalar_lea.vmem %s1560_s1, %s1167_s18  ;;  %v1313_v18 = vld [vmem:[%s1564_s5 + $0x18] sm:$0xff]   ;;  %v1314_v19 = vld [vmem:[%s1564_s5 + $0x10] sm:$0xff]  }
   0xf   : > { %1216 = vmatpush3.bf16.msra.mxu1 %v1296_v1  ;;  %1205 = vmatprep.subr.bf16.mxu0 %v1297_v2  ;;  %v1302_v7 = vld [vmem:[%s1561_s2] sm:$0xff]   ;;  %v1305_v10 = vld [vmem:[%s342_s30 + $0x8] sm:$0xff]   ;;  %v1307_v12 = vld [vmem:[%s1427_s23 + $0x10] sm:$0xff]   ;;  %s352_s29 = scalar_lea.vmem %s1566_s7, %s1167_s18 }
  0x10   : > { %1217 = vmatprep.subr.bf16.mxu1 %v1298_v3  ;;  %v1303_v8 = vld [vmem:[%s342_s30] sm:$0xff]   ;;  %v1306_v11 = vld [vmem:[%s1427_s23 + $0x8] sm:$0xff]   ;;  %v1308_v13 = vld [vmem:[%s1427_s23 + $0x18] sm:$0xff]  }
  0x11   : > { %v1304_v9 = vld [vmem:[%s1427_s23] sm:$0xff]   ;;  %1211 = vmatprep.mubr.msk.bf16.mxu0 %vm424_vm0, %v1303_v8  ;;  %v1310_v15 = vld [vmem:[%s1427_s23 + $0x28] sm:$0xff]   ;;  %v1311_v16 = vld [vmem:[%s1427_s23 + $0x30] sm:$0xff]  }
  0x12   : > { %1206 = vmatpush3.bf16.msra.mxu0 %v1297_v2  ;;  %1223 = vmatprep.mubr.msk.bf16.mxu1 %vm424_vm0, %v1304_v9  ;;  %v1309_v14 = vld [vmem:[%s1427_s23 + $0x20] sm:$0xff]   ;;  %v1312_v17 = vld [vmem:[%s1427_s23 + $0x38] sm:$0xff]   ;;  %v1315_v20 = vld [vmem:[%s1564_s5 + $0x8] sm:$0xff]  }
  0x13   : > { %1218 = vmatpush3.bf16.msra.mxu1 %v1298_v3  ;;  %1207 = vmatprep.subr.bf16.mxu0 %v1299_v4  ;;  %v1316_v21 = vld [vmem:[%s1564_s5] sm:$0xff]  }
  0x14   : > { %1219 = vmatprep.subr.bf16.mxu1 %v1300_v5  ;;  %v1118_v23 = vld [vmem:[%s1563_s4] ss:$0 sm:$0xff] }
  0x16   : > { %1208 = vmatpush3.bf16.msra.mxu0 %v1299_v4 }
  0x17   : > { %1220 = vmatpush3.bf16.msra.mxu1 %v1300_v5  ;;  %1209 = vmatprep.subr.bf16.mxu0 %v1301_v6 }
  0x18   : > { %1221 = vmatprep.subr.bf16.mxu1 %v1302_v7 }
  0x1a   : > { %1210 = vmatpush3.bf16.msra.mxu0 %v1301_v6 }
  0x1b   : > { %1222 = vmatpush3.bf16.msra.mxu1 %v1302_v7  ;;  %1239 = vmatprep.subr.bf16.mxu0 %v1313_v18 }
  0x1c   : > { %1263 = vmatprep.subr.bf16.mxu1 %v1313_v18 }
  0x1d   : > { %1212 = vmatmul.mubr.msk.bf16.vlgmr.msra.gmra.mxu0 %vm424_vm0, %v1305_v10 }
  0x1e   : > { %1224 = vmatmul.mubr.msk.bf16.vlgmr.msra.gmra.mxu1 %vm424_vm0, %v1306_v11  ;;  %1240 = vmatpush3.bf16.msra.mxu0 %v1313_v18 }
  0x1f   : > { %1227 = vmatprep.mubr.msk.bf16.mxu1 %vm424_vm0, %v1307_v12  ;;  %1267 = vmatpush3.bf16.msra.mxu1 %v1313_v18 }
  0x20   : > { %1241 = vmatprep.subr.bf16.mxu0 %v1314_v19  ;;  %1264 = vmatprep.subr.bf16.mxu1 %v1314_v19 }
  0x22   : > { %1242 = vmatpush3.bf16.msra.mxu0 %v1314_v19 }
  0x23   : > { %1268 = vmatpush3.bf16.msra.mxu1 %v1314_v19  ;;  %1243 = vmatprep.subr.bf16.mxu0 %v1315_v20 }
  0x24   : > { %1265 = vmatprep.subr.bf16.mxu1 %v1315_v20 }
  0x26   : > { %1228 = vmatmul.mubr.msk.bf16.gmra.mxu1 %vm424_vm0, %v1308_v13  ;;  %1244 = vmatpush3.bf16.msra.mxu0 %v1315_v20 }
  0x27   : > { %1231 = vmatprep.mubr.msk.bf16.mxu1 %vm424_vm0, %v1309_v14  ;;  %1269 = vmatpush3.bf16.msra.mxu1 %v1315_v20 }
  0x28   : > { %1245 = vmatprep.subr.bf16.mxu0 %v1316_v21  ;;  %1266 = vmatprep.subr.bf16.mxu1 %v1316_v21 }
  0x2a   : > { %1246 = vmatpush3.bf16.msra.mxu0 %v1316_v21 }
  0x2b   : > { %1270 = vmatpush3.bf16.msra.mxu1 %v1316_v21 }
  0x2e   : > { %1232 = vmatmul.mubr.msk.bf16.gmra.mxu1 %vm424_vm0, %v1310_v15 }
  0x2f   : > { %1235 = vmatprep.mubr.msk.bf16.mxu1 %vm424_vm0, %v1311_v16 }
  0x36   : > { %1236 = vmatmul.mubr.msk.bf16.gmra.mxu1 %vm424_vm0, %v1312_v17 }
  0xdd   : > { %v1213_v22 = vpop.f32.mrf.mxu0 }
  0xde   : > { %v1225_v24 = vpop.f32.mrf.mxu1  ;;  %v1470_v26 = vadd.f32 %v1213_v22, %v1118_v23 }
  0xdf   : > { %v465_v25 = vpop.f32.mrf.mxu0 }
  0xe0   : > { %v1472_v27 = vadd.f32 %v1118_v23, %v465_v25  ;;  %v610_v28 = vpop.f32.mrf.mxu1  ;;  %v675_v34 = vadd.f32 %v1225_v24, %v1470_v26 }
  0xe1   : > { %v1214_v29 = vpop.f32.mrf.mxu0 }
  0xe2   : > { %v1474_v30 = vadd.f32 %v1214_v29, %v1118_v23  ;;  %v1226_v31 = vpop.f32.mrf.mxu1  ;;  %v673_v32 = vadd.f32 %v610_v28, %v1472_v27  ;;  %v707_v42 = vmul.f32 0.2, %v675_v34  ;;  %vm691_vm3 = vcmp.ge.f32.partialorder %v675_v34, 0.0 }
  0xe3   : > { %v468_v33 = vpop.f32.mrf.mxu0 }
  0xe4   : > { %v676_v35 = vadd.f32 %v1226_v31, %v1474_v30  ;;  %v613_v36 = vpop.f32.mrf.mxu1  ;;  %v1479_v37 = vadd.f32 %v1118_v23, %v468_v33  ;;  %v705_v40 = vmul.f32 0.2, %v673_v32  ;;  %vm689_vm2 = vcmp.ge.f32.partialorder %v673_v32, 0.0 }
  0xe5   : > { %v723_v51 = vsel %vm691_vm3, %v675_v34, %v707_v42  ;;  %v1505_v42 = vld [vmem:[%s1565_s6] ss:$0 sm:$0xff] }
  0xe6   : > { %v708_v38 = vmul.f32 0.2, %v676_v35  ;;  %v1229_v39 = vpop.f32.mrf.mxu1  ;;  %vm692_vm1 = vcmp.ge.f32.partialorder %v676_v35, 0.0  ;;  %v674_v41 = vadd.f32 %v613_v36, %v1479_v37  ;;  %v721_v48 = vsel %vm689_vm2, %v673_v32, %v705_v40 }
  0xe7   : > { %v679_v53 = vadd.f32 %v1229_v39, %v1470_v26 }
  0xe8   : > { %v626_v43 = vpop.f32.mrf.mxu1  ;;  %vm690_vm4 = vcmp.ge.f32.partialorder %v674_v41, 0.0  ;;  %v706_v44 = vmul.f32 0.2, %v674_v41  ;;  %v724_v45 = vsel %vm692_vm1, %v676_v35, %v708_v38 }
  0xe9   : > { %v677_v46 = vadd.f32 %v626_v43, %v1472_v27  ;;  %v738_v55 = vpack.c.bf16 %v724_v45, %v723_v51  ;;  %v711_v61 = vmul.f32 0.2, %v679_v53  ;;  %vm695_vm8 = vcmp.ge.f32.partialorder %v679_v53, 0.0 }
  0xea   : > { %v1230_v47 = vpop.f32.mrf.mxu1  ;;  %v722_v49 = vsel %vm690_vm4, %v674_v41, %v706_v44 }
  0xeb   : > { %v680_v50 = vadd.f32 %v1230_v47, %v1474_v30  ;;  %v737_v52 = vpack.c.bf16 %v722_v49, %v721_v48  ;;  %v709_v56 = vmul.f32 0.2, %v677_v46  ;;  %vm693_vm5 = vcmp.ge.f32.partialorder %v677_v46, 0.0 }
  0xec   : > { %v629_v54 = vpop.f32.mrf.mxu1  ;;  %v727_v7 = vsel %vm695_vm8, %v679_v53, %v711_v61 }
  0xed   : > { %v678_v57 = vadd.f32 %v629_v54, %v1479_v37  ;;  %v712_v58 = vmul.f32 0.2, %v680_v50  ;;  %1247 = vmatprep.mubr.msk.bf16.mxu0 %vm424_vm0, %v737_v52  ;;  %vm696_vm6 = vcmp.ge.f32.partialorder %v680_v50, 0.0  ;;  %v725_v63 = vsel %vm693_vm5, %v677_v46, %v709_v56 }
  0xee   : > { %v1233_v59 = vpop.f32.mrf.mxu1  ;;  %1248 = vmatmul.mubr.msk.bf16.vlgmr.msra.gmra.mxu0 %vm424_vm0, %v738_v55 }
  0xef   : > { %vm694_vm7 = vcmp.ge.f32.partialorder %v678_v57, 0.0  ;;  %v710_v60 = vmul.f32 0.2, %v678_v57  ;;  %v728_v2 = vsel %vm696_vm6, %v680_v50, %v712_v58  ;;  %v683_v5 = vadd.f32 %v1233_v59, %v1470_v26 }
  0xf0   : > { %v642_v62 = vpop.f32.mrf.mxu1  ;;  %v740_v9 = vpack.c.bf16 %v728_v2, %v727_v7 }
  0xf1   : > { %v726_v0 = vsel %vm694_vm7, %v678_v57, %v710_v60  ;;  %v681_v1 = vadd.f32 %v642_v62, %v1472_v27  ;;  %v715_v14 = vmul.f32 0.2, %v683_v5  ;;  %vm699_vm12 = vcmp.ge.f32.partialorder %v683_v5, 0.0 }
  0xf2   : > { %v739_v3 = vpack.c.bf16 %v726_v0, %v725_v63  ;;  %v1234_v4 = vpop.f32.mrf.mxu1 }
  0xf3   : > { %v684_v6 = vadd.f32 %v1234_v4, %v1474_v30  ;;  %v713_v10 = vmul.f32 0.2, %v681_v1  ;;  %vm697_vm9 = vcmp.ge.f32.partialorder %v681_v1, 0.0  ;;  %v731_v24 = vsel %vm699_vm12, %v683_v5, %v715_v14 }
  0xf4   : > { %v645_v8 = vpop.f32.mrf.mxu1  ;;  %1251 = vmatprep.mubr.msk.bf16.mxu0 %vm424_vm0, %v739_v3  ;;  %vm997_vm12 = vcmask 519168  }
  0xf5   : > { %v716_v11 = vmul.f32 0.2, %v684_v6  ;;  %v682_v12 = vadd.f32 %v645_v8, %v1479_v37  ;;  %vm700_vm10 = vcmp.ge.f32.partialorder %v684_v6, 0.0  ;;  %v729_v17 = vsel %vm697_vm9, %v681_v1, %v713_v10 }
  0xf6   : > { %v1237_v13 = vpop.f32.mrf.mxu1  ;;  %1252 = vmatmul.mubr.msk.bf16.gmra.mxu0 %vm424_vm0, %v740_v9 }
  0xf7   : > { %vm698_vm11 = vcmp.ge.f32.partialorder %v682_v12, 0.0  ;;  %v714_v15 = vmul.f32 0.2, %v682_v12  ;;  %v732_v18 = vsel %vm700_vm10, %v684_v6, %v716_v11  ;;  %v687_v22 = vadd.f32 %v1237_v13, %v1470_v26 }
  0xf8   : > { %v658_v16 = vpop.f32.mrf.mxu1  ;;  %v742_v28 = vpack.c.bf16 %v732_v18, %v731_v24 }
  0xf9   : > { %v730_v19 = vsel %vm698_vm11, %v682_v12, %v714_v15  ;;  %v685_v20 = vadd.f32 %v658_v16, %v1472_v27  ;;  %v719_v34 = vmul.f32 0.2, %v687_v22  ;;  %vm703_vm15 = vcmp.ge.f32.partialorder %v687_v22, 0.0 }
  0xfa   : > { %v741_v21 = vpack.c.bf16 %v730_v19, %v729_v17  ;;  %v1238_v23 = vpop.f32.mrf.mxu1 }
  0xfb   : > { %v688_v25 = vadd.f32 %v1238_v23, %v1474_v30  ;;  %v717_v31 = vmul.f32 0.2, %v685_v20  ;;  %vm701_vm14 = vcmp.ge.f32.partialorder %v685_v20, 0.0  ;;  %v735_v30 = vsel %vm703_vm15, %v687_v22, %v719_v34 }
  0xfc   : > { %v661_v29 = vpop.f32.mrf.mxu1  ;;  %1255 = vmatprep.mubr.msk.bf16.mxu0 %vm424_vm0, %v741_v21 }
  0xfd   : > { %vm704_vm13 = vcmp.ge.f32.partialorder %v688_v25, 0.0  ;;  %v720_v32 = vmul.f32 0.2, %v688_v25  ;;  %v686_v33 = vadd.f32 %v661_v29, %v1479_v37  ;;  %v733_v35 = vsel %vm701_vm14, %v685_v20, %v717_v31 }
  0xfe   : > { %1256 = vmatmul.mubr.msk.bf16.gmra.mxu0 %vm424_vm0, %v742_v28 }
  0xff   : > { %vm702_vm1 = vcmp.ge.f32.partialorder %v686_v33, 0.0  ;;  %v718_v27 = vmul.f32 0.2, %v686_v33  ;;  %v736_v26 = vsel %vm704_vm13, %v688_v25, %v720_v32 }
 0x100   : > { %v744_v39 = vpack.c.bf16 %v736_v26, %v735_v30 }
 0x101   : > { %v734_v36 = vsel %vm702_vm1, %v686_v33, %v718_v27 }
 0x102   : > { %v743_v38 = vpack.c.bf16 %v734_v36, %v733_v35 }
 0x104   : > { %1259 = vmatprep.mubr.msk.bf16.mxu1 %vm424_vm0, %v743_v38 }
 0x105   : > { %1260 = vmatmul.mubr.msk.bf16.vlgmr.msra.gmra.mxu1 %vm424_vm0, %v744_v39 }
 0x1ae   : > { %v1249_v40 = vpop.f32.mrf.mxu0 }
 0x1af   : > { %v851_v44 = vadd.f32 %v1249_v40, %v1505_v42 }
 0x1b0   : > { %v842_v41 = vpop.f32.mrf.mxu0 }
 0x1b1   : > { %v843_v45 = vadd.f32 %v1505_v42, %v842_v41  ;;  %vm907_vm2 = vcmp.ge.f32.partialorder %v851_v44, 0.0  ;;  %v923_v53 = vmul.f32 0.2, %v851_v44 }
 0x1b2   : > { %v1250_v37 = vpop.f32.mrf.mxu0 }
 0x1b3   : > { %v854_v47 = vadd.f32 %v1250_v37, %v1505_v42  ;;  %vm905_vm3 = vcmp.ge.f32.partialorder %v843_v45, 0.0  ;;  %v921_v55 = vmul.f32 0.2, %v843_v45  ;;  %v939_v62 = vsel %vm907_vm2, %v851_v44, %v923_v53 }
 0x1b4   : > { %v845_v43 = vpop.f32.mrf.mxu0  ;;  %v967_v11 = vsel %vm424_vm0, %v939_v62, -inf }
 0x1b5   : > { %v846_v48 = vadd.f32 %v1505_v42, %v845_v43  ;;  %v924_v56 = vmul.f32 0.2, %v854_v47  ;;  %vm908_vm5 = vcmp.ge.f32.partialorder %v854_v47, 0.0  ;;  %v937_v0 = vsel %vm905_vm3, %v843_v45, %v921_v55 }
 0x1b6   : > { %v1253_v46 = vpop.f32.mrf.mxu0  ;;  %v953_v12 = vsel %vm424_vm0, %v937_v0, -inf }
 0x1b7   : > { %v867_v49 = vadd.f32 %v1253_v46, %v1505_v42  ;;  %v922_v57 = vmul.f32 0.2, %v846_v48  ;;  %vm906_vm6 = vcmp.ge.f32.partialorder %v846_v48, 0.0  ;;  %v940_v1 = vsel %vm908_vm5, %v854_v47, %v924_v56 }
 0x1b8   : > { %v858_v50 = vpop.f32.mrf.mxu0  ;;  %v974_v13 = vsel %vm424_vm0, %v940_v1, -inf }
 0x1b9   : > { %v927_v51 = vmul.f32 0.2, %v867_v49  ;;  %v859_v52 = vadd.f32 %v1505_v42, %v858_v50  ;;  %vm911_vm4 = vcmp.ge.f32.partialorder %v867_v49, 0.0  ;;  %v938_v2 = vsel %vm906_vm6, %v846_v48, %v922_v57 }
 0x1ba   : > { %v1254_v54 = vpop.f32.mrf.mxu0  ;;  %v960_v15 = vsel %vm424_vm0, %v938_v2, -inf }
 0x1bb   : > { %v925_v58 = vmul.f32 0.2, %v859_v52  ;;  %v870_v59 = vadd.f32 %v1254_v54, %v1505_v42  ;;  %v943_v61 = vsel %vm911_vm4, %v867_v49, %v927_v51  ;;  %vm909_vm7 = vcmp.ge.f32.partialorder %v859_v52, 0.0 }
 0x1bc   : > { %v861_v60 = vpop.f32.mrf.mxu0  ;;  %v968_v4 = vsel %vm424_vm0, %v943_v61, -inf }
 0x1bd   : > { %v941_v5 = vsel %vm909_vm7, %v859_v52, %v925_v58  ;;  %vm912_vm8 = vcmp.ge.f32.partialorder %v870_v59, 0.0  ;;  %v928_v6 = vmul.f32 0.2, %v870_v59  ;;  %v862_v8 = vadd.f32 %v1505_v42, %v861_v60 }
 0x1be   : > { %v1257_v63 = vpop.f32.mrf.mxu0  ;;  %v969_v18 = vmax.f32 %v967_v11, %v968_v4  ;;  %v954_v19 = vsel %vm424_vm0, %v941_v5, -inf }
 0x1bf   : > { %v883_v3 = vadd.f32 %v1257_v63, %v1505_v42  ;;  %v944_v20 = vsel %vm912_vm8, %v870_v59, %v928_v6  ;;  %vm910_vm11 = vcmp.ge.f32.partialorder %v862_v8, 0.0  ;;  %v926_v24 = vmul.f32 0.2, %v862_v8 }
 0x1c0   : > { %v874_v7 = vpop.f32.mrf.mxu0  ;;  %v955_v34 = vmax.f32 %v953_v12, %v954_v19  ;;  %v975_v26 = vsel %vm424_vm0, %v944_v20, -inf }
 0x1c1   : > { %vm915_vm9 = vcmp.ge.f32.partialorder %v883_v3, 0.0  ;;  %v931_v9 = vmul.f32 0.2, %v883_v3  ;;  %v875_v10 = vadd.f32 %v1505_v42, %v874_v7  ;;  %v942_v39 = vsel %vm910_vm11, %v862_v8, %v926_v24 }
 0x1c2   : > { %v1258_v14 = vpop.f32.mrf.mxu0  ;;  %v976_v47 = vmax.f32 %v974_v13, %v975_v26  ;;  %v961_v50 = vsel %vm424_vm0, %v942_v39, -inf }
 0x1c3   : > { %v947_v16 = vsel %vm915_vm9, %v883_v3, %v931_v9  ;;  %vm913_vm10 = vcmp.ge.f32.partialorder %v875_v10, 0.0  ;;  %v929_v17 = vmul.f32 0.2, %v875_v10  ;;  %v886_v21 = vadd.f32 %v1258_v14, %v1505_v42 }
 0x1c4   : > { %v877_v22 = vpop.f32.mrf.mxu0  ;;  %v970_v29 = vsel %vm424_vm0, %v947_v16, -inf  ;;  %v962_v61 = vmax.f32 %v960_v15, %v961_v50 }
 0x1c5   : > { %v1261_v23 = vpop.f32.mrf.mxu1  ;;  %v878_v25 = vadd.f32 %v1505_v42, %v877_v22  ;;  %v945_v31 = vsel %vm913_vm10, %v875_v10, %v929_v17  ;;  %vm916_vm13 = vcmp.ge.f32.partialorder %v886_v21, 0.0  ;;  %v932_v32 = vmul.f32 0.2, %v886_v21 }
 0x1c6   : > { %v899_v28 = vadd.f32 %v1261_v23, %v1505_v42  ;;  %v971_v40 = vmax.f32 %v969_v18, %v970_v29  ;;  %v956_v41 = vsel %vm424_vm0, %v945_v31, -inf }
 0x1c7   : > { %v890_v33 = vpop.f32.mrf.mxu1  ;;  %vm914_vm14 = vcmp.ge.f32.partialorder %v878_v25, 0.0  ;;  %v930_v27 = vmul.f32 0.2, %v878_v25  ;;  %v948_v35 = vsel %vm916_vm13, %v886_v21, %v932_v32  ;;  %v957_v54 = vmax.f32 %v955_v34, %v956_v41 }
 0x1c8   : > { %vm919_vm15 = vcmp.ge.f32.partialorder %v899_v28, 0.0  ;;  %v935_v36 = vmul.f32 0.2, %v899_v28  ;;  %v891_v30 = vadd.f32 %v1505_v42, %v890_v33  ;;  %v977_v43 = vsel %vm424_vm0, %v948_v35, -inf }
 0x1c9   : > { %v1262_v38 = vpop.f32.mrf.mxu1  ;;  %v946_v44 = vsel %vm914_vm14, %v878_v25, %v930_v27  ;;  %v978_v55 = vmax.f32 %v976_v47, %v977_v43 }
 0x1ca   : > { %v902_v37 = vadd.f32 %v1262_v38, %v1505_v42  ;;  %v951_v45 = vsel %vm919_vm15, %v899_v28, %v935_v36  ;;  %vm917_vm1 = vcmp.ge.f32.partialorder %v891_v30, 0.0  ;;  %v933_v49 = vmul.f32 0.2, %v891_v30 }
 0x1cb   : > { %v893_v46 = vpop.f32.mrf.mxu1  ;;  %v972_v48 = vsel %vm424_vm0, %v951_v45, -inf  ;;  %v963_v56 = vsel %vm424_vm0, %v946_v44, -inf }
 0x1cc   : > { %vm920_vm2 = vcmp.ge.f32.partialorder %v902_v37, 0.0  ;;  %v973_v51 = vmax.f32 %v971_v40, %v972_v48  ;;  %v936_v52 = vmul.f32 0.2, %v902_v37  ;;  %v894_v53 = vadd.f32 %v1505_v42, %v893_v46 }
 0x1cd   : > { %v949_v57 = vsel %vm917_vm1, %v891_v30, %v933_v49  ;;  %v964_v1 = vmax.f32 %v962_v61, %v963_v56 }
 0x1ce   : > { %v1171_v58 = vpack.c.bf16 %v973_v51, %v973_v51  ;;  %v958_v59 = vsel %vm424_vm0, %v949_v57, -inf  ;;  %v952_v60 = vsel %vm920_vm2, %v902_v37, %v936_v52  ;;  %vm918_vm3 = vcmp.ge.f32.partialorder %v894_v53, 0.0 }
 0x1cf   : > { %v959_v62 = vmax.f32 %v957_v54, %v958_v59  ;;  %v979_v63 = vsel %vm424_vm0, %v952_v60, -inf  ;;  %v934_v42 = vmul.f32 0.2, %v894_v53 }
 0x1d0   : > { %1000 = vst.msk [vmem:[%s352_s29 + $0x8] sm:$0xf] %vm997_vm12, %v1171_v58  ;;  %v980_v0 = vmax.f32 %v978_v55, %v979_v63 }
 0x1d1   : > { %v1169_v2 = vpack.c.bf16 %v959_v62, %v959_v62  ;;  %v950_v3 = vsel %vm918_vm3, %v894_v53, %v934_v42 }
 0x1d2   : > { %v1172_v4 = vpack.c.bf16 %v980_v0, %v980_v0  ;;  %v965_v5 = vsel %vm424_vm0, %v950_v3, -inf }
 0x1d3   : > { %998 = vst.msk [vmem:[%s352_s29] sm:$0xf] %vm997_vm12, %v1169_v2  ;;  %v966_v6 = vmax.f32 %v964_v1, %v965_v5 }
 0x1d4   : > { %1001 = vst.msk [vmem:[%s352_s29 + $0xc] sm:$0xf] %vm997_vm12, %v1172_v4 }
 0x1d5   : > { %v1170_v7 = vpack.c.bf16 %v966_v6, %v966_v6 }
 0x1d7   : > { %999 = vst.msk [vmem:[%s352_s29 + $0x4] sm:$0xf] %vm997_vm12, %v1170_v7 }
 0x1d8 PF: > { %s17_s26 = sadd.s32 1, %s1339_s26   ;;  %s1567_s24 = smov %s1335_s25 }
 0x1d9   : > { %p14_p5 = scmp.ge.s32.totalorder %s17_s26, 4   ;;  %s1568_s25 = smov %s1570_s27 }
 0x1db   :  { %16 = sbr.rel (!%p14_p5) target bundleno = 2 (0x2), region = 81 }

// kernel: dgcnn_semseg_forward.14
= control target key start
LH: loop header
LB: loop body
LE: loop exit
PB: predicated region body
PF: predicated region fallthrough
CT: control target
= control target key end

     0   :  { %s2397_s24 = smov 0   ;;  %s2399_s25 = smov 0   ;;  %s3069_s0 = inlined_call_operand.vmem [shape: bf16[2,32,64], index: 0, kind: input, shape index: {}]   ;;  %s3070_s1 = inlined_call_operand.vmem [shape: bf16[2,32,64], index: 1, kind: input, shape index: {}]   ;;  %s3071_s2 = inlined_call_operand.vmem [shape: bf16[2,32,64], index: 2, kind: input, shape index: {}]   ;;  %s3072_s3 = inlined_call_operand.vmem [shape: bf16[64,1024], index: 3, kind: input, shape index: {}]   ;;  %s3073_s4 = inlined_call_operand.vmem [shape: bf16[64,1024], index: 4, kind: input, shape index: {}]   ;;  %s3074_s5 = inlined_call_operand.vmem [shape: bf16[64,1024], index: 5, kind: input, shape index: {}]   ;;  %s3075_s6 = inlined_call_operand.vmem [shape: f32[1,1024], index: 6, kind: input, shape index: {}]   ;;  %s3076_s7 = inlined_call_operand.vmem [shape: f32[2,1,1024], index: 7, kind: output, shape index: {}]  }
   0x1   :  { %s2401_s26 = smov 0  }
   0x2 LB: > { %s36_s27 = sadd.s32 1, %s2349_s25  ;;  %p2160_p0 = scmp.ge.s32.totalorder %s2353_s26, 1  ;;  %s2353_s26 = sphi %s2401_s26, %s17_s26   ;;  %s2349_s25 = sphi %s2399_s25, %s3113_s25   ;;  %s2345_s24 = sphi %s2397_s24, %s3112_s24  }
   0x3   : > { %p38_p1 = scmp.ge.s32.totalorder %s36_s27, 2  ;;  %p311_p2 = scmp.lt.s32.totalorder %s2353_s26, 3 }
   0x5   : > { %s3115_s27 = smov (%p38_p1, %s36_s27), 0  ;;  %p312_p3 = pnand %p2160_p0, %p311_p2 }
   0x7   : > { %315 = sbr.rel (%p312_p3) target bundleno = 375 (0x177), region = 48 }
   0xc   : > { %v485_v0 = vld [vmem:[%s3073_s4 + $0xc0] sm:$0xff]  ;;  %v486_v2 = vld [vmem:[%s3073_s4 + $0xc8] sm:$0xff]  ;;  %p373_p4 = scmp.lt.s32.totalorder %s2345_s24, 1  ;;  %v2355_v8 = vmov 0   ;;  %v487_v31 = vld [vmem:[%s3073_s4 + $0xd0] sm:$0xff]  ;;  %vm663_vm0 = vcmask 523264  }
   0xd   : > { %v489_v1 = vld [vmem:[%s3073_s4 + $0xe0] sm:$0xff]  ;;  %v490_v4 = vld [vmem:[%s3073_s4 + $0xe8] sm:$0xff]  ;;  %702 = vmatprep.mubr.bf16.mxu0 %v2355_v8  ;;  %755 = vmatprep.mubr.bf16.mxu1 %v2355_v8  ;;  %v491_v32 = vld [vmem:[%s3073_s4 + $0xf0] sm:$0xff] }
   0xe   : > { %v2195_v3 = vcombine.high %v485_v0, %v489_v1  ;;  %v2194_v5 = vcombine.low %v485_v0, %v489_v1  ;;  %v477_v6 = vld [vmem:[%s3073_s4 + $0x80] sm:$0xff]  ;;  %v2197_v9 = vcombine.high %v486_v2, %v490_v4  ;;  %v2196_v10 = vcombine.low %v486_v2, %v490_v4  ;;  %v478_v12 = vld [vmem:[%s3073_s4 + $0x88] sm:$0xff]  ;;  %s3117_s24 = smov (!%p373_p4, %s2345_s24), 1  ;;  %v488_v33 = vld [vmem:[%s3073_s4 + $0xd8] sm:$0xff] }
   0xf   : > { %v481_v7 = vld [vmem:[%s3073_s4 + $0xa0] sm:$0xff]  ;;  %v482_v13 = vld [vmem:[%s3073_s4 + $0xa8] sm:$0xff]  ;;  %s2457_s10 = sshll.u32 %s3117_s24, 4  ;;  %v492_v34 = vld [vmem:[%s3073_s4 + $0xf8] sm:$0xff]  ;;  %v2199_v37 = vcombine.high %v487_v31, %v491_v32  ;;  %v2198_v44 = vcombine.low %v487_v31, %v491_v32  ;;  %s2167_s13 = sshll.u32 %s3117_s24, 3 }
  0x10   : > { %v2187_v11 = vcombine.high %v477_v6, %v481_v7  ;;  %v469_v14 = vld [vmem:[%s3073_s4 + $0x40] sm:$0xff]  ;;  %678 = vmatprep.subr.bf16.mxu0 %v2195_v3  ;;  %v2189_v15 = vcombine.high %v478_v12, %v482_v13  ;;  %v470_v17 = vld [vmem:[%s3073_s4 + $0x48] sm:$0xff]  ;;  %731 = vmatprep.subr.bf16.mxu1 %v2197_v9  ;;  %v2186_v19 = vcombine.low %v477_v6, %v481_v7  ;;  %s2466_s15 = scalar_lea.vmem %s3070_s1, %s2457_s10  ;;  %v479_v39 = vld [vmem:[%s3073_s4 + $0x90] sm:$0xff]  ;;  %s2508_s23 = scalar_lea.vmem %s3069_s0, %s2457_s10 }
  0x11   : > { %v473_v16 = vld [vmem:[%s3073_s4 + $0x60] sm:$0xff]  ;;  %v474_v18 = vld [vmem:[%s3073_s4 + $0x68] sm:$0xff]  ;;  %679 = vmatpush1.bf16.msra.mxu0 %v2194_v5  ;;  %732 = vmatpush1.bf16.msra.mxu1 %v2196_v10  ;;  %v2188_v20 = vcombine.low %v478_v12, %v482_v13  ;;  %v2201_v38 = vcombine.high %v488_v33, %v492_v34  ;;  %v483_v40 = vld [vmem:[%s3073_s4 + $0xb0] sm:$0xff]  ;;  %v2200_v45 = vcombine.low %v488_v33, %v492_v34  ;;  %s2563_s16 = scalar_lea.vmem %s3071_s2, %s2457_s10  ;;  %s414_s18 = scalar_lea.vmem %s3076_s7, %s2167_s13 }
  0x12   : > { %680 = vmatprep.subr.bf16.mxu0 %v2187_v11  ;;  %v2179_v21 = vcombine.high %v469_v14, %v473_v16  ;;  %v461_v22 = vld [vmem:[%s3073_s4] sm:$0xff]  ;;  %733 = vmatprep.subr.bf16.mxu1 %v2189_v15  ;;  %v2181_v23 = vcombine.high %v470_v17, %v474_v18  ;;  %v462_v25 = vld [vmem:[%s3073_s4 + $0x8] sm:$0xff]  ;;  %v2178_v27 = vcombine.low %v469_v14, %v473_v16  ;;  %v480_v42 = vld [vmem:[%s3073_s4 + $0x98] sm:$0xff] }
  0x13   : > { %v465_v24 = vld [vmem:[%s3073_s4 + $0x20] sm:$0xff]  ;;  %v466_v26 = vld [vmem:[%s3073_s4 + $0x28] sm:$0xff]  ;;  %v2180_v28 = vcombine.low %v470_v17, %v474_v18  ;;  %v484_v43 = vld [vmem:[%s3073_s4 + $0xb8] sm:$0xff]  ;;  %v2191_v46 = vcombine.high %v479_v39, %v483_v40  ;;  %v2190_v52 = vcombine.low %v479_v39, %v483_v40 }
  0x14   : > { %v2171_v29 = vcombine.high %v461_v22, %v465_v24  ;;  %v2173_v30 = vcombine.high %v462_v25, %v466_v26  ;;  %v2170_v35 = vcombine.low %v461_v22, %v465_v24  ;;  %v2172_v36 = vcombine.low %v462_v25, %v466_v26  ;;  %v2496_v41 = vld [vmem:[%s2466_s15] sm:$0xff]   ;;  %v471_v47 = vld [vmem:[%s3073_s4 + $0x50] sm:$0xff]  ;;  %v472_v50 = vld [vmem:[%s3073_s4 + $0x58] sm:$0xff] }
  0x15   : > { %681 = vmatpush1.bf16.msra.mxu0 %v2186_v19  ;;  %734 = vmatpush1.bf16.msra.mxu1 %v2188_v20  ;;  %v2193_v48 = vcombine.high %v480_v42, %v484_v43  ;;  %v475_v49 = vld [vmem:[%s3073_s4 + $0x70] sm:$0xff]  ;;  %v476_v51 = vld [vmem:[%s3073_s4 + $0x78] sm:$0xff]  ;;  %v2192_v53 = vcombine.low %v480_v42, %v484_v43  ;;  %v2535_v58 = vld [vmem:[%s2466_s15 + $0x8] sm:$0xff]  }
  0x16   : > { %682 = vmatprep.subr.bf16.mxu0 %v2179_v21  ;;  %735 = vmatprep.subr.bf16.mxu1 %v2181_v23  ;;  %v2183_v54 = vcombine.high %v471_v47, %v475_v49  ;;  %v2185_v55 = vcombine.high %v472_v50, %v476_v51  ;;  %v463_v56 = vld [vmem:[%s3073_s4 + $0x10] sm:$0xff]  ;;  %v464_v59 = vld [vmem:[%s3073_s4 + $0x18] sm:$0xff]  ;;  %v2182_v61 = vcombine.low %v471_v47, %v475_v49  ;;  %v449_v1 = vld [vmem:[%s3072_s3 + $0xc0] sm:$0xff] }
  0x17   : > { %v467_v57 = vld [vmem:[%s3073_s4 + $0x30] sm:$0xff]  ;;  %v468_v60 = vld [vmem:[%s3073_s4 + $0x38] sm:$0xff]  ;;  %v2184_v62 = vcombine.low %v472_v50, %v476_v51  ;;  %v453_v2 = vld [vmem:[%s3072_s3 + $0xe0] sm:$0xff] }
  0x18   : > { %v2175_v63 = vcombine.high %v463_v56, %v467_v57  ;;  %v2177_v0 = vcombine.high %v464_v59, %v468_v60  ;;  %v450_v3 = vld [vmem:[%s3072_s3 + $0xc8] sm:$0xff]  ;;  %v2174_v5 = vcombine.low %v463_v56, %v467_v57  ;;  %v2176_v6 = vcombine.low %v464_v59, %v468_v60  ;;  %v441_v10 = vld [vmem:[%s3072_s3 + $0x80] sm:$0xff]  ;;  %v451_v34 = vld [vmem:[%s3072_s3 + $0xd0] sm:$0xff] }
  0x19   : > { %683 = vmatpush1.bf16.msra.mxu0 %v2178_v27  ;;  %736 = vmatpush1.bf16.msra.mxu1 %v2180_v28  ;;  %v454_v4 = vld [vmem:[%s3072_s3 + $0xe8] sm:$0xff]  ;;  %v2237_v7 = vcombine.high %v449_v1, %v453_v2  ;;  %v445_v11 = vld [vmem:[%s3072_s3 + $0xa0] sm:$0xff]  ;;  %v2236_v14 = vcombine.low %v449_v1, %v453_v2  ;;  %v443_v42 = vld [vmem:[%s3072_s3 + $0x90] sm:$0xff] }
  0x1a   : > { %684 = vmatprep.subr.bf16.mxu0 %v2171_v29  ;;  %737 = vmatprep.subr.bf16.mxu1 %v2173_v30  ;;  %v2239_v9 = vcombine.high %v450_v3, %v454_v4  ;;  %v442_v12 = vld [vmem:[%s3072_s3 + $0x88] sm:$0xff]  ;;  %v2238_v15 = vcombine.low %v450_v3, %v454_v4  ;;  %v2229_v16 = vcombine.high %v441_v10, %v445_v11  ;;  %v433_v17 = vld [vmem:[%s3072_s3 + $0x40] sm:$0xff]  ;;  %v447_v43 = vld [vmem:[%s3072_s3 + $0xb0] sm:$0xff] }
  0x1b   : > { %v446_v13 = vld [vmem:[%s3072_s3 + $0xa8] sm:$0xff]  ;;  %v437_v19 = vld [vmem:[%s3072_s3 + $0x60] sm:$0xff]  ;;  %v2228_v22 = vcombine.low %v441_v10, %v445_v11  ;;  %v2233_v49 = vcombine.high %v443_v42, %v447_v43  ;;  %v435_v51 = vld [vmem:[%s3072_s3 + $0x50] sm:$0xff] }
  0x1c   : > { %v2231_v18 = vcombine.high %v442_v12, %v446_v13  ;;  %v434_v20 = vld [vmem:[%s3072_s3 + $0x48] sm:$0xff]  ;;  %v2230_v23 = vcombine.low %v442_v12, %v446_v13  ;;  %v2221_v24 = vcombine.high %v433_v17, %v437_v19  ;;  %v425_v26 = vld [vmem:[%s3072_s3] sm:$0xff]  ;;  %v2220_v30 = vcombine.low %v433_v17, %v437_v19  ;;  %v427_v59 = vld [vmem:[%s3072_s3 + $0x10] sm:$0xff] }
  0x1d   : > { %685 = vmatpush1.bf16.msra.mxu0 %v2170_v35  ;;  %738 = vmatpush1.bf16.msra.mxu1 %v2172_v36  ;;  %v438_v21 = vld [vmem:[%s3072_s3 + $0x68] sm:$0xff]  ;;  %v429_v27 = vld [vmem:[%s3072_s3 + $0x20] sm:$0xff]  ;;  %v455_v35 = vld [vmem:[%s3072_s3 + $0xf0] sm:$0xff] }
  0x1e   : > { %784 = vmatprep.subr.bf16.mxu0 %v2199_v37  ;;  %837 = vmatprep.subr.bf16.mxu1 %v2201_v38  ;;  %v2223_v25 = vcombine.high %v434_v20, %v438_v21  ;;  %v426_v28 = vld [vmem:[%s3072_s3 + $0x8] sm:$0xff]  ;;  %v2222_v31 = vcombine.low %v434_v20, %v438_v21  ;;  %v2213_v32 = vcombine.high %v425_v26, %v429_v27  ;;  %v452_v36 = vld [vmem:[%s3072_s3 + $0xd8] sm:$0xff]  ;;  %v431_v60 = vld [vmem:[%s3072_s3 + $0x30] sm:$0xff] }
  0x1f   : > { %v430_v29 = vld [vmem:[%s3072_s3 + $0x28] sm:$0xff]  ;;  %v456_v37 = vld [vmem:[%s3072_s3 + $0xf8] sm:$0xff]  ;;  %v2212_v38 = vcombine.low %v425_v26, %v429_v27  ;;  %v2241_v40 = vcombine.high %v451_v34, %v455_v35  ;;  %v2240_v47 = vcombine.low %v451_v34, %v455_v35  ;;  %v2217_v2 = vcombine.high %v427_v59, %v431_v60  ;;  %v1298_v4 = vld [vmem:[%s3074_s5 + $0xc0] sm:$0xff] }
  0x20   : > { %2202 = vmatmul.mubr.msk.bf16.vlgmr.msra.gmra.mxu0 %vm663_vm0, %v2496_v41  ;;  %2204 = vmatmul.mubr.msk.bf16.vlgmr.msra.gmra.mxu1 %vm663_vm0, %v2496_v41  ;;  %v2215_v33 = vcombine.high %v426_v28, %v430_v29  ;;  %v2214_v39 = vcombine.low %v426_v28, %v430_v29  ;;  %v1290_v13 = vld [vmem:[%s3074_s5 + $0x80] sm:$0xff] }
  0x21   : > { %785 = vmatpush1.bf16.msra.mxu0 %v2198_v44  ;;  %838 = vmatpush1.bf16.msra.mxu1 %v2200_v45  ;;  %v2634_v44 = vld [vmem:[%s2508_s23] sm:$0xff]   ;;  %v444_v45 = vld [vmem:[%s3072_s3 + $0x98] sm:$0xff] }
  0x22   : > { %786 = vmatprep.subr.bf16.mxu0 %v2191_v46  ;;  %839 = vmatprep.subr.bf16.mxu1 %v2193_v48  ;;  %v448_v46 = vld [vmem:[%s3072_s3 + $0xb8] sm:$0xff]  ;;  %v2242_v48 = vcombine.low %v452_v36, %v456_v37  ;;  %v1282_v21 = vld [vmem:[%s3074_s5 + $0x40] sm:$0xff] }
  0x23   : > { %712 = vmatprep.mubr.bf16.mxu0 %v2355_v8  ;;  %765 = vmatprep.mubr.bf16.mxu1 %v2355_v8  ;;  %v2235_v50 = vcombine.high %v444_v45, %v448_v46  ;;  %v2234_v56 = vcombine.low %v444_v45, %v448_v46  ;;  %v1274_v29 = vld [vmem:[%s3074_s5] sm:$0xff]  ;;  %v1292_v45 = vld [vmem:[%s3074_s5 + $0x90] sm:$0xff] }
  0x24   : > { %v1296_v46 = vld [vmem:[%s3074_s5 + $0xb0] sm:$0xff] }
  0x25   : > { %787 = vmatpush1.bf16.msra.mxu0 %v2190_v52  ;;  %840 = vmatpush1.bf16.msra.mxu1 %v2192_v53  ;;  %v439_v52 = vld [vmem:[%s3072_s3 + $0x70] sm:$0xff]  ;;  %v436_v53 = vld [vmem:[%s3072_s3 + $0x58] sm:$0xff] }
  0x26   : > { %788 = vmatprep.subr.bf16.mxu0 %v2183_v54  ;;  %841 = vmatprep.subr.bf16.mxu1 %v2185_v55  ;;  %v440_v54 = vld [vmem:[%s3072_s3 + $0x78] sm:$0xff]  ;;  %v2232_v55 = vcombine.low %v443_v42, %v447_v43  ;;  %v2225_v57 = vcombine.high %v435_v51, %v439_v52 }
  0x27   : > { %v2226_v1 = vcombine.low %v436_v53, %v440_v54 }
  0x28   : > { %2203 = vmatmul.mubr.msk.bf16.gmra.mxu0 %vm663_vm0, %v2535_v58  ;;  %2205 = vmatmul.mubr.msk.bf16.gmra.mxu1 %vm663_vm0, %v2535_v58 }
  0x29   : > { %789 = vmatpush1.bf16.msra.mxu0 %v2182_v61  ;;  %842 = vmatpush1.bf16.msra.mxu1 %v2184_v62  ;;  %v2667_v61 = vld [vmem:[%s2508_s23 + $0x8] sm:$0xff]   ;;  %v428_v62 = vld [vmem:[%s3072_s3 + $0x18] sm:$0xff] }
  0x2a   : > { %790 = vmatprep.subr.bf16.mxu0 %v2175_v63  ;;  %843 = vmatprep.subr.bf16.mxu1 %v2177_v0  ;;  %v432_v63 = vld [vmem:[%s3072_s3 + $0x38] sm:$0xff]  ;;  %v2224_v0 = vcombine.low %v435_v51, %v439_v52  ;;  %v2275_v52 = vcombine.high %v1292_v45, %v1296_v46 }
  0x2b   : > { %808 = vmatprep.mubr.bf16.mxu0 %v2355_v8  ;;  %861 = vmatprep.mubr.bf16.mxu1 %v2355_v8  ;;  %v2219_v3 = vcombine.high %v428_v62, %v432_v63  ;;  %v2218_v10 = vcombine.low %v428_v62, %v432_v63  ;;  %v1276_v62 = vld [vmem:[%s3074_s5 + $0x10] sm:$0xff] }
  0x2c   : > { %v1280_v63 = vld [vmem:[%s3074_s5 + $0x30] sm:$0xff] }
  0x2d   : > { %791 = vmatpush1.bf16.msra.mxu0 %v2174_v5  ;;  %844 = vmatpush1.bf16.msra.mxu1 %v2176_v6  ;;  %v1302_v5 = vld [vmem:[%s3074_s5 + $0xe0] sm:$0xff]  ;;  %v1299_v6 = vld [vmem:[%s3074_s5 + $0xc8] sm:$0xff] }
  0x2e   : > { %1066 = vmatprep.subr.bf16.mxu0 %v2237_v7  ;;  %1119 = vmatprep.subr.bf16.mxu1 %v2239_v9  ;;  %v1303_v7 = vld [vmem:[%s3074_s5 + $0xe8] sm:$0xff]  ;;  %v2216_v9 = vcombine.low %v427_v59, %v431_v60  ;;  %v2279_v11 = vcombine.high %v1298_v4, %v1302_v5  ;;  %v2278_v17 = vcombine.low %v1298_v4, %v1302_v5 }
  0x2f   : > { %v2281_v12 = vcombine.high %v1299_v6, %v1303_v7  ;;  %v2259_v5 = vcombine.high %v1276_v62, %v1280_v63 }
  0x30   : > { %2206 = vmatmul.mubr.msk.bf16.vlgmr.msra.gmra.mxu0 %vm663_vm0, %v2496_v41  ;;  %2208 = vmatmul.mubr.msk.bf16.vlgmr.msra.gmra.mxu1 %vm663_vm0, %v2496_v41  ;;  %v2243_v41 = vcombine.high %v452_v36, %v456_v37  ;;  %v1300_v37 = vld [vmem:[%s3074_s5 + $0xd0] sm:$0xff] }
  0x31   : > { %1067 = vmatpush1.bf16.msra.mxu0 %v2236_v14  ;;  %1120 = vmatpush1.bf16.msra.mxu1 %v2238_v15  ;;  %v1294_v14 = vld [vmem:[%s3074_s5 + $0xa0] sm:$0xff]  ;;  %v1291_v15 = vld [vmem:[%s3074_s5 + $0x88] sm:$0xff] }
  0x32   : > { %1068 = vmatprep.subr.bf16.mxu0 %v2229_v16  ;;  %1121 = vmatprep.subr.bf16.mxu1 %v2231_v18  ;;  %v1295_v16 = vld [vmem:[%s3074_s5 + $0xa8] sm:$0xff]  ;;  %v2280_v18 = vcombine.low %v1299_v6, %v1303_v7  ;;  %v2271_v19 = vcombine.high %v1290_v13, %v1294_v14  ;;  %v2258_v7 = vcombine.low %v1276_v62, %v1280_v63  ;;  %v2356_v63 = vmov 1966171168  }
  0x33   : > { %818 = vmatprep.mubr.bf16.mxu0 %v2355_v8  ;;  %871 = vmatprep.mubr.bf16.mxu1 %v2355_v8  ;;  %v2273_v20 = vcombine.high %v1291_v15, %v1295_v16  ;;  %v2272_v26 = vcombine.low %v1291_v15, %v1295_v16 }
  0x35   : > { %1069 = vmatpush1.bf16.msra.mxu0 %v2228_v22  ;;  %1122 = vmatpush1.bf16.msra.mxu1 %v2230_v23  ;;  %v1286_v22 = vld [vmem:[%s3074_s5 + $0x60] sm:$0xff]  ;;  %v1283_v23 = vld [vmem:[%s3074_s5 + $0x48] sm:$0xff] }
  0x36   : > { %1070 = vmatprep.subr.bf16.mxu0 %v2221_v24  ;;  %1123 = vmatprep.subr.bf16.mxu1 %v2223_v25  ;;  %v1287_v24 = vld [vmem:[%s3074_s5 + $0x68] sm:$0xff]  ;;  %v2270_v25 = vcombine.low %v1290_v13, %v1294_v14  ;;  %v2263_v27 = vcombine.high %v1282_v21, %v1286_v22 }
  0x37   : > { %v2265_v28 = vcombine.high %v1283_v23, %v1287_v24  ;;  %v2264_v34 = vcombine.low %v1283_v23, %v1287_v24 }
  0x38   : > { %2207 = vmatmul.mubr.msk.bf16.gmra.mxu0 %vm663_vm0, %v2535_v58  ;;  %2209 = vmatmul.mubr.msk.bf16.gmra.mxu1 %vm663_vm0, %v2535_v58  ;;  %v2227_v58 = vcombine.high %v436_v53, %v440_v54  ;;  %v1284_v54 = vld [vmem:[%s3074_s5 + $0x50] sm:$0xff] }
  0x39   : > { %1071 = vmatpush1.bf16.msra.mxu0 %v2220_v30  ;;  %1124 = vmatpush1.bf16.msra.mxu1 %v2222_v31  ;;  %v1278_v30 = vld [vmem:[%s3074_s5 + $0x20] sm:$0xff]  ;;  %v1275_v31 = vld [vmem:[%s3074_s5 + $0x8] sm:$0xff] }
  0x3a   : > { %1072 = vmatprep.subr.bf16.mxu0 %v2213_v32  ;;  %1125 = vmatprep.subr.bf16.mxu1 %v2215_v33  ;;  %v1279_v32 = vld [vmem:[%s3074_s5 + $0x28] sm:$0xff]  ;;  %v2262_v33 = vcombine.low %v1282_v21, %v1286_v22  ;;  %v2255_v35 = vcombine.high %v1274_v29, %v1278_v30 }
  0x3b   : > { %1090 = vmatprep.mubr.bf16.mxu0 %v2355_v8  ;;  %1143 = vmatprep.mubr.bf16.mxu1 %v2355_v8  ;;  %v2257_v36 = vcombine.high %v1275_v31, %v1279_v32  ;;  %v2256_v42 = vcombine.low %v1275_v31, %v1279_v32 }
  0x3d   : > { %1073 = vmatpush1.bf16.msra.mxu0 %v2212_v38  ;;  %1126 = vmatpush1.bf16.msra.mxu1 %v2214_v39  ;;  %v1304_v38 = vld [vmem:[%s3074_s5 + $0xf0] sm:$0xff]  ;;  %v1301_v39 = vld [vmem:[%s3074_s5 + $0xd8] sm:$0xff] }
  0x3e   : > { %1172 = vmatprep.subr.bf16.mxu0 %v2241_v40  ;;  %1225 = vmatprep.subr.bf16.mxu1 %v2243_v41  ;;  %v1305_v40 = vld [vmem:[%s3074_s5 + $0xf8] sm:$0xff]  ;;  %v2254_v41 = vcombine.low %v1274_v29, %v1278_v30  ;;  %v2283_v43 = vcombine.high %v1300_v37, %v1304_v38 }
  0x3f   : > { %v2284_v51 = vcombine.low %v1301_v39, %v1305_v40 }
  0x40   : > { %2244 = vmatmul.mubr.msk.bf16.vlgmr.msra.gmra.mxu0 %vm663_vm0, %v2634_v44  ;;  %2246 = vmatmul.mubr.msk.bf16.vlgmr.msra.gmra.mxu1 %vm663_vm0, %v2634_v44 }
  0x41   : > { %1173 = vmatpush1.bf16.msra.mxu0 %v2240_v47  ;;  %1226 = vmatpush1.bf16.msra.mxu1 %v2242_v48  ;;  %v2329_v47 = vld [vmem:[%s2563_s16] sm:$0xff]   ;;  %v1293_v48 = vld [vmem:[%s3074_s5 + $0x98] sm:$0xff] }
  0x42   : > { %1174 = vmatprep.subr.bf16.mxu0 %v2233_v49  ;;  %1227 = vmatprep.subr.bf16.mxu1 %v2235_v50  ;;  %v1297_v49 = vld [vmem:[%s3074_s5 + $0xb8] sm:$0xff]  ;;  %v2282_v50 = vcombine.low %v1300_v37, %v1304_v38 }
  0x43   : > { %1100 = vmatprep.mubr.bf16.mxu0 %v2355_v8  ;;  %1153 = vmatprep.mubr.bf16.mxu1 %v2355_v8  ;;  %v2277_v53 = vcombine.high %v1293_v48, %v1297_v49  ;;  %v2276_v59 = vcombine.low %v1293_v48, %v1297_v49 }
  0x45   : > { %1175 = vmatpush1.bf16.msra.mxu0 %v2232_v55  ;;  %1228 = vmatpush1.bf16.msra.mxu1 %v2234_v56  ;;  %v1288_v55 = vld [vmem:[%s3074_s5 + $0x70] sm:$0xff]  ;;  %v1285_v56 = vld [vmem:[%s3074_s5 + $0x58] sm:$0xff] }
  0x46   : > { %1176 = vmatprep.subr.bf16.mxu0 %v2225_v57  ;;  %1229 = vmatprep.subr.bf16.mxu1 %v2227_v58  ;;  %v1289_v57 = vld [vmem:[%s3074_s5 + $0x78] sm:$0xff]  ;;  %v2274_v58 = vcombine.low %v1292_v45, %v1296_v46  ;;  %v2267_v60 = vcombine.high %v1284_v54, %v1288_v55 }
  0x47   : > { %v2268_v4 = vcombine.low %v1285_v56, %v1289_v57 }
  0x48   : > { %2245 = vmatmul.mubr.msk.bf16.gmra.mxu0 %vm663_vm0, %v2667_v61  ;;  %2247 = vmatmul.mubr.msk.bf16.gmra.mxu1 %vm663_vm0, %v2667_v61 }
  0x49   : > { %1177 = vmatpush1.bf16.msra.mxu0 %v2224_v0  ;;  %1230 = vmatpush1.bf16.msra.mxu1 %v2226_v1  ;;  %v2330_v0 = vld [vmem:[%s2563_s16 + $0x8] sm:$0xff]   ;;  %v1277_v1 = vld [vmem:[%s3074_s5 + $0x18] sm:$0xff] }
  0x4a   : > { %1178 = vmatprep.subr.bf16.mxu0 %v2217_v2  ;;  %1231 = vmatprep.subr.bf16.mxu1 %v2219_v3  ;;  %v1281_v2 = vld [vmem:[%s3074_s5 + $0x38] sm:$0xff]  ;;  %v2266_v3 = vcombine.low %v1284_v54, %v1288_v55  ;;  %v1728_v55 = vlaneseq }
  0x4b   : > { %1196 = vmatprep.mubr.bf16.mxu0 %v2355_v8  ;;  %1249 = vmatprep.mubr.bf16.mxu1 %v2355_v8  ;;  %v2261_v6 = vcombine.high %v1277_v1, %v1281_v2 }
  0x4d   : > { %1179 = vmatpush1.bf16.msra.mxu0 %v2216_v9  ;;  %1232 = vmatpush1.bf16.msra.mxu1 %v2218_v10  ;;  %v2260_v9 = vcombine.low %v1277_v1, %v1281_v2 }
  0x4e   : > { %1490 = vmatprep.subr.bf16.mxu0 %v2279_v11  ;;  %1543 = vmatprep.subr.bf16.mxu1 %v2281_v12 }
  0x50   : > { %2248 = vmatmul.mubr.msk.bf16.vlgmr.msra.gmra.mxu0 %vm663_vm0, %v2634_v44  ;;  %2250 = vmatmul.mubr.msk.bf16.vlgmr.msra.gmra.mxu1 %vm663_vm0, %v2634_v44  ;;  %v2285_v44 = vcombine.high %v1301_v39, %v1305_v40 }
  0x51   : > { %1491 = vmatpush1.bf16.msra.mxu0 %v2278_v17  ;;  %1544 = vmatpush1.bf16.msra.mxu1 %v2280_v18 }
  0x52   : > { %1492 = vmatprep.subr.bf16.mxu0 %v2271_v19  ;;  %1545 = vmatprep.subr.bf16.mxu1 %v2273_v20 }
  0x53   : > { %1206 = vmatprep.mubr.bf16.mxu0 %v2355_v8  ;;  %1259 = vmatprep.mubr.bf16.mxu1 %v2355_v8 }
  0x55   : > { %1493 = vmatpush1.bf16.msra.mxu0 %v2270_v25  ;;  %1546 = vmatpush1.bf16.msra.mxu1 %v2272_v26 }
  0x56   : > { %1494 = vmatprep.subr.bf16.mxu0 %v2263_v27  ;;  %1547 = vmatprep.subr.bf16.mxu1 %v2265_v28 }
  0x58   : > { %2249 = vmatmul.mubr.msk.bf16.gmra.mxu0 %vm663_vm0, %v2667_v61  ;;  %2251 = vmatmul.mubr.msk.bf16.gmra.mxu1 %vm663_vm0, %v2667_v61  ;;  %v2269_v61 = vcombine.high %v1285_v56, %v1289_v57 }
  0x59   : > { %1495 = vmatpush1.bf16.msra.mxu0 %v2262_v33  ;;  %1548 = vmatpush1.bf16.msra.mxu1 %v2264_v34 }
  0x5a   : > { %1496 = vmatprep.subr.bf16.mxu0 %v2255_v35  ;;  %1549 = vmatprep.subr.bf16.mxu1 %v2257_v36 }
  0x5b   : > { %1514 = vmatprep.mubr.bf16.mxu0 %v2355_v8  ;;  %1567 = vmatprep.mubr.bf16.mxu1 %v2355_v8 }
  0x5d   : > { %1497 = vmatpush1.bf16.msra.mxu0 %v2254_v41  ;;  %1550 = vmatpush1.bf16.msra.mxu1 %v2256_v42 }
  0x5e   : > { %1596 = vmatprep.subr.bf16.mxu0 %v2283_v43  ;;  %1649 = vmatprep.subr.bf16.mxu1 %v2285_v44 }
  0x60   : > { %2286 = vmatmul.mubr.msk.bf16.vlgmr.msra.gmra.mxu0 %vm663_vm0, %v2329_v47  ;;  %2288 = vmatmul.mubr.msk.bf16.vlgmr.msra.gmra.mxu1 %vm663_vm0, %v2329_v47 }
  0x61   : > { %1597 = vmatpush1.bf16.msra.mxu0 %v2282_v50  ;;  %1650 = vmatpush1.bf16.msra.mxu1 %v2284_v51 }
  0x62   : > { %1598 = vmatprep.subr.bf16.mxu0 %v2275_v52  ;;  %1651 = vmatprep.subr.bf16.mxu1 %v2277_v53 }
  0x63   : > { %1524 = vmatprep.mubr.bf16.mxu0 %v2355_v8  ;;  %1577 = vmatprep.mubr.bf16.mxu1 %v2355_v8 }
  0x65   : > { %1599 = vmatpush1.bf16.msra.mxu0 %v2274_v58  ;;  %1652 = vmatpush1.bf16.msra.mxu1 %v2276_v59 }
  0x66   : > { %1600 = vmatprep.subr.bf16.mxu0 %v2267_v60  ;;  %1653 = vmatprep.subr.bf16.mxu1 %v2269_v61  ;;  %v1729_v60 = vshrl.u32 %v1728_v55, 7 }
  0x68   : > { %2287 = vmatmul.mubr.msk.bf16.gmra.mxu0 %vm663_vm0, %v2330_v0  ;;  %2289 = vmatmul.mubr.msk.bf16.gmra.mxu1 %vm663_vm0, %v2330_v0  ;;  %v1750_v55 = vsub.s32 5, %v1729_v60 }
  0x69   : > { %1601 = vmatpush1.bf16.msra.mxu0 %v2266_v3  ;;  %1654 = vmatpush1.bf16.msra.mxu1 %v2268_v4  ;;  %v1730_v3 = vsub.s32 0, %v1729_v60  ;;  %v1738_v4 = vsub.s32 2, %v1729_v60 }
  0x6a   : > { %1602 = vmatprep.subr.bf16.mxu0 %v2259_v5  ;;  %1655 = vmatprep.subr.bf16.mxu1 %v2261_v6  ;;  %v1726_v6 = vld [vmem:[%s3075_s6] sm:$0xff] }
  0x6b   : > { %1620 = vmatprep.mubr.bf16.mxu0 %v2355_v8  ;;  %1673 = vmatprep.mubr.bf16.mxu1 %v2355_v8 }
  0x6d   : > { %1603 = vmatpush1.bf16.msra.mxu0 %v2258_v7  ;;  %1656 = vmatpush1.bf16.msra.mxu1 %v2260_v9  ;;  %v1734_v7 = vsub.s32 1, %v1729_v60  ;;  %v1742_v9 = vsub.s32 3, %v1729_v60 }
  0x70   : > { %2290 = vmatmul.mubr.msk.bf16.vlgmr.msra.gmra.mxu0 %vm663_vm0, %v2329_v47  ;;  %2292 = vmatmul.mubr.msk.bf16.vlgmr.msra.gmra.mxu1 %vm663_vm0, %v2329_v47 }
  0x71   : > { %1630 = vmatprep.mubr.bf16.mxu0 %v2355_v8  ;;  %1683 = vmatprep.mubr.bf16.mxu1 %v2355_v8 }
  0x78   : > { %2291 = vmatmul.mubr.msk.bf16.gmra.mxu0 %vm663_vm0, %v2330_v0  ;;  %2293 = vmatmul.mubr.msk.bf16.gmra.mxu1 %vm663_vm0, %v2330_v0  ;;  %v1982_v0 = vunpack.c.l.s4 %v2356_v63  ;;  %v2872_v63 = vrot.slane %v1726_v6, %v1730_v3 }
  0xe0   : > { %v2805_v10 = vpop.f32.mrf.mxu0  ;;  %v2807_v11 = vpop.f32.mrf.mxu1 }
  0xe2   : > { %v2809_v12 = vpop.f32.mrf.mxu0  ;;  %v2811_v13 = vpop.f32.mrf.mxu1 }
  0xe4   : > { %v2813_v14 = vpop.f32.mrf.mxu0  ;;  %v2815_v15 = vpop.f32.mrf.mxu1 }
  0xe6   : > { %v2817_v16 = vpop.f32.mrf.mxu0  ;;  %v2819_v17 = vpop.f32.mrf.mxu1 }
  0xe8   : > { %v2821_v8 = vpop.f32.mrf.mxu0  ;;  %v2823_v18 = vpop.f32.mrf.mxu1 }
  0xea   : > { %v2825_v19 = vpop.f32.mrf.mxu0  ;;  %v2827_v20 = vpop.f32.mrf.mxu1 }
  0xec   : > { %v2829_v21 = vpop.f32.mrf.mxu0  ;;  %v2831_v22 = vpop.f32.mrf.mxu1 }
  0xee   : > { %v2833_v23 = vpop.f32.mrf.mxu0  ;;  %v2835_v24 = vpop.f32.mrf.mxu1 }
  0xf0   : > { %v2837_v25 = vpop.f32.mrf.mxu0  ;;  %v2839_v26 = vpop.f32.mrf.mxu1 }
  0xf1   : > { %3078 = vst [vmem:[#allocation3_spill] sm:$0xff] %v2837_v25  ;;  %3079 = vst [vmem:[#allocation4_spill] sm:$0xff] %v2839_v26  ;;  %v2887_v25 = vrot.slane %v1726_v6, %v1750_v55 }
  0xf2   : > { %v2841_v27 = vpop.f32.mrf.mxu0  ;;  %v2843_v28 = vpop.f32.mrf.mxu1 }
  0xf3   : > { %3080 = vst [vmem:[#allocation5_spill] sm:$0xff] %v2841_v27  ;;  %3081 = vst [vmem:[#allocation6_spill] sm:$0xff] %v2843_v28 }
  0xf4   : > { %v2845_v29 = vpop.f32.mrf.mxu0  ;;  %v2847_v30 = vpop.f32.mrf.mxu1 }
  0xf5   : > { %3082 = vst [vmem:[#allocation7_spill] sm:$0xff] %v2845_v29  ;;  %3083 = vst [vmem:[#allocation8_spill] sm:$0xff] %v2847_v30  ;;  %v2878_v30 = vrot.slane %v1726_v6, %v1742_v9 }
  0xf6   : > { %v2849_v31 = vpop.f32.mrf.mxu0  ;;  %v2851_v32 = vpop.f32.mrf.mxu1 }
  0xf7   : > { %3084 = vst [vmem:[#allocation9_spill] sm:$0xff] %v2849_v31  ;;  %3085 = vst [vmem:[#allocation10_spill] sm:$0xff] %v2851_v32  ;;  %v2876_v31 = vrot.slane %v1726_v6, %v1734_v7 }
  0xf8   : > { %v2853_v33 = vpop.f32.mrf.mxu0  ;;  %v2855_v34 = vpop.f32.mrf.mxu1 }
  0xf9   : > { %3086 = vst [vmem:[#allocation11_spill] sm:$0xff] %v2853_v33  ;;  %3087 = vst [vmem:[#allocation12_spill] sm:$0xff] %v2855_v34  ;;  %v2874_v33 = vrot.slane %v1726_v6, %v1738_v4 }
  0xfa   : > { %v2857_v35 = vpop.f32.mrf.mxu0  ;;  %v2859_v36 = vpop.f32.mrf.mxu1 }
  0xfb   : > { %3088 = vst [vmem:[#allocation13_spill] sm:$0xff] %v2857_v35  ;;  %3089 = vst [vmem:[#allocation14_spill] sm:$0xff] %v2859_v36  ;;  %v1758_v36 = vsub.s32 7, %v1729_v60 }
  0xfc   : > { %v2861_v37 = vpop.f32.mrf.mxu0  ;;  %v2863_v38 = vpop.f32.mrf.mxu1 }
  0xfd   : > { %3090 = vst [vmem:[#allocation15_spill] sm:$0xff] %v2861_v37  ;;  %3091 = vst [vmem:[#allocation16_spill] sm:$0xff] %v2863_v38  ;;  %v1983_v37 = vunpack.c.0.s8 %v1982_v0  ;;  %v2889_v3 = vrot.slane %v1726_v6, %v1758_v36 }
  0xfe   : > { %v2865_v39 = vpop.f32.mrf.mxu0  ;;  %v2867_v40 = vpop.f32.mrf.mxu1 }
  0xff   : > { %3092 = vst [vmem:[#allocation17_spill] sm:$0xff] %v2865_v39  ;;  %3093 = vst [vmem:[#allocation18_spill] sm:$0xff] %v2867_v40  ;;  %v1746_v40 = vsub.s32 4, %v1729_v60  ;;  %v1754_v39 = vsub.s32 6, %v1729_v60  ;;  %v2885_v26 = vsub.s32 %v1983_v37, %v1729_v60 }
 0x100   : > { %v1092_v41 = vpop.f32.mrf.mxu0  ;;  %v1145_v42 = vpop.f32.mrf.mxu1 }
 0x101   : > { %v2880_v29 = vrot.slane %v1726_v6, %v1746_v40  ;;  %v2882_v28 = vrot.slane %v1726_v6, %v1754_v39  ;;  %v1093_v27 = vadd.f32 %v1092_v41, %v2805_v10  ;;  %v1146_v4 = vadd.f32 %v1145_v42, %v2807_v11 }
 0x102   : > { %v1094_v43 = vpop.f32.mrf.mxu0  ;;  %v1147_v44 = vpop.f32.mrf.mxu1  ;;  %v3105_v60 = vld [vmem:[#allocation13_spill] sm:$0xff] }
 0x103   : > { %3094 = vst [vmem:[#allocation19_spill] sm:$0xff] %v2880_v29  ;;  %v1095_v7 = vadd.f32 %v1094_v43, %v2809_v12  ;;  %v1148_v9 = vadd.f32 %v1147_v44, %v2811_v13 }
 0x104   : > { %v1096_v45 = vpop.f32.mrf.mxu0  ;;  %v1149_v46 = vpop.f32.mrf.mxu1 }
 0x105   : > { %v1097_v40 = vadd.f32 %v1096_v45, %v2813_v14  ;;  %v1150_v39 = vadd.f32 %v1149_v46, %v2815_v15  ;;  %v3098_v45 = vld [vmem:[#allocation6_spill] sm:$0xff]  ;;  %v3099_v46 = vld [vmem:[#allocation7_spill] sm:$0xff] }
 0x106   : > { %v1098_v47 = vpop.f32.mrf.mxu0  ;;  %v1151_v48 = vpop.f32.mrf.mxu1 }
 0x107   : > { %v1099_v10 = vadd.f32 %v1098_v47, %v2817_v16  ;;  %v2898_v37 = vadd.f32 %v1151_v48, %v2819_v17 }
 0x108   : > { %v1102_v49 = vpop.f32.mrf.mxu0  ;;  %v1155_v50 = vpop.f32.mrf.mxu1 }
 0x109   : > { %v2901_v41 = vadd.f32 %v1102_v49, %v2821_v8  ;;  %v2904_v11 = vadd.f32 %v1155_v50, %v2823_v18  ;;  %v3095_v18 = vld [vmem:[#allocation3_spill] sm:$0xff]  ;;  %v3101_v49 = vld [vmem:[#allocation9_spill] sm:$0xff] }
 0x10a   : > { %v1104_v51 = vpop.f32.mrf.mxu0  ;;  %v1157_v52 = vpop.f32.mrf.mxu1 }
 0x10b   : > { %v2907_v12 = vadd.f32 %v1104_v51, %v2825_v19  ;;  %v2910_v13 = vadd.f32 %v1157_v52, %v2827_v20  ;;  %v3096_v20 = vld [vmem:[#allocation4_spill] sm:$0xff]  ;;  %v3102_v51 = vld [vmem:[#allocation10_spill] sm:$0xff] }
 0x10c   : > { %v1106_v53 = vpop.f32.mrf.mxu0  ;;  %v1159_v54 = vpop.f32.mrf.mxu1 }
 0x10d   : > { %v2913_v14 = vadd.f32 %v1106_v53, %v2829_v21  ;;  %v2916_v16 = vadd.f32 %v1159_v54, %v2831_v22  ;;  %v3097_v21 = vld [vmem:[#allocation5_spill] sm:$0xff] }
 0x10e   : > { %v1108_v56 = vpop.f32.mrf.mxu0  ;;  %v1161_v57 = vpop.f32.mrf.mxu1 }
 0x10f   : > { %v2919_v17 = vadd.f32 %v1108_v56, %v2833_v23  ;;  %v2922_v8 = vadd.f32 %v1161_v57, %v2835_v24  ;;  %v3100_v24 = vld [vmem:[#allocation8_spill] sm:$0xff]  ;;  %v3103_v56 = vld [vmem:[#allocation11_spill] sm:$0xff] }
 0x110   : > { %v1198_v58 = vpop.f32.mrf.mxu0  ;;  %v1251_v59 = vpop.f32.mrf.mxu1 }
 0x111   : > { %v2925_v42 = vadd.f32 %v1198_v58, %v3095_v18  ;;  %v2930_v43 = vadd.f32 %v1251_v59, %v3096_v20  ;;  %v3104_v58 = vld [vmem:[#allocation12_spill] sm:$0xff] }
 0x112   : > { %v1200_v61 = vpop.f32.mrf.mxu0  ;;  %v1253_v62 = vpop.f32.mrf.mxu1 }
 0x113   : > { %v2933_v44 = vadd.f32 %v1200_v61, %v3097_v21  ;;  %v2936_v22 = vadd.f32 %v1253_v62, %v3098_v45 }
 0x114   : > { %v1202_v1 = vpop.f32.mrf.mxu0  ;;  %v1255_v2 = vpop.f32.mrf.mxu1 }
 0x115   : > { %v2939_v23 = vadd.f32 %v1202_v1, %v3099_v46  ;;  %v2942_v48 = vadd.f32 %v1255_v2, %v3100_v24  ;;  %v3106_v2 = vld [vmem:[#allocation14_spill] sm:$0xff] }
 0x116   : > { %v1204_v5 = vpop.f32.mrf.mxu0  ;;  %v1257_v38 = vpop.f32.mrf.mxu1 }
 0x117   : > { %v2945_v50 = vadd.f32 %v1204_v5, %v3101_v49  ;;  %v2948_v52 = vadd.f32 %v1257_v38, %v3102_v51  ;;  %v3107_v5 = vld [vmem:[#allocation15_spill] sm:$0xff] }
 0x118   : > { %v1208_v35 = vpop.f32.mrf.mxu0  ;;  %v1261_v34 = vpop.f32.mrf.mxu1 }
 0x119   : > { %v2951_v57 = vadd.f32 %v1208_v35, %v3103_v56  ;;  %v2954_v59 = vadd.f32 %v1261_v34, %v3104_v58  ;;  %v3108_v35 = vld [vmem:[#allocation16_spill] sm:$0xff]  ;;  %v3109_v34 = vld [vmem:[#allocation17_spill] sm:$0xff] }
 0x11a   : > { %v1210_v32 = vpop.f32.mrf.mxu0  ;;  %v1263_v0 = vpop.f32.mrf.mxu1 }
 0x11b   : > { %v2957_v61 = vadd.f32 %v1210_v32, %v3105_v60  ;;  %v2960_v6 = vadd.f32 %v1263_v0, %v3106_v2 }
 0x11c   : > { %v1212_v29 = vpop.f32.mrf.mxu0  ;;  %v1265_v36 = vpop.f32.mrf.mxu1 }
 0x11d   : > { %v2963_v55 = vadd.f32 %v1212_v29, %v3107_v5  ;;  %v2967_v20 = vadd.f32 %v1265_v36, %v3108_v35 }
 0x11e   : > { %v1214_v15 = vpop.f32.mrf.mxu0  ;;  %v2927_v19 = vpop.f32.mrf.mxu1 }
 0x11f   : > { %v2970_v21 = vadd.f32 %v1214_v15, %v3109_v34 }
 0x120   : > { %v1516_v47 = vpop.f32.mrf.mxu0  ;;  %v1569_v54 = vpop.f32.mrf.mxu1 }
 0x121   : > { %v1694_v53 = vadd.f32 %v1516_v47, %v1093_v27  ;;  %v1696_v62 = vadd.f32 %v1569_v54, %v1146_v4 }
 0x122   : > { %v1518_v1 = vpop.f32.mrf.mxu0  ;;  %v1571_v18 = vpop.f32.mrf.mxu1 }
 0x123   : > { %v1768_v27 = vadd.f32 %v2872_v63, %v1694_v53  ;;  %v1695_v38 = vadd.f32 %v1518_v1, %v1095_v7  ;;  %v1770_v32 = vadd.f32 %v2874_v33, %v1696_v62  ;;  %v1697_v4 = vadd.f32 %v1571_v18, %v1148_v9 }
 0x124   : > { %v1520_v45 = vpop.f32.mrf.mxu0  ;;  %v1573_v47 = vpop.f32.mrf.mxu1 }
 0x125   : > { %vm1800_vm1 = vcmp.ge.f32.partialorder %v1768_v27, 0.0  ;;  %v1832_v0 = vmul.f32 0.2, %v1768_v27  ;;  %v1769_v46 = vadd.f32 %v2876_v31, %v1695_v38  ;;  %v1702_v29 = vadd.f32 %v1520_v45, %v1097_v40 }
 0x126   : > { %vm1802_vm2 = vcmp.ge.f32.partialorder %v1770_v32, 0.0  ;;  %v1834_v24 = vmul.f32 0.2, %v1770_v32  ;;  %v1771_v7 = vadd.f32 %v2878_v30, %v1697_v4  ;;  %v1704_v49 = vadd.f32 %v1573_v47, %v1150_v39  ;;  %v1522_v36 = vpop.f32.mrf.mxu0  ;;  %v1575_v54 = vpop.f32.mrf.mxu1 }
 0x127   : > { %v1864_v51 = vsel %vm1800_vm1, %v1768_v27, %v1832_v0  ;;  %vm1801_vm3 = vcmp.ge.f32.partialorder %v1769_v46, 0.0  ;;  %v1833_v15 = vmul.f32 0.2, %v1769_v46  ;;  %v1776_v53 = vadd.f32 %v2872_v63, %v1702_v29 }
 0x128   : > { %v1866_v9 = vsel %vm1802_vm2, %v1770_v32, %v1834_v24  ;;  %vm1803_vm4 = vcmp.ge.f32.partialorder %v1771_v7, 0.0  ;;  %v1835_v56 = vmul.f32 0.2, %v1771_v7  ;;  %v1778_v58 = vadd.f32 %v2874_v33, %v1704_v49  ;;  %v1526_v60 = vpop.f32.mrf.mxu0  ;;  %v1579_v2 = vpop.f32.mrf.mxu1 }
 0x129   : > { %v1865_v40 = vsel %vm1801_vm3, %v1769_v46, %v1833_v15  ;;  %vm1808_vm5 = vcmp.ge.f32.partialorder %v1776_v53, 0.0  ;;  %v1840_v62 = vmul.f32 0.2, %v1776_v53  ;;  %v1703_v1 = vadd.f32 %v1522_v36, %v1099_v10 }
 0x12a   : > { %v1867_v5 = vsel %vm1803_vm4, %v1771_v7, %v1835_v56  ;;  %vm1810_vm6 = vcmp.ge.f32.partialorder %v1778_v58, 0.0  ;;  %v1842_v39 = vmul.f32 0.2, %v1778_v58  ;;  %v1705_v27 = vadd.f32 %v1575_v54, %v2898_v37  ;;  %v1528_v38 = vpop.f32.mrf.mxu0  ;;  %v1581_v4 = vpop.f32.mrf.mxu1 }
 0x12b   : > { %v1872_v18 = vsel %vm1808_vm5, %v1776_v53, %v1840_v62  ;;  %v1777_v35 = vadd.f32 %v2876_v31, %v1703_v1  ;;  %v1710_v34 = vadd.f32 %v1526_v60, %v2901_v41  ;;  %v1712_v32 = vadd.f32 %v1579_v2, %v2904_v11 }
 0x12c   : > { %v1897_v45 = vmax.f32 %v1864_v51, %v1872_v18  ;;  %v1874_v0 = vsel %vm1810_vm6, %v1778_v58, %v1842_v39  ;;  %v1779_v46 = vadd.f32 %v2878_v30, %v1705_v27  ;;  %v1711_v10 = vadd.f32 %v1528_v38, %v2907_v12  ;;  %v1530_v29 = vpop.f32.mrf.mxu0  ;;  %v1583_v7 = vpop.f32.mrf.mxu1 }
 0x12d   : > { %v1915_v47 = vmax.f32 %v1866_v9, %v1874_v0  ;;  %vm1809_vm7 = vcmp.ge.f32.partialorder %v1777_v35, 0.0  ;;  %v1841_v24 = vmul.f32 0.2, %v1777_v35  ;;  %v1784_v37 = vadd.f32 %v2872_v63, %v1710_v34 }
 0x12e   : > { %vm1811_vm8 = vcmp.ge.f32.partialorder %v1779_v46, 0.0  ;;  %v1843_v49 = vmul.f32 0.2, %v1779_v46  ;;  %v1786_v41 = vadd.f32 %v2874_v33, %v1712_v32  ;;  %v1785_v11 = vadd.f32 %v2876_v31, %v1711_v10  ;;  %v1532_v36 = vpop.f32.mrf.mxu0  ;;  %v1585_v12 = vpop.f32.mrf.mxu1 }
 0x12f   : > { %v1873_v51 = vsel %vm1809_vm7, %v1777_v35, %v1841_v24  ;;  %vm1816_vm9 = vcmp.ge.f32.partialorder %v1784_v37, 0.0  ;;  %v1848_v15 = vmul.f32 0.2, %v1784_v37  ;;  %v1713_v53 = vadd.f32 %v1581_v4, %v2910_v13 }
 0x130   : > { %v1906_v54 = vmax.f32 %v1865_v40, %v1873_v51  ;;  %v1875_v9 = vsel %vm1811_vm8, %v1779_v46, %v1843_v49  ;;  %vm1818_vm10 = vcmp.ge.f32.partialorder %v1786_v41, 0.0  ;;  %v1850_v56 = vmul.f32 0.2, %v1786_v41  ;;  %v1622_v1 = vpop.f32.mrf.mxu0  ;;  %v1675_v34 = vpop.f32.mrf.mxu1 }
 0x131   : > { %v1924_v58 = vmax.f32 %v1867_v5, %v1875_v9  ;;  %v1880_v60 = vsel %vm1816_vm9, %v1784_v37, %v1848_v15  ;;  %vm1817_vm11 = vcmp.ge.f32.partialorder %v1785_v11, 0.0  ;;  %v1849_v62 = vmul.f32 0.2, %v1785_v11 }
 0x132   : > { %v1898_v2 = vmax.f32 %v1897_v45, %v1880_v60  ;;  %v1882_v39 = vsel %vm1818_vm10, %v1786_v41, %v1850_v56  ;;  %v1787_v27 = vadd.f32 %v2878_v30, %v1713_v53  ;;  %v1718_v38 = vadd.f32 %v1530_v29, %v2913_v14  ;;  %v1624_v10 = vpop.f32.mrf.mxu0  ;;  %v1677_v37 = vpop.f32.mrf.mxu1 }
 0x133   : > { %v1916_v18 = vmax.f32 %v1915_v47, %v1882_v39  ;;  %v1881_v35 = vsel %vm1817_vm11, %v1785_v11, %v1849_v62  ;;  %v1720_v13 = vadd.f32 %v1583_v7, %v2916_v16  ;;  %v1719_v40 = vadd.f32 %v1532_v36, %v2919_v17 }
 0x134   : > { %v1907_v32 = vmax.f32 %v1906_v54, %v1881_v35  ;;  %vm1819_vm12 = vcmp.ge.f32.partialorder %v1787_v27, 0.0  ;;  %v1851_v5 = vmul.f32 0.2, %v1787_v27  ;;  %v1792_v4 = vadd.f32 %v2872_v63, %v1718_v38  ;;  %v1626_v36 = vpop.f32.mrf.mxu0  ;;  %v1679_v9 = vpop.f32.mrf.mxu1 }
 0x135   : > { %v1794_v0 = vadd.f32 %v2874_v33, %v1720_v13  ;;  %v1793_v45 = vadd.f32 %v2876_v31, %v1719_v40  ;;  %v1721_v46 = vadd.f32 %v1585_v12, %v2922_v8  ;;  %v1698_v14 = vadd.f32 %v1622_v1, %v2925_v42  ;;  %v3110_v31 = vld [vmem:[#allocation19_spill] sm:$0xff] }
 0x136   : > { %v1883_v29 = vsel %vm1819_vm12, %v1787_v27, %v1851_v5  ;;  %vm1824_vm13 = vcmp.ge.f32.partialorder %v1792_v4, 0.0  ;;  %v1856_v16 = vmul.f32 0.2, %v1792_v4  ;;  %v1700_v17 = vadd.f32 %v1675_v34, %v2930_v43 }
 0x137   : > { %v1925_v47 = vmax.f32 %v1924_v58, %v1883_v29  ;;  %vm1826_vm14 = vcmp.ge.f32.partialorder %v1794_v0, 0.0  ;;  %v1858_v24 = vmul.f32 0.2, %v1794_v0  ;;  %vm1825_vm15 = vcmp.ge.f32.partialorder %v1793_v45, 0.0 }
 0x138   : > { %v1888_v63 = vsel %vm1824_vm13, %v1792_v4, %v1856_v16  ;;  %v1857_v7 = vmul.f32 0.2, %v1793_v45  ;;  %v1795_v33 = vadd.f32 %v2878_v30, %v1721_v46  ;;  %v1772_v49 = vadd.f32 %v3110_v31, %v1698_v14 }
 0x139   : > { %v1899_v8 = vmax.f32 %v1898_v2, %v1888_v63  ;;  %v1890_v41 = vsel %vm1826_vm14, %v1794_v0, %v1858_v24  ;;  %v1774_v42 = vadd.f32 %v2882_v28, %v1700_v17  ;;  %v1699_v11 = vadd.f32 %v1624_v10, %v2933_v44  ;;  %v1628_v44 = vpop.f32.mrf.mxu0 }
 0x13a   : > { %v1917_v51 = vmax.f32 %v1916_v18, %v1890_v41  ;;  %v1889_v43 = vsel %vm1825_vm15, %v1793_v45, %v1857_v7  ;;  %vm1827_vm0 = vcmp.ge.f32.partialorder %v1795_v33, 0.0  ;;  %v1859_v15 = vmul.f32 0.2, %v1795_v33 }
 0x13b   : > { %v1900_v53 = vrot.slane %v1899_v8, 4  ;;  %v1908_v12 = vmax.f32 %v1907_v32, %v1889_v43  ;;  %vm1804_vm1 = vcmp.ge.f32.partialorder %v1772_v49, 0.0  ;;  %v1836_v54 = vmul.f32 0.2, %v1772_v49  ;;  %v1681_v32 = vpop.f32.mrf.mxu1  ;;  %v1632_v29 = vpop.f32.mrf.mxu0 }
 0x13c   : > { %v1918_v56 = vrot.slane %v1917_v51, 4  ;;  %v1891_v30 = vsel %vm1827_vm0, %v1795_v33, %v1859_v15  ;;  %vm1806_vm2 = vcmp.ge.f32.partialorder %v1774_v42, 0.0  ;;  %v1838_v58 = vmul.f32 0.2, %v1774_v42 }
 0x13d   : > { %v1901_v60 = vmax.f32 %v1899_v8, %v1900_v53  ;;  %v1909_v62 = vrot.slane %v1908_v12, 4  ;;  %v1926_v1 = vmax.f32 %v1925_v47, %v1891_v30  ;;  %v3001_v2 = vsel %vm1804_vm1, %v1772_v49, %v1836_v54 }
 0x13e   : > { %v1919_v39 = vmax.f32 %v1917_v51, %v1918_v56  ;;  %v3003_v27 = vsel %vm1806_vm2, %v1774_v42, %v1838_v58  ;;  %v1773_v38 = vadd.f32 %v2887_v25, %v1699_v11  ;;  %v1701_v18 = vadd.f32 %v1677_v37, %v2936_v22  ;;  %v1685_v37 = vpop.f32.mrf.mxu1 }
 0x13f   : > { %v1902_v35 = vrot.slane %v1901_v60, 2  ;;  %v1910_v13 = vmax.f32 %v1908_v12, %v1909_v62  ;;  %v1927_v40 = vrot.slane %v1926_v1, 4  ;;  %v1706_v34 = vadd.f32 %v1626_v36, %v2939_v23  ;;  %v1634_v36 = vpop.f32.mrf.mxu0 }
 0x140   : > { %v1920_v5 = vrot.slane %v1919_v39, 2  ;;  %vm1805_vm3 = vcmp.ge.f32.partialorder %v1773_v38, 0.0  ;;  %v1837_v4 = vmul.f32 0.2, %v1773_v38  ;;  %v1775_v0 = vadd.f32 %v2889_v3, %v1701_v18  ;;  %v1687_v58 = vpop.f32.mrf.mxu1 }
 0x141   : > { %v1903_v45 = vmax.f32 %v1901_v60, %v1902_v35  ;;  %v1911_v46 = vrot.slane %v1910_v13, 2  ;;  %v1928_v14 = vmax.f32 %v1926_v1, %v1927_v40  ;;  %v1780_v10 = vadd.f32 %v3110_v31, %v1706_v34 }
 0x142   : > { %v1921_v16 = vmax.f32 %v1919_v39, %v1920_v5  ;;  %v3010_v17 = vsel %vm1805_vm3, %v1773_v38, %v1837_v4  ;;  %vm1807_vm4 = vcmp.ge.f32.partialorder %v1775_v0, 0.0  ;;  %v1839_v22 = vmul.f32 0.2, %v1775_v0  ;;  %v1689_v40 = vpop.f32.mrf.mxu1 }
 0x143   : > { %v1904_v47 = vrot.slane %v1903_v45, 1  ;;  %v1912_v24 = vmax.f32 %v1910_v13, %v1911_v46  ;;  %v1929_v23 = vrot.slane %v1928_v14, 2  ;;  %vm1812_vm5 = vcmp.ge.f32.partialorder %v1780_v10, 0.0 }
 0x144   : > { %v1922_v63 = vrot.slane %v1921_v16, 1  ;;  %v3012_v7 = vsel %vm1807_vm4, %v1775_v0, %v1839_v22  ;;  %v1844_v33 = vmul.f32 0.2, %v1780_v10  ;;  %v1708_v49 = vadd.f32 %v1679_v9, %v2942_v48 }
 0x145   : > { %v1905_v8 = vmax.f32 %v1903_v45, %v1904_v47  ;;  %v1913_v41 = vrot.slane %v1912_v24, 1  ;;  %v1930_v42 = vmax.f32 %v1928_v14, %v1929_v23  ;;  %v1707_v11 = vadd.f32 %v1628_v44, %v2945_v50  ;;  %v1636_v44 = vpop.f32.mrf.mxu0  ;;  %v3111_v23 = vld [vmem:[#allocation18_spill] sm:$0xff] }
 0x146   : > { %v1923_v51 = vmax.f32 %v1921_v16, %v1922_v63  ;;  %v1876_v43 = vsel %vm1812_vm5, %v1780_v10, %v1844_v33  ;;  %v1782_v15 = vadd.f32 %v2882_v28, %v1708_v49  ;;  %v1709_v53 = vadd.f32 %v1681_v32, %v2948_v52 }
 0x147   : > { %v1914_v12 = vmax.f32 %v1912_v24, %v1913_v41  ;;  %v1931_v54 = vrot.slane %v1930_v42, 1  ;;  %v1933_v56 = vmax.f32 %v3001_v2, %v1876_v43  ;;  %v1781_v30 = vadd.f32 %v2887_v25, %v1707_v11  ;;  %v1638_v46 = vpop.f32.mrf.mxu0 }
 0x148   : > { %vm1814_vm6 = vcmp.ge.f32.partialorder %v1782_v15, 0.0  ;;  %v1846_v48 = vmul.f32 0.2, %v1782_v15  ;;  %v1783_v9 = vadd.f32 %v2889_v3, %v1709_v53  ;;  %v1714_v50 = vadd.f32 %v1632_v29, %v2951_v57 }
 0x149   : > { %v1977_v60 = vcombine.low %v1905_v8, %v1914_v12  ;;  %v1932_v62 = vmax.f32 %v1930_v42, %v1931_v54  ;;  %vm1813_vm7 = vcmp.ge.f32.partialorder %v1781_v30, 0.0  ;;  %v1845_v1 = vmul.f32 0.2, %v1781_v30 }
 0x14a   : > { %v1878_v39 = vsel %vm1814_vm6, %v1782_v15, %v1846_v48  ;;  %vm1815_vm8 = vcmp.ge.f32.partialorder %v1783_v9, 0.0  ;;  %v1847_v52 = vmul.f32 0.2, %v1783_v9  ;;  %v1788_v38 = vadd.f32 %v3110_v31, %v1714_v50 }
 0x14b   : > { %v3024_v2 = vrot.slane %v1977_v60, %v2885_v26  ;;  %v1978_v18 = vcombine.low %v1923_v51, %v1932_v62  ;;  %v1951_v35 = vmax.f32 %v3003_v27, %v1878_v39  ;;  %v1877_v13 = vsel %vm1813_vm7, %v1781_v30, %v1845_v1 }
 0x14c   : > { %v1942_v57 = vmax.f32 %v3010_v17, %v1877_v13  ;;  %v1879_v34 = vsel %vm1815_vm8, %v1783_v9, %v1847_v52  ;;  %vm1820_vm9 = vcmp.ge.f32.partialorder %v1788_v38, 0.0  ;;  %v1852_v32 = vmul.f32 0.2, %v1788_v38 }
 0x14d   : > { %v3029_v5 = vrot.slane %v1978_v18, %v2885_v26  ;;  %v1960_v4 = vmax.f32 %v3012_v7, %v1879_v34  ;;  %v1716_v0 = vadd.f32 %v1685_v37, %v2954_v59  ;;  %v1715_v45 = vadd.f32 %v1634_v36, %v2957_v61 }
 0x14e   : > { %v1884_v14 = vsel %vm1820_vm9, %v1788_v38, %v1852_v32  ;;  %v1717_v27 = vadd.f32 %v1687_v58, %v2960_v6  ;;  %v1722_v10 = vadd.f32 %v1636_v44, %v2963_v55  ;;  %v1724_v29 = vadd.f32 %v1689_v40, %v2967_v20 }
 0x14f   : > { %v2009_v16 = vcombine.low %v3024_v2, %v3029_v5  ;;  %v1934_v17 = vmax.f32 %v1933_v56, %v1884_v14  ;;  %v1790_v22 = vadd.f32 %v2882_v28, %v1716_v0  ;;  %v1789_v47 = vadd.f32 %v2887_v25, %v1715_v45 }
 0x150   : > { %v1791_v59 = vadd.f32 %v2889_v3, %v1717_v27  ;;  %v1796_v61 = vadd.f32 %v3110_v31, %v1722_v10  ;;  %v1798_v24 = vadd.f32 %v2882_v28, %v1724_v29  ;;  %v1723_v6 = vadd.f32 %v1638_v46, %v2970_v21  ;;  %v1691_v21 = vpop.f32.mrf.mxu1 }
 0x151   : > { %v1268_v55 = vadd.f32 %v2927_v19, %v3111_v23  ;;  %vm1822_vm10 = vcmp.ge.f32.partialorder %v1790_v22, 0.0  ;;  %v1854_v20 = vmul.f32 0.2, %v1790_v22  ;;  %vm1821_vm11 = vcmp.ge.f32.partialorder %v1789_v47, 0.0 }
 0x152   : > { %v1853_v37 = vmul.f32 0.2, %v1789_v47  ;;  %vm1823_vm12 = vcmp.ge.f32.partialorder %v1791_v59, 0.0  ;;  %v1855_v63 = vmul.f32 0.2, %v1791_v59  ;;  %vm1828_vm13 = vcmp.ge.f32.partialorder %v1796_v61, 0.0 }
 0x153   : > { %v1886_v7 = vsel %vm1822_vm10, %v1790_v22, %v1854_v20  ;;  %v1860_v33 = vmul.f32 0.2, %v1796_v61  ;;  %vm1830_vm14 = vcmp.ge.f32.partialorder %v1798_v24, 0.0  ;;  %v1862_v49 = vmul.f32 0.2, %v1798_v24 }
 0x154   : > { %v1952_v8 = vmax.f32 %v1951_v35, %v1886_v7  ;;  %v1885_v31 = vsel %vm1821_vm11, %v1789_v47, %v1853_v37  ;;  %v1887_v41 = vsel %vm1823_vm12, %v1791_v59, %v1855_v63  ;;  %v1797_v28 = vadd.f32 %v2887_v25, %v1723_v6 }
 0x155   : > { %v1943_v42 = vmax.f32 %v1942_v57, %v1885_v31  ;;  %v1961_v11 = vmax.f32 %v1960_v4, %v1887_v41  ;;  %v1892_v19 = vsel %vm1828_vm13, %v1796_v61, %v1860_v33  ;;  %v1894_v36 = vsel %vm1830_vm14, %v1798_v24, %v1862_v49 }
 0x156   : > { %v1935_v51 = vmax.f32 %v1934_v17, %v1892_v19  ;;  %v1953_v43 = vmax.f32 %v1952_v8, %v1894_v36  ;;  %vm1829_vm15 = vcmp.ge.f32.partialorder %v1797_v28, 0.0  ;;  %v1861_v15 = vmul.f32 0.2, %v1797_v28 }
 0x157   : > { %v1725_v53 = vadd.f32 %v1691_v21, %v1268_v55  ;;  %v2017_v59 = vrot.slane %v2009_v16, %v2885_v26 }
 0x158   : > { %v1936_v12 = vrot.slane %v1935_v51, 4  ;;  %v1954_v54 = vrot.slane %v1953_v43, 4  ;;  %v1893_v56 = vsel %vm1829_vm15, %v1797_v28, %v1861_v15 }
 0x159   : > { %v1944_v30 = vmax.f32 %v1943_v42, %v1893_v56  ;;  %v1799_v58 = vadd.f32 %v2889_v3, %v1725_v53 }
 0x15a   : > { %v1937_v48 = vmax.f32 %v1935_v51, %v1936_v12  ;;  %v1955_v9 = vmax.f32 %v1953_v43, %v1954_v54 }
 0x15b   : > { %v1945_v50 = vrot.slane %v1944_v30, 4  ;;  %vm1831_vm0 = vcmp.ge.f32.partialorder %v1799_v58, 0.0  ;;  %v1863_v25 = vmul.f32 0.2, %v1799_v58 }
 0x15c   : > { %v1938_v60 = vrot.slane %v1937_v48, 2  ;;  %v1956_v39 = vrot.slane %v1955_v9, 2 }
 0x15d   : > { %v1946_v62 = vmax.f32 %v1944_v30, %v1945_v50  ;;  %v1895_v1 = vsel %vm1831_vm0, %v1799_v58, %v1863_v25 }
 0x15e   : > { %v1939_v44 = vmax.f32 %v1937_v48, %v1938_v60  ;;  %v1962_v52 = vmax.f32 %v1961_v11, %v1895_v1  ;;  %v1957_v40 = vmax.f32 %v1955_v9, %v1956_v39 }
 0x15f   : > { %v1947_v38 = vrot.slane %v1946_v62, 2 }
 0x160   : > { %v1963_v18 = vrot.slane %v1962_v52, 4  ;;  %v1940_v35 = vrot.slane %v1939_v44, 1  ;;  %v1958_v0 = vrot.slane %v1957_v40, 1 }
 0x161   : > { %v1948_v13 = vmax.f32 %v1946_v62, %v1947_v38 }
 0x162   : > { %v1964_v57 = vmax.f32 %v1962_v52, %v1963_v18  ;;  %v1941_v32 = vmax.f32 %v1939_v44, %v1940_v35  ;;  %v1959_v27 = vmax.f32 %v1957_v40, %v1958_v0 }
 0x163   : > { %v1949_v34 = vrot.slane %v1948_v13, 1 }
 0x164   : > { %v1965_v3 = vrot.slane %v1964_v57, 2 }
 0x165   : > { %v1950_v4 = vmax.f32 %v1948_v13, %v1949_v34 }
 0x166   : > { %v1966_v45 = vmax.f32 %v1964_v57, %v1965_v3 }
 0x167   : > { %v1979_v46 = vcombine.low %v1941_v32, %v1950_v4 }
 0x168   : > { %v1967_v14 = vrot.slane %v1966_v45, 1 }
 0x169   : > { %v2001_v29 = vrot.slane %v1979_v46, %v2885_v26 }
 0x16a   : > { %v1968_v10 = vmax.f32 %v1966_v45, %v1967_v14 }
 0x16c   : > { %v1980_v17 = vcombine.low %v1959_v27, %v1968_v10 }
 0x16e   : > { %v2008_v22 = vrot.slane %v1980_v17, %v2885_v26 }
 0x170   : > { %v2010_v47 = vcombine.low %v2001_v29, %v2008_v22 }
 0x172   : > { %v2024_v61 = vrot.slane %v2010_v47, %v2885_v26 }
 0x174   : > { %v2025_v24 = vcombine.low %v2017_v59, %v2024_v61 }
 0x176   : > { %2033 = vst [vmem:[%s414_s18] sm:$0xff] %v2025_v24 }
 0x177 PF: > { %s17_s26 = sadd.s32 1, %s2353_s26   ;;  %s3112_s24 = smov %s2349_s25 }
 0x178   : > { %p14_p5 = scmp.ge.s32.totalorder %s17_s26, 4   ;;  %s3113_s25 = smov %s3115_s27 }
 0x17a   :  { %16 = sbr.rel (!%p14_p5) target bundleno = 2 (0x2), region = 92 }

// kernel: dgcnn_semseg_forward.15
= control target key start
LH: loop header
LB: loop body
LE: loop exit
PB: predicated region body
PF: predicated region fallthrough
CT: control target
= control target key end

     0   :  { %s2636_s13 = smov 0   ;;  %s2638_s14 = smov 0   ;;  %s3164_s0 = inlined_call_operand.vmem [shape: bf16[2,32,64], index: 0, kind: input, shape index: {}]   ;;  %s3165_s1 = inlined_call_operand.vmem [shape: bf16[2,32,64], index: 1, kind: input, shape index: {}]   ;;  %s3166_s2 = inlined_call_operand.vmem [shape: bf16[2,32,64], index: 2, kind: input, shape index: {}]   ;;  %s3167_s3 = inlined_call_operand.vmem [shape: f32[2,1,512], index: 3, kind: input, shape index: {}]   ;;  %s3168_s4 = inlined_call_operand.vmem [shape: bf16[64,512], index: 4, kind: input, shape index: {}]   ;;  %s3169_s5 = inlined_call_operand.vmem [shape: bf16[64,512], index: 5, kind: input, shape index: {}]   ;;  %s3170_s6 = inlined_call_operand.vmem [shape: bf16[64,512], index: 6, kind: input, shape index: {}]   ;;  %s3171_s7 = inlined_call_operand.vmem [shape: bf16[512,256], index: 7, kind: input, shape index: {}]   ;;  %s3172_s8 = inlined_call_operand.vmem [shape: f32[1,256], index: 8, kind: input, shape index: {}]   ;;  %s3173_s9 = inlined_call_operand.vmem [shape: bf16[256,128], index: 9, kind: input, shape index: {}]   ;;  %s3174_s10 = inlined_call_operand.vmem [shape: bf16[2,32,128], index: 10, kind: output, shape index: {}]  }
   0x1   :  { %s2640_s15 = smov 0  }
   0x2 LB: > { %s32_s16 = sadd.s32 1, %s2574_s14  ;;  %p2132_p0 = scmp.ge.s32.totalorder %s2578_s15, 1  ;;  %s2578_s15 = sphi %s2640_s15, %s20_s15   ;;  %s2574_s14 = sphi %s2638_s14, %s3176_s14   ;;  %s2570_s13 = sphi %s2636_s13, %s3175_s13  }
   0x3   : > { %p34_p1 = scmp.ge.s32.totalorder %s32_s16, 2  ;;  %p376_p2 = scmp.lt.s32.totalorder %s2578_s15, 3 }
   0x5   : > { %s3178_s16 = smov (%p34_p1, %s32_s16), 0  ;;  %p377_p3 = pnand %p2132_p0, %p376_p2 }
   0x6   : > { %p445_p4 = scmp.lt.s32.totalorder (!%p377_p3), %s2570_s13, 1 }
   0x7   : > { %380 = sbr.rel (%p377_p3) target bundleno = 706 (0x2c2), region = 60 }
   0xc   : > { %v2366_v0 = vld [vmem:[%s3169_s5 + $0x64] ss:$16 sps:$4 sm:$0xff]   ;;  %v2580_v2 = vmov 0   ;;  %v2370_v3 = vld [vmem:[%s3169_s5 + $0x60] ss:$16 sps:$4 sm:$0xff]   ;;  %s3180_s13 = smov (!%p445_p4, %s2570_s13), 1 }
   0xd   : > { %v2368_v1 = vld [vmem:[%s3168_s4 + $0x64] ss:$16 sps:$4 sm:$0xff]   ;;  %658 = vmatprep.mubr.bf16.mxu1 %v2580_v2  ;;  %860 = vmatprep.mubr.bf16.mxu0 %v2580_v2  ;;  %v2371_v4 = vld [vmem:[%s3168_s4 + $0x60] ss:$16 sps:$4 sm:$0xff]   ;;  %s2686_s19 = sshll.u32 %s3180_s13, 4  ;;  %vm619_vm0 = vcmask 523264  }
   0xe   : > { %634 = vmatprep.subr.bf16.mxu1 %v2366_v0  ;;  %836 = vmatprep.subr.bf16.mxu0 %v2368_v1  ;;  %v2372_v5 = vld [vmem:[%s3169_s5 + $0x44] ss:$16 sps:$4 sm:$0xff]   ;;  %v2376_v7 = vld [vmem:[%s3169_s5 + $0x40] ss:$16 sps:$4 sm:$0xff]   ;;  %s462_s12 = scalar_lea.vmem %s3165_s1, %s2686_s19  ;;  %s2711_s20 = scalar_lea.vmem %s3164_s0, %s2686_s19  ;;  %v2393_v18 = vld [vmem:[%s3169_s5 + $0x6c] ss:$16 sps:$4 sm:$0xff]  }
   0xf   : > { %635 = vmatpush1.bf16.msra.mxu1 %v2370_v3  ;;  %837 = vmatpush1.bf16.msra.mxu0 %v2371_v4  ;;  %v2374_v6 = vld [vmem:[%s3168_s4 + $0x44] ss:$16 sps:$4 sm:$0xff]   ;;  %v2377_v8 = vld [vmem:[%s3168_s4 + $0x40] ss:$16 sps:$4 sm:$0xff]   ;;  %v2391_v21 = vld [vmem:[%s3169_s5 + $0x68] ss:$16 sps:$4 sm:$0xff]   ;;  %s472_s26 = scalar_lea.vmem %s3166_s2, %s2686_s19 }
  0x10   : > { %636 = vmatprep.subr.bf16.mxu1 %v2372_v5  ;;  %838 = vmatprep.subr.bf16.mxu0 %v2374_v6  ;;  %v2378_v9 = vld [vmem:[%s3169_s5 + $0x24] ss:$16 sps:$4 sm:$0xff]   ;;  %v2382_v11 = vld [vmem:[%s3169_s5 + $0x20] ss:$16 sps:$4 sm:$0xff]   ;;  %v2400_v23 = vld [vmem:[%s3169_s5 + $0x4c] ss:$16 sps:$4 sm:$0xff]  }
  0x11   : > { %v2380_v10 = vld [vmem:[%s3168_s4 + $0x24] ss:$16 sps:$4 sm:$0xff]   ;;  %v2383_v12 = vld [vmem:[%s3168_s4 + $0x20] ss:$16 sps:$4 sm:$0xff]   ;;  %v2398_v25 = vld [vmem:[%s3169_s5 + $0x48] ss:$16 sps:$4 sm:$0xff]  }
  0x12   : > { %v2384_v13 = vld [vmem:[%s3169_s5 + $0x4] ss:$16 sps:$4 sm:$0xff]   ;;  %v2388_v15 = vld [vmem:[%s3169_s5] ss:$16 sps:$4 sm:$0xff]   ;;  %v2404_v27 = vld [vmem:[%s462_s12 + $0x8] sm:$0xff]  }
  0x13   : > { %637 = vmatpush1.bf16.msra.mxu1 %v2376_v7  ;;  %839 = vmatpush1.bf16.msra.mxu0 %v2377_v8  ;;  %v2386_v14 = vld [vmem:[%s3168_s4 + $0x4] ss:$16 sps:$4 sm:$0xff]   ;;  %v2389_v16 = vld [vmem:[%s3168_s4] ss:$16 sps:$4 sm:$0xff]   ;;  %v2407_v28 = vld [vmem:[%s3169_s5 + $0x2c] ss:$16 sps:$4 sm:$0xff]  }
  0x14   : > { %638 = vmatprep.subr.bf16.mxu1 %v2378_v9  ;;  %840 = vmatprep.subr.bf16.mxu0 %v2380_v10  ;;  %v2390_v17 = vld [vmem:[%s462_s12] sm:$0xff]   ;;  %v2405_v29 = vld [vmem:[%s3169_s5 + $0x28] ss:$16 sps:$4 sm:$0xff]   ;;  %v2414_v33 = vld [vmem:[%s3169_s5 + $0xc] ss:$16 sps:$4 sm:$0xff]   ;;  %s486_s12 = scalar_lea.vmem %s3174_s10, %s2686_s19 }
  0x15   : > { %v2723_v19 = vld [vmem:[%s2711_s20] sm:$0xff]   ;;  %v2761_v31 = vld [vmem:[%s2711_s20 + $0x8] sm:$0xff]   ;;  %v2444_v44 = vld [vmem:[%s3171_s7 + $0x70] ss:$8 sps:$4 sm:$0xff]   ;;  %s2139_s20 = sshll.u32 %s3180_s13, 2 }
  0x16   : > { %v2397_v20 = vld [vmem:[%s3170_s6 + $0x64] ss:$16 sps:$4 sm:$0xff]   ;;  %v2395_v22 = vld [vmem:[%s3170_s6 + $0x60] ss:$16 sps:$4 sm:$0xff]   ;;  %v2412_v35 = vld [vmem:[%s3169_s5 + $0x8] ss:$16 sps:$4 sm:$0xff]   ;;  %s477_s11 = scalar_lea.vmem %s3167_s3, %s2139_s20 }
  0x17   : > { %639 = vmatpush1.bf16.msra.mxu1 %v2382_v11  ;;  %841 = vmatpush1.bf16.msra.mxu0 %v2383_v12  ;;  %v2403_v24 = vld [vmem:[%s3170_s6 + $0x44] ss:$16 sps:$4 sm:$0xff]   ;;  %v2401_v26 = vld [vmem:[%s3170_s6 + $0x40] ss:$16 sps:$4 sm:$0xff]   ;;  %v2420_v37 = vld [vmem:[%s3168_s4 + $0x6c] ss:$16 sps:$4 sm:$0xff]  }
  0x18   : > { %640 = vmatprep.subr.bf16.mxu1 %v2384_v13  ;;  %842 = vmatprep.subr.bf16.mxu0 %v2386_v14  ;;  %v2411_v30 = vld [vmem:[%s3170_s6 + $0x24] ss:$16 sps:$4 sm:$0xff]   ;;  %v2409_v32 = vld [vmem:[%s3170_s6 + $0x20] ss:$16 sps:$4 sm:$0xff]   ;;  %v2418_v39 = vld [vmem:[%s3168_s4 + $0x68] ss:$16 sps:$4 sm:$0xff]  }
  0x19   : > { %v2417_v34 = vld [vmem:[%s3170_s6 + $0x4] ss:$16 sps:$4 sm:$0xff]   ;;  %v2415_v36 = vld [vmem:[%s3170_s6] ss:$16 sps:$4 sm:$0xff]   ;;  %v2424_v40 = vld [vmem:[%s3168_s4 + $0x4c] ss:$16 sps:$4 sm:$0xff]  }
  0x1a   : > { %v2790_v38 = vld [vmem:[%s472_s26] sm:$0xff]   ;;  %v2422_v41 = vld [vmem:[%s3168_s4 + $0x48] ss:$16 sps:$4 sm:$0xff]   ;;  %v2427_v42 = vld [vmem:[%s3168_s4 + $0x2c] ss:$16 sps:$4 sm:$0xff]  }
  0x1b   : > { %641 = vmatpush1.bf16.msra.mxu1 %v2388_v15  ;;  %843 = vmatpush1.bf16.msra.mxu0 %v2389_v16  ;;  %v2809_v43 = vld [vmem:[%s472_s26 + $0x8] sm:$0xff]   ;;  %v2446_v45 = vld [vmem:[%s3171_s7 + $0x74] ss:$8 sps:$4 sm:$0xff]   ;;  %v2450_v54 = vld [vmem:[%s3171_s7 + $0x50] ss:$8 sps:$4 sm:$0xff]  }
  0x1c   : > { %687 = vmatprep.subr.bf16.mxu1 %v2393_v18  ;;  %1058 = vmatprep.subr.bf16.mxu0 %v2397_v20  ;;  %v2425_v46 = vld [vmem:[%s3168_s4 + $0x28] ss:$16 sps:$4 sm:$0xff]   ;;  %v2431_v47 = vld [vmem:[%s3168_s4 + $0xc] ss:$16 sps:$4 sm:$0xff]  }
  0x1d   : > { %v2449_v48 = vld [vmem:[%s3171_s7 + $0x64] ss:$8 sps:$4 sm:$0xff]   ;;  %v2447_v49 = vld [vmem:[%s3171_s7 + $0x60] ss:$8 sps:$4 sm:$0xff]   ;;  %v2452_v50 = vld [vmem:[%s3171_s7 + $0x54] ss:$8 sps:$4 sm:$0xff]  }
  0x1e   : > { %2160 = vmatmul.mubr.msk.bf16.vlgmr.msra.gmra.mxu1 %vm619_vm0, %v2390_v17  ;;  %2182 = vmatmul.mubr.msk.bf16.vlgmr.msra.gmra.mxu0 %vm619_vm0, %v2723_v19  ;;  %v2429_v51 = vld [vmem:[%s3168_s4 + $0x8] ss:$16 sps:$4 sm:$0xff]   ;;  %v2434_v52 = vld [vmem:[%s3170_s6 + $0x6c] ss:$16 sps:$4 sm:$0xff]  }
  0x1f   : > { %688 = vmatpush1.bf16.msra.mxu1 %v2391_v21  ;;  %1059 = vmatpush1.bf16.msra.mxu0 %v2395_v22  ;;  %v2432_v53 = vld [vmem:[%s3170_s6 + $0x68] ss:$16 sps:$4 sm:$0xff]   ;;  %v2455_v55 = vld [vmem:[%s3171_s7 + $0x44] ss:$8 sps:$4 sm:$0xff]   ;;  %v2458_v58 = vld [vmem:[%s3171_s7 + $0x34] ss:$8 sps:$4 sm:$0xff]  }
  0x20   : > { %689 = vmatprep.subr.bf16.mxu1 %v2400_v23  ;;  %1060 = vmatprep.subr.bf16.mxu0 %v2403_v24  ;;  %v2437_v56 = vld [vmem:[%s3170_s6 + $0x4c] ss:$16 sps:$4 sm:$0xff]   ;;  %v2453_v57 = vld [vmem:[%s3171_s7 + $0x40] ss:$8 sps:$4 sm:$0xff]   ;;  %v2456_v61 = vld [vmem:[%s3171_s7 + $0x30] ss:$8 sps:$4 sm:$0xff]  }
  0x21   : > { %668 = vmatprep.mubr.bf16.mxu1 %v2580_v2  ;;  %870 = vmatprep.mubr.bf16.mxu0 %v2580_v2  ;;  %v2435_v59 = vld [vmem:[%s3170_s6 + $0x48] ss:$16 sps:$4 sm:$0xff]   ;;  %v2440_v60 = vld [vmem:[%s3170_s6 + $0x2c] ss:$16 sps:$4 sm:$0xff]  }
  0x22   : > { %v2461_v62 = vld [vmem:[%s3171_s7 + $0x24] ss:$8 sps:$4 sm:$0xff]   ;;  %v2438_v63 = vld [vmem:[%s3170_s6 + $0x28] ss:$16 sps:$4 sm:$0xff]   ;;  %v2464_v3 = vld [vmem:[%s3171_s7 + $0x14] ss:$8 sps:$4 sm:$0xff]  }
  0x23   : > { %690 = vmatpush1.bf16.msra.mxu1 %v2398_v25  ;;  %1061 = vmatpush1.bf16.msra.mxu0 %v2401_v26  ;;  %v2443_v0 = vld [vmem:[%s3170_s6 + $0xc] ss:$16 sps:$4 sm:$0xff]   ;;  %v2459_v1 = vld [vmem:[%s3171_s7 + $0x20] ss:$8 sps:$4 sm:$0xff]   ;;  %v2462_v5 = vld [vmem:[%s3171_s7 + $0x10] ss:$8 sps:$4 sm:$0xff]  }
  0x24   : > { %691 = vmatprep.subr.bf16.mxu1 %v2407_v28  ;;  %1062 = vmatprep.subr.bf16.mxu0 %v2411_v30  ;;  %v2441_v4 = vld [vmem:[%s3170_s6 + $0x8] ss:$16 sps:$4 sm:$0xff]   ;;  %v2467_v6 = vld [vmem:[%s3171_s7 + $0x4] ss:$8 sps:$4 sm:$0xff]   ;;  %v2470_v8 = vld [vmem:[%s3171_s7 + $0xf4] ss:$8 sps:$4 sm:$0xff]  }
  0x25   : > { %v2465_v7 = vld [vmem:[%s3171_s7] ss:$8 sps:$4 sm:$0xff]   ;;  %v2473_v9 = vld [vmem:[%s3171_s7 + $0x174] ss:$8 sps:$4 sm:$0xff]   ;;  %v2468_v10 = vld [vmem:[%s3171_s7 + $0xf0] ss:$8 sps:$4 sm:$0xff]  }
  0x26   : > { %2161 = vmatmul.mubr.msk.bf16.gmra.mxu1 %vm619_vm0, %v2404_v27  ;;  %2183 = vmatmul.mubr.msk.bf16.gmra.mxu0 %vm619_vm0, %v2761_v31  ;;  %v2476_v11 = vld [vmem:[%s3171_s7 + $0xe4] ss:$8 sps:$4 sm:$0xff]   ;;  %v2474_v13 = vld [vmem:[%s3171_s7 + $0xe0] ss:$8 sps:$4 sm:$0xff]   ;;  %v2482_v15 = vld [vmem:[%s3171_s7 + $0xd4] ss:$8 sps:$4 sm:$0xff]  }
  0x27   : > { %692 = vmatpush1.bf16.msra.mxu1 %v2405_v29  ;;  %1063 = vmatpush1.bf16.msra.mxu0 %v2409_v32  ;;  %v2479_v12 = vld [vmem:[%s3171_s7 + $0x164] ss:$8 sps:$4 sm:$0xff]   ;;  %v2477_v14 = vld [vmem:[%s3171_s7 + $0x160] ss:$8 sps:$4 sm:$0xff]   ;;  %v2485_v16 = vld [vmem:[%s3171_s7 + $0x154] ss:$8 sps:$4 sm:$0xff]  }
  0x28   : > { %693 = vmatprep.subr.bf16.mxu1 %v2414_v33  ;;  %1064 = vmatprep.subr.bf16.mxu0 %v2417_v34  ;;  %v2483_v18 = vld [vmem:[%s3171_s7 + $0x150] ss:$8 sps:$4 sm:$0xff]   ;;  %v2491_v20 = vld [vmem:[%s3171_s7 + $0x144] ss:$8 sps:$4 sm:$0xff]   ;;  %v2486_v21 = vld [vmem:[%s3171_s7 + $0xc0] ss:$8 sps:$4 sm:$0xff]  }
  0x29   : > { %711 = vmatprep.mubr.bf16.mxu1 %v2580_v2  ;;  %1082 = vmatprep.mubr.bf16.mxu0 %v2580_v2  ;;  %v2489_v22 = vld [vmem:[%s3171_s7 + $0x140] ss:$8 sps:$4 sm:$0xff]   ;;  %v2494_v23 = vld [vmem:[%s3171_s7 + $0xb4] ss:$8 sps:$4 sm:$0xff]   ;;  %v2492_v25 = vld [vmem:[%s3171_s7 + $0xb0] ss:$8 sps:$4 sm:$0xff]  }
  0x2a   : > { %v2497_v24 = vld [vmem:[%s3171_s7 + $0x134] ss:$8 sps:$4 sm:$0xff]   ;;  %v2495_v26 = vld [vmem:[%s3171_s7 + $0x130] ss:$8 sps:$4 sm:$0xff]   ;;  %v2503_v28 = vld [vmem:[%s3171_s7 + $0x124] ss:$8 sps:$4 sm:$0xff]  }
  0x2b   : > { %694 = vmatpush1.bf16.msra.mxu1 %v2412_v35  ;;  %1065 = vmatpush1.bf16.msra.mxu0 %v2415_v36  ;;  %v2498_v29 = vld [vmem:[%s3171_s7 + $0xa0] ss:$8 sps:$4 sm:$0xff]   ;;  %v2509_v32 = vld [vmem:[%s3171_s7 + $0x114] ss:$8 sps:$4 sm:$0xff]   ;;  %v2504_v33 = vld [vmem:[%s3171_s7 + $0x90] ss:$8 sps:$4 sm:$0xff]  }
  0x2c   : > { %889 = vmatprep.subr.bf16.mxu1 %v2420_v37  ;;  %1662 = vmatprep.subr.bf16.mxu0 %v2446_v45  ;;  %v2501_v30 = vld [vmem:[%s3171_s7 + $0x120] ss:$8 sps:$4 sm:$0xff]   ;;  %v2507_v34 = vld [vmem:[%s3171_s7 + $0x110] ss:$8 sps:$4 sm:$0xff]   ;;  %v2512_v35 = vld [vmem:[%s3171_s7 + $0x84] ss:$8 sps:$4 sm:$0xff]  }
  0x2d   : > { %v2515_v36 = vld [vmem:[%s3171_s7 + $0x104] ss:$8 sps:$4 sm:$0xff]   ;;  %v2510_v37 = vld [vmem:[%s3171_s7 + $0x80] ss:$8 sps:$4 sm:$0xff]  }
  0x2e   : > { %2162 = vmatmul.mubr.msk.bf16.vlgmr.msra.gmra.mxu1 %vm619_vm0, %v2390_v17  ;;  %2204 = vmatmul.mubr.msk.bf16.vlgmr.msra.gmra.mxu0 %vm619_vm0, %v2790_v38  ;;  %v2480_v17 = vld [vmem:[%s3171_s7 + $0xd0] ss:$8 sps:$4 sm:$0xff]   ;;  %v2525_v45 = vld [vmem:[%s3171_s7 + $0x1c0] ss:$8 sps:$4 sm:$0xff]  }
  0x2f   : > { %890 = vmatpush1.bf16.msra.mxu1 %v2418_v39  ;;  %721 = vmatprep.mubr.bf16.mxu1 %v2580_v2  ;;  %v2518_v39 = vld [vmem:[%s3171_s7 + $0x1f4] ss:$8 sps:$4 sm:$0xff]  }
  0x30   : > { %891 = vmatprep.subr.bf16.mxu1 %v2424_v40  ;;  %1092 = vmatprep.mubr.bf16.mxu0 %v2580_v2  ;;  %v2516_v40 = vld [vmem:[%s3171_s7 + $0x1f0] ss:$8 sps:$4 sm:$0xff]  }
  0x31   : > { %1663 = vmatpush1.bf16.msra.mxu0 %v2444_v44  ;;  %v2522_v44 = vld [vmem:[%s3171_s7 + $0x1d0] ss:$8 sps:$4 sm:$0xff]  }
  0x32   : > { %1664 = vmatprep.subr.bf16.mxu0 %v2449_v48  ;;  %v2528_v48 = vld [vmem:[%s3171_s7 + $0x1b0] ss:$8 sps:$4 sm:$0xff]  }
  0x33   : > { %892 = vmatpush1.bf16.msra.mxu1 %v2422_v41  ;;  %v2519_v41 = vld [vmem:[%s3171_s7 + $0x1e0] ss:$8 sps:$4 sm:$0xff]  }
  0x34   : > { %893 = vmatprep.subr.bf16.mxu1 %v2427_v42  ;;  %v2521_v42 = vld [vmem:[%s3171_s7 + $0x1e4] ss:$8 sps:$4 sm:$0xff]  }
  0x35   : > { %1665 = vmatpush1.bf16.msra.mxu0 %v2447_v49  ;;  %v2533_v49 = vld [vmem:[%s3171_s7 + $0x1a4] ss:$8 sps:$4 sm:$0xff]  }
  0x36   : > { %2163 = vmatmul.mubr.msk.bf16.gmra.mxu1 %vm619_vm0, %v2404_v27  ;;  %2205 = vmatmul.mubr.msk.bf16.gmra.mxu0 %vm619_vm0, %v2809_v43  ;;  %v2500_v27 = vld [vmem:[%s3171_s7 + $0xa4] ss:$8 sps:$4 sm:$0xff]  }
  0x37   : > { %894 = vmatpush1.bf16.msra.mxu1 %v2425_v46  ;;  %913 = vmatprep.mubr.bf16.mxu1 %v2580_v2  ;;  %v2527_v46 = vld [vmem:[%s3171_s7 + $0x1c4] ss:$8 sps:$4 sm:$0xff]  }
  0x38   : > { %895 = vmatprep.subr.bf16.mxu1 %v2431_v47  ;;  %1666 = vmatprep.subr.bf16.mxu0 %v2452_v50  ;;  %v2530_v47 = vld [vmem:[%s3171_s7 + $0x1b4] ss:$8 sps:$4 sm:$0xff]   ;;  %v2531_v50 = vld [vmem:[%s3171_s7 + $0x1a0] ss:$8 sps:$4 sm:$0xff]  }
  0x39   : > { %1667 = vmatpush1.bf16.msra.mxu0 %v2450_v54  ;;  %v2537_v54 = vld [vmem:[%s3171_s7 + $0x180] ss:$8 sps:$4 sm:$0xff]  }
  0x3a   : > { %1668 = vmatprep.subr.bf16.mxu0 %v2455_v55 }
  0x3b   : > { %896 = vmatpush1.bf16.msra.mxu1 %v2429_v51  ;;  %v2536_v51 = vld [vmem:[%s3171_s7 + $0x194] ss:$8 sps:$4 sm:$0xff]  }
  0x3c   : > { %1111 = vmatprep.subr.bf16.mxu1 %v2434_v52  ;;  %v2534_v52 = vld [vmem:[%s3171_s7 + $0x190] ss:$8 sps:$4 sm:$0xff]  }
  0x3d   : > { %1669 = vmatpush1.bf16.msra.mxu0 %v2453_v57 }
  0x3e   : > { %2184 = vmatmul.mubr.msk.bf16.vlgmr.msra.gmra.mxu1 %vm619_vm0, %v2723_v19  ;;  %1670 = vmatprep.subr.bf16.mxu0 %v2458_v58  ;;  %v2488_v19 = vld [vmem:[%s3171_s7 + $0xc4] ss:$8 sps:$4 sm:$0xff]  }
  0x3f   : > { %1112 = vmatpush1.bf16.msra.mxu1 %v2432_v53  ;;  %923 = vmatprep.mubr.bf16.mxu1 %v2580_v2  ;;  %v2539_v53 = vld [vmem:[%s3171_s7 + $0x184] ss:$8 sps:$4 sm:$0xff]  }
  0x40   : > { %1113 = vmatprep.subr.bf16.mxu1 %v2437_v56 }
  0x41   : > { %1671 = vmatpush1.bf16.msra.mxu0 %v2456_v61 }
  0x42   : > { %1672 = vmatprep.subr.bf16.mxu0 %v2461_v62 }
  0x43   : > { %1114 = vmatpush1.bf16.msra.mxu1 %v2435_v59 }
  0x44   : > { %1115 = vmatprep.subr.bf16.mxu1 %v2440_v60 }
  0x45   : > { %1673 = vmatpush1.bf16.msra.mxu0 %v2459_v1 }
  0x46   : > { %2185 = vmatmul.mubr.msk.bf16.gmra.mxu1 %vm619_vm0, %v2761_v31  ;;  %1674 = vmatprep.subr.bf16.mxu0 %v2464_v3  ;;  %v2506_v31 = vld [vmem:[%s3171_s7 + $0x94] ss:$8 sps:$4 sm:$0xff]  }
  0x47   : > { %1116 = vmatpush1.bf16.msra.mxu1 %v2438_v63  ;;  %1135 = vmatprep.mubr.bf16.mxu1 %v2580_v2  ;;  %v1174_v63 = vlaneseq }
  0x48   : > { %1117 = vmatprep.subr.bf16.mxu1 %v2443_v0 }
  0x49   : > { %1675 = vmatpush1.bf16.msra.mxu0 %v2462_v5  ;;  %v3052_v5 = vshrl.u32 %v1174_v63, 7 }
  0x4a   : > { %1676 = vmatprep.subr.bf16.mxu0 %v2467_v6 }
  0x4b   : > { %1118 = vmatpush1.bf16.msra.mxu1 %v2441_v4 }
  0x4c   : > { %1715 = vmatprep.subr.bf16.mxu1 %v2473_v9 }
  0x4d   : > { %1677 = vmatpush1.bf16.msra.mxu0 %v2465_v7 }
  0x4e   : > { %2206 = vmatmul.mubr.msk.bf16.vlgmr.msra.gmra.mxu1 %vm619_vm0, %v2790_v38  ;;  %1678 = vmatprep.subr.bf16.mxu0 %v2470_v8  ;;  %v2513_v38 = vld [vmem:[%s3171_s7 + $0x100] ss:$8 sps:$4 sm:$0xff]  }
  0x4f   : > { %1145 = vmatprep.mubr.bf16.mxu1 %v2580_v2  ;;  %v2471_v2 = vld [vmem:[%s3171_s7 + $0x170] ss:$8 sps:$4 sm:$0xff]  }
  0x50   : > { %1716 = vmatpush1.bf16.msra.mxu1 %v2471_v2  ;;  %v3058_v2 = vld [vmem:[%s477_s11] sm:$0xf] }
  0x51   : > { %1679 = vmatpush2.bf16.msra.mxu0 %v2468_v10  ;;  %1717 = vmatprep.subr.bf16.mxu1 %v2479_v12  ;;  %v1176_v10 = vsub.s32 0, %v3052_v5 }
  0x52   : > { %1680 = vmatprep.subr.bf16.mxu0 %v2476_v11  ;;  %v1180_v11 = vsub.s32 1, %v3052_v5 }
  0x54   : > { %1718 = vmatpush1.bf16.msra.mxu1 %v2477_v14 }
  0x55   : > { %1681 = vmatpush2.bf16.msra.mxu0 %v2474_v13  ;;  %1719 = vmatprep.subr.bf16.mxu1 %v2485_v16  ;;  %v1177_v16 = vrot.slane %v3058_v2, %v1176_v10 }
  0x56   : > { %2207 = vmatmul.mubr.msk.bf16.gmra.mxu1 %vm619_vm0, %v2809_v43  ;;  %1682 = vmatprep.subr.bf16.mxu0 %v2482_v15  ;;  %v2524_v43 = vld [vmem:[%s3171_s7 + $0x1d4] ss:$8 sps:$4 sm:$0xff]  }
  0x58   : > { %1720 = vmatpush1.bf16.msra.mxu1 %v2483_v18 }
  0x59   : > { %1683 = vmatpush2.bf16.msra.mxu0 %v2480_v17  ;;  %1721 = vmatprep.subr.bf16.mxu1 %v2491_v20 }
  0x5a   : > { %1684 = vmatprep.subr.bf16.mxu0 %v2488_v19 }
  0x5c   : > { %1722 = vmatpush1.bf16.msra.mxu1 %v2489_v22  ;;  %v1181_v22 = vrot.slane %v3058_v2, %v1180_v11 }
  0x5d   : > { %1685 = vmatpush2.bf16.msra.mxu0 %v2486_v21  ;;  %1723 = vmatprep.subr.bf16.mxu1 %v2497_v24 }
  0x5e   : > { %1686 = vmatprep.subr.bf16.mxu0 %v2494_v23 }
  0x60   : > { %1724 = vmatpush1.bf16.msra.mxu1 %v2495_v26 }
  0x61   : > { %1687 = vmatpush2.bf16.msra.mxu0 %v2492_v25  ;;  %1725 = vmatprep.subr.bf16.mxu1 %v2503_v28 }
  0x62   : > { %1688 = vmatprep.subr.bf16.mxu0 %v2500_v27 }
  0x64   : > { %1726 = vmatpush1.bf16.msra.mxu1 %v2501_v30 }
  0x65   : > { %1689 = vmatpush2.bf16.msra.mxu0 %v2498_v29  ;;  %1727 = vmatprep.subr.bf16.mxu1 %v2509_v32 }
  0x66   : > { %1690 = vmatprep.subr.bf16.mxu0 %v2506_v31 }
  0x68   : > { %1728 = vmatpush1.bf16.msra.mxu1 %v2507_v34 }
  0x69   : > { %1691 = vmatpush2.bf16.msra.mxu0 %v2504_v33  ;;  %1729 = vmatprep.subr.bf16.mxu1 %v2515_v36 }
  0x6a   : > { %1692 = vmatprep.subr.bf16.mxu0 %v2512_v35 }
  0x6c   : > { %1730 = vmatpush1.bf16.msra.mxu1 %v2513_v38 }
  0x6d   : > { %1693 = vmatpush2.bf16.msra.mxu0 %v2510_v37  ;;  %1731 = vmatprep.subr.bf16.mxu1 %v2518_v39 }
  0x70   : > { %1732 = vmatpush2.bf16.msra.mxu1 %v2516_v40 }
  0x71   : > { %1733 = vmatprep.subr.bf16.mxu1 %v2521_v42 }
  0x74   : > { %1734 = vmatpush2.bf16.msra.mxu1 %v2519_v41 }
  0x75   : > { %1735 = vmatprep.subr.bf16.mxu1 %v2524_v43 }
  0x78   : > { %1736 = vmatpush2.bf16.msra.mxu1 %v2522_v44 }
  0x79   : > { %1737 = vmatprep.subr.bf16.mxu1 %v2527_v46 }
  0x7c   : > { %1738 = vmatpush2.bf16.msra.mxu1 %v2525_v45 }
  0x7d   : > { %1739 = vmatprep.subr.bf16.mxu1 %v2530_v47 }
  0x80   : > { %1740 = vmatpush2.bf16.msra.mxu1 %v2528_v48 }
  0x81   : > { %1741 = vmatprep.subr.bf16.mxu1 %v2533_v49 }
  0x84   : > { %1742 = vmatpush2.bf16.msra.mxu1 %v2531_v50 }
  0x85   : > { %1743 = vmatprep.subr.bf16.mxu1 %v2536_v51 }
  0x88   : > { %1744 = vmatpush2.bf16.msra.mxu1 %v2534_v52 }
  0x89   : > { %1745 = vmatprep.subr.bf16.mxu1 %v2539_v53 }
  0x8c   : > { %1746 = vmatpush2.bf16.msra.mxu1 %v2537_v54 }
  0xde   : > { %v660_v55 = vpop.f32.mrf.mxu1  ;;  %v862_v56 = vpop.f32.mrf.mxu0 }
  0xdf   : > { %v863_v14 = vadd.f32 %v862_v56, %v660_v55 }
  0xe0   : > { %v662_v57 = vpop.f32.mrf.mxu1  ;;  %v864_v58 = vpop.f32.mrf.mxu0 }
  0xe1   : > { %v865_v15 = vadd.f32 %v864_v58, %v662_v57 }
  0xe2   : > { %v664_v59 = vpop.f32.mrf.mxu1  ;;  %v866_v60 = vpop.f32.mrf.mxu0 }
  0xe3   : > { %v867_v19 = vadd.f32 %v866_v60, %v664_v59 }
  0xe4   : > { %v666_v61 = vpop.f32.mrf.mxu1  ;;  %v868_v62 = vpop.f32.mrf.mxu0 }
  0xe5   : > { %v869_v26 = vadd.f32 %v868_v62, %v666_v61 }
  0xe6   : > { %v670_v0 = vpop.f32.mrf.mxu1  ;;  %v872_v1 = vpop.f32.mrf.mxu0 }
  0xe7   : > { %v873_v36 = vadd.f32 %v872_v1, %v670_v0 }
  0xe8   : > { %v672_v3 = vpop.f32.mrf.mxu1  ;;  %v874_v4 = vpop.f32.mrf.mxu0 }
  0xe9   : > { %v875_v35 = vadd.f32 %v874_v4, %v672_v3 }
  0xea   : > { %v674_v6 = vpop.f32.mrf.mxu1  ;;  %v876_v7 = vpop.f32.mrf.mxu0 }
  0xeb   : > { %v877_v37 = vadd.f32 %v876_v7, %v674_v6 }
  0xec   : > { %v676_v8 = vpop.f32.mrf.mxu1  ;;  %v878_v9 = vpop.f32.mrf.mxu0 }
  0xed   : > { %v879_v49 = vadd.f32 %v878_v9, %v676_v8 }
  0xee   : > { %v3061_v12 = vpop.f32.mrf.mxu1  ;;  %v1084_v13 = vpop.f32.mrf.mxu0 }
  0xef   : > { %v1156_v20 = vadd.f32 %v1084_v13, %v863_v14 }
  0xf0   : > { %v3066_v17 = vpop.f32.mrf.mxu1  ;;  %v1086_v18 = vpop.f32.mrf.mxu0 }
  0xf1   : > { %v1157_v21 = vadd.f32 %v1086_v18, %v865_v15  ;;  %v1194_v29 = vadd.f32 %v1177_v16, %v1156_v20 }
  0xf2   : > { %v3071_v23 = vpop.f32.mrf.mxu1  ;;  %v1088_v24 = vpop.f32.mrf.mxu0 }
  0xf3   : > { %v1160_v25 = vadd.f32 %v1088_v24, %v867_v19  ;;  %v1195_v30 = vadd.f32 %v1181_v22, %v1157_v21  ;;  %v1226_v42 = vmul.f32 0.2, %v1194_v29  ;;  %vm1210_vm4 = vcmp.ge.f32.partialorder %v1194_v29, 0.0 }
  0xf4   : > { %v3073_v27 = vpop.f32.mrf.mxu1  ;;  %v1090_v28 = vpop.f32.mrf.mxu0 }
  0xf5   : > { %v1198_v31 = vadd.f32 %v1177_v16, %v1160_v25  ;;  %v1161_v32 = vadd.f32 %v1090_v28, %v869_v26  ;;  %v1227_v43 = vmul.f32 0.2, %v1195_v30  ;;  %vm1211_vm2 = vcmp.ge.f32.partialorder %v1195_v30, 0.0 }
  0xf6   : > { %v3075_v33 = vpop.f32.mrf.mxu1  ;;  %v1094_v34 = vpop.f32.mrf.mxu0  ;;  %v1242_v59 = vsel %vm1210_vm4, %v1194_v29, %v1226_v42  ;;  %v1184_v25 = vsub.s32 2, %v3052_v5  ;;  %v1188_v26 = vsub.s32 3, %v3052_v5 }
  0xf7   : > { %v1230_v38 = vmul.f32 0.2, %v1198_v31  ;;  %v1199_v39 = vadd.f32 %v1181_v22, %v1161_v32  ;;  %vm1214_vm1 = vcmp.ge.f32.partialorder %v1198_v31, 0.0  ;;  %v1164_v46 = vadd.f32 %v1094_v34, %v873_v36 }
  0xf8   : > { %v3077_v40 = vpop.f32.mrf.mxu1  ;;  %v1096_v41 = vpop.f32.mrf.mxu0  ;;  %v1243_v58 = vsel %vm1211_vm2, %v1195_v30, %v1227_v43 }
  0xf9   : > { %v1165_v44 = vadd.f32 %v1096_v41, %v875_v35  ;;  %vm1215_vm3 = vcmp.ge.f32.partialorder %v1199_v39, 0.0  ;;  %v1231_v45 = vmul.f32 0.2, %v1199_v39  ;;  %v1246_v52 = vsel %vm1214_vm1, %v1198_v31, %v1230_v38 }
  0xfa   : > { %v3079_v47 = vpop.f32.mrf.mxu1  ;;  %v1098_v48 = vpop.f32.mrf.mxu0  ;;  %v1202_v60 = vadd.f32 %v1177_v16, %v1164_v46  ;;  %v1258_v63 = vpack.c.bf16 %v1246_v52, %v1242_v59  ;;  %v1185_v31 = vrot.slane %v3058_v2, %v1184_v25  ;;  %v2545_v25 = vld [vmem:[%s3173_s9 + $0x28] sm:$0xff]  }
  0xfb   : > { %v1203_v50 = vadd.f32 %v1181_v22, %v1165_v44  ;;  %v1168_v51 = vadd.f32 %v1098_v48, %v877_v37  ;;  %v1247_v55 = vsel %vm1215_vm3, %v1199_v39, %v1231_v45  ;;  %v1189_v37 = vrot.slane %v3058_v2, %v1188_v26  ;;  %v2546_v26 = vld [vmem:[%s3173_s9 + $0x60] sm:$0xff]  }
  0xfc   : > { %v3081_v53 = vpop.f32.mrf.mxu1  ;;  %v1100_v54 = vpop.f32.mrf.mxu0  ;;  %v1259_v62 = vpack.c.bf16 %v1247_v55, %v1243_v58  ;;  %v1234_v7 = vmul.f32 0.2, %v1202_v60  ;;  %vm1218_vm8 = vcmp.ge.f32.partialorder %v1202_v60, 0.0 }
  0xfd   : > { %v1206_v56 = vadd.f32 %v1177_v16, %v1168_v51  ;;  %v1169_v57 = vadd.f32 %v1100_v54, %v879_v49  ;;  %v1235_v0 = vmul.f32 0.2, %v1203_v50  ;;  %vm1219_vm5 = vcmp.ge.f32.partialorder %v1203_v50, 0.0 }
  0xfe   : > { %v915_v61 = vpop.f32.mrf.mxu1  ;;  %1694 = vmatprep.mubr.bf16.mxu0 %v1259_v62  ;;  %v1250_v19 = vsel %vm1218_vm8, %v1202_v60, %v1234_v7 }
  0xff   : > { %v1207_v1 = vadd.f32 %v1181_v22, %v1169_v57  ;;  %v1238_v3 = vmul.f32 0.2, %v1206_v56  ;;  %vm1222_vm6 = vcmp.ge.f32.partialorder %v1206_v56, 0.0  ;;  %1695 = vmatmul.mubr.bf16.vlgmr.msra.gmra.mxu0 %v1258_v63  ;;  %v1251_v9 = vsel %vm1219_vm5, %v1203_v50, %v1235_v0 }
 0x100   : > { %v917_v4 = vpop.f32.mrf.mxu1  ;;  %v916_v29 = vadd.f32 %v915_v61, %v3061_v12 }
 0x101   : > { %vm1223_vm7 = vcmp.ge.f32.partialorder %v1207_v1, 0.0  ;;  %v1239_v6 = vmul.f32 0.2, %v1207_v1  ;;  %v1254_v16 = vsel %vm1222_vm6, %v1206_v56, %v1238_v3  ;;  %v918_v30 = vadd.f32 %v917_v4, %v3066_v17 }
 0x102   : > { %v919_v8 = vpop.f32.mrf.mxu1  ;;  %v1262_v20 = vpack.c.bf16 %v1254_v16, %v1250_v19  ;;  %v2540_v19 = vld [vmem:[%s3173_s9 + $0x78] sm:$0xff]  }
 0x103   : > { %v1255_v13 = vsel %vm1223_vm7, %v1207_v1, %v1239_v6  ;;  %v920_v34 = vadd.f32 %v919_v8, %v3071_v23  ;;  %2313 = vmatprep.subr.bf16.mxu0 %v2540_v19 }
 0x104   : > { %v921_v14 = vpop.f32.mrf.mxu1  ;;  %v1263_v15 = vpack.c.bf16 %v1255_v13, %v1251_v9 }
 0x105   : > { %v922_v41 = vadd.f32 %v921_v14, %v3073_v27 }
 0x106   : > { %v925_v18 = vpop.f32.mrf.mxu1  ;;  %1704 = vmatprep.mubr.bf16.mxu0 %v1263_v15 }
 0x107   : > { %1705 = vmatmul.mubr.bf16.gmra.mxu0 %v1262_v20  ;;  %v926_v48 = vadd.f32 %v925_v18, %v3075_v33  ;;  %v2541_v20 = vld [vmem:[%s3173_s9 + $0x38] sm:$0xff]  }
 0x108   : > { %v927_v21 = vpop.f32.mrf.mxu1  ;;  %2314 = vmatpush3.bf16.msra.mxu0 %v2541_v20 }
 0x109   : > { %v928_v17 = vadd.f32 %v927_v21, %v3077_v40  ;;  %v2542_v21 = vld [vmem:[%s3173_s9 + $0x70] sm:$0xff]  }
 0x10a   : > { %v929_v22 = vpop.f32.mrf.mxu1  ;;  %2315 = vmatprep.subr.bf16.mxu0 %v2542_v21 }
 0x10b   : > { %v930_v23 = vadd.f32 %v929_v22, %v3079_v47  ;;  %v2543_v22 = vld [vmem:[%s3173_s9 + $0x30] sm:$0xff]  }
 0x10c   : > { %v931_v24 = vpop.f32.mrf.mxu1  ;;  %2316 = vmatpush3.bf16.msra.mxu0 %v2543_v22 }
 0x10d   : > { %v932_v57 = vadd.f32 %v931_v24, %v3081_v53  ;;  %v2544_v24 = vld [vmem:[%s3173_s9 + $0x68] sm:$0xff]  }
 0x10e   : > { %v1137_v28 = vpop.f32.mrf.mxu1  ;;  %2317 = vmatprep.subr.bf16.mxu0 %v2544_v24 }
 0x10f   : > { %v1158_v35 = vadd.f32 %v1137_v28, %v916_v29  ;;  %v2547_v28 = vld [vmem:[%s3173_s9 + $0x20] sm:$0xff]   ;;  %v2548_v29 = vld [vmem:[%s3173_s9 + $0x58] sm:$0xff]  }
 0x110   : > { %v1139_v32 = vpop.f32.mrf.mxu1  ;;  %2318 = vmatpush3.bf16.msra.mxu0 %v2545_v25 }
 0x111   : > { %v1159_v36 = vadd.f32 %v1139_v32, %v918_v30  ;;  %v1196_v43 = vadd.f32 %v1185_v31, %v1158_v35  ;;  %2319 = vmatprep.subr.bf16.mxu0 %v2546_v26  ;;  %v2549_v30 = vld [vmem:[%s3173_s9 + $0x18] sm:$0xff]   ;;  %v2551_v32 = vld [vmem:[%s3173_s9 + $0x10] sm:$0xff]   ;;  %v2553_v35 = vld [vmem:[%s3173_s9 + $0x8] sm:$0xff]  }
 0x112   : > { %v1141_v38 = vpop.f32.mrf.mxu1 }
 0x113   : > { %v1162_v39 = vadd.f32 %v1141_v38, %v920_v34  ;;  %v1197_v44 = vadd.f32 %v1189_v37, %v1159_v36  ;;  %v1228_v2 = vmul.f32 0.2, %v1196_v43  ;;  %vm1212_vm12 = vcmp.ge.f32.partialorder %v1196_v43, 0.0  ;;  %v2552_v34 = vld [vmem:[%s3173_s9 + $0x48] sm:$0xff]   ;;  %v2554_v36 = vld [vmem:[%s3173_s9 + $0x40] sm:$0xff]  }
 0x114   : > { %v1143_v42 = vpop.f32.mrf.mxu1  ;;  %2320 = vmatpush3.bf16.msra.mxu0 %v2547_v28 }
 0x115   : > { %v1200_v45 = vadd.f32 %v1185_v31, %v1162_v39  ;;  %v1163_v12 = vadd.f32 %v1143_v42, %v922_v41  ;;  %v1229_v52 = vmul.f32 0.2, %v1197_v44  ;;  %vm1213_vm10 = vcmp.ge.f32.partialorder %v1197_v44, 0.0  ;;  %2321 = vmatprep.subr.bf16.mxu0 %v2548_v29 }
 0x116   : > { %v1147_v46 = vpop.f32.mrf.mxu1  ;;  %v1244_v63 = vsel %vm1212_vm12, %v1196_v43, %v1228_v2  ;;  %v1330_v43 = vld [vmem:[%s3172_s8] sm:$0x3] }
 0x117   : > { %v1232_v49 = vmul.f32 0.2, %v1200_v45  ;;  %v1201_v50 = vadd.f32 %v1189_v37, %v1163_v12  ;;  %vm1216_vm9 = vcmp.ge.f32.partialorder %v1200_v45, 0.0  ;;  %v1166_v55 = vadd.f32 %v1147_v46, %v926_v48 }
 0x118   : > { %v1149_v51 = vpop.f32.mrf.mxu1  ;;  %v1245_v62 = vsel %vm1213_vm10, %v1197_v44, %v1229_v52  ;;  %2322 = vmatpush3.bf16.msra.mxu0 %v2549_v30  ;;  %v1339_v44 = vrot.slane %v1330_v43, %v1180_v11 }
 0x119   : > { %v1167_v54 = vadd.f32 %v1149_v51, %v928_v17  ;;  %vm1217_vm11 = vcmp.ge.f32.partialorder %v1201_v50, 0.0  ;;  %v1233_v27 = vmul.f32 0.2, %v1201_v50  ;;  %v1248_v33 = vsel %vm1216_vm9, %v1200_v45, %v1232_v49 }
 0x11a   : > { %v1151_v56 = vpop.f32.mrf.mxu1  ;;  %v1204_v0 = vadd.f32 %v1185_v31, %v1166_v55  ;;  %v1260_v3 = vpack.c.bf16 %v1248_v33, %v1244_v63  ;;  %v1335_v45 = vrot.slane %v1330_v43, %v1176_v10 }
 0x11b   : > { %v1205_v40 = vadd.f32 %v1189_v37, %v1167_v54  ;;  %v1170_v58 = vadd.f32 %v1151_v56, %v930_v23  ;;  %v1249_v47 = vsel %vm1217_vm11, %v1201_v50, %v1233_v27 }
 0x11c   : > { %v1153_v59 = vpop.f32.mrf.mxu1  ;;  %v1261_v1 = vpack.c.bf16 %v1249_v47, %v1245_v62  ;;  %v1236_v8 = vmul.f32 0.2, %v1204_v0  ;;  %vm1220_vm0 = vcmp.ge.f32.partialorder %v1204_v0, 0.0 }
 0x11d   : > { %v1208_v60 = vadd.f32 %v1185_v31, %v1170_v58  ;;  %v1171_v61 = vadd.f32 %v1153_v59, %v932_v57  ;;  %v1237_v4 = vmul.f32 0.2, %v1205_v40  ;;  %vm1221_vm13 = vcmp.ge.f32.partialorder %v1205_v40, 0.0  ;;  %v2550_v31 = vld [vmem:[%s3173_s9 + $0x50] sm:$0xff]  }
 0x11e   : > { %1747 = vmatprep.mubr.bf16.mxu1 %v1261_v1  ;;  %v1252_v16 = vsel %vm1220_vm0, %v1204_v0, %v1236_v8  ;;  %2323 = vmatprep.subr.bf16.mxu0 %v2550_v31 }
 0x11f   : > { %v1209_v6 = vadd.f32 %v1189_v37, %v1171_v61  ;;  %v1240_v7 = vmul.f32 0.2, %v1208_v60  ;;  %vm1224_vm14 = vcmp.ge.f32.partialorder %v1208_v60, 0.0  ;;  %1748 = vmatmul.mubr.bf16.vlgmr.msra.gmra.mxu1 %v1260_v3  ;;  %v1253_v9 = vsel %vm1221_vm13, %v1205_v40, %v1237_v4  ;;  %2324 = vmatpush3.bf16.msra.mxu0 %v2551_v32  ;;  %v2555_v37 = vld [vmem:[%s3173_s9] sm:$0xff]  }
 0x120   : > { %2325 = vmatprep.subr.bf16.mxu0 %v2552_v34 }
 0x121   : > { %vm1225_vm15 = vcmp.ge.f32.partialorder %v1209_v6, 0.0  ;;  %v1241_v53 = vmul.f32 0.2, %v1209_v6  ;;  %v1256_v15 = vsel %vm1224_vm14, %v1208_v60, %v1240_v7 }
 0x122   : > { %v1264_v18 = vpack.c.bf16 %v1256_v15, %v1252_v16 }
 0x123   : > { %v1257_v13 = vsel %vm1225_vm15, %v1209_v6, %v1241_v53  ;;  %2326 = vmatpush3.bf16.msra.mxu0 %v2553_v35 }
 0x124   : > { %v1265_v14 = vpack.c.bf16 %v1257_v13, %v1253_v9  ;;  %2327 = vmatprep.subr.bf16.mxu0 %v2554_v36 }
 0x126   : > { %1757 = vmatprep.mubr.bf16.mxu1 %v1265_v14 }
 0x127   : > { %1758 = vmatmul.mubr.bf16.gmra.mxu1 %v1264_v18  ;;  %2328 = vmatpush3.bf16.msra.mxu0 %v2555_v37 }
 0x1bf   : > { %v1696_v38 = vpop.f32.mrf.mxu0 }
 0x1c0   : > { %v1697_v48 = vadd.f32 %v1696_v38, %v1335_v45 }
 0x1c1   : > { %v1698_v39 = vpop.f32.mrf.mxu0 }
 0x1c2   : > { %v1699_v17 = vadd.f32 %v1698_v39, %v1339_v44 }
 0x1c3   : > { %v1700_v41 = vpop.f32.mrf.mxu0 }
 0x1c4   : > { %v1701_v50 = vadd.f32 %v1700_v41, %v1335_v45 }
 0x1c5   : > { %v1702_v42 = vpop.f32.mrf.mxu0 }
 0x1c6   : > { %v1703_v54 = vadd.f32 %v1702_v42, %v1339_v44 }
 0x1c7   : > { %v1706_v12 = vpop.f32.mrf.mxu0 }
 0x1c8   : > { %v1707_v59 = vadd.f32 %v1706_v12, %v1335_v45 }
 0x1c9   : > { %v1708_v23 = vpop.f32.mrf.mxu0 }
 0x1ca   : > { %v1709_v58 = vadd.f32 %v1708_v23, %v1339_v44 }
 0x1cb   : > { %v1710_v55 = vpop.f32.mrf.mxu0 }
 0x1cc   : > { %v1711_v62 = vadd.f32 %v1710_v55, %v1335_v45 }
 0x1cd   : > { %v1712_v47 = vpop.f32.mrf.mxu0 }
 0x1ce   : > { %v1713_v53 = vadd.f32 %v1712_v47, %v1339_v44 }
 0x1df   : > { %v1749_v46 = vpop.f32.mrf.mxu1 }
 0x1e0   : > { %v1750_v2 = vadd.f32 %v1749_v46, %v1697_v48 }
 0x1e1   : > { %v1751_v49 = vpop.f32.mrf.mxu1 }
 0x1e2   : > { %v1752_v51 = vadd.f32 %v1751_v49, %v1699_v17  ;;  %v1776_v5 = vmul.f32 0.2, %v1750_v2  ;;  %vm1768_vm3 = vcmp.ge.f32.partialorder %v1750_v2, 0.0 }
 0x1e3   : > { %v1753_v52 = vpop.f32.mrf.mxu1 }
 0x1e4   : > { %v1754_v27 = vadd.f32 %v1753_v52, %v1701_v50  ;;  %v1777_v57 = vmul.f32 0.2, %v1752_v51  ;;  %vm1769_vm2 = vcmp.ge.f32.partialorder %v1752_v51, 0.0  ;;  %v1784_v3 = vsel %vm1768_vm3, %v1750_v2, %v1776_v5 }
 0x1e5   : > { %v1755_v56 = vpop.f32.mrf.mxu1 }
 0x1e6   : > { %vm1770_vm1 = vcmp.ge.f32.partialorder %v1754_v27, 0.0  ;;  %v1778_v11 = vmul.f32 0.2, %v1754_v27  ;;  %v1756_v40 = vadd.f32 %v1755_v56, %v1703_v54  ;;  %v1785_v0 = vsel %vm1769_vm2, %v1752_v51, %v1777_v57 }
 0x1e7   : > { %v1759_v10 = vpop.f32.mrf.mxu1 }
 0x1e8   : > { %vm1771_vm4 = vcmp.ge.f32.partialorder %v1756_v40, 0.0  ;;  %v1779_v33 = vmul.f32 0.2, %v1756_v40  ;;  %v1786_v60 = vsel %vm1770_vm1, %v1754_v27, %v1778_v11  ;;  %v1760_v4 = vadd.f32 %v1759_v10, %v1707_v59 }
 0x1e9   : > { %v1761_v61 = vpop.f32.mrf.mxu1  ;;  %v1792_v8 = vpack.c.bf16 %v1786_v60, %v1784_v3 }
 0x1ea   : > { %v1762_v63 = vadd.f32 %v1761_v61, %v1709_v58  ;;  %v1787_v1 = vsel %vm1771_vm4, %v1756_v40, %v1779_v33  ;;  %v1780_v18 = vmul.f32 0.2, %v1760_v4  ;;  %vm1772_vm7 = vcmp.ge.f32.partialorder %v1760_v4, 0.0 }
 0x1eb   : > { %v1763_v6 = vpop.f32.mrf.mxu1  ;;  %v1793_v7 = vpack.c.bf16 %v1787_v1, %v1785_v0 }
 0x1ec   : > { %v1764_v9 = vadd.f32 %v1763_v6, %v1711_v62  ;;  %v1781_v14 = vmul.f32 0.2, %v1762_v63  ;;  %vm1773_vm6 = vcmp.ge.f32.partialorder %v1762_v63, 0.0  ;;  %v1788_v25 = vsel %vm1772_vm7, %v1760_v4, %v1780_v18 }
 0x1ed   : > { %v1765_v13 = vpop.f32.mrf.mxu1  ;;  %1956 = vmatprep.mubr.bf16.mxu0 %v1793_v7 }
 0x1ee   : > { %vm1774_vm5 = vcmp.ge.f32.partialorder %v1764_v9, 0.0  ;;  %v1782_v15 = vmul.f32 0.2, %v1764_v9  ;;  %v1766_v16 = vadd.f32 %v1765_v13, %v1713_v53  ;;  %1957 = vmatmul.mubr.bf16.vlgmr.msra.gmra.mxu0 %v1792_v8  ;;  %v1789_v21 = vsel %vm1773_vm6, %v1762_v63, %v1781_v14 }
 0x1f0   : > { %vm1775_vm8 = vcmp.ge.f32.partialorder %v1766_v16, 0.0  ;;  %v1783_v19 = vmul.f32 0.2, %v1766_v16  ;;  %v1790_v20 = vsel %vm1774_vm5, %v1764_v9, %v1782_v15 }
 0x1f1   : > { %v1794_v26 = vpack.c.bf16 %v1790_v20, %v1788_v25 }
 0x1f2   : > { %v1791_v22 = vsel %vm1775_vm8, %v1766_v16, %v1783_v19 }
 0x1f3   : > { %v1795_v24 = vpack.c.bf16 %v1791_v22, %v1789_v21 }
 0x1f5   : > { %1964 = vmatprep.mubr.bf16.mxu0 %v1795_v24 }
 0x1f6   : > { %1965 = vmatmul.mubr.bf16.gmra.mxu0 %v1794_v26 }
 0x2ae   : > { %v2329_v28 = vpop.f32.mrf.mxu0 }
 0x2b0   : > { %v2330_v29 = vpop.f32.mrf.mxu0 }
 0x2b1   : > { %v2331_v32 = vadd.f32 %v2330_v29, %v2329_v28 }
 0x2b2   : > { %v2332_v30 = vpop.f32.mrf.mxu0 }
 0x2b4   : > { %v2333_v31 = vpop.f32.mrf.mxu0 }
 0x2b5   : > { %v2334_v34 = vadd.f32 %v2333_v31, %v2332_v30 }
 0x2b6   : > { %v2335_v35 = vpop.f32.mrf.mxu0 }
 0x2b7   : > { %v2305_v36 = vpack.c.bf16 %v2334_v34, %v2331_v32 }
 0x2b8   : > { %v2336_v37 = vpop.f32.mrf.mxu0 }
 0x2b9   : > { %2306 = vst [vmem:[%s486_s12] sm:$0xff] %v2305_v36   ;;  %v2337_v41 = vadd.f32 %v2336_v37, %v2335_v35 }
 0x2ba   : > { %v2338_v38 = vpop.f32.mrf.mxu0 }
 0x2bc   : > { %v2339_v39 = vpop.f32.mrf.mxu0 }
 0x2bd   : > { %v2340_v42 = vadd.f32 %v2339_v39, %v2338_v38 }
 0x2bf   : > { %v2310_v43 = vpack.c.bf16 %v2340_v42, %v2337_v41 }
 0x2c1   : > { %2312 = vst [vmem:[%s486_s12 + $0x8] sm:$0xff] %v2310_v43  }
 0x2c2 PF: > { %s20_s15 = sadd.s32 1, %s2578_s15   ;;  %s3175_s13 = smov %s2574_s14 }
 0x2c3   : > { %p17_p5 = scmp.ge.s32.totalorder %s20_s15, 4   ;;  %s3176_s14 = smov %s3178_s16 }
 0x2c5   :  { %19 = sbr.rel (!%p17_p5) target bundleno = 2 (0x2), region = 99 }

</bundles_post_ra>
